<compile_context>
chip_gen: v7x
topology: tpu7x:2x2x1
jax: 0.10.0
libtpu: 0.0.40
codegen_flags: <defaults>
</compile_context>

<pallas_src>
import jax
import jax.numpy as jnp
from jax.experimental import pallas as pl
from jax.experimental.pallas import tpu as pltpu


# ----------------------------------------------------------------------------
# Static geometry
# ----------------------------------------------------------------------------
def _layer_geometry(cfgs, D, H, W):
    """Per-layer static shapes (Python ints only) for a given input size."""
    layers = []
    for (cin, cout, (kd, kh, kw), (sd, sh, sw), (pd, ph, pw)) in cfgs:
        assert sd == 1 and sh == 2 and sw == 2, "kernel assumes stride (1,2,2)"
        assert kh == 4 and kw == 4 and ph == 1 and pw == 1, "kernel assumes k=4,pad=1 in H/W"
        assert H % 2 == 0 and W % 2 == 0
        layers.append(dict(
            cin=cin, cout=cout, kd=kd, pd=pd,
            Do=D + 2 * pd - kd + 1, Ho=H // 2, Wo=W // 2,
            Dp=D + 2 * pd, Hp2=H // 2 + 1, Wp2=W // 2 + 1))
        D, H, W = layers[-1]["Do"], layers[-1]["Ho"], layers[-1]["Wo"]
    for l in layers[:-1]:  # parity re-packing between layers needs even H/W outputs
        assert l["Ho"] % 2 == 0 and l["Wo"] % 2 == 0
    return layers


# ----------------------------------------------------------------------------
# Fused kernel: 4x (Conv3d + folded-BN + LeakyReLU) + AvgPool + Linear + Sigmoid
# ----------------------------------------------------------------------------
def _make_fused_kernel(layers, compute_dtype):
    n_layers = len(layers)

    def conv_layer(read_slab, w_ref, b_ref, L):
        """Sum of (M, 4*cin) @ (4*cin, cout) matmuls over (zd, qh, qw) groups."""
        Mb = L["Do"] * L["Ho"] * L["Wo"]
        acc = jnp.zeros((Mb, L["cout"]), jnp.float32)
        g = 0
        for zd in range(L["kd"]):
            for qh in range(2):
                for qw in range(2):
                    lhs = read_slab(zd, qh, qw)                 # (Mb, 4*cin)
                    acc = acc + jnp.dot(lhs, w_ref[g],
                                        preferred_element_type=jnp.float32)
                    g += 1
        y = acc + b_ref[...]                                    # folded BN bias
        return jnp.where(y >= 0.0, y, 0.2 * y)                  # LeakyReLU(0.2)

    def reader_from(x_ref, L, lead=None):
        Do, Ho, Wo, K = L["Do"], L["Ho"], L["Wo"], 4 * L["cin"]

        def read(zd, qh, qw):
            if lead is None:
                s = x_ref[zd:zd + Do, qh:qh + Ho, qw:qw + Wo, :]
            else:
                s = x_ref[lead, zd:zd + Do, qh:qh + Ho, qw:qw + Wo, :]
            return s.reshape(Do * Ho * Wo, K)
        return read

    def scatter_packed(y, L, Lnext, x_next_ref):
        """Write layer output into the next layer's padded, phase-packed buffer.

        Buffer layout: X[d, hq, wq, rh*2C + rw*C + c] = x_padded[d, 2hq+rh, 2wq+rw, c].
        The pad halo stays zero (buffer was zero-initialised).
        """
        Do, Ho, Wo, C = L["Do"], L["Ho"], L["Wo"], L["cout"]
        pdn = Lnext["pd"]
        yb = y.reshape(Do, Ho // 2, 2, Wo // 2, 2, C).astype(compute_dtype)
        for a in range(2):                       # parity of output h index
            rh, hq0 = (0, 1) if a == 1 else (1, 0)
            for b in range(2):                   # parity of output w index
                rw, wq0 = (0, 1) if b == 1 else (1, 0)
                lane0 = (rh * 2 + rw) * C
                x_next_ref[pdn:pdn + Do,
                           hq0:hq0 + Ho // 2,
                           wq0:wq0 + Wo // 2,
                           lane0:lane0 + C] = yb[:, :, a, :, b, :]

    def kernel(x1_ref, w1, b1, w2, b2, w3, b3, w4, b4, fcw_ref, fcb_ref,
               o_ref, x2_ref, x3_ref, x4_ref):
        w_refs = (w1, w2, w3, w4)
        b_refs = (b1, b2, b3, b4)
        act_refs = (None, x2_ref, x3_ref, x4_ref)

        # zero the padded inter-layer buffers (only the halo actually needs it)
        for r in act_refs[1:]:
            r[...] = jnp.zeros_like(r)

        y = None
        for li, L in enumerate(layers):
            if li == 0:
                read = reader_from(x1_ref, L, lead=0)
            else:
                read = reader_from(act_refs[li], L)
            y = conv_layer(read, w_refs[li], b_refs[li], L)     # (Mb, cout) f32
            if li + 1 < n_layers:
                scatter_packed(y, L, layers[li + 1], act_refs[li + 1])

        # AdaptiveAvgPool3d((1,1,1)) + Flatten + Linear(C->1) + Sigmoid
        pooled = jnp.mean(y, axis=0, keepdims=True)             # (1, C4) f32, exact
        logit = jnp.sum(pooled * fcw_ref[...], axis=1, keepdims=True) + fcb_ref[0, 0]
        o_ref[...] = jax.nn.sigmoid(logit).reshape(1, 1, 1)

    return kernel


# ----------------------------------------------------------------------------
# Model: init / pallas forward / pure-JAX reference
# ----------------------------------------------------------------------------
def build_discriminator(in_channels, base_channels, compute_dtype=jnp.bfloat16):
    cfgs = [
        (in_channels,       base_channels,     (3, 4, 4), (1, 2, 2), (1, 1, 1)),
        (base_channels,     base_channels * 2, (3, 4, 4), (1, 2, 2), (1, 1, 1)),
        (base_channels * 2, base_channels * 4, (1, 4, 4), (1, 2, 2), (0, 1, 1)),
        (base_channels * 4, base_channels * 8, (1, 4, 4), (1, 2, 2), (0, 1, 1)),
    ]
    eps = 1e-5

    def init(key):
        conv_w, conv_b, ref_convs = [], [], []
        for (cin, cout, (kd, kh, kw), _s, _p) in cfgs:
            key, k1, k2, k3, k4, k5 = jax.random.split(key, 6)
            # PyTorch Conv3d weight layout: (Cout, Cin, kd, kh, kw)
            w = 0.05 * jax.random.normal(k1, (cout, cin, kd, kh, kw), jnp.float32)
            gamma = 1.0 + 0.1 * jax.random.normal(k2, (cout,), jnp.float32)
            beta = 0.1 * jax.random.normal(k3, (cout,), jnp.float32)
            running_mean = 0.1 * jax.random.normal(k4, (cout,), jnp.float32)
            running_var = 1.0 + 0.1 * jnp.abs(jax.random.normal(k5, (cout,), jnp.float32))
            scale = gamma / jnp.sqrt(running_var + eps)
            bias = beta - running_mean * scale
            # Fold BN scale and repack to (groups, K, cout):
            #   group = (zd, qh, qw),  K-lane = rh*2*cin + rw*cin + ci
            wt = jnp.transpose(w, (2, 3, 4, 1, 0)) * scale[None, None, None, None, :]
            wt = wt.reshape(kd, kh // 2, 2, kw // 2, 2, cin, cout)   # zd,qh,rh,qw,rw,ci,co
            wt = jnp.transpose(wt, (0, 1, 3, 2, 4, 5, 6))            # zd,qh,qw,rh,rw,ci,co
            wt = wt.reshape(kd * (kh // 2) * (kw // 2), 4 * cin, cout)
            conv_w.append(wt.astype(compute_dtype))
            conv_b.append(bias[None, :].astype(jnp.float32))
            ref_convs.append(dict(w=w, scale=scale, bias=bias))
        key, kf, kb = jax.random.split(key, 3)
        cfin = cfgs[-1][1]
        fcw = 0.05 * jax.random.normal(kf, (1, cfin), jnp.float32)   # torch Linear (1, C)
        fcb = 0.05 * jax.random.normal(kb, (1, 1), jnp.float32)
        params = dict(conv_w=conv_w, conv_b=conv_b, fc_w=fcw, fc_b=fcb)
        ref_params = dict(convs=ref_convs, fc_w=fcw, fc_b=fcb)
        return params, ref_params

    def forward(x_ncdhw, params):
        N, Cin, D, H, W = x_ncdhw.shape
        assert Cin == cfgs[0][0]
        layers = _layer_geometry(cfgs, D, H, W)
        L0 = layers[0]

        # Input prep (plain JAX, input-only, 1x data): NCDHW -> padded,
        # phase-packed layout X[d, hq, wq, rh*2C + rw*C + c].
        a = jnp.transpose(x_ncdhw, (0, 2, 3, 4, 1)).astype(compute_dtype)
        pd0 = L0["pd"]
        a = jnp.pad(a, ((0, 0), (pd0, pd0), (1, 1), (1, 1), (0, 0)))
        a = a.reshape(N, L0["Dp"], L0["Hp2"], 2, L0["Wp2"], 2, Cin)
        a = jnp.transpose(a, (0, 1, 2, 4, 3, 5, 6))
        x1 = a.reshape(N, L0["Dp"], L0["Hp2"], L0["Wp2"], 4 * Cin)

        kernel = _make_fused_kernel(layers, compute_dtype)

        in_specs = [pl.BlockSpec((1,) + x1.shape[1:], lambda i: (i, 0, 0, 0, 0))]
        ops = [x1]
        for li in range(len(cfgs)):
            wl, bl = params["conv_w"][li], params["conv_b"][li]
            in_specs.append(pl.BlockSpec(wl.shape, lambda i: (0, 0, 0)))
            ops.append(wl)
            in_specs.append(pl.BlockSpec(bl.shape, lambda i: (0, 0)))
            ops.append(bl)
        in_specs.append(pl.BlockSpec(params["fc_w"].shape, lambda i: (0, 0)))
        ops.append(params["fc_w"])
        in_specs.append(pl.BlockSpec(memory_space=pltpu.MemorySpace.SMEM))
        ops.append(params["fc_b"])

        scratch = [pltpu.VMEM((l["Dp"], l["Hp2"], l["Wp2"], 4 * l["cin"]), compute_dtype)
                   for l in layers[1:]]

        out = pl.pallas_call(
            kernel,
            out_shape=jax.ShapeDtypeStruct((N, 1, 1), jnp.float32),
            grid=(N,),
            in_specs=in_specs,
            out_specs=pl.BlockSpec((1, 1, 1), lambda i: (i, 0, 0)),
            scratch_shapes=scratch,
            compiler_params=pltpu.CompilerParams(
                dimension_semantics=("parallel",)),
        )(*ops)
        return out.reshape(N, 1)

    def reference(x_ncdhw, ref_params):
        """Pure-JAX/XLA f32 reference."""
        y = x_ncdhw.astype(jnp.float32)
        for layer, (_ci, _co, _k, s, p) in zip(ref_params["convs"], cfgs):
            y = jax.lax.conv_general_dilated(
                y, layer["w"], window_strides=s, padding=[(pp, pp) for pp in p],
                dimension_numbers=("NCDHW", "OIDHW", "NCDHW"))
            sc = layer["scale"][None, :, None, None, None]
            bi = layer["bias"][None, :, None, None, None]
            y = sc * y + bi
            y = jnp.where(y >= 0.0, y, 0.2 * y)
        pooled = jnp.mean(y, axis=(2, 3, 4))                        # (N, C)
        logit = pooled @ ref_params["fc_w"].T + ref_params["fc_b"]  # (N, 1)
        return jax.nn.sigmoid(logit)

    return init, forward, reference


if __name__ == "__main__":
    # Small but structurally faithful config: in_channels=16, base_channels=16
    # -> final channel count 128; input NCDHW (2, 16, 4, 16, 16).
    in_channels, base_channels = 16, 16
    key = jax.random.PRNGKey(0)
    kp, kx = jax.random.split(key)
    x = jax.random.normal(kx, (2, in_channels, 4, 16, 16), jnp.float32)

    # f32 compute path: tight check that the tap/phase packing is exact.
    init32, fwd32, ref_fn = build_discriminator(in_channels, base_channels,
                                                compute_dtype=jnp.float32)
    params32, ref_params = init32(kp)
    pred32 = jax.block_until_ready(jax.jit(fwd32)(x, params32))
    ref = ref_fn(x, ref_params)
    assert pred32.shape == (2, 1) and pred32.dtype == jnp.float32
    assert bool(jnp.max(jnp.abs(pred32 - ref)) < 1e-2), (pred32, ref)

    # bf16 fast path (MXU-native operands, f32 accumulation).
    init16, fwd16, _ = build_discriminator(in_channels, base_channels,
                                           compute_dtype=jnp.bfloat16)
    params16, _ = init16(kp)
    pred16 = jax.block_until_ready(jax.jit(fwd16)(x, params16))
    assert pred16.shape == (2, 1) and pred16.dtype == jnp.float32
    assert bool(jnp.all((pred16 >= 0.0) & (pred16 <= 1.0)))
    assert bool(jnp.max(jnp.abs(pred16 - ref)) < 0.05), (pred16, ref)

    print("KERNEL_OK")
</pallas_src>

<mosaic_0001>
module attributes {stable_mosaic.version = 11 : i64} {
  func.func @kernel(%arg0: i32, %arg1: memref<1x6x9x9x64xf32, #tpu.memory_space<vmem>>, %arg2: memref<12x64x16xf32, #tpu.memory_space<vmem>>, %arg3: memref<1x16xf32, #tpu.memory_space<vmem>>, %arg4: memref<12x64x32xf32, #tpu.memory_space<vmem>>, %arg5: memref<1x32xf32, #tpu.memory_space<vmem>>, %arg6: memref<4x128x64xf32, #tpu.memory_space<vmem>>, %arg7: memref<1x64xf32, #tpu.memory_space<vmem>>, %arg8: memref<4x256x128xf32, #tpu.memory_space<vmem>>, %arg9: memref<1x128xf32, #tpu.memory_space<vmem>>, %arg10: memref<1x128xf32, #tpu.memory_space<vmem>>, %arg11: memref<1x1xf32, #tpu.memory_space<smem>>, %arg12: memref<1x1x1xf32, #tpu.memory_space<vmem>>, %arg13: memref<6x5x5x64xf32, #tpu.memory_space<vmem>>, %arg14: memref<4x3x3x128xf32, #tpu.memory_space<vmem>>, %arg15: memref<4x2x2x256xf32, #tpu.memory_space<vmem>>) attributes {dimension_semantics = [#tpu.dimension_semantics<parallel>], iteration_bounds = array<i64: 2>, scalar_prefetch = 0 : i64, scratch_operands = 3 : i64, tpu.core_type = #tpu.core_type<tc>, window_params = [{transform_indices = @transform_0, window_bounds = array<i64: 1, 6, 9, 9, 64>}, {pipeline_mode = #tpu.pipeline_mode<synchronous>, transform_indices = @transform_1, window_bounds = array<i64: 12, 64, 16>}, {pipeline_mode = #tpu.pipeline_mode<synchronous>, transform_indices = @transform_2, window_bounds = array<i64: 1, 16>}, {pipeline_mode = #tpu.pipeline_mode<synchronous>, transform_indices = @transform_3, window_bounds = array<i64: 12, 64, 32>}, {pipeline_mode = #tpu.pipeline_mode<synchronous>, transform_indices = @transform_4, window_bounds = array<i64: 1, 32>}, {pipeline_mode = #tpu.pipeline_mode<synchronous>, transform_indices = @transform_5, window_bounds = array<i64: 4, 128, 64>}, {pipeline_mode = #tpu.pipeline_mode<synchronous>, transform_indices = @transform_6, window_bounds = array<i64: 1, 64>}, {pipeline_mode = #tpu.pipeline_mode<synchronous>, transform_indices = @transform_7, window_bounds = array<i64: 4, 256, 128>}, {pipeline_mode = #tpu.pipeline_mode<synchronous>, transform_indices = @transform_8, window_bounds = array<i64: 1, 128>}, {pipeline_mode = #tpu.pipeline_mode<synchronous>, transform_indices = @transform_9, window_bounds = array<i64: 1, 128>}, {transform_indices = @transform_10, window_bounds = array<i64: 1, 1>}, {transform_indices = @transform_11, window_bounds = array<i64: 1, 1, 1>}]} {
    %cst = arith.constant 0.000000e+00 : f32
    %0 = vector.broadcast %cst : f32 to vector<6x5x5x64xf32>
    %c0 = arith.constant 0 : index
    %c0_0 = arith.constant 0 : index
    %c0_1 = arith.constant 0 : index
    %c0_2 = arith.constant 0 : index
    %1 = vector.load %arg13[%c0, %c0_0, %c0_1, %c0_2] : memref<6x5x5x64xf32, #tpu.memory_space<vmem>>, vector<6x5x5x64xf32>
    tpu.vector_store %arg13[%c0, %c0_0, %c0_1, %c0_2], %0 {strides = array<i32>} : memref<6x5x5x64xf32, #tpu.memory_space<vmem>>, vector<6x5x5x64xf32>,
    %cst_3 = arith.constant 0.000000e+00 : f32
    %2 = vector.broadcast %cst_3 : f32 to vector<4x3x3x128xf32>
    %c0_4 = arith.constant 0 : index
    %c0_5 = arith.constant 0 : index
    %c0_6 = arith.constant 0 : index
    %c0_7 = arith.constant 0 : index
    %3 = vector.load %arg14[%c0_4, %c0_5, %c0_6, %c0_7] : memref<4x3x3x128xf32, #tpu.memory_space<vmem>>, vector<4x3x3x128xf32>
    tpu.vector_store %arg14[%c0_4, %c0_5, %c0_6, %c0_7], %2 {strides = array<i32>} : memref<4x3x3x128xf32, #tpu.memory_space<vmem>>, vector<4x3x3x128xf32>,
    %cst_8 = arith.constant 0.000000e+00 : f32
    %4 = vector.broadcast %cst_8 : f32 to vector<4x2x2x256xf32>
    %c0_9 = arith.constant 0 : index
    %c0_10 = arith.constant 0 : index
    %c0_11 = arith.constant 0 : index
    %c0_12 = arith.constant 0 : index
    %5 = vector.load %arg15[%c0_9, %c0_10, %c0_11, %c0_12] : memref<4x2x2x256xf32, #tpu.memory_space<vmem>>, vector<4x2x2x256xf32>
    tpu.vector_store %arg15[%c0_9, %c0_10, %c0_11, %c0_12], %4 {strides = array<i32>} : memref<4x2x2x256xf32, #tpu.memory_space<vmem>>, vector<4x2x2x256xf32>,
    %cst_13 = arith.constant 0.000000e+00 : f32
    %6 = vector.broadcast %cst_13 : f32 to vector<256x16xf32>
    %c0_14 = arith.constant 0 : index
    %c0_15 = arith.constant 0 : index
    %c0_16 = arith.constant 0 : index
    %c0_17 = arith.constant 0 : index
    %c0_18 = arith.constant 0 : index
    %7 = vector.load %arg1[%c0_14, %c0_15, %c0_16, %c0_17, %c0_18] : memref<1x6x9x9x64xf32, #tpu.memory_space<vmem>>, vector<1x4x8x8x64xf32>
    %8 = vector.shape_cast %7 : vector<1x4x8x8x64xf32> to vector<4x8x8x64xf32>
    %9 = vector.shape_cast %8 : vector<4x8x8x64xf32> to vector<256x64xf32>
    %c0_19 = arith.constant 0 : index
    %c0_20 = arith.constant 0 : index
    %c0_21 = arith.constant 0 : index
    %10 = vector.load %arg2[%c0_19, %c0_20, %c0_21] : memref<12x64x16xf32, #tpu.memory_space<vmem>>, vector<1x64x16xf32>
    %11 = vector.shape_cast %10 : vector<1x64x16xf32> to vector<64x16xf32>
    %cst_22 = arith.constant dense<0.000000e+00> : vector<256x16xf32>
    %12 = tpu.matmul %9, %11, %cst_22 {dimension_numbers = #tpu.dot_dimension_numbers<[1], [0], [0], [1], [0, 0, 1, 1], [], []>} : vector<256x64xf32>, vector<64x16xf32>, vector<256x16xf32> -> vector<256x16xf32>
    %13 = arith.addf %6, %12 : vector<256x16xf32>
    %c0_23 = arith.constant 0 : index
    %c0_24 = arith.constant 0 : index
    %c0_25 = arith.constant 0 : index
    %c1 = arith.constant 1 : index
    %c0_26 = arith.constant 0 : index
    %14 = vector.load %arg1[%c0_23, %c0_24, %c0_25, %c1, %c0_26] : memref<1x6x9x9x64xf32, #tpu.memory_space<vmem>>, vector<1x4x8x8x64xf32>
    %15 = vector.shape_cast %14 : vector<1x4x8x8x64xf32> to vector<4x8x8x64xf32>
    %16 = vector.shape_cast %15 : vector<4x8x8x64xf32> to vector<256x64xf32>
    %c1_27 = arith.constant 1 : index
    %c0_28 = arith.constant 0 : index
    %c0_29 = arith.constant 0 : index
    %17 = vector.load %arg2[%c1_27, %c0_28, %c0_29] : memref<12x64x16xf32, #tpu.memory_space<vmem>>, vector<1x64x16xf32>
    %18 = vector.shape_cast %17 : vector<1x64x16xf32> to vector<64x16xf32>
    %cst_30 = arith.constant dense<0.000000e+00> : vector<256x16xf32>
    %19 = tpu.matmul %16, %18, %cst_30 {dimension_numbers = #tpu.dot_dimension_numbers<[1], [0], [0], [1], [0, 0, 1, 1], [], []>} : vector<256x64xf32>, vector<64x16xf32>, vector<256x16xf32> -> vector<256x16xf32>
    %20 = arith.addf %13, %19 : vector<256x16xf32>
    %c0_31 = arith.constant 0 : index
    %c0_32 = arith.constant 0 : index
    %c1_33 = arith.constant 1 : index
    %c0_34 = arith.constant 0 : index
    %c0_35 = arith.constant 0 : index
    %21 = vector.load %arg1[%c0_31, %c0_32, %c1_33, %c0_34, %c0_35] : memref<1x6x9x9x64xf32, #tpu.memory_space<vmem>>, vector<1x4x8x8x64xf32>
    %22 = vector.shape_cast %21 : vector<1x4x8x8x64xf32> to vector<4x8x8x64xf32>
    %23 = vector.shape_cast %22 : vector<4x8x8x64xf32> to vector<256x64xf32>
    %c2 = arith.constant 2 : index
    %c0_36 = arith.constant 0 : index
    %c0_37 = arith.constant 0 : index
    %24 = vector.load %arg2[%c2, %c0_36, %c0_37] : memref<12x64x16xf32, #tpu.memory_space<vmem>>, vector<1x64x16xf32>
    %25 = vector.shape_cast %24 : vector<1x64x16xf32> to vector<64x16xf32>
    %cst_38 = arith.constant dense<0.000000e+00> : vector<256x16xf32>
    %26 = tpu.matmul %23, %25, %cst_38 {dimension_numbers = #tpu.dot_dimension_numbers<[1], [0], [0], [1], [0, 0, 1, 1], [], []>} : vector<256x64xf32>, vector<64x16xf32>, vector<256x16xf32> -> vector<256x16xf32>
    %27 = arith.addf %20, %26 : vector<256x16xf32>
    %c0_39 = arith.constant 0 : index
    %c0_40 = arith.constant 0 : index
    %c1_41 = arith.constant 1 : index
    %c1_42 = arith.constant 1 : index
    %c0_43 = arith.constant 0 : index
    %28 = vector.load %arg1[%c0_39, %c0_40, %c1_41, %c1_42, %c0_43] : memref<1x6x9x9x64xf32, #tpu.memory_space<vmem>>, vector<1x4x8x8x64xf32>
    %29 = vector.shape_cast %28 : vector<1x4x8x8x64xf32> to vector<4x8x8x64xf32>
    %30 = vector.shape_cast %29 : vector<4x8x8x64xf32> to vector<256x64xf32>
    %c3 = arith.constant 3 : index
    %c0_44 = arith.constant 0 : index
    %c0_45 = arith.constant 0 : index
    %31 = vector.load %arg2[%c3, %c0_44, %c0_45] : memref<12x64x16xf32, #tpu.memory_space<vmem>>, vector<1x64x16xf32>
    %32 = vector.shape_cast %31 : vector<1x64x16xf32> to vector<64x16xf32>
    %cst_46 = arith.constant dense<0.000000e+00> : vector<256x16xf32>
    %33 = tpu.matmul %30, %32, %cst_46 {dimension_numbers = #tpu.dot_dimension_numbers<[1], [0], [0], [1], [0, 0, 1, 1], [], []>} : vector<256x64xf32>, vector<64x16xf32>, vector<256x16xf32> -> vector<256x16xf32>
    %34 = arith.addf %27, %33 : vector<256x16xf32>
    %c0_47 = arith.constant 0 : index
    %c1_48 = arith.constant 1 : index
    %c0_49 = arith.constant 0 : index
    %c0_50 = arith.constant 0 : index
    %c0_51 = arith.constant 0 : index
    %35 = vector.load %arg1[%c0_47, %c1_48, %c0_49, %c0_50, %c0_51] : memref<1x6x9x9x64xf32, #tpu.memory_space<vmem>>, vector<1x4x8x8x64xf32>
    %36 = vector.shape_cast %35 : vector<1x4x8x8x64xf32> to vector<4x8x8x64xf32>
    %37 = vector.shape_cast %36 : vector<4x8x8x64xf32> to vector<256x64xf32>
    %c4 = arith.constant 4 : index
    %c0_52 = arith.constant 0 : index
    %c0_53 = arith.constant 0 : index
    %38 = vector.load %arg2[%c4, %c0_52, %c0_53] : memref<12x64x16xf32, #tpu.memory_space<vmem>>, vector<1x64x16xf32>
    %39 = vector.shape_cast %38 : vector<1x64x16xf32> to vector<64x16xf32>
    %cst_54 = arith.constant dense<0.000000e+00> : vector<256x16xf32>
    %40 = tpu.matmul %37, %39, %cst_54 {dimension_numbers = #tpu.dot_dimension_numbers<[1], [0], [0], [1], [0, 0, 1, 1], [], []>} : vector<256x64xf32>, vector<64x16xf32>, vector<256x16xf32> -> vector<256x16xf32>
    %41 = arith.addf %34, %40 : vector<256x16xf32>
    %c0_55 = arith.constant 0 : index
    %c1_56 = arith.constant 1 : index
    %c0_57 = arith.constant 0 : index
    %c1_58 = arith.constant 1 : index
    %c0_59 = arith.constant 0 : index
    %42 = vector.load %arg1[%c0_55, %c1_56, %c0_57, %c1_58, %c0_59] : memref<1x6x9x9x64xf32, #tpu.memory_space<vmem>>, vector<1x4x8x8x64xf32>
    %43 = vector.shape_cast %42 : vector<1x4x8x8x64xf32> to vector<4x8x8x64xf32>
    %44 = vector.shape_cast %43 : vector<4x8x8x64xf32> to vector<256x64xf32>
    %c5 = arith.constant 5 : index
    %c0_60 = arith.constant 0 : index
    %c0_61 = arith.constant 0 : index
    %45 = vector.load %arg2[%c5, %c0_60, %c0_61] : memref<12x64x16xf32, #tpu.memory_space<vmem>>, vector<1x64x16xf32>
    %46 = vector.shape_cast %45 : vector<1x64x16xf32> to vector<64x16xf32>
    %cst_62 = arith.constant dense<0.000000e+00> : vector<256x16xf32>
    %47 = tpu.matmul %44, %46, %cst_62 {dimension_numbers = #tpu.dot_dimension_numbers<[1], [0], [0], [1], [0, 0, 1, 1], [], []>} : vector<256x64xf32>, vector<64x16xf32>, vector<256x16xf32> -> vector<256x16xf32>
    %48 = arith.addf %41, %47 : vector<256x16xf32>
    %c0_63 = arith.constant 0 : index
    %c1_64 = arith.constant 1 : index
    %c1_65 = arith.constant 1 : index
    %c0_66 = arith.constant 0 : index
    %c0_67 = arith.constant 0 : index
    %49 = vector.load %arg1[%c0_63, %c1_64, %c1_65, %c0_66, %c0_67] : memref<1x6x9x9x64xf32, #tpu.memory_space<vmem>>, vector<1x4x8x8x64xf32>
    %50 = vector.shape_cast %49 : vector<1x4x8x8x64xf32> to vector<4x8x8x64xf32>
    %51 = vector.shape_cast %50 : vector<4x8x8x64xf32> to vector<256x64xf32>
    %c6 = arith.constant 6 : index
    %c0_68 = arith.constant 0 : index
    %c0_69 = arith.constant 0 : index
    %52 = vector.load %arg2[%c6, %c0_68, %c0_69] : memref<12x64x16xf32, #tpu.memory_space<vmem>>, vector<1x64x16xf32>
    %53 = vector.shape_cast %52 : vector<1x64x16xf32> to vector<64x16xf32>
    %cst_70 = arith.constant dense<0.000000e+00> : vector<256x16xf32>
    %54 = tpu.matmul %51, %53, %cst_70 {dimension_numbers = #tpu.dot_dimension_numbers<[1], [0], [0], [1], [0, 0, 1, 1], [], []>} : vector<256x64xf32>, vector<64x16xf32>, vector<256x16xf32> -> vector<256x16xf32>
    %55 = arith.addf %48, %54 : vector<256x16xf32>
    %c0_71 = arith.constant 0 : index
    %c1_72 = arith.constant 1 : index
    %c1_73 = arith.constant 1 : index
    %c1_74 = arith.constant 1 : index
    %c0_75 = arith.constant 0 : index
    %56 = vector.load %arg1[%c0_71, %c1_72, %c1_73, %c1_74, %c0_75] : memref<1x6x9x9x64xf32, #tpu.memory_space<vmem>>, vector<1x4x8x8x64xf32>
    %57 = vector.shape_cast %56 : vector<1x4x8x8x64xf32> to vector<4x8x8x64xf32>
    %58 = vector.shape_cast %57 : vector<4x8x8x64xf32> to vector<256x64xf32>
    %c7 = arith.constant 7 : index
    %c0_76 = arith.constant 0 : index
    %c0_77 = arith.constant 0 : index
    %59 = vector.load %arg2[%c7, %c0_76, %c0_77] : memref<12x64x16xf32, #tpu.memory_space<vmem>>, vector<1x64x16xf32>
    %60 = vector.shape_cast %59 : vector<1x64x16xf32> to vector<64x16xf32>
    %cst_78 = arith.constant dense<0.000000e+00> : vector<256x16xf32>
    %61 = tpu.matmul %58, %60, %cst_78 {dimension_numbers = #tpu.dot_dimension_numbers<[1], [0], [0], [1], [0, 0, 1, 1], [], []>} : vector<256x64xf32>, vector<64x16xf32>, vector<256x16xf32> -> vector<256x16xf32>
    %62 = arith.addf %55, %61 : vector<256x16xf32>
    %c0_79 = arith.constant 0 : index
    %c2_80 = arith.constant 2 : index
    %c0_81 = arith.constant 0 : index
    %c0_82 = arith.constant 0 : index
    %c0_83 = arith.constant 0 : index
    %63 = vector.load %arg1[%c0_79, %c2_80, %c0_81, %c0_82, %c0_83] : memref<1x6x9x9x64xf32, #tpu.memory_space<vmem>>, vector<1x4x8x8x64xf32>
    %64 = vector.shape_cast %63 : vector<1x4x8x8x64xf32> to vector<4x8x8x64xf32>
    %65 = vector.shape_cast %64 : vector<4x8x8x64xf32> to vector<256x64xf32>
    %c8 = arith.constant 8 : index
    %c0_84 = arith.constant 0 : index
    %c0_85 = arith.constant 0 : index
    %66 = vector.load %arg2[%c8, %c0_84, %c0_85] : memref<12x64x16xf32, #tpu.memory_space<vmem>>, vector<1x64x16xf32>
    %67 = vector.shape_cast %66 : vector<1x64x16xf32> to vector<64x16xf32>
    %cst_86 = arith.constant dense<0.000000e+00> : vector<256x16xf32>
    %68 = tpu.matmul %65, %67, %cst_86 {dimension_numbers = #tpu.dot_dimension_numbers<[1], [0], [0], [1], [0, 0, 1, 1], [], []>} : vector<256x64xf32>, vector<64x16xf32>, vector<256x16xf32> -> vector<256x16xf32>
    %69 = arith.addf %62, %68 : vector<256x16xf32>
    %c0_87 = arith.constant 0 : index
    %c2_88 = arith.constant 2 : index
    %c0_89 = arith.constant 0 : index
    %c1_90 = arith.constant 1 : index
    %c0_91 = arith.constant 0 : index
    %70 = vector.load %arg1[%c0_87, %c2_88, %c0_89, %c1_90, %c0_91] : memref<1x6x9x9x64xf32, #tpu.memory_space<vmem>>, vector<1x4x8x8x64xf32>
    %71 = vector.shape_cast %70 : vector<1x4x8x8x64xf32> to vector<4x8x8x64xf32>
    %72 = vector.shape_cast %71 : vector<4x8x8x64xf32> to vector<256x64xf32>
    %c9 = arith.constant 9 : index
    %c0_92 = arith.constant 0 : index
    %c0_93 = arith.constant 0 : index
    %73 = vector.load %arg2[%c9, %c0_92, %c0_93] : memref<12x64x16xf32, #tpu.memory_space<vmem>>, vector<1x64x16xf32>
    %74 = vector.shape_cast %73 : vector<1x64x16xf32> to vector<64x16xf32>
    %cst_94 = arith.constant dense<0.000000e+00> : vector<256x16xf32>
    %75 = tpu.matmul %72, %74, %cst_94 {dimension_numbers = #tpu.dot_dimension_numbers<[1], [0], [0], [1], [0, 0, 1, 1], [], []>} : vector<256x64xf32>, vector<64x16xf32>, vector<256x16xf32> -> vector<256x16xf32>
    %76 = arith.addf %69, %75 : vector<256x16xf32>
    %c0_95 = arith.constant 0 : index
    %c2_96 = arith.constant 2 : index
    %c1_97 = arith.constant 1 : index
    %c0_98 = arith.constant 0 : index
    %c0_99 = arith.constant 0 : index
    %77 = vector.load %arg1[%c0_95, %c2_96, %c1_97, %c0_98, %c0_99] : memref<1x6x9x9x64xf32, #tpu.memory_space<vmem>>, vector<1x4x8x8x64xf32>
    %78 = vector.shape_cast %77 : vector<1x4x8x8x64xf32> to vector<4x8x8x64xf32>
    %79 = vector.shape_cast %78 : vector<4x8x8x64xf32> to vector<256x64xf32>
    %c10 = arith.constant 10 : index
    %c0_100 = arith.constant 0 : index
    %c0_101 = arith.constant 0 : index
    %80 = vector.load %arg2[%c10, %c0_100, %c0_101] : memref<12x64x16xf32, #tpu.memory_space<vmem>>, vector<1x64x16xf32>
    %81 = vector.shape_cast %80 : vector<1x64x16xf32> to vector<64x16xf32>
    %cst_102 = arith.constant dense<0.000000e+00> : vector<256x16xf32>
    %82 = tpu.matmul %79, %81, %cst_102 {dimension_numbers = #tpu.dot_dimension_numbers<[1], [0], [0], [1], [0, 0, 1, 1], [], []>} : vector<256x64xf32>, vector<64x16xf32>, vector<256x16xf32> -> vector<256x16xf32>
    %83 = arith.addf %76, %82 : vector<256x16xf32>
    %c0_103 = arith.constant 0 : index
    %c2_104 = arith.constant 2 : index
    %c1_105 = arith.constant 1 : index
    %c1_106 = arith.constant 1 : index
    %c0_107 = arith.constant 0 : index
    %84 = vector.load %arg1[%c0_103, %c2_104, %c1_105, %c1_106, %c0_107] : memref<1x6x9x9x64xf32, #tpu.memory_space<vmem>>, vector<1x4x8x8x64xf32>
    %85 = vector.shape_cast %84 : vector<1x4x8x8x64xf32> to vector<4x8x8x64xf32>
    %86 = vector.shape_cast %85 : vector<4x8x8x64xf32> to vector<256x64xf32>
    %c11 = arith.constant 11 : index
    %c0_108 = arith.constant 0 : index
    %c0_109 = arith.constant 0 : index
    %87 = vector.load %arg2[%c11, %c0_108, %c0_109] : memref<12x64x16xf32, #tpu.memory_space<vmem>>, vector<1x64x16xf32>
    %88 = vector.shape_cast %87 : vector<1x64x16xf32> to vector<64x16xf32>
    %cst_110 = arith.constant dense<0.000000e+00> : vector<256x16xf32>
    %89 = tpu.matmul %86, %88, %cst_110 {dimension_numbers = #tpu.dot_dimension_numbers<[1], [0], [0], [1], [0, 0, 1, 1], [], []>} : vector<256x64xf32>, vector<64x16xf32>, vector<256x16xf32> -> vector<256x16xf32>
    %90 = arith.addf %83, %89 : vector<256x16xf32>
    %c0_111 = arith.constant 0 : index
    %c0_112 = arith.constant 0 : index
    %91 = vector.load %arg3[%c0_111, %c0_112] : memref<1x16xf32, #tpu.memory_space<vmem>>, vector<1x16xf32>
    %92 = vector.broadcast %91 : vector<1x16xf32> to vector<256x16xf32>
    %93 = arith.addf %90, %92 : vector<256x16xf32>
    %cst_113 = arith.constant 0.000000e+00 : f32
    %94 = vector.broadcast %cst_113 : f32 to vector<256x16xf32>
    %95 = arith.cmpf oge, %93, %94 : vector<256x16xf32>
    %cst_114 = arith.constant 2.000000e-01 : f32
    %96 = vector.broadcast %cst_114 : f32 to vector<256x16xf32>
    %97 = arith.mulf %96, %93 : vector<256x16xf32>
    %98 = arith.select %95, %93, %97 : vector<256x16xi1>, vector<256x16xf32>
    %99 = vector.shape_cast %98 : vector<256x16xf32> to vector<4x4x2x4x2x16xf32>
    %100 = vector.extract_strided_slice %99 {offsets = [0, 0, 0, 0, 0, 0], sizes = [4, 4, 1, 4, 1, 16], strides = [1, 1, 1, 1, 1, 1]} : vector<4x4x2x4x2x16xf32> to vector<4x4x1x4x1x16xf32>
    %101 = vector.shape_cast %100 : vector<4x4x1x4x1x16xf32> to vector<4x4x4x16xf32>
    %c1_115 = arith.constant 1 : index
    %c0_116 = arith.constant 0 : index
    %c0_117 = arith.constant 0 : index
    %c48 = arith.constant 48 : index
    %102 = vector.load %arg13[%c1_115, %c0_116, %c0_117, %c48] : memref<6x5x5x64xf32, #tpu.memory_space<vmem>>, vector<4x4x4x16xf32>
    tpu.vector_store %arg13[%c1_115, %c0_116, %c0_117, %c48], %101 {strides = array<i32>} : memref<6x5x5x64xf32, #tpu.memory_space<vmem>>, vector<4x4x4x16xf32>,
    %103 = vector.extract_strided_slice %99 {offsets = [0, 0, 0, 0, 1, 0], sizes = [4, 4, 1, 4, 1, 16], strides = [1, 1, 1, 1, 1, 1]} : vector<4x4x2x4x2x16xf32> to vector<4x4x1x4x1x16xf32>
    %104 = vector.shape_cast %103 : vector<4x4x1x4x1x16xf32> to vector<4x4x4x16xf32>
    %c1_118 = arith.constant 1 : index
    %c0_119 = arith.constant 0 : index
    %c1_120 = arith.constant 1 : index
    %c32 = arith.constant 32 : index
    %105 = vector.load %arg13[%c1_118, %c0_119, %c1_120, %c32] : memref<6x5x5x64xf32, #tpu.memory_space<vmem>>, vector<4x4x4x16xf32>
    tpu.vector_store %arg13[%c1_118, %c0_119, %c1_120, %c32], %104 {strides = array<i32>} : memref<6x5x5x64xf32, #tpu.memory_space<vmem>>, vector<4x4x4x16xf32>,
    %106 = vector.extract_strided_slice %99 {offsets = [0, 0, 1, 0, 0, 0], sizes = [4, 4, 1, 4, 1, 16], strides = [1, 1, 1, 1, 1, 1]} : vector<4x4x2x4x2x16xf32> to vector<4x4x1x4x1x16xf32>
    %107 = vector.shape_cast %106 : vector<4x4x1x4x1x16xf32> to vector<4x4x4x16xf32>
    %c1_121 = arith.constant 1 : index
    %c1_122 = arith.constant 1 : index
    %c0_123 = arith.constant 0 : index
    %c16 = arith.constant 16 : index
    %108 = vector.load %arg13[%c1_121, %c1_122, %c0_123, %c16] : memref<6x5x5x64xf32, #tpu.memory_space<vmem>>, vector<4x4x4x16xf32>
    tpu.vector_store %arg13[%c1_121, %c1_122, %c0_123, %c16], %107 {strides = array<i32>} : memref<6x5x5x64xf32, #tpu.memory_space<vmem>>, vector<4x4x4x16xf32>,
    %109 = vector.extract_strided_slice %99 {offsets = [0, 0, 1, 0, 1, 0], sizes = [4, 4, 1, 4, 1, 16], strides = [1, 1, 1, 1, 1, 1]} : vector<4x4x2x4x2x16xf32> to vector<4x4x1x4x1x16xf32>
    %110 = vector.shape_cast %109 : vector<4x4x1x4x1x16xf32> to vector<4x4x4x16xf32>
    %c1_124 = arith.constant 1 : index
    %c1_125 = arith.constant 1 : index
    %c1_126 = arith.constant 1 : index
    %c0_127 = arith.constant 0 : index
    %111 = vector.load %arg13[%c1_124, %c1_125, %c1_126, %c0_127] : memref<6x5x5x64xf32, #tpu.memory_space<vmem>>, vector<4x4x4x16xf32>
    tpu.vector_store %arg13[%c1_124, %c1_125, %c1_126, %c0_127], %110 {strides = array<i32>} : memref<6x5x5x64xf32, #tpu.memory_space<vmem>>, vector<4x4x4x16xf32>,
    %cst_128 = arith.constant 0.000000e+00 : f32
    %112 = vector.broadcast %cst_128 : f32 to vector<64x32xf32>
    %c0_129 = arith.constant 0 : index
    %c0_130 = arith.constant 0 : index
    %c0_131 = arith.constant 0 : index
    %c0_132 = arith.constant 0 : index
    %113 = vector.load %arg13[%c0_129, %c0_130, %c0_131, %c0_132] : memref<6x5x5x64xf32, #tpu.memory_space<vmem>>, vector<4x4x4x64xf32>
    %114 = vector.shape_cast %113 : vector<4x4x4x64xf32> to vector<64x64xf32>
    %c0_133 = arith.constant 0 : index
    %c0_134 = arith.constant 0 : index
    %c0_135 = arith.constant 0 : index
    %115 = vector.load %arg4[%c0_133, %c0_134, %c0_135] : memref<12x64x32xf32, #tpu.memory_space<vmem>>, vector<1x64x32xf32>
    %116 = vector.shape_cast %115 : vector<1x64x32xf32> to vector<64x32xf32>
    %cst_136 = arith.constant dense<0.000000e+00> : vector<64x32xf32>
    %117 = tpu.matmul %114, %116, %cst_136 {dimension_numbers = #tpu.dot_dimension_numbers<[1], [0], [0], [1], [0, 0, 1, 1], [], []>} : vector<64x64xf32>, vector<64x32xf32>, vector<64x32xf32> -> vector<64x32xf32>
    %118 = arith.addf %112, %117 : vector<64x32xf32>
    %c0_137 = arith.constant 0 : index
    %c0_138 = arith.constant 0 : index
    %c1_139 = arith.constant 1 : index
    %c0_140 = arith.constant 0 : index
    %119 = vector.load %arg13[%c0_137, %c0_138, %c1_139, %c0_140] : memref<6x5x5x64xf32, #tpu.memory_space<vmem>>, vector<4x4x4x64xf32>
    %120 = vector.shape_cast %119 : vector<4x4x4x64xf32> to vector<64x64xf32>
    %c1_141 = arith.constant 1 : index
    %c0_142 = arith.constant 0 : index
    %c0_143 = arith.constant 0 : index
    %121 = vector.load %arg4[%c1_141, %c0_142, %c0_143] : memref<12x64x32xf32, #tpu.memory_space<vmem>>, vector<1x64x32xf32>
    %122 = vector.shape_cast %121 : vector<1x64x32xf32> to vector<64x32xf32>
    %cst_144 = arith.constant dense<0.000000e+00> : vector<64x32xf32>
    %123 = tpu.matmul %120, %122, %cst_144 {dimension_numbers = #tpu.dot_dimension_numbers<[1], [0], [0], [1], [0, 0, 1, 1], [], []>} : vector<64x64xf32>, vector<64x32xf32>, vector<64x32xf32> -> vector<64x32xf32>
    %124 = arith.addf %118, %123 : vector<64x32xf32>
    %c0_145 = arith.constant 0 : index
    %c1_146 = arith.constant 1 : index
    %c0_147 = arith.constant 0 : index
    %c0_148 = arith.constant 0 : index
    %125 = vector.load %arg13[%c0_145, %c1_146, %c0_147, %c0_148] : memref<6x5x5x64xf32, #tpu.memory_space<vmem>>, vector<4x4x4x64xf32>
    %126 = vector.shape_cast %125 : vector<4x4x4x64xf32> to vector<64x64xf32>
    %c2_149 = arith.constant 2 : index
    %c0_150 = arith.constant 0 : index
    %c0_151 = arith.constant 0 : index
    %127 = vector.load %arg4[%c2_149, %c0_150, %c0_151] : memref<12x64x32xf32, #tpu.memory_space<vmem>>, vector<1x64x32xf32>
    %128 = vector.shape_cast %127 : vector<1x64x32xf32> to vector<64x32xf32>
    %cst_152 = arith.constant dense<0.000000e+00> : vector<64x32xf32>
    %129 = tpu.matmul %126, %128, %cst_152 {dimension_numbers = #tpu.dot_dimension_numbers<[1], [0], [0], [1], [0, 0, 1, 1], [], []>} : vector<64x64xf32>, vector<64x32xf32>, vector<64x32xf32> -> vector<64x32xf32>
    %130 = arith.addf %124, %129 : vector<64x32xf32>
    %c0_153 = arith.constant 0 : index
    %c1_154 = arith.constant 1 : index
    %c1_155 = arith.constant 1 : index
    %c0_156 = arith.constant 0 : index
    %131 = vector.load %arg13[%c0_153, %c1_154, %c1_155, %c0_156] : memref<6x5x5x64xf32, #tpu.memory_space<vmem>>, vector<4x4x4x64xf32>
    %132 = vector.shape_cast %131 : vector<4x4x4x64xf32> to vector<64x64xf32>
    %c3_157 = arith.constant 3 : index
    %c0_158 = arith.constant 0 : index
    %c0_159 = arith.constant 0 : index
    %133 = vector.load %arg4[%c3_157, %c0_158, %c0_159] : memref<12x64x32xf32, #tpu.memory_space<vmem>>, vector<1x64x32xf32>
    %134 = vector.shape_cast %133 : vector<1x64x32xf32> to vector<64x32xf32>
    %cst_160 = arith.constant dense<0.000000e+00> : vector<64x32xf32>
    %135 = tpu.matmul %132, %134, %cst_160 {dimension_numbers = #tpu.dot_dimension_numbers<[1], [0], [0], [1], [0, 0, 1, 1], [], []>} : vector<64x64xf32>, vector<64x32xf32>, vector<64x32xf32> -> vector<64x32xf32>
    %136 = arith.addf %130, %135 : vector<64x32xf32>
    %c1_161 = arith.constant 1 : index
    %c0_162 = arith.constant 0 : index
    %c0_163 = arith.constant 0 : index
    %c0_164 = arith.constant 0 : index
    %137 = vector.load %arg13[%c1_161, %c0_162, %c0_163, %c0_164] : memref<6x5x5x64xf32, #tpu.memory_space<vmem>>, vector<4x4x4x64xf32>
    %138 = vector.shape_cast %137 : vector<4x4x4x64xf32> to vector<64x64xf32>
    %c4_165 = arith.constant 4 : index
    %c0_166 = arith.constant 0 : index
    %c0_167 = arith.constant 0 : index
    %139 = vector.load %arg4[%c4_165, %c0_166, %c0_167] : memref<12x64x32xf32, #tpu.memory_space<vmem>>, vector<1x64x32xf32>
    %140 = vector.shape_cast %139 : vector<1x64x32xf32> to vector<64x32xf32>
    %cst_168 = arith.constant dense<0.000000e+00> : vector<64x32xf32>
    %141 = tpu.matmul %138, %140, %cst_168 {dimension_numbers = #tpu.dot_dimension_numbers<[1], [0], [0], [1], [0, 0, 1, 1], [], []>} : vector<64x64xf32>, vector<64x32xf32>, vector<64x32xf32> -> vector<64x32xf32>
    %142 = arith.addf %136, %141 : vector<64x32xf32>
    %c1_169 = arith.constant 1 : index
    %c0_170 = arith.constant 0 : index
    %c1_171 = arith.constant 1 : index
    %c0_172 = arith.constant 0 : index
    %143 = vector.load %arg13[%c1_169, %c0_170, %c1_171, %c0_172] : memref<6x5x5x64xf32, #tpu.memory_space<vmem>>, vector<4x4x4x64xf32>
    %144 = vector.shape_cast %143 : vector<4x4x4x64xf32> to vector<64x64xf32>
    %c5_173 = arith.constant 5 : index
    %c0_174 = arith.constant 0 : index
    %c0_175 = arith.constant 0 : index
    %145 = vector.load %arg4[%c5_173, %c0_174, %c0_175] : memref<12x64x32xf32, #tpu.memory_space<vmem>>, vector<1x64x32xf32>
    %146 = vector.shape_cast %145 : vector<1x64x32xf32> to vector<64x32xf32>
    %cst_176 = arith.constant dense<0.000000e+00> : vector<64x32xf32>
    %147 = tpu.matmul %144, %146, %cst_176 {dimension_numbers = #tpu.dot_dimension_numbers<[1], [0], [0], [1], [0, 0, 1, 1], [], []>} : vector<64x64xf32>, vector<64x32xf32>, vector<64x32xf32> -> vector<64x32xf32>
    %148 = arith.addf %142, %147 : vector<64x32xf32>
    %c1_177 = arith.constant 1 : index
    %c1_178 = arith.constant 1 : index
    %c0_179 = arith.constant 0 : index
    %c0_180 = arith.constant 0 : index
    %149 = vector.load %arg13[%c1_177, %c1_178, %c0_179, %c0_180] : memref<6x5x5x64xf32, #tpu.memory_space<vmem>>, vector<4x4x4x64xf32>
    %150 = vector.shape_cast %149 : vector<4x4x4x64xf32> to vector<64x64xf32>
    %c6_181 = arith.constant 6 : index
    %c0_182 = arith.constant 0 : index
    %c0_183 = arith.constant 0 : index
    %151 = vector.load %arg4[%c6_181, %c0_182, %c0_183] : memref<12x64x32xf32, #tpu.memory_space<vmem>>, vector<1x64x32xf32>
    %152 = vector.shape_cast %151 : vector<1x64x32xf32> to vector<64x32xf32>
    %cst_184 = arith.constant dense<0.000000e+00> : vector<64x32xf32>
    %153 = tpu.matmul %150, %152, %cst_184 {dimension_numbers = #tpu.dot_dimension_numbers<[1], [0], [0], [1], [0, 0, 1, 1], [], []>} : vector<64x64xf32>, vector<64x32xf32>, vector<64x32xf32> -> vector<64x32xf32>
    %154 = arith.addf %148, %153 : vector<64x32xf32>
    %c1_185 = arith.constant 1 : index
    %c1_186 = arith.constant 1 : index
    %c1_187 = arith.constant 1 : index
    %c0_188 = arith.constant 0 : index
    %155 = vector.load %arg13[%c1_185, %c1_186, %c1_187, %c0_188] : memref<6x5x5x64xf32, #tpu.memory_space<vmem>>, vector<4x4x4x64xf32>
    %156 = vector.shape_cast %155 : vector<4x4x4x64xf32> to vector<64x64xf32>
    %c7_189 = arith.constant 7 : index
    %c0_190 = arith.constant 0 : index
    %c0_191 = arith.constant 0 : index
    %157 = vector.load %arg4[%c7_189, %c0_190, %c0_191] : memref<12x64x32xf32, #tpu.memory_space<vmem>>, vector<1x64x32xf32>
    %158 = vector.shape_cast %157 : vector<1x64x32xf32> to vector<64x32xf32>
    %cst_192 = arith.constant dense<0.000000e+00> : vector<64x32xf32>
    %159 = tpu.matmul %156, %158, %cst_192 {dimension_numbers = #tpu.dot_dimension_numbers<[1], [0], [0], [1], [0, 0, 1, 1], [], []>} : vector<64x64xf32>, vector<64x32xf32>, vector<64x32xf32> -> vector<64x32xf32>
    %160 = arith.addf %154, %159 : vector<64x32xf32>
    %c2_193 = arith.constant 2 : index
    %c0_194 = arith.constant 0 : index
    %c0_195 = arith.constant 0 : index
    %c0_196 = arith.constant 0 : index
    %161 = vector.load %arg13[%c2_193, %c0_194, %c0_195, %c0_196] : memref<6x5x5x64xf32, #tpu.memory_space<vmem>>, vector<4x4x4x64xf32>
    %162 = vector.shape_cast %161 : vector<4x4x4x64xf32> to vector<64x64xf32>
    %c8_197 = arith.constant 8 : index
    %c0_198 = arith.constant 0 : index
    %c0_199 = arith.constant 0 : index
    %163 = vector.load %arg4[%c8_197, %c0_198, %c0_199] : memref<12x64x32xf32, #tpu.memory_space<vmem>>, vector<1x64x32xf32>
    %164 = vector.shape_cast %163 : vector<1x64x32xf32> to vector<64x32xf32>
    %cst_200 = arith.constant dense<0.000000e+00> : vector<64x32xf32>
    %165 = tpu.matmul %162, %164, %cst_200 {dimension_numbers = #tpu.dot_dimension_numbers<[1], [0], [0], [1], [0, 0, 1, 1], [], []>} : vector<64x64xf32>, vector<64x32xf32>, vector<64x32xf32> -> vector<64x32xf32>
    %166 = arith.addf %160, %165 : vector<64x32xf32>
    %c2_201 = arith.constant 2 : index
    %c0_202 = arith.constant 0 : index
    %c1_203 = arith.constant 1 : index
    %c0_204 = arith.constant 0 : index
    %167 = vector.load %arg13[%c2_201, %c0_202, %c1_203, %c0_204] : memref<6x5x5x64xf32, #tpu.memory_space<vmem>>, vector<4x4x4x64xf32>
    %168 = vector.shape_cast %167 : vector<4x4x4x64xf32> to vector<64x64xf32>
    %c9_205 = arith.constant 9 : index
    %c0_206 = arith.constant 0 : index
    %c0_207 = arith.constant 0 : index
    %169 = vector.load %arg4[%c9_205, %c0_206, %c0_207] : memref<12x64x32xf32, #tpu.memory_space<vmem>>, vector<1x64x32xf32>
    %170 = vector.shape_cast %169 : vector<1x64x32xf32> to vector<64x32xf32>
    %cst_208 = arith.constant dense<0.000000e+00> : vector<64x32xf32>
    %171 = tpu.matmul %168, %170, %cst_208 {dimension_numbers = #tpu.dot_dimension_numbers<[1], [0], [0], [1], [0, 0, 1, 1], [], []>} : vector<64x64xf32>, vector<64x32xf32>, vector<64x32xf32> -> vector<64x32xf32>
    %172 = arith.addf %166, %171 : vector<64x32xf32>
    %c2_209 = arith.constant 2 : index
    %c1_210 = arith.constant 1 : index
    %c0_211 = arith.constant 0 : index
    %c0_212 = arith.constant 0 : index
    %173 = vector.load %arg13[%c2_209, %c1_210, %c0_211, %c0_212] : memref<6x5x5x64xf32, #tpu.memory_space<vmem>>, vector<4x4x4x64xf32>
    %174 = vector.shape_cast %173 : vector<4x4x4x64xf32> to vector<64x64xf32>
    %c10_213 = arith.constant 10 : index
    %c0_214 = arith.constant 0 : index
    %c0_215 = arith.constant 0 : index
    %175 = vector.load %arg4[%c10_213, %c0_214, %c0_215] : memref<12x64x32xf32, #tpu.memory_space<vmem>>, vector<1x64x32xf32>
    %176 = vector.shape_cast %175 : vector<1x64x32xf32> to vector<64x32xf32>
    %cst_216 = arith.constant dense<0.000000e+00> : vector<64x32xf32>
    %177 = tpu.matmul %174, %176, %cst_216 {dimension_numbers = #tpu.dot_dimension_numbers<[1], [0], [0], [1], [0, 0, 1, 1], [], []>} : vector<64x64xf32>, vector<64x32xf32>, vector<64x32xf32> -> vector<64x32xf32>
    %178 = arith.addf %172, %177 : vector<64x32xf32>
    %c2_217 = arith.constant 2 : index
    %c1_218 = arith.constant 1 : index
    %c1_219 = arith.constant 1 : index
    %c0_220 = arith.constant 0 : index
    %179 = vector.load %arg13[%c2_217, %c1_218, %c1_219, %c0_220] : memref<6x5x5x64xf32, #tpu.memory_space<vmem>>, vector<4x4x4x64xf32>
    %180 = vector.shape_cast %179 : vector<4x4x4x64xf32> to vector<64x64xf32>
    %c11_221 = arith.constant 11 : index
    %c0_222 = arith.constant 0 : index
    %c0_223 = arith.constant 0 : index
    %181 = vector.load %arg4[%c11_221, %c0_222, %c0_223] : memref<12x64x32xf32, #tpu.memory_space<vmem>>, vector<1x64x32xf32>
    %182 = vector.shape_cast %181 : vector<1x64x32xf32> to vector<64x32xf32>
    %cst_224 = arith.constant dense<0.000000e+00> : vector<64x32xf32>
    %183 = tpu.matmul %180, %182, %cst_224 {dimension_numbers = #tpu.dot_dimension_numbers<[1], [0], [0], [1], [0, 0, 1, 1], [], []>} : vector<64x64xf32>, vector<64x32xf32>, vector<64x32xf32> -> vector<64x32xf32>
    %184 = arith.addf %178, %183 : vector<64x32xf32>
    %c0_225 = arith.constant 0 : index
    %c0_226 = arith.constant 0 : index
    %185 = vector.load %arg5[%c0_225, %c0_226] : memref<1x32xf32, #tpu.memory_space<vmem>>, vector<1x32xf32>
    %186 = vector.broadcast %185 : vector<1x32xf32> to vector<64x32xf32>
    %187 = arith.addf %184, %186 : vector<64x32xf32>
    %cst_227 = arith.constant 0.000000e+00 : f32
    %188 = vector.broadcast %cst_227 : f32 to vector<64x32xf32>
    %189 = arith.cmpf oge, %187, %188 : vector<64x32xf32>
    %cst_228 = arith.constant 2.000000e-01 : f32
    %190 = vector.broadcast %cst_228 : f32 to vector<64x32xf32>
    %191 = arith.mulf %190, %187 : vector<64x32xf32>
    %192 = arith.select %189, %187, %191 : vector<64x32xi1>, vector<64x32xf32>
    %193 = vector.shape_cast %192 : vector<64x32xf32> to vector<4x2x2x2x2x32xf32>
    %194 = vector.extract_strided_slice %193 {offsets = [0, 0, 0, 0, 0, 0], sizes = [4, 2, 1, 2, 1, 32], strides = [1, 1, 1, 1, 1, 1]} : vector<4x2x2x2x2x32xf32> to vector<4x2x1x2x1x32xf32>
    %195 = vector.shape_cast %194 : vector<4x2x1x2x1x32xf32> to vector<4x2x2x32xf32>
    %c0_229 = arith.constant 0 : index
    %c0_230 = arith.constant 0 : index
    %c0_231 = arith.constant 0 : index
    %c96 = arith.constant 96 : index
    %196 = vector.load %arg14[%c0_229, %c0_230, %c0_231, %c96] : memref<4x3x3x128xf32, #tpu.memory_space<vmem>>, vector<4x2x2x32xf32>
    tpu.vector_store %arg14[%c0_229, %c0_230, %c0_231, %c96], %195 {strides = array<i32>} : memref<4x3x3x128xf32, #tpu.memory_space<vmem>>, vector<4x2x2x32xf32>,
    %197 = vector.extract_strided_slice %193 {offsets = [0, 0, 0, 0, 1, 0], sizes = [4, 2, 1, 2, 1, 32], strides = [1, 1, 1, 1, 1, 1]} : vector<4x2x2x2x2x32xf32> to vector<4x2x1x2x1x32xf32>
    %198 = vector.shape_cast %197 : vector<4x2x1x2x1x32xf32> to vector<4x2x2x32xf32>
    %c0_232 = arith.constant 0 : index
    %c0_233 = arith.constant 0 : index
    %c1_234 = arith.constant 1 : index
    %c64 = arith.constant 64 : index
    %199 = vector.load %arg14[%c0_232, %c0_233, %c1_234, %c64] : memref<4x3x3x128xf32, #tpu.memory_space<vmem>>, vector<4x2x2x32xf32>
    tpu.vector_store %arg14[%c0_232, %c0_233, %c1_234, %c64], %198 {strides = array<i32>} : memref<4x3x3x128xf32, #tpu.memory_space<vmem>>, vector<4x2x2x32xf32>,
    %200 = vector.extract_strided_slice %193 {offsets = [0, 0, 1, 0, 0, 0], sizes = [4, 2, 1, 2, 1, 32], strides = [1, 1, 1, 1, 1, 1]} : vector<4x2x2x2x2x32xf32> to vector<4x2x1x2x1x32xf32>
    %201 = vector.shape_cast %200 : vector<4x2x1x2x1x32xf32> to vector<4x2x2x32xf32>
    %c0_235 = arith.constant 0 : index
    %c1_236 = arith.constant 1 : index
    %c0_237 = arith.constant 0 : index
    %c32_238 = arith.constant 32 : index
    %202 = vector.load %arg14[%c0_235, %c1_236, %c0_237, %c32_238] : memref<4x3x3x128xf32, #tpu.memory_space<vmem>>, vector<4x2x2x32xf32>
    tpu.vector_store %arg14[%c0_235, %c1_236, %c0_237, %c32_238], %201 {strides = array<i32>} : memref<4x3x3x128xf32, #tpu.memory_space<vmem>>, vector<4x2x2x32xf32>,
    %203 = vector.extract_strided_slice %193 {offsets = [0, 0, 1, 0, 1, 0], sizes = [4, 2, 1, 2, 1, 32], strides = [1, 1, 1, 1, 1, 1]} : vector<4x2x2x2x2x32xf32> to vector<4x2x1x2x1x32xf32>
    %204 = vector.shape_cast %203 : vector<4x2x1x2x1x32xf32> to vector<4x2x2x32xf32>
    %c0_239 = arith.constant 0 : index
    %c1_240 = arith.constant 1 : index
    %c1_241 = arith.constant 1 : index
    %c0_242 = arith.constant 0 : index
    %205 = vector.load %arg14[%c0_239, %c1_240, %c1_241, %c0_242] : memref<4x3x3x128xf32, #tpu.memory_space<vmem>>, vector<4x2x2x32xf32>
    tpu.vector_store %arg14[%c0_239, %c1_240, %c1_241, %c0_242], %204 {strides = array<i32>} : memref<4x3x3x128xf32, #tpu.memory_space<vmem>>, vector<4x2x2x32xf32>,
    %cst_243 = arith.constant 0.000000e+00 : f32
    %206 = vector.broadcast %cst_243 : f32 to vector<16x64xf32>
    %c0_244 = arith.constant 0 : index
    %c0_245 = arith.constant 0 : index
    %c0_246 = arith.constant 0 : index
    %c0_247 = arith.constant 0 : index
    %207 = vector.load %arg14[%c0_244, %c0_245, %c0_246, %c0_247] : memref<4x3x3x128xf32, #tpu.memory_space<vmem>>, vector<4x2x2x128xf32>
    %208 = vector.shape_cast %207 : vector<4x2x2x128xf32> to vector<16x128xf32>
    %c0_248 = arith.constant 0 : index
    %c0_249 = arith.constant 0 : index
    %c0_250 = arith.constant 0 : index
    %209 = vector.load %arg6[%c0_248, %c0_249, %c0_250] : memref<4x128x64xf32, #tpu.memory_space<vmem>>, vector<1x128x64xf32>
    %210 = vector.shape_cast %209 : vector<1x128x64xf32> to vector<128x64xf32>
    %cst_251 = arith.constant dense<0.000000e+00> : vector<16x64xf32>
    %211 = tpu.matmul %208, %210, %cst_251 {dimension_numbers = #tpu.dot_dimension_numbers<[1], [0], [0], [1], [0, 0, 1, 1], [], []>} : vector<16x128xf32>, vector<128x64xf32>, vector<16x64xf32> -> vector<16x64xf32>
    %212 = arith.addf %206, %211 : vector<16x64xf32>
    %c0_252 = arith.constant 0 : index
    %c0_253 = arith.constant 0 : index
    %c1_254 = arith.constant 1 : index
    %c0_255 = arith.constant 0 : index
    %213 = vector.load %arg14[%c0_252, %c0_253, %c1_254, %c0_255] : memref<4x3x3x128xf32, #tpu.memory_space<vmem>>, vector<4x2x2x128xf32>
    %214 = vector.shape_cast %213 : vector<4x2x2x128xf32> to vector<16x128xf32>
    %c1_256 = arith.constant 1 : index
    %c0_257 = arith.constant 0 : index
    %c0_258 = arith.constant 0 : index
    %215 = vector.load %arg6[%c1_256, %c0_257, %c0_258] : memref<4x128x64xf32, #tpu.memory_space<vmem>>, vector<1x128x64xf32>
    %216 = vector.shape_cast %215 : vector<1x128x64xf32> to vector<128x64xf32>
    %cst_259 = arith.constant dense<0.000000e+00> : vector<16x64xf32>
    %217 = tpu.matmul %214, %216, %cst_259 {dimension_numbers = #tpu.dot_dimension_numbers<[1], [0], [0], [1], [0, 0, 1, 1], [], []>} : vector<16x128xf32>, vector<128x64xf32>, vector<16x64xf32> -> vector<16x64xf32>
    %218 = arith.addf %212, %217 : vector<16x64xf32>
    %c0_260 = arith.constant 0 : index
    %c1_261 = arith.constant 1 : index
    %c0_262 = arith.constant 0 : index
    %c0_263 = arith.constant 0 : index
    %219 = vector.load %arg14[%c0_260, %c1_261, %c0_262, %c0_263] : memref<4x3x3x128xf32, #tpu.memory_space<vmem>>, vector<4x2x2x128xf32>
    %220 = vector.shape_cast %219 : vector<4x2x2x128xf32> to vector<16x128xf32>
    %c2_264 = arith.constant 2 : index
    %c0_265 = arith.constant 0 : index
    %c0_266 = arith.constant 0 : index
    %221 = vector.load %arg6[%c2_264, %c0_265, %c0_266] : memref<4x128x64xf32, #tpu.memory_space<vmem>>, vector<1x128x64xf32>
    %222 = vector.shape_cast %221 : vector<1x128x64xf32> to vector<128x64xf32>
    %cst_267 = arith.constant dense<0.000000e+00> : vector<16x64xf32>
    %223 = tpu.matmul %220, %222, %cst_267 {dimension_numbers = #tpu.dot_dimension_numbers<[1], [0], [0], [1], [0, 0, 1, 1], [], []>} : vector<16x128xf32>, vector<128x64xf32>, vector<16x64xf32> -> vector<16x64xf32>
    %224 = arith.addf %218, %223 : vector<16x64xf32>
    %c0_268 = arith.constant 0 : index
    %c1_269 = arith.constant 1 : index
    %c1_270 = arith.constant 1 : index
    %c0_271 = arith.constant 0 : index
    %225 = vector.load %arg14[%c0_268, %c1_269, %c1_270, %c0_271] : memref<4x3x3x128xf32, #tpu.memory_space<vmem>>, vector<4x2x2x128xf32>
    %226 = vector.shape_cast %225 : vector<4x2x2x128xf32> to vector<16x128xf32>
    %c3_272 = arith.constant 3 : index
    %c0_273 = arith.constant 0 : index
    %c0_274 = arith.constant 0 : index
    %227 = vector.load %arg6[%c3_272, %c0_273, %c0_274] : memref<4x128x64xf32, #tpu.memory_space<vmem>>, vector<1x128x64xf32>
    %228 = vector.shape_cast %227 : vector<1x128x64xf32> to vector<128x64xf32>
    %cst_275 = arith.constant dense<0.000000e+00> : vector<16x64xf32>
    %229 = tpu.matmul %226, %228, %cst_275 {dimension_numbers = #tpu.dot_dimension_numbers<[1], [0], [0], [1], [0, 0, 1, 1], [], []>} : vector<16x128xf32>, vector<128x64xf32>, vector<16x64xf32> -> vector<16x64xf32>
    %230 = arith.addf %224, %229 : vector<16x64xf32>
    %c0_276 = arith.constant 0 : index
    %c0_277 = arith.constant 0 : index
    %231 = vector.load %arg7[%c0_276, %c0_277] : memref<1x64xf32, #tpu.memory_space<vmem>>, vector<1x64xf32>
    %232 = vector.broadcast %231 : vector<1x64xf32> to vector<16x64xf32>
    %233 = arith.addf %230, %232 : vector<16x64xf32>
    %cst_278 = arith.constant 0.000000e+00 : f32
    %234 = vector.broadcast %cst_278 : f32 to vector<16x64xf32>
    %235 = arith.cmpf oge, %233, %234 : vector<16x64xf32>
    %cst_279 = arith.constant 2.000000e-01 : f32
    %236 = vector.broadcast %cst_279 : f32 to vector<16x64xf32>
    %237 = arith.mulf %236, %233 : vector<16x64xf32>
    %238 = arith.select %235, %233, %237 : vector<16x64xi1>, vector<16x64xf32>
    %239 = vector.shape_cast %238 : vector<16x64xf32> to vector<4x1x2x1x2x64xf32>
    %240 = vector.extract_strided_slice %239 {offsets = [0, 0, 0, 0, 0, 0], sizes = [4, 1, 1, 1, 1, 64], strides = [1, 1, 1, 1, 1, 1]} : vector<4x1x2x1x2x64xf32> to vector<4x1x1x1x1x64xf32>
    %241 = vector.shape_cast %240 : vector<4x1x1x1x1x64xf32> to vector<4x1x1x64xf32>
    %c0_280 = arith.constant 0 : index
    %c0_281 = arith.constant 0 : index
    %c0_282 = arith.constant 0 : index
    %c192 = arith.constant 192 : index
    %242 = vector.load %arg15[%c0_280, %c0_281, %c0_282, %c192] : memref<4x2x2x256xf32, #tpu.memory_space<vmem>>, vector<4x1x1x64xf32>
    tpu.vector_store %arg15[%c0_280, %c0_281, %c0_282, %c192], %241 {strides = array<i32>} : memref<4x2x2x256xf32, #tpu.memory_space<vmem>>, vector<4x1x1x64xf32>,
    %243 = vector.extract_strided_slice %239 {offsets = [0, 0, 0, 0, 1, 0], sizes = [4, 1, 1, 1, 1, 64], strides = [1, 1, 1, 1, 1, 1]} : vector<4x1x2x1x2x64xf32> to vector<4x1x1x1x1x64xf32>
    %244 = vector.shape_cast %243 : vector<4x1x1x1x1x64xf32> to vector<4x1x1x64xf32>
    %c0_283 = arith.constant 0 : index
    %c0_284 = arith.constant 0 : index
    %c1_285 = arith.constant 1 : index
    %c128 = arith.constant 128 : index
    %245 = vector.load %arg15[%c0_283, %c0_284, %c1_285, %c128] : memref<4x2x2x256xf32, #tpu.memory_space<vmem>>, vector<4x1x1x64xf32>
    tpu.vector_store %arg15[%c0_283, %c0_284, %c1_285, %c128], %244 {strides = array<i32>} : memref<4x2x2x256xf32, #tpu.memory_space<vmem>>, vector<4x1x1x64xf32>,
    %246 = vector.extract_strided_slice %239 {offsets = [0, 0, 1, 0, 0, 0], sizes = [4, 1, 1, 1, 1, 64], strides = [1, 1, 1, 1, 1, 1]} : vector<4x1x2x1x2x64xf32> to vector<4x1x1x1x1x64xf32>
    %247 = vector.shape_cast %246 : vector<4x1x1x1x1x64xf32> to vector<4x1x1x64xf32>
    %c0_286 = arith.constant 0 : index
    %c1_287 = arith.constant 1 : index
    %c0_288 = arith.constant 0 : index
    %c64_289 = arith.constant 64 : index
    %248 = vector.load %arg15[%c0_286, %c1_287, %c0_288, %c64_289] : memref<4x2x2x256xf32, #tpu.memory_space<vmem>>, vector<4x1x1x64xf32>
    tpu.vector_store %arg15[%c0_286, %c1_287, %c0_288, %c64_289], %247 {strides = array<i32>} : memref<4x2x2x256xf32, #tpu.memory_space<vmem>>, vector<4x1x1x64xf32>,
    %249 = vector.extract_strided_slice %239 {offsets = [0, 0, 1, 0, 1, 0], sizes = [4, 1, 1, 1, 1, 64], strides = [1, 1, 1, 1, 1, 1]} : vector<4x1x2x1x2x64xf32> to vector<4x1x1x1x1x64xf32>
    %250 = vector.shape_cast %249 : vector<4x1x1x1x1x64xf32> to vector<4x1x1x64xf32>
    %c0_290 = arith.constant 0 : index
    %c1_291 = arith.constant 1 : index
    %c1_292 = arith.constant 1 : index
    %c0_293 = arith.constant 0 : index
    %251 = vector.load %arg15[%c0_290, %c1_291, %c1_292, %c0_293] : memref<4x2x2x256xf32, #tpu.memory_space<vmem>>, vector<4x1x1x64xf32>
    tpu.vector_store %arg15[%c0_290, %c1_291, %c1_292, %c0_293], %250 {strides = array<i32>} : memref<4x2x2x256xf32, #tpu.memory_space<vmem>>, vector<4x1x1x64xf32>,
    %cst_294 = arith.constant 0.000000e+00 : f32
    %252 = vector.broadcast %cst_294 : f32 to vector<4x128xf32>
    %c0_295 = arith.constant 0 : index
    %c0_296 = arith.constant 0 : index
    %c0_297 = arith.constant 0 : index
    %c0_298 = arith.constant 0 : index
    %253 = vector.load %arg15[%c0_295, %c0_296, %c0_297, %c0_298] : memref<4x2x2x256xf32, #tpu.memory_space<vmem>>, vector<4x1x1x256xf32>
    %254 = vector.shape_cast %253 : vector<4x1x1x256xf32> to vector<4x256xf32>
    %c0_299 = arith.constant 0 : index
    %c0_300 = arith.constant 0 : index
    %c0_301 = arith.constant 0 : index
    %255 = vector.load %arg8[%c0_299, %c0_300, %c0_301] : memref<4x256x128xf32, #tpu.memory_space<vmem>>, vector<1x256x128xf32>
    %256 = vector.shape_cast %255 : vector<1x256x128xf32> to vector<256x128xf32>
    %cst_302 = arith.constant dense<0.000000e+00> : vector<4x128xf32>
    %257 = tpu.matmul %254, %256, %cst_302 {dimension_numbers = #tpu.dot_dimension_numbers<[1], [0], [0], [1], [0, 0, 1, 1], [], []>} : vector<4x256xf32>, vector<256x128xf32>, vector<4x128xf32> -> vector<4x128xf32>
    %258 = arith.addf %252, %257 : vector<4x128xf32>
    %c0_303 = arith.constant 0 : index
    %c0_304 = arith.constant 0 : index
    %c1_305 = arith.constant 1 : index
    %c0_306 = arith.constant 0 : index
    %259 = vector.load %arg15[%c0_303, %c0_304, %c1_305, %c0_306] : memref<4x2x2x256xf32, #tpu.memory_space<vmem>>, vector<4x1x1x256xf32>
    %260 = vector.shape_cast %259 : vector<4x1x1x256xf32> to vector<4x256xf32>
    %c1_307 = arith.constant 1 : index
    %c0_308 = arith.constant 0 : index
    %c0_309 = arith.constant 0 : index
    %261 = vector.load %arg8[%c1_307, %c0_308, %c0_309] : memref<4x256x128xf32, #tpu.memory_space<vmem>>, vector<1x256x128xf32>
    %262 = vector.shape_cast %261 : vector<1x256x128xf32> to vector<256x128xf32>
    %cst_310 = arith.constant dense<0.000000e+00> : vector<4x128xf32>
    %263 = tpu.matmul %260, %262, %cst_310 {dimension_numbers = #tpu.dot_dimension_numbers<[1], [0], [0], [1], [0, 0, 1, 1], [], []>} : vector<4x256xf32>, vector<256x128xf32>, vector<4x128xf32> -> vector<4x128xf32>
    %264 = arith.addf %258, %263 : vector<4x128xf32>
    %c0_311 = arith.constant 0 : index
    %c1_312 = arith.constant 1 : index
    %c0_313 = arith.constant 0 : index
    %c0_314 = arith.constant 0 : index
    %265 = vector.load %arg15[%c0_311, %c1_312, %c0_313, %c0_314] : memref<4x2x2x256xf32, #tpu.memory_space<vmem>>, vector<4x1x1x256xf32>
    %266 = vector.shape_cast %265 : vector<4x1x1x256xf32> to vector<4x256xf32>
    %c2_315 = arith.constant 2 : index
    %c0_316 = arith.constant 0 : index
    %c0_317 = arith.constant 0 : index
    %267 = vector.load %arg8[%c2_315, %c0_316, %c0_317] : memref<4x256x128xf32, #tpu.memory_space<vmem>>, vector<1x256x128xf32>
    %268 = vector.shape_cast %267 : vector<1x256x128xf32> to vector<256x128xf32>
    %cst_318 = arith.constant dense<0.000000e+00> : vector<4x128xf32>
    %269 = tpu.matmul %266, %268, %cst_318 {dimension_numbers = #tpu.dot_dimension_numbers<[1], [0], [0], [1], [0, 0, 1, 1], [], []>} : vector<4x256xf32>, vector<256x128xf32>, vector<4x128xf32> -> vector<4x128xf32>
    %270 = arith.addf %264, %269 : vector<4x128xf32>
    %c0_319 = arith.constant 0 : index
    %c1_320 = arith.constant 1 : index
    %c1_321 = arith.constant 1 : index
    %c0_322 = arith.constant 0 : index
    %271 = vector.load %arg15[%c0_319, %c1_320, %c1_321, %c0_322] : memref<4x2x2x256xf32, #tpu.memory_space<vmem>>, vector<4x1x1x256xf32>
    %272 = vector.shape_cast %271 : vector<4x1x1x256xf32> to vector<4x256xf32>
    %c3_323 = arith.constant 3 : index
    %c0_324 = arith.constant 0 : index
    %c0_325 = arith.constant 0 : index
    %273 = vector.load %arg8[%c3_323, %c0_324, %c0_325] : memref<4x256x128xf32, #tpu.memory_space<vmem>>, vector<1x256x128xf32>
    %274 = vector.shape_cast %273 : vector<1x256x128xf32> to vector<256x128xf32>
    %cst_326 = arith.constant dense<0.000000e+00> : vector<4x128xf32>
    %275 = tpu.matmul %272, %274, %cst_326 {dimension_numbers = #tpu.dot_dimension_numbers<[1], [0], [0], [1], [0, 0, 1, 1], [], []>} : vector<4x256xf32>, vector<256x128xf32>, vector<4x128xf32> -> vector<4x128xf32>
    %276 = arith.addf %270, %275 : vector<4x128xf32>
    %c0_327 = arith.constant 0 : index
    %c0_328 = arith.constant 0 : index
    %277 = vector.load %arg9[%c0_327, %c0_328] : memref<1x128xf32, #tpu.memory_space<vmem>>, vector<1x128xf32>
    %278 = vector.broadcast %277 : vector<1x128xf32> to vector<4x128xf32>
    %279 = arith.addf %276, %278 : vector<4x128xf32>
    %cst_329 = arith.constant 0.000000e+00 : f32
    %280 = vector.broadcast %cst_329 : f32 to vector<4x128xf32>
    %281 = arith.cmpf oge, %279, %280 : vector<4x128xf32>
    %cst_330 = arith.constant 2.000000e-01 : f32
    %282 = vector.broadcast %cst_330 : f32 to vector<4x128xf32>
    %283 = arith.mulf %282, %279 : vector<4x128xf32>
    %284 = arith.select %281, %279, %283 : vector<4x128xi1>, vector<4x128xf32>
    %cst_331 = arith.constant dense<0.000000e+00> : vector<128xf32>
    %285 = vector.multi_reduction <add>, %284, %cst_331 [0] : vector<4x128xf32> to vector<128xf32>
    %286 = vector.shape_cast %285 : vector<128xf32> to vector<1x128xf32>
    %cst_332 = arith.constant 4.000000e+00 : f32
    %287 = vector.broadcast %cst_332 : f32 to vector<1x128xf32>
    %288 = arith.divf %286, %287 : vector<1x128xf32>
    %c0_333 = arith.constant 0 : index
    %c0_334 = arith.constant 0 : index
    %289 = vector.load %arg10[%c0_333, %c0_334] : memref<1x128xf32, #tpu.memory_space<vmem>>, vector<1x128xf32>
    %290 = arith.mulf %288, %289 : vector<1x128xf32>
    %cst_335 = arith.constant dense<0.000000e+00> : vector<1xf32>
    %291 = vector.multi_reduction <add>, %290, %cst_335 [1] : vector<1x128xf32> to vector<1xf32>
    %292 = vector.shape_cast %291 : vector<1xf32> to vector<1x1xf32>
    %c0_336 = arith.constant 0 : index
    %c0_337 = arith.constant 0 : index
    %293 = memref.load %arg11[%c0_336, %c0_337] : memref<1x1xf32, #tpu.memory_space<smem>>
    %294 = vector.broadcast %293 : f32 to vector<1x1xf32>
    %295 = arith.addf %292, %294 : vector<1x1xf32>
    %296 = arith.negf %295 : vector<1x1xf32>
    %297 = math.exp %296 : vector<1x1xf32>
    %cst_338 = arith.constant 1.000000e+00 : f32
    %298 = vector.broadcast %cst_338 : f32 to vector<1x1xf32>
    %299 = arith.addf %298, %297 : vector<1x1xf32>
    %300 = arith.divf %298, %299 : vector<1x1xf32>
    %301 = vector.shape_cast %300 : vector<1x1xf32> to vector<1x1x1xf32>
    %c0_339 = arith.constant 0 : index
    %c0_340 = arith.constant 0 : index
    %c0_341 = arith.constant 0 : index
    %302 = vector.load %arg12[%c0_339, %c0_340, %c0_341] : memref<1x1x1xf32, #tpu.memory_space<vmem>>, vector<1x1x1xf32>
    tpu.vector_store %arg12[%c0_339, %c0_340, %c0_341], %301 {strides = array<i32>} : memref<1x1x1xf32, #tpu.memory_space<vmem>>, vector<1x1x1xf32>,
    return
  }
  func.func @transform_0(%arg0: i32) -> (i32, i32, i32, i32, i32) {
    %c0_i32 = arith.constant 0 : i32
    %c0_i32_0 = arith.constant 0 : i32
    %c0_i32_1 = arith.constant 0 : i32
    %c0_i32_2 = arith.constant 0 : i32
    %c0_i32_3 = arith.constant 0 : i32
    return %arg0, %c0_i32, %c0_i32_0, %c0_i32_1, %c0_i32_2 : i32, i32, i32, i32, i32
  }
  func.func @transform_1(%arg0: i32) -> (i32, i32, i32) {
    %c0_i32 = arith.constant 0 : i32
    %c0_i32_0 = arith.constant 0 : i32
    %c0_i32_1 = arith.constant 0 : i32
    %c0_i32_2 = arith.constant 0 : i32
    return %c0_i32, %c0_i32_0, %c0_i32_1 : i32, i32, i32
  }
  func.func @transform_2(%arg0: i32) -> (i32, i32) {
    %c0_i32 = arith.constant 0 : i32
    %c0_i32_0 = arith.constant 0 : i32
    %c0_i32_1 = arith.constant 0 : i32
    return %c0_i32, %c0_i32_0 : i32, i32
  }
  func.func @transform_3(%arg0: i32) -> (i32, i32, i32) {
    %c0_i32 = arith.constant 0 : i32
    %c0_i32_0 = arith.constant 0 : i32
    %c0_i32_1 = arith.constant 0 : i32
    %c0_i32_2 = arith.constant 0 : i32
    return %c0_i32, %c0_i32_0, %c0_i32_1 : i32, i32, i32
  }
  func.func @transform_4(%arg0: i32) -> (i32, i32) {
    %c0_i32 = arith.constant 0 : i32
    %c0_i32_0 = arith.constant 0 : i32
    %c0_i32_1 = arith.constant 0 : i32
    return %c0_i32, %c0_i32_0 : i32, i32
  }
  func.func @transform_5(%arg0: i32) -> (i32, i32, i32) {
    %c0_i32 = arith.constant 0 : i32
    %c0_i32_0 = arith.constant 0 : i32
    %c0_i32_1 = arith.constant 0 : i32
    %c0_i32_2 = arith.constant 0 : i32
    return %c0_i32, %c0_i32_0, %c0_i32_1 : i32, i32, i32
  }
  func.func @transform_6(%arg0: i32) -> (i32, i32) {
    %c0_i32 = arith.constant 0 : i32
    %c0_i32_0 = arith.constant 0 : i32
    %c0_i32_1 = arith.constant 0 : i32
    return %c0_i32, %c0_i32_0 : i32, i32
  }
  func.func @transform_7(%arg0: i32) -> (i32, i32, i32) {
    %c0_i32 = arith.constant 0 : i32
    %c0_i32_0 = arith.constant 0 : i32
    %c0_i32_1 = arith.constant 0 : i32
    %c0_i32_2 = arith.constant 0 : i32
    return %c0_i32, %c0_i32_0, %c0_i32_1 : i32, i32, i32
  }
  func.func @transform_8(%arg0: i32) -> (i32, i32) {
    %c0_i32 = arith.constant 0 : i32
    %c0_i32_0 = arith.constant 0 : i32
    %c0_i32_1 = arith.constant 0 : i32
    return %c0_i32, %c0_i32_0 : i32, i32
  }
  func.func @transform_9(%arg0: i32) -> (i32, i32) {
    %c0_i32 = arith.constant 0 : i32
    %c0_i32_0 = arith.constant 0 : i32
    %c0_i32_1 = arith.constant 0 : i32
    return %c0_i32, %c0_i32_0 : i32, i32
  }
  func.func @transform_10(%arg0: i32) -> (i32, i32) {
    %c0_i32 = arith.constant 0 : i32
    %c0_i32_0 = arith.constant 0 : i32
    %c0_i32_1 = arith.constant 0 : i32
    return %c0_i32, %c0_i32_0 : i32, i32
  }
  func.func @transform_11(%arg0: i32) -> (i32, i32, i32) {
    %c0_i32 = arith.constant 0 : i32
    %c0_i32_0 = arith.constant 0 : i32
    %c0_i32_1 = arith.constant 0 : i32
    return %arg0, %c0_i32, %c0_i32_0 : i32, i32, i32
  }
}

</mosaic_0001>

<bundles_post_ra>
// kernel: forward.1
= control target key start
LH: loop header
LB: loop body
LE: loop exit
PB: predicated region body
PF: predicated region fallthrough
CT: control target
= control target key end

     0   :  { %s15951_s19 = smov 0   ;;  %s20432_s0 = inlined_call_operand.vmem [shape: f32[2,6,9,9,64], index: 0, kind: input, shape index: {}]   ;;  %s20433_s1 = inlined_call_operand.vmem [shape: f32[12,64,16], index: 1, kind: input, shape index: {}]   ;;  %s20434_s2 = inlined_call_operand.vmem [shape: f32[1,16], index: 2, kind: input, shape index: {}]   ;;  %s20435_s3 = inlined_call_operand.vmem [shape: f32[12,64,32], index: 3, kind: input, shape index: {}]   ;;  %s20436_s4 = inlined_call_operand.vmem [shape: f32[1,32], index: 4, kind: input, shape index: {}]   ;;  %s20437_s5 = inlined_call_operand.vmem [shape: f32[4,128,64], index: 5, kind: input, shape index: {}]   ;;  %s20438_s6 = inlined_call_operand.vmem [shape: f32[1,64], index: 6, kind: input, shape index: {}]   ;;  %s20439_s7 = inlined_call_operand.vmem [shape: f32[4,256,128], index: 7, kind: input, shape index: {}]   ;;  %s20440_s8 = inlined_call_operand.vmem [shape: f32[1,128], index: 8, kind: input, shape index: {}]   ;;  %s20441_s9 = inlined_call_operand.vmem [shape: f32[1,128], index: 9, kind: input, shape index: {}]   ;;  %s20442_s10 = inlined_call_operand.<no memory space> [shape: f32[1,1], index: 10, kind: input, shape index: {}]   ;;  %s20443_s11 = inlined_call_operand.vmem [shape: f32[2,1,1], index: 11, kind: output, shape index: {}]  }
   0x1   :  { %16 = sst [smem:[#allocation5]] %s20442_s10 }
   0x2 LB: > { %s11359_s20 = sadd.s32 4294967295, %s15878_s19   ;;  %p11363_p0 = scmp.ge.s32.totalorder %s15878_s19, 1  ;;  %s15878_s19 = sphi %s15951_s19, %s22_s19  }
   0x3   : > { %p338_p1 = scmp.lt.s32.totalorder %s15878_s19, 3 }
   0x5   : > { %p339_p2 = pnand %p11363_p0, %p338_p1 }
   0x7   : > { %342 = sbr.rel (%p339_p2) target bundleno = 2554 (0x9fa), region = 64 }
   0xe   : > { %v11469_v0 = vld [vmem:[%s20433_s1 + $0x80] sm:$0xff]  ;;  %v11470_v1 = vld [vmem:[%s20433_s1 + $0x88] sm:$0xff]  ;;  %v11471_v2 = vld [vmem:[%s20433_s1 + $0x90] sm:$0xff]  ;;  %p376_p3 = scmp.lt.s32.totalorder %s11359_s20, 1  ;;  %vm516_vm0 = vcmask 523264   ;;  %vm6073_vm5 = vcmask 1042434  }
   0xf   : > { %v15968_v3 = vpack.c.bf16 %v11470_v1, %v11469_v0  ;;  %v11472_v4 = vld [vmem:[%s20433_s1 + $0x98] sm:$0xff]  ;;  %v11473_v6 = vld [vmem:[%s20433_s1 + $0xa0] sm:$0xff]  ;;  %v11474_v7 = vld [vmem:[%s20433_s1 + $0xa8] sm:$0xff]  ;;  %vm6071_vm7 = vcmask 1041409   ;;  %vm6075_vm9 = vcmask 1043459   ;;  %vm6446_vm10 = vcmask 1044484  }
  0x10   : > { %v15973_v5 = vpack.c.bf16 %v11472_v4, %v11471_v2  ;;  %s20657_s20 = smov (!%p376_p3, %s11359_s20), 1  ;;  %v15987_v8 = vpack.c.bf16 %v11474_v7, %v11473_v6  ;;  %v11475_v9 = vld [vmem:[%s20433_s1 + $0xb0] sm:$0xff]  ;;  %v11476_v10 = vld [vmem:[%s20433_s1 + $0xb8] sm:$0xff]  ;;  %v11541_v13 = vld [vmem:[%s20433_s1 + $0xc0] sm:$0xff]  ;;  %s15882_s30 = smov 48  }
  0x11   : > { %20506 = vst [vmem:[#allocation6_spill] sm:$0xff] %v15968_v3  ;;  %14661 = vmatprep.subr.bf16.mxu0 %v15968_v3  ;;  %s15722_s13 = smul.u32 864, %s20657_s20  ;;  %v16004_v12 = vpack.c.bf16 %v11476_v10, %v11475_v9  ;;  %v11542_v14 = vld [vmem:[%s20433_s1 + $0xc8] sm:$0xff]  ;;  %v11543_v16 = vld [vmem:[%s20433_s1 + $0xd0] sm:$0xff]  ;;  %v11544_v17 = vld [vmem:[%s20433_s1 + $0xd8] sm:$0xff]  ;;  %s15883_s12 = smov 32  }
  0x12   : > { %20507 = vst [vmem:[#allocation7_spill] sm:$0xff] %v15973_v5  ;;  %14663 = vmatpush3.bf16.msra.mxu0 %v15968_v3  ;;  %20508 = vst [vmem:[#allocation8_spill] sm:$0xff] %v15987_v8  ;;  %v14676_v15 = vpack.c.bf16 %v11542_v14, %v11541_v13  ;;  %v14680_v20 = vpack.c.bf16 %v11544_v17, %v11543_v16  ;;  %v11545_v21 = vld [vmem:[%s20433_s1 + $0xe0] sm:$0xff]  ;;  %v11546_v22 = vld [vmem:[%s20433_s1 + $0xe8] sm:$0xff]  ;;  %s15885_s24 = smov 96   ;;  %s15886_s25 = smov 64  }
  0x13   : > { %14665 = vmatprep.subr.bf16.mxu0 %v15973_v5  ;;  %s15998_s22 = scalar_lea.vmem %s20432_s0, %s15722_s13  ;;  %20509 = vst [vmem:[#allocation9_spill] sm:$0xff] %v16004_v12  ;;  %v14684_v25 = vpack.c.bf16 %v11546_v22, %v11545_v21  ;;  %v11547_v26 = vld [vmem:[%s20433_s1 + $0xf0] sm:$0xff]  ;;  %v11548_v27 = vld [vmem:[%s20433_s1 + $0xf8] sm:$0xff]  ;;  %v11613_v31 = vld [vmem:[%s20433_s1 + $0x100] sm:$0xff]  ;;  %s11294_s13 = sld [smem:[#allocation5]] }
  0x14   : > { %v11437_v11 = vld [vmem:[%s15998_s22 + $0x10] sm:$0xff]  ;;  %v11438_v18 = vld [vmem:[%s15998_s22 + $0x20] sm:$0xff]  ;;  %v14688_v30 = vpack.c.bf16 %v11548_v27, %v11547_v26  ;;  %v11614_v32 = vld [vmem:[%s20433_s1 + $0x108] sm:$0xff]  ;;  %s383_s16 = scalar_lea.vmem %s20443_s11, %s20657_s20 }
  0x15   : > { %13528 = vmatprep.mubr.msk.f32.mxu0 %vm516_vm0, %v11437_v11  ;;  %v11439_v19 = vld [vmem:[%s15998_s22 + $0x30] sm:$0xff]  ;;  %v11440_v23 = vld [vmem:[%s15998_s22 + $0x40] sm:$0xff]  ;;  %v14692_v35 = vpack.c.bf16 %v11614_v32, %v11613_v31  ;;  %v11616_v43 = vld [vmem:[%s20433_s1 + $0x118] sm:$0xff] }
  0x16   : > { %14667 = vmatpush3.bf16.msra.mxu0 %v15973_v5  ;;  %v11441_v24 = vld [vmem:[%s15998_s22 + $0x50] sm:$0xff]  ;;  %v11442_v28 = vld [vmem:[%s15998_s22 + $0x60] sm:$0xff]  ;;  %v11618_v48 = vld [vmem:[%s20433_s1 + $0x128] sm:$0xff] }
  0x17   : > { %14669 = vmatprep.subr.bf16.mxu0 %v15987_v8  ;;  %v11443_v29 = vld [vmem:[%s15998_s22 + $0x70] sm:$0xff]  ;;  %v11444_v33 = vld [vmem:[%s15998_s22 + $0x80] sm:$0xff]  ;;  %v11620_v53 = vld [vmem:[%s20433_s1 + $0x138] sm:$0xff] }
  0x18   : > { %v16053_v34 = vld [vmem:[%s15998_s22 + $0xa0] sm:$0xff]  ;;  %v16059_v36 = vld [vmem:[%s15998_s22 + $0xb0] sm:$0xff]  ;;  %v11686_v58 = vld [vmem:[%s20433_s1 + $0x148] sm:$0xff] }
  0x19   : > { %v16062_v37 = vld [vmem:[%s15998_s22 + $0xc0] sm:$0xff]  ;;  %v16069_v38 = vld [vmem:[%s15998_s22 + $0xd0] sm:$0xff]  ;;  %v11688_v27 = vld [vmem:[%s20433_s1 + $0x158] sm:$0xff] }
  0x1a   : > { %14671 = vmatpush3.bf16.msra.mxu0 %v15987_v8  ;;  %v16072_v39 = vld [vmem:[%s15998_s22 + $0xe0] sm:$0xff]  ;;  %v16079_v40 = vld [vmem:[%s15998_s22 + $0xf0] sm:$0xff]  ;;  %v11762_v5 = vld [vmem:[%s20433_s1 + $0x1a8] sm:$0xff] }
  0x1b   : > { %14673 = vmatprep.subr.bf16.mxu0 %v16004_v12  ;;  %v16082_v41 = vld [vmem:[%s15998_s22 + $0x11] sm:$0xff]  ;;  %v16095_v44 = vld [vmem:[%s15998_s22 + $0x21] sm:$0xff] }
  0x1c   : > { %v11615_v42 = vld [vmem:[%s20433_s1 + $0x110] sm:$0xff]  ;;  %v11617_v47 = vld [vmem:[%s20433_s1 + $0x120] sm:$0xff] }
  0x1d   : > { %v16098_v45 = vld [vmem:[%s15998_s22 + $0x31] sm:$0xff]  ;;  %v14696_v46 = vpack.c.bf16 %v11616_v43, %v11615_v42  ;;  %v16111_v49 = vld [vmem:[%s15998_s22 + $0x41] sm:$0xff]  ;;  %v14700_v51 = vpack.c.bf16 %v11618_v48, %v11617_v47 }
  0x1e   : > { %14675 = vmatpush3.bf16.msra.mxu0 %v16004_v12  ;;  %v16114_v50 = vld [vmem:[%s15998_s22 + $0x51] sm:$0xff]  ;;  %v16127_v54 = vld [vmem:[%s15998_s22 + $0x61] sm:$0xff] }
  0x1f   : > { %14677 = vmatprep.subr.bf16.mxu0 %v14676_v15  ;;  %v11619_v52 = vld [vmem:[%s20433_s1 + $0x130] sm:$0xff]  ;;  %v11685_v57 = vld [vmem:[%s20433_s1 + $0x140] sm:$0xff]  ;;  %v11758_v43 = vld [vmem:[%s20433_s1 + $0x188] sm:$0xff] }
  0x20   : > { %v16130_v55 = vld [vmem:[%s15998_s22 + $0x71] sm:$0xff]  ;;  %v14704_v56 = vpack.c.bf16 %v11620_v53, %v11619_v52  ;;  %v11516_v59 = vld [vmem:[%s15998_s22 + $0x81] sm:$0xff]  ;;  %v14708_v61 = vpack.c.bf16 %v11686_v58, %v11685_v57 }
  0x21   : > { %13529 = vmatmul.mubr.msk.f32.vlgmr.msra.gmra.mrb[0].mxu0 %vm516_vm0, %v11438_v18  ;;  %v16144_v60 = vld [vmem:[%s15998_s22 + $0xa1] sm:$0xff]  ;;  %v16150_v62 = vld [vmem:[%s15998_s22 + $0xb1] sm:$0xff] }
  0x22   : > { %14679 = vmatpush3.bf16.msra.mxu0 %v14676_v15  ;;  %13531 = vmatprep.mubr.msk.f32.mxu0 %vm516_vm0, %v11439_v19  ;;  %v16153_v63 = vld [vmem:[%s15998_s22 + $0xc1] sm:$0xff]  ;;  %v16160_v0 = vld [vmem:[%s15998_s22 + $0xd1] sm:$0xff] }
  0x23   : > { %14681 = vmatprep.subr.bf16.mxu0 %v14680_v20  ;;  %v16163_v1 = vld [vmem:[%s15998_s22 + $0xe1] sm:$0xff]  ;;  %v16170_v2 = vld [vmem:[%s15998_s22 + $0xf1] sm:$0xff] }
  0x24   : > { %v16173_v4 = vld [vmem:[%s15998_s22 + $0x101] sm:$0xff]  ;;  %v16180_v6 = vld [vmem:[%s15998_s22 + $0x111] sm:$0xff] }
  0x25   : > { %13532 = vmatmul.mubr.msk.f32.gmra.mrb[2].mxu0 %vm516_vm0, %v11440_v23  ;;  %20510 = vst [vmem:[#allocation10_spill] sm:$0xff] %v16180_v6  ;;  %v16183_v7 = vld [vmem:[%s15998_s22 + $0x131] sm:$0xff]  ;;  %v16190_v9 = vld [vmem:[%s15998_s22 + $0x141] sm:$0xff] }
  0x26   : > { %13534 = vmatprep.mubr.msk.f32.mxu0 %vm516_vm0, %v11441_v24  ;;  %14683 = vmatpush3.bf16.msra.mxu0 %v14680_v20  ;;  %v16193_v10 = vld [vmem:[%s15998_s22 + $0x151] sm:$0xff]  ;;  %v16200_v11 = vld [vmem:[%s15998_s22 + $0x161] sm:$0xff] }
  0x27   : > { %14685 = vmatprep.subr.bf16.mxu0 %v14684_v25  ;;  %v16203_v13 = vld [vmem:[%s15998_s22 + $0x171] sm:$0xff]  ;;  %v16210_v14 = vld [vmem:[%s15998_s22 + $0x181] sm:$0xff] }
  0x28   : > { %v16213_v15 = vld [vmem:[%s15998_s22 + $0x191] sm:$0xff]  ;;  %v16220_v16 = vld [vmem:[%s15998_s22 + $0x1a1] sm:$0xff] }
  0x29   : > { %13535 = vmatmul.mubr.msk.f32.gmra.mrb[4].mxu0 %vm516_vm0, %v11442_v28  ;;  %20511 = vst [vmem:[#allocation11_spill] sm:$0xff] %v16220_v16  ;;  %v16223_v17 = vld [vmem:[%s15998_s22 + $0x1c1] sm:$0xff]  ;;  %v16230_v18 = vld [vmem:[%s15998_s22 + $0x1d1] sm:$0xff] }
  0x2a   : > { %13537 = vmatprep.mubr.msk.f32.mxu0 %vm516_vm0, %v11443_v29  ;;  %14687 = vmatpush3.bf16.msra.mxu0 %v14684_v25  ;;  %v16233_v19 = vld [vmem:[%s15998_s22 + $0x1e1] sm:$0xff]  ;;  %v16240_v20 = vld [vmem:[%s15998_s22 + $0x1f1] sm:$0xff] }
  0x2b   : > { %14689 = vmatprep.subr.bf16.mxu0 %v14688_v30  ;;  %20512 = vst [vmem:[#allocation12_spill] sm:$0xff] %v16240_v20  ;;  %v16243_v21 = vld [vmem:[%s15998_s22 + $0x201] sm:$0xff]  ;;  %v16250_v22 = vld [vmem:[%s15998_s22 + $0x211] sm:$0xff] }
  0x2c   : > { %20513 = vst [vmem:[#allocation13_spill] sm:$0xff] %v16243_v21  ;;  %20514 = vst [vmem:[#allocation14_spill] sm:$0xff] %v16250_v22  ;;  %v16253_v23 = vld [vmem:[%s15998_s22 + $0x221] sm:$0xff]  ;;  %v16260_v24 = vld [vmem:[%s15998_s22 + $0x231] sm:$0xff] }
  0x2d   : > { %13538 = vmatmul.mubr.msk.f32.gmra.mrb[6].mxu0 %vm516_vm0, %v11444_v33  ;;  %20515 = vst [vmem:[#allocation15_spill] sm:$0xff] %v16253_v23  ;;  %20516 = vst [vmem:[#allocation16_spill] sm:$0xff] %v16260_v24  ;;  %v11581_v25 = vld [vmem:[%s15998_s22 + $0x90] sm:$0xff]  ;;  %v11689_v29 = vld [vmem:[%s20433_s1 + $0x160] sm:$0xff] }
  0x2e   : > { %13540 = vmatprep.mubr.msk.f32.mxu0 %vm516_vm0, %v16053_v34  ;;  %14691 = vmatpush3.bf16.msra.mxu0 %v14688_v30  ;;  %v11687_v26 = vld [vmem:[%s20433_s1 + $0x150] sm:$0xff]  ;;  %v11690_v30 = vld [vmem:[%s20433_s1 + $0x168] sm:$0xff]  ;;  %v11692_v33 = vld [vmem:[%s20433_s1 + $0x178] sm:$0xff] }
  0x2f   : > { %14693 = vmatprep.subr.bf16.mxu0 %v14692_v35  ;;  %v14712_v28 = vpack.c.bf16 %v11688_v27, %v11687_v26  ;;  %v14716_v31 = vpack.c.bf16 %v11690_v30, %v11689_v29  ;;  %v11691_v32 = vld [vmem:[%s20433_s1 + $0x170] sm:$0xff]  ;;  %v11757_v42 = vld [vmem:[%s20433_s1 + $0x180] sm:$0xff]  ;;  %v11760_v12 = vld [vmem:[%s20433_s1 + $0x198] sm:$0xff] }
  0x30   : > { %v16306_v47 = vld [vmem:[%s15998_s22 + $0x120] sm:$0xff]  ;;  %v14724_v48 = vpack.c.bf16 %v11758_v43, %v11757_v42  ;;  %v16323_v53 = vld [vmem:[%s15998_s22 + $0x150] sm:$0xff] }
  0x31   : > { %13541 = vmatmul.mubr.msk.f32.gmra.mrb[8].mxu0 %vm516_vm0, %v16059_v36  ;;  %20517 = vst [vmem:[#allocation17_spill] sm:$0xff] %v16306_v47  ;;  %v16316_v52 = vld [vmem:[%s15998_s22 + $0x140] sm:$0xff]  ;;  %v16333_v57 = vld [vmem:[%s15998_s22 + $0x170] sm:$0xff] }
  0x32   : > { %13543 = vmatprep.mubr.msk.f32.mxu0 %vm516_vm0, %v16062_v37  ;;  %v16336_v58 = vld [vmem:[%s15998_s22 + $0x180] sm:$0xff]  ;;  %v16356_v26 = vld [vmem:[%s15998_s22 + $0x1d0] sm:$0xff] }
  0x33   : > { %v16363_v27 = vld [vmem:[%s15998_s22 + $0x1e0] sm:$0xff]  ;;  %v16376_v30 = vld [vmem:[%s15998_s22 + $0x210] sm:$0xff] }
  0x34   : > { %v16373_v29 = vld [vmem:[%s15998_s22 + $0x200] sm:$0xff]  ;;  %v16403_v42 = vld [vmem:[%s15998_s22 + $0x270] sm:$0xff] }
  0x35   : > { %13544 = vmatmul.mubr.msk.f32.gmra.mrb[10].mxu0 %vm516_vm0, %v16069_v38  ;;  %v16406_v43 = vld [vmem:[%s15998_s22 + $0x280] sm:$0xff] }
  0x36   : > { %13546 = vmatprep.mubr.msk.f32.mxu0 %vm516_vm0, %v16072_v39 }
  0x39   : > { %13547 = vmatmul.mubr.msk.f32.gmra.mrb[12].mxu0 %vm516_vm0, %v16079_v40 }
  0x3a   : > { %13592 = vmatprep.mubr.msk.f32.mxu0 %vm516_vm0, %v16082_v41 }
  0x3d   : > { %13593 = vmatmul.mubr.msk.f32.vlgmr.msra.gmra.mrb[0].mxu0 %vm516_vm0, %v16095_v44 }
  0x3e   : > { %14695 = vmatpush3.bf16.msra.mxu0 %v14692_v35  ;;  %13595 = vmatprep.mubr.msk.f32.mxu0 %vm516_vm0, %v16098_v45  ;;  %v14720_v35 = vpack.c.bf16 %v11692_v33, %v11691_v32  ;;  %v16386_v32 = vld [vmem:[%s15998_s22 + $0x240] sm:$0xff]  ;;  %v16393_v33 = vld [vmem:[%s15998_s22 + $0x250] sm:$0xff] }
  0x3f   : > { %14697 = vmatprep.subr.bf16.mxu0 %v14696_v46  ;;  %20519 = vst [vmem:[#allocation19_spill] sm:$0xff] %v16386_v32 }
  0x41   : > { %13596 = vmatmul.mubr.msk.f32.gmra.mrb[2].mxu0 %vm516_vm0, %v16111_v49 }
  0x42   : > { %13598 = vmatprep.mubr.msk.f32.mxu0 %vm516_vm0, %v16114_v50  ;;  %14699 = vmatpush3.bf16.msra.mxu0 %v14696_v46  ;;  %v16303_v46 = vld [vmem:[%s15998_s22 + $0x100] sm:$0xff] }
  0x43   : > { %14701 = vmatprep.subr.bf16.mxu0 %v14700_v51 }
  0x45   : > { %13599 = vmatmul.mubr.msk.f32.gmra.mrb[4].mxu0 %vm516_vm0, %v16127_v54 }
  0x46   : > { %13601 = vmatprep.mubr.msk.f32.mxu0 %vm516_vm0, %v16130_v55  ;;  %14703 = vmatpush3.bf16.msra.mxu0 %v14700_v51  ;;  %v16313_v51 = vld [vmem:[%s15998_s22 + $0x130] sm:$0xff] }
  0x47   : > { %14705 = vmatprep.subr.bf16.mxu0 %v14704_v56 }
  0x49   : > { %13602 = vmatmul.mubr.msk.f32.gmra.mrb[6].mxu0 %vm516_vm0, %v11516_v59  ;;  %v16343_v59 = vld [vmem:[%s15998_s22 + $0x190] sm:$0xff] }
  0x4a   : > { %13604 = vmatprep.mubr.msk.f32.mxu0 %vm516_vm0, %v16144_v60  ;;  %14707 = vmatpush3.bf16.msra.mxu0 %v14704_v56  ;;  %v16326_v56 = vld [vmem:[%s15998_s22 + $0x160] sm:$0xff] }
  0x4b   : > { %14709 = vmatprep.subr.bf16.mxu0 %v14708_v61 }
  0x4d   : > { %13605 = vmatmul.mubr.msk.f32.gmra.mrb[8].mxu0 %vm516_vm0, %v16150_v62 }
  0x4e   : > { %13607 = vmatprep.mubr.msk.f32.mxu0 %vm516_vm0, %v16153_v63 }
  0x51   : > { %13608 = vmatmul.mubr.msk.f32.gmra.mrb[10].mxu0 %vm516_vm0, %v16160_v0 }
  0x52   : > { %13610 = vmatprep.mubr.msk.f32.mxu0 %vm516_vm0, %v16163_v1 }
  0x55   : > { %13611 = vmatmul.mubr.msk.f32.gmra.mrb[12].mxu0 %vm516_vm0, %v16170_v2 }
  0x56   : > { %13613 = vmatprep.mubr.msk.f32.mxu0 %vm516_vm0, %v16173_v4 }
  0x59   : > { %13614 = vmatmul.mubr.msk.f32.gmra.mrb[14].mxu0 %vm516_vm0, %v16180_v6  ;;  %v11761_v6 = vld [vmem:[%s20433_s1 + $0x1a0] sm:$0xff] }
  0x5a   : > { %13616 = vmatprep.mubr.msk.f32.mxu0 %vm516_vm0, %v16183_v7  ;;  %v14732_v3 = vpack.c.bf16 %v11762_v5, %v11761_v6  ;;  %v11829_v5 = vld [vmem:[%s20433_s1 + $0x1c0] sm:$0xff]  ;;  %v11830_v6 = vld [vmem:[%s20433_s1 + $0x1c8] sm:$0xff] }
  0x5d   : > { %13617 = vmatmul.mubr.msk.f32.gmra.mrb[16].mxu0 %vm516_vm0, %v16190_v9 }
  0x5e   : > { %13619 = vmatprep.mubr.msk.f32.mxu0 %vm516_vm0, %v16193_v10 }
  0x61   : > { %13620 = vmatmul.mubr.msk.f32.gmra.mrb[18].mxu0 %vm516_vm0, %v16200_v11 }
  0x62   : > { %13622 = vmatprep.mubr.msk.f32.mxu0 %vm516_vm0, %v16203_v13 }
  0x65   : > { %13623 = vmatmul.mubr.msk.f32.gmra.mrb[20].mxu0 %vm516_vm0, %v16210_v14 }
  0x66   : > { %13625 = vmatprep.mubr.msk.f32.mxu0 %vm516_vm0, %v16213_v15 }
  0x69   : > { %13626 = vmatmul.mubr.msk.f32.gmra.mrb[22].mxu0 %vm516_vm0, %v16220_v16  ;;  %v11759_v16 = vld [vmem:[%s20433_s1 + $0x190] sm:$0xff] }
  0x6a   : > { %13628 = vmatprep.mubr.msk.f32.mxu0 %vm516_vm0, %v16223_v17  ;;  %v14728_v8 = vpack.c.bf16 %v11760_v12, %v11759_v16  ;;  %v11763_v12 = vld [vmem:[%s20433_s1 + $0x1b0] sm:$0xff]  ;;  %v11764_v16 = vld [vmem:[%s20433_s1 + $0x1b8] sm:$0xff] }
  0x6d   : > { %13629 = vmatmul.mubr.msk.f32.gmra.mrb[24].mxu0 %vm516_vm0, %v16230_v18 }
  0x6e   : > { %13631 = vmatprep.mubr.msk.f32.mxu0 %vm516_vm0, %v16233_v19 }
  0x71   : > { %13632 = vmatmul.mubr.msk.f32.gmra.mrb[26].mxu0 %vm516_vm0, %v16240_v20 }
  0x72   : > { %13634 = vmatprep.mubr.msk.f32.mxu0 %vm516_vm0, %v16243_v21 }
  0x75   : > { %13635 = vmatmul.mubr.msk.f32.gmra.mrb[28].mxu0 %vm516_vm0, %v16250_v22 }
  0x76   : > { %13637 = vmatprep.mubr.msk.f32.mxu0 %vm516_vm0, %v16253_v23 }
  0x79   : > { %13638 = vmatmul.mubr.msk.f32.gmra.mrb[30].mxu0 %vm516_vm0, %v16260_v24  ;;  %v16426_v24 = vld [vmem:[%s15998_s22 + $0x91] sm:$0xff] }
  0x7a   : > { %13656 = vmatprep.mubr.msk.f32.mxu0 %vm516_vm0, %v11581_v25  ;;  %v16353_v25 = vld [vmem:[%s15998_s22 + $0x1c0] sm:$0xff] }
  0x7d   : > { %13657 = vmatmul.mubr.msk.f32.vlgmr.msra.gmra.mrb[0].mxu0 %vm516_vm0, %v16053_v34 }
  0x7e   : > { %14711 = vmatpush3.bf16.msra.mxu0 %v14708_v61  ;;  %13659 = vmatprep.mubr.msk.f32.mxu0 %vm516_vm0, %v16059_v36  ;;  %v16346_v61 = vld [vmem:[%s15998_s22 + $0x1b0] sm:$0xff] }
  0x7f   : > { %14713 = vmatprep.subr.bf16.mxu0 %v14712_v28  ;;  %20518 = vst [vmem:[#allocation18_spill] sm:$0xff] %v16346_v61 }
  0x81   : > { %13660 = vmatmul.mubr.msk.f32.gmra.mrb[2].mxu0 %vm516_vm0, %v16062_v37 }
  0x82   : > { %13662 = vmatprep.mubr.msk.f32.mxu0 %vm516_vm0, %v16069_v38  ;;  %14715 = vmatpush3.bf16.msra.mxu0 %v14712_v28  ;;  %v16366_v28 = vld [vmem:[%s15998_s22 + $0x1f0] sm:$0xff] }
  0x83   : > { %14717 = vmatprep.subr.bf16.mxu0 %v14716_v31 }
  0x85   : > { %13663 = vmatmul.mubr.msk.f32.gmra.mrb[4].mxu0 %vm516_vm0, %v16072_v39 }
  0x86   : > { %13665 = vmatprep.mubr.msk.f32.mxu0 %vm516_vm0, %v16079_v40  ;;  %14719 = vmatpush3.bf16.msra.mxu0 %v14716_v31  ;;  %v16383_v31 = vld [vmem:[%s15998_s22 + $0x220] sm:$0xff] }
  0x87   : > { %14721 = vmatprep.subr.bf16.mxu0 %v14720_v35 }
  0x89   : > { %13666 = vmatmul.mubr.msk.f32.gmra.mrb[6].mxu0 %vm516_vm0, %v16303_v46 }
  0x8a   : > { %13668 = vmatprep.mubr.msk.f32.mxu0 %vm516_vm0, %v16306_v47  ;;  %14723 = vmatpush3.bf16.msra.mxu0 %v14720_v35  ;;  %v16396_v35 = vld [vmem:[%s15998_s22 + $0x260] sm:$0xff]  ;;  %v16423_v47 = vld [vmem:[%s15998_s22 + $0x2b0] sm:$0xff] }
  0x8b   : > { %14725 = vmatprep.subr.bf16.mxu0 %v14724_v48  ;;  %20520 = vst [vmem:[#allocation20_spill] sm:$0xff] %v16423_v47 }
  0x8d   : > { %13669 = vmatmul.mubr.msk.f32.gmra.mrb[8].mxu0 %vm516_vm0, %v16313_v51 }
  0x8e   : > { %13671 = vmatprep.mubr.msk.f32.mxu0 %vm516_vm0, %v16316_v52 }
  0x91   : > { %13672 = vmatmul.mubr.msk.f32.gmra.mrb[10].mxu0 %vm516_vm0, %v16323_v53 }
  0x92   : > { %13674 = vmatprep.mubr.msk.f32.mxu0 %vm516_vm0, %v16326_v56 }
  0x95   : > { %13675 = vmatmul.mubr.msk.f32.gmra.mrb[12].mxu0 %vm516_vm0, %v16333_v57 }
  0x96   : > { %13677 = vmatprep.mubr.msk.f32.mxu0 %vm516_vm0, %v16336_v58 }
  0x99   : > { %13678 = vmatmul.mubr.msk.f32.gmra.mrb[14].mxu0 %vm516_vm0, %v16343_v59 }
  0x9a   : > { %13680 = vmatprep.mubr.msk.f32.mxu0 %vm516_vm0, %v16346_v61  ;;  %v16416_v61 = vld [vmem:[%s15998_s22 + $0x2a0] sm:$0xff] }
  0x9d   : > { %13681 = vmatmul.mubr.msk.f32.gmra.mrb[16].mxu0 %vm516_vm0, %v16353_v25 }
  0x9e   : > { %13683 = vmatprep.mubr.msk.f32.mxu0 %vm516_vm0, %v16356_v26 }
  0xa1   : > { %13684 = vmatmul.mubr.msk.f32.gmra.mrb[18].mxu0 %vm516_vm0, %v16363_v27 }
  0xa2   : > { %13686 = vmatprep.mubr.msk.f32.mxu0 %vm516_vm0, %v16366_v28 }
  0xa5   : > { %13687 = vmatmul.mubr.msk.f32.gmra.mrb[20].mxu0 %vm516_vm0, %v16373_v29 }
  0xa6   : > { %13689 = vmatprep.mubr.msk.f32.mxu0 %vm516_vm0, %v16376_v30 }
  0xa9   : > { %13690 = vmatmul.mubr.msk.f32.gmra.mrb[22].mxu0 %vm516_vm0, %v16383_v31 }
  0xaa   : > { %13692 = vmatprep.mubr.msk.f32.mxu0 %vm516_vm0, %v16386_v32  ;;  %v16413_v32 = vld [vmem:[%s15998_s22 + $0x290] sm:$0xff] }
  0xad   : > { %13693 = vmatmul.mubr.msk.f32.gmra.mrb[24].mxu0 %vm516_vm0, %v16393_v33 }
  0xae   : > { %13695 = vmatprep.mubr.msk.f32.mxu0 %vm516_vm0, %v16396_v35 }
  0xb1   : > { %13696 = vmatmul.mubr.msk.f32.gmra.mrb[26].mxu0 %vm516_vm0, %v16403_v42 }
  0xb2   : > { %13698 = vmatprep.mubr.msk.f32.mxu0 %vm516_vm0, %v16406_v43 }
  0xb5   : > { %13699 = vmatmul.mubr.msk.f32.gmra.mrb[28].mxu0 %vm516_vm0, %v16413_v32 }
  0xb6   : > { %13701 = vmatprep.mubr.msk.f32.mxu0 %vm516_vm0, %v16416_v61 }
  0xb9   : > { %13702 = vmatmul.mubr.msk.f32.gmra.mrb[30].mxu0 %vm516_vm0, %v16423_v47  ;;  %v16469_v47 = vld [vmem:[%s15998_s22 + $0x121] sm:$0xff] }
  0xba   : > { %13720 = vmatprep.mubr.msk.f32.mxu0 %vm516_vm0, %v16426_v24 }
  0xbd   : > { %13721 = vmatmul.mubr.msk.f32.vlgmr.msra.gmra.mrb[0].mxu0 %vm516_vm0, %v16144_v60 }
  0xbe   : > { %14727 = vmatpush3.bf16.msra.mxu0 %v14724_v48  ;;  %13723 = vmatprep.mubr.msk.f32.mxu0 %vm516_vm0, %v16150_v62  ;;  %v14736_v48 = vpack.c.bf16 %v11764_v16, %v11763_v12  ;;  %v16510_v12 = vld [vmem:[%s15998_s22 + $0x241] sm:$0xff]  ;;  %v16517_v16 = vld [vmem:[%s15998_s22 + $0x251] sm:$0xff] }
  0xbf   : > { %14729 = vmatprep.subr.bf16.mxu0 %v14728_v8  ;;  %20521 = vst [vmem:[#allocation21_spill] sm:$0xff] %v16510_v12  ;;  %20522 = vst [vmem:[#allocation22_spill] sm:$0xff] %v16517_v16 }
  0xc1   : > { %13724 = vmatmul.mubr.msk.f32.gmra.mrb[2].mxu0 %vm516_vm0, %v16153_v63 }
  0xc2   : > { %13726 = vmatprep.mubr.msk.f32.mxu0 %vm516_vm0, %v16160_v0  ;;  %14731 = vmatpush3.bf16.msra.mxu0 %v14728_v8  ;;  %v16471_v8 = vpack.c.bf16 %v11830_v6, %v11829_v5  ;;  %v11365_v5 = vld [vmem:[%s20433_s1 + $0x40] sm:$0xff]  ;;  %v16530_v6 = vld [vmem:[%s15998_s22 + $0x271] sm:$0xff] }
  0xc3   : > { %14733 = vmatprep.subr.bf16.mxu0 %v14732_v3  ;;  %20524 = vst [vmem:[#allocation24_spill] sm:$0xff] %v16530_v6 }
  0xc5   : > { %13727 = vmatmul.mubr.msk.f32.gmra.mrb[4].mxu0 %vm516_vm0, %v16163_v1 }
  0xc6   : > { %13729 = vmatprep.mubr.msk.f32.mxu0 %vm516_vm0, %v16170_v2  ;;  %14735 = vmatpush3.bf16.msra.mxu0 %v14732_v3  ;;  %v16491_v3 = vld [vmem:[%s15998_s22 + $0x1b1] sm:$0xff] }
  0xc7   : > { %14737 = vmatprep.subr.bf16.mxu0 %v14736_v48 }
  0xc9   : > { %13730 = vmatmul.mubr.msk.f32.gmra.mrb[6].mxu0 %vm516_vm0, %v16173_v4 }
  0xca   : > { %13732 = vmatprep.mubr.msk.f32.mxu0 %vm516_vm0, %v16469_v47  ;;  %14739 = vmatpush3.bf16.msra.mxu0 %v14736_v48  ;;  %v16520_v48 = vld [vmem:[%s15998_s22 + $0x261] sm:$0xff] }
  0xcb   : > { %14741 = vmatprep.subr.bf16.mxu0 %v16471_v8  ;;  %20523 = vst [vmem:[#allocation23_spill] sm:$0xff] %v16520_v48 }
  0xcd   : > { %13733 = vmatmul.mubr.msk.f32.gmra.mrb[8].mxu0 %vm516_vm0, %v16183_v7 }
  0xce   : > { %13735 = vmatprep.mubr.msk.f32.mxu0 %vm516_vm0, %v16190_v9 }
  0xd1   : > { %13736 = vmatmul.mubr.msk.f32.gmra.mrb[10].mxu0 %vm516_vm0, %v16193_v10 }
  0xd2   : > { %13738 = vmatprep.mubr.msk.f32.mxu0 %vm516_vm0, %v16200_v11 }
  0xd5   : > { %13739 = vmatmul.mubr.msk.f32.gmra.mrb[12].mxu0 %vm516_vm0, %v16203_v13 }
  0xd6   : > { %13741 = vmatprep.mubr.msk.f32.mxu0 %vm516_vm0, %v16210_v14 }
  0xd9   : > { %13742 = vmatmul.mubr.msk.f32.gmra.mrb[14].mxu0 %vm516_vm0, %v16213_v15 }
  0xda   : > { %13744 = vmatprep.mubr.msk.f32.mxu0 %vm516_vm0, %v16491_v3 }
  0xdd   : > { %13745 = vmatmul.mubr.msk.f32.gmra.mrb[16].mxu0 %vm516_vm0, %v16223_v17 }
  0xde   : > { %13747 = vmatprep.mubr.msk.f32.mxu0 %vm516_vm0, %v16230_v18 }
  0xe1   : > { %13748 = vmatmul.mubr.msk.f32.gmra.mrb[18].mxu0 %vm516_vm0, %v16233_v19 }
  0xe2   : > { %13750 = vmatprep.mubr.msk.f32.mxu0 %vm516_vm0, %v16240_v20 }
  0xe5   : > { %13751 = vmatmul.mubr.msk.f32.gmra.mrb[20].mxu0 %vm516_vm0, %v16243_v21  ;;  %v16549_v21 = vld [vmem:[%s15998_s22 + $0x291] sm:$0xff] }
  0xe6   : > { %13753 = vmatprep.mubr.msk.f32.mxu0 %vm516_vm0, %v16250_v22  ;;  %20526 = vst [vmem:[#allocation26_spill] sm:$0xff] %v16549_v21 }
  0xe9   : > { %13754 = vmatmul.mubr.msk.f32.gmra.mrb[22].mxu0 %vm516_vm0, %v16253_v23  ;;  %v16536_v23 = vld [vmem:[%s15998_s22 + $0x281] sm:$0xff] }
  0xea   : > { %13756 = vmatprep.mubr.msk.f32.mxu0 %vm516_vm0, %v16510_v12  ;;  %v11366_v12 = vld [vmem:[%s20433_s1 + $0x48] sm:$0xff]  ;;  %20525 = vst [vmem:[#allocation25_spill] sm:$0xff] %v16536_v23 }
  0xeb   : > { %v14628_v22 = vpack.c.bf16 %v11366_v12, %v11365_v5  ;;  %v16552_v12 = vld [vmem:[%s15998_s22 + $0x2a1] sm:$0xff] }
  0xec   : > { %20527 = vst [vmem:[#allocation27_spill] sm:$0xff] %v16552_v12  ;;  %v11369_v5 = vld [vmem:[%s20433_s1 + $0x60] sm:$0xff] }
  0xed   : > { %13757 = vmatmul.mubr.msk.f32.gmra.mrb[24].mxu0 %vm516_vm0, %v16517_v16  ;;  %14629 = vmatprep.subr.bf16.mxu1 %v14628_v22  ;;  %v11367_v16 = vld [vmem:[%s20433_s1 + $0x50] sm:$0xff] }
  0xee   : > { %13759 = vmatprep.mubr.msk.f32.mxu0 %vm516_vm0, %v16520_v48  ;;  %v11368_v48 = vld [vmem:[%s20433_s1 + $0x58] sm:$0xff]  ;;  %14631 = vmatpush3.bf16.msra.mxu1 %v14628_v22 }
  0xef   : > { %v14632_v20 = vpack.c.bf16 %v11368_v48, %v11367_v16  ;;  %v11831_v16 = vld [vmem:[%s20433_s1 + $0x1d0] sm:$0xff]  ;;  %v11832_v48 = vld [vmem:[%s20433_s1 + $0x1d8] sm:$0xff] }
  0xf1   : > { %13760 = vmatmul.mubr.msk.f32.gmra.mrb[26].mxu0 %vm516_vm0, %v16530_v6  ;;  %14633 = vmatprep.subr.bf16.mxu1 %v14632_v20  ;;  %v11370_v6 = vld [vmem:[%s20433_s1 + $0x68] sm:$0xff] }
  0xf2   : > { %13762 = vmatprep.mubr.msk.f32.mxu0 %vm516_vm0, %v16536_v23  ;;  %v16565_v23 = vld [vmem:[%s15998_s22 + $0x2b1] sm:$0xff]  ;;  %14635 = vmatpush3.bf16.msra.mxu1 %v14632_v20  ;;  %v14636_v22 = vpack.c.bf16 %v11370_v6, %v11369_v5  ;;  %v14744_v5 = vpack.c.bf16 %v11832_v48, %v11831_v16 }
  0xf3   : > { %20528 = vst [vmem:[#allocation28_spill] sm:$0xff] %v16565_v23  ;;  %v11372_v20 = vld [vmem:[%s20433_s1 + $0x78] sm:$0xff] }
  0xf4   : > { %14637 = vmatprep.subr.bf16.mxu1 %v14636_v22  ;;  %v11836_v16 = vld [vmem:[%s20433_s1 + $0x1f8] sm:$0xff] }
  0xf5   : > { %13763 = vmatmul.mubr.msk.f32.gmra.mrb[28].mxu0 %vm516_vm0, %v16549_v21  ;;  %v11833_v21 = vld [vmem:[%s20433_s1 + $0x1e0] sm:$0xff] }
  0xf6   : > { %13765 = vmatprep.mubr.msk.f32.mxu0 %vm516_vm0, %v16552_v12  ;;  %v11371_v12 = vld [vmem:[%s20433_s1 + $0x70] sm:$0xff]  ;;  %14639 = vmatpush3.bf16.msra.mxu1 %v14636_v22 }
  0xf7   : > { %v14640_v6 = vpack.c.bf16 %v11372_v20, %v11371_v12  ;;  %v11835_v22 = vld [vmem:[%s20433_s1 + $0x1f0] sm:$0xff] }
  0xf8   : > { %v11903_v20 = vld [vmem:[%s20433_s1 + $0x210] sm:$0xff] }
  0xf9   : > { %13766 = vmatmul.mubr.msk.f32.gmra.mrb[30].mxu0 %vm516_vm0, %v16565_v23  ;;  %v11834_v23 = vld [vmem:[%s20433_s1 + $0x1e8] sm:$0xff]  ;;  %14641 = vmatprep.subr.bf16.mxu1 %v14640_v6 }
  0xfa   : > { %13784 = vmatprep.mubr.msk.f32.mxu0 %vm516_vm0, %v16053_v34  ;;  %v475_v34 = vld [vmem:[%s15998_s22 + $0x1] sm:$0xff]  ;;  %v14748_v12 = vpack.c.bf16 %v11834_v23, %v11833_v21  ;;  %14643 = vmatpush3.bf16.msra.mxu1 %v14640_v6  ;;  %v11904_v6 = vld [vmem:[%s20433_s1 + $0x218] sm:$0xff] }
  0xfb   : > { %13400 = vmatprep.mubr.msk.f32.mxu1 %vm516_vm0, %v475_v34  ;;  %v11902_v21 = vld [vmem:[%s20433_s1 + $0x208] sm:$0xff]  ;;  %v471_v23 = vld [vmem:[%s20433_s1 + $0x20] sm:$0xff] }
  0xfc   : > { %v16755_v34 = vld [vmem:[%s15998_s22 + $0x201] sm:$0xff] }
  0xfd   : > { %13785 = vmatmul.mubr.msk.f32.vlgmr.msra.gmra.mrb[0].mxu0 %vm516_vm0, %v16059_v36  ;;  %v14752_v36 = vpack.c.bf16 %v11836_v16, %v11835_v22  ;;  %13401 = vmatmul.mubr.msk.f32.vlgmr.msra.gmra.mrb[0].mxu1 %vm516_vm0, %v16082_v41  ;;  %v11748_v41 = vld [vmem:[%s15998_s22 + $0x230] sm:$0xff]  ;;  %v474_v16 = vld [vmem:[%s20433_s1 + $0x38] sm:$0xff] }
  0xfe   : > { %14743 = vmatpush3.bf16.msra.mxu0 %v16471_v8  ;;  %13787 = vmatprep.mubr.msk.f32.mxu0 %vm516_vm0, %v16062_v37  ;;  %v11901_v37 = vld [vmem:[%s20433_s1 + $0x200] sm:$0xff]  ;;  %v473_v22 = vld [vmem:[%s20433_s1 + $0x30] sm:$0xff] }
  0xff   : > { %14745 = vmatprep.subr.bf16.mxu0 %v14744_v5  ;;  %13403 = vmatprep.mubr.msk.f32.mxu1 %vm516_vm0, %v16095_v44  ;;  %v467_v44 = vld [vmem:[%s20433_s1] sm:$0xff] }
 0x100   : > { %v11756_v8 = vld [vmem:[%s15998_s22 + $0x2c0] sm:$0xff] }
 0x101   : > { %13788 = vmatmul.mubr.msk.f32.gmra.mrb[2].mxu0 %vm516_vm0, %v16069_v38  ;;  %v16621_v38 = vld [vmem:[%s15998_s22 + $0x110] sm:$0xff]  ;;  %13404 = vmatmul.mubr.msk.f32.gmra.mrb[2].mxu1 %vm516_vm0, %v16098_v45  ;;  %v468_v45 = vld [vmem:[%s20433_s1 + $0x8] sm:$0xff] }
 0x102   : > { %13790 = vmatprep.mubr.msk.f32.mxu0 %vm516_vm0, %v16072_v39  ;;  %14747 = vmatpush3.bf16.msra.mxu0 %v14744_v5  ;;  %v16623_v39 = vpack.c.bf16 %v11902_v21, %v11901_v37  ;;  %v20530_v5 = vld [vmem:[#allocation12_spill] sm:$0xff]  ;;  %v14760_v37 = vpack.c.bf16 %v11904_v6, %v11903_v20  ;;  %v11905_v21 = vld [vmem:[%s20433_s1 + $0x220] sm:$0xff] }
 0x103   : > { %14749 = vmatprep.subr.bf16.mxu0 %v14748_v12  ;;  %13406 = vmatprep.mubr.msk.f32.mxu1 %vm516_vm0, %v16111_v49  ;;  %v14644_v49 = vpack.c.bf16 %v468_v45, %v467_v44  ;;  %v435_v44 = vld [vmem:[%s15998_s22] sm:$0xff]  ;;  %v20534_v6 = vld [vmem:[#allocation8_spill] sm:$0xff] }
 0x104   : > { %v441_v20 = vld [vmem:[%s15998_s22 + $0x60] sm:$0xff] }
 0x105   : > { %13791 = vmatmul.mubr.msk.f32.gmra.mrb[4].mxu0 %vm516_vm0, %v16079_v40  ;;  %13407 = vmatmul.mubr.msk.f32.gmra.mrb[4].mxu1 %vm516_vm0, %v16114_v50  ;;  %v16659_v40 = vld [vmem:[%s15998_s22 + $0x1a0] sm:$0xff]  ;;  %v469_v50 = vld [vmem:[%s20433_s1 + $0x10] sm:$0xff] }
 0x106   : > { %13793 = vmatprep.mubr.msk.f32.mxu0 %vm516_vm0, %v16303_v46  ;;  %14751 = vmatpush3.bf16.msra.mxu0 %v14748_v12  ;;  %v20529_v46 = vld [vmem:[#allocation20_spill] sm:$0xff] }
 0x107   : > { %14753 = vmatprep.subr.bf16.mxu0 %v14752_v36  ;;  %13409 = vmatprep.mubr.msk.f32.mxu1 %vm516_vm0, %v16127_v54  ;;  %v470_v54 = vld [vmem:[%s20433_s1 + $0x18] sm:$0xff] }
 0x108   : > { %14645 = vmatprep.subr.bf16.mxu1 %v14644_v49  ;;  %v16759_v12 = vld [vmem:[%s15998_s22 + $0x211] sm:$0xff] }
 0x109   : > { %13794 = vmatmul.mubr.msk.f32.gmra.mrb[6].mxu0 %vm516_vm0, %v16621_v38  ;;  %13410 = vmatmul.mubr.msk.f32.gmra.mrb[6].mxu1 %vm516_vm0, %v16130_v55  ;;  %v14648_v55 = vpack.c.bf16 %v470_v54, %v469_v50  ;;  %v20531_v50 = vld [vmem:[#allocation6_spill] sm:$0xff] }
 0x10a   : > { %13796 = vmatprep.mubr.msk.f32.mxu0 %vm516_vm0, %v16313_v51  ;;  %14755 = vmatpush3.bf16.msra.mxu0 %v14752_v36  ;;  %v14656_v36 = vpack.c.bf16 %v474_v16, %v473_v22  ;;  %v443_v22 = vld [vmem:[%s15998_s22 + $0x90] sm:$0xff]  ;;  %v20535_v16 = vld [vmem:[#allocation9_spill] sm:$0xff] }
 0x10b   : > { %14757 = vmatprep.subr.bf16.mxu0 %v16623_v39  ;;  %13412 = vmatprep.mubr.msk.f32.mxu1 %vm516_vm0, %v16426_v24  ;;  %v472_v24 = vld [vmem:[%s20433_s1 + $0x28] sm:$0xff] }
 0x10c   : > { %14647 = vmatpush3.bf16.msra.mxu1 %v14644_v49  ;;  %v14652_v48 = vpack.c.bf16 %v472_v24, %v471_v23  ;;  %v11907_v49 = vld [vmem:[%s20433_s1 + $0x230] sm:$0xff]  ;;  %v20532_v24 = vld [vmem:[#allocation7_spill] sm:$0xff] }
 0x10d   : > { %13797 = vmatmul.mubr.msk.f32.gmra.mrb[8].mxu0 %vm516_vm0, %v16316_v52  ;;  %13413 = vmatmul.mubr.msk.f32.gmra.mrb[8].mxu1 %vm516_vm0, %v16144_v60  ;;  %v438_v23 = vld [vmem:[%s15998_s22 + $0x30] sm:$0xff] }
 0x10e   : > { %13799 = vmatprep.mubr.msk.f32.mxu0 %vm516_vm0, %v16323_v53  ;;  %13415 = vmatprep.mubr.msk.f32.mxu1 %vm516_vm0, %v16150_v62 }
 0x10f   : > { %14649 = vmatprep.subr.bf16.mxu1 %v14648_v55 }
 0x110   : > { %14651 = vmatpush3.bf16.msra.mxu1 %v14648_v55  ;;  %v11973_v55 = vld [vmem:[%s20433_s1 + $0x240] sm:$0xff] }
 0x111   : > { %13800 = vmatmul.mubr.msk.f32.gmra.mrb[10].mxu0 %vm516_vm0, %v16326_v56  ;;  %13416 = vmatmul.mubr.msk.f32.gmra.mrb[10].mxu1 %vm516_vm0, %v16153_v63 }
 0x112   : > { %13802 = vmatprep.mubr.msk.f32.mxu0 %vm516_vm0, %v16333_v57  ;;  %13418 = vmatprep.mubr.msk.f32.mxu1 %vm516_vm0, %v16160_v0 }
 0x113   : > { %14653 = vmatprep.subr.bf16.mxu1 %v14652_v48 }
 0x114   : > { %14655 = vmatpush3.bf16.msra.mxu1 %v14652_v48  ;;  %v440_v48 = vld [vmem:[%s15998_s22 + $0x50] sm:$0xff] }
 0x115   : > { %13803 = vmatmul.mubr.msk.f32.gmra.mrb[12].mxu0 %vm516_vm0, %v16336_v58  ;;  %13419 = vmatmul.mubr.msk.f32.gmra.mrb[12].mxu1 %vm516_vm0, %v16163_v1 }
 0x116   : > { %13805 = vmatprep.mubr.msk.f32.mxu0 %vm516_vm0, %v16343_v59  ;;  %13421 = vmatprep.mubr.msk.f32.mxu1 %vm516_vm0, %v16170_v2 }
 0x117   : > { %14657 = vmatprep.subr.bf16.mxu1 %v14656_v36 }
 0x118   : > { %14659 = vmatpush3.bf16.msra.mxu1 %v14656_v36  ;;  %v445_v36 = vld [vmem:[%s15998_s22 + $0xb0] sm:$0xff] }
 0x119   : > { %13806 = vmatmul.mubr.msk.f32.gmra.mrb[14].mxu0 %vm516_vm0, %v16659_v40  ;;  %13422 = vmatmul.mubr.msk.f32.gmra.mrb[14].mxu1 %vm516_vm0, %v16173_v4 }
 0x11a   : > { %13808 = vmatprep.mubr.msk.f32.mxu0 %vm516_vm0, %v16353_v25  ;;  %13424 = vmatprep.mubr.msk.f32.mxu1 %vm516_vm0, %v16469_v47 }
 0x11b   : > { %15268 = vmatprep.subr.bf16.mxu1 %v20531_v50 }
 0x11d   : > { %13809 = vmatmul.mubr.msk.f32.gmra.mrb[16].mxu0 %vm516_vm0, %v16356_v26  ;;  %13425 = vmatmul.mubr.msk.f32.gmra.mrb[16].mxu1 %vm516_vm0, %v16183_v7 }
 0x11e   : > { %13811 = vmatprep.mubr.msk.f32.mxu0 %vm516_vm0, %v16363_v27  ;;  %13427 = vmatprep.mubr.msk.f32.mxu1 %vm516_vm0, %v16190_v9 }
 0x121   : > { %13812 = vmatmul.mubr.msk.f32.gmra.mrb[18].mxu0 %vm516_vm0, %v16366_v28  ;;  %13428 = vmatmul.mubr.msk.f32.gmra.mrb[18].mxu1 %vm516_vm0, %v16193_v10 }
 0x122   : > { %13814 = vmatprep.mubr.msk.f32.mxu0 %vm516_vm0, %v16373_v29  ;;  %13430 = vmatprep.mubr.msk.f32.mxu1 %vm516_vm0, %v16200_v11 }
 0x125   : > { %13815 = vmatmul.mubr.msk.f32.gmra.mrb[20].mxu0 %vm516_vm0, %v16376_v30  ;;  %13431 = vmatmul.mubr.msk.f32.gmra.mrb[20].mxu1 %vm516_vm0, %v16203_v13 }
 0x126   : > { %13817 = vmatprep.mubr.msk.f32.mxu0 %vm516_vm0, %v16383_v31  ;;  %13433 = vmatprep.mubr.msk.f32.mxu1 %vm516_vm0, %v16210_v14 }
 0x129   : > { %13818 = vmatmul.mubr.msk.f32.gmra.mrb[22].mxu0 %vm516_vm0, %v11748_v41  ;;  %13434 = vmatmul.mubr.msk.f32.gmra.mrb[22].mxu1 %vm516_vm0, %v16213_v15  ;;  %v11906_v41 = vld [vmem:[%s20433_s1 + $0x228] sm:$0xff] }
 0x12a   : > { %13820 = vmatprep.mubr.msk.f32.mxu0 %vm516_vm0, %v16393_v33  ;;  %13436 = vmatprep.mubr.msk.f32.mxu1 %vm516_vm0, %v16491_v3  ;;  %v14764_v45 = vpack.c.bf16 %v11906_v41, %v11905_v21  ;;  %v16887_v21 = vld [vmem:[%s15998_s22 + $0x140] sm:$0xff]  ;;  %v20537_v41 = vld [vmem:[#allocation13_spill] sm:$0xff] }
 0x12d   : > { %13821 = vmatmul.mubr.msk.f32.gmra.mrb[24].mxu0 %vm516_vm0, %v16396_v35  ;;  %13437 = vmatmul.mubr.msk.f32.gmra.mrb[24].mxu1 %vm516_vm0, %v16223_v17 }
 0x12e   : > { %13823 = vmatprep.mubr.msk.f32.mxu0 %vm516_vm0, %v16403_v42  ;;  %13439 = vmatprep.mubr.msk.f32.mxu1 %vm516_vm0, %v16230_v18 }
 0x131   : > { %13824 = vmatmul.mubr.msk.f32.gmra.mrb[26].mxu0 %vm516_vm0, %v16406_v43  ;;  %13440 = vmatmul.mubr.msk.f32.gmra.mrb[26].mxu1 %vm516_vm0, %v16233_v19 }
 0x132   : > { %13826 = vmatprep.mubr.msk.f32.mxu0 %vm516_vm0, %v16413_v32  ;;  %13442 = vmatprep.mubr.msk.f32.mxu1 %vm516_vm0, %v20530_v5 }
 0x135   : > { %13827 = vmatmul.mubr.msk.f32.gmra.mrb[28].mxu0 %vm516_vm0, %v16416_v61  ;;  %13443 = vmatmul.mubr.msk.f32.gmra.mrb[28].mxu1 %vm516_vm0, %v16755_v34 }
 0x136   : > { %13829 = vmatprep.mubr.msk.f32.mxu0 %vm516_vm0, %v20529_v46  ;;  %13445 = vmatprep.mubr.msk.f32.mxu1 %vm516_vm0, %v16759_v12 }
 0x139   : > { %13830 = vmatmul.mubr.msk.f32.gmra.mrb[30].mxu0 %vm516_vm0, %v11756_v8 }
 0x13a   : > { %13848 = vmatprep.mubr.msk.f32.mxu0 %vm516_vm0, %v16144_v60  ;;  %v16780_v60 = vld [vmem:[%s15998_s22 + $0x221] sm:$0xff] }
 0x13b   : > { %13446 = vmatmul.mubr.msk.f32.gmra.mrb[30].mxu1 %vm516_vm0, %v16780_v60 }
 0x13c   : > { %13464 = vmatprep.mubr.msk.f32.mxu1 %vm516_vm0, %v435_v44  ;;  %v16901_v44 = vld [vmem:[%s15998_s22 + $0x160] sm:$0xff] }
 0x13d   : > { %13849 = vmatmul.mubr.msk.f32.vlgmr.msra.gmra.mrb[0].mxu0 %vm516_vm0, %v16150_v62  ;;  %v11908_v62 = vld [vmem:[%s20433_s1 + $0x238] sm:$0xff] }
 0x13e   : > { %14759 = vmatpush3.bf16.msra.mxu0 %v16623_v39  ;;  %13851 = vmatprep.mubr.msk.f32.mxu0 %vm516_vm0, %v16153_v63  ;;  %v436_v63 = vld [vmem:[%s15998_s22 + $0x10] sm:$0xff]  ;;  %v437_v39 = vld [vmem:[%s15998_s22 + $0x20] sm:$0xff]  ;;  %v14768_v54 = vpack.c.bf16 %v11908_v62, %v11907_v49 }
 0x13f   : > { %14761 = vmatprep.subr.bf16.mxu0 %v14760_v37  ;;  %13465 = vmatmul.mubr.msk.f32.vlgmr.msra.gmra.mrb[0].mxu1 %vm516_vm0, %v436_v63  ;;  %v20540_v49 = vld [vmem:[#allocation16_spill] sm:$0xff]  ;;  %v16915_v62 = vld [vmem:[%s15998_s22 + $0x180] sm:$0xff] }
 0x140   : > { %13467 = vmatprep.mubr.msk.f32.mxu1 %vm516_vm0, %v437_v39  ;;  %15272 = vmatpush3.bf16.msra.mxu1 %v20531_v50  ;;  %v20541_v63 = vld [vmem:[#allocation22_spill] sm:$0xff]  ;;  %v16924_v39 = vld [vmem:[%s15998_s22 + $0x190] sm:$0xff]  ;;  %v20542_v50 = vld [vmem:[#allocation23_spill] sm:$0xff] }
 0x141   : > { %13852 = vmatmul.mubr.msk.f32.gmra.mrb[2].mxu0 %vm516_vm0, %v16160_v0  ;;  %v11974_v0 = vld [vmem:[%s20433_s1 + $0x248] sm:$0xff]  ;;  %15269 = vmatprep.subr.bf16.mxu1 %v20532_v24 }
 0x142   : > { %13854 = vmatprep.mubr.msk.f32.mxu0 %vm516_vm0, %v16163_v1  ;;  %14763 = vmatpush3.bf16.msra.mxu0 %v14760_v37  ;;  %v439_v1 = vld [vmem:[%s15998_s22 + $0x40] sm:$0xff]  ;;  %v16820_v8 = vpack.c.bf16 %v11974_v0, %v11973_v55  ;;  %v449_v37 = vld [vmem:[%s15998_s22 + $0xf0] sm:$0xff] }
 0x143   : > { %14765 = vmatprep.subr.bf16.mxu0 %v14764_v45  ;;  %13468 = vmatmul.mubr.msk.f32.gmra.mrb[2].mxu1 %vm516_vm0, %v438_v23  ;;  %v20543_v55 = vld [vmem:[#allocation24_spill] sm:$0xff]  ;;  %v16935_v0 = vld [vmem:[%s15998_s22 + $0x1c0] sm:$0xff]  ;;  %v20544_v23 = vld [vmem:[#allocation25_spill] sm:$0xff] }
 0x144   : > { %13470 = vmatprep.mubr.msk.f32.mxu1 %vm516_vm0, %v439_v1  ;;  %15273 = vmatpush3.bf16.msra.mxu1 %v20532_v24  ;;  %v16940_v1 = vld [vmem:[%s15998_s22 + $0x1d0] sm:$0xff]  ;;  %v20545_v24 = vld [vmem:[#allocation26_spill] sm:$0xff] }
 0x145   : > { %13855 = vmatmul.mubr.msk.f32.gmra.mrb[4].mxu0 %vm516_vm0, %v16170_v2  ;;  %v20533_v2 = vld [vmem:[#allocation10_spill] sm:$0xff]  ;;  %15270 = vmatprep.subr.bf16.mxu1 %v20534_v6 }
 0x146   : > { %13857 = vmatprep.mubr.msk.f32.mxu0 %vm516_vm0, %v16173_v4  ;;  %14767 = vmatpush3.bf16.msra.mxu0 %v14764_v45  ;;  %v442_v4 = vld [vmem:[%s15998_s22 + $0x70] sm:$0xff] }
 0x147   : > { %14769 = vmatprep.subr.bf16.mxu0 %v14768_v54  ;;  %13471 = vmatmul.mubr.msk.f32.gmra.mrb[4].mxu1 %vm516_vm0, %v440_v48  ;;  %v16910_v45 = vld [vmem:[%s15998_s22 + $0x170] sm:$0xff]  ;;  %v16949_v48 = vld [vmem:[%s15998_s22 + $0x1e0] sm:$0xff] }
 0x148   : > { %13473 = vmatprep.mubr.msk.f32.mxu1 %vm516_vm0, %v441_v20  ;;  %15274 = vmatpush3.bf16.msra.mxu1 %v20534_v6  ;;  %v16954_v20 = vld [vmem:[%s15998_s22 + $0x1f0] sm:$0xff] }
 0x149   : > { %13858 = vmatmul.mubr.msk.f32.gmra.mrb[6].mxu0 %vm516_vm0, %v20533_v2  ;;  %15271 = vmatprep.subr.bf16.mxu1 %v20535_v16  ;;  %v20546_v2 = vld [vmem:[#allocation27_spill] sm:$0xff]  ;;  %v20547_v6 = vld [vmem:[#allocation28_spill] sm:$0xff] }
 0x14a   : > { %13860 = vmatprep.mubr.msk.f32.mxu0 %vm516_vm0, %v16183_v7  ;;  %14771 = vmatpush3.bf16.msra.mxu0 %v14768_v54  ;;  %v444_v7 = vld [vmem:[%s15998_s22 + $0xa0] sm:$0xff]  ;;  %v459_v54 = vld [vmem:[%s15998_s22 + $0x1b0] sm:$0xff] }
 0x14b   : > { %14773 = vmatprep.subr.bf16.mxu0 %v16820_v8  ;;  %13474 = vmatmul.mubr.msk.f32.gmra.mrb[6].mxu1 %vm516_vm0, %v442_v4  ;;  %v16959_v4 = vld [vmem:[%s15998_s22 + $0x2c1] sm:$0xff] }
 0x14c   : > { %13476 = vmatprep.mubr.msk.f32.mxu1 %vm516_vm0, %v443_v22  ;;  %15275 = vmatpush3.bf16.msra.mxu1 %v20535_v16  ;;  %v11975_v22 = vld [vmem:[%s20433_s1 + $0x250] sm:$0xff]  ;;  %v11976_v16 = vld [vmem:[%s20433_s1 + $0x258] sm:$0xff] }
 0x14d   : > { %13861 = vmatmul.mubr.msk.f32.gmra.mrb[8].mxu0 %vm516_vm0, %v16190_v9  ;;  %v446_v9 = vld [vmem:[%s15998_s22 + $0xc0] sm:$0xff] }
 0x14e   : > { %13863 = vmatprep.mubr.msk.f32.mxu0 %vm516_vm0, %v16193_v10  ;;  %v447_v10 = vld [vmem:[%s15998_s22 + $0xd0] sm:$0xff] }
 0x14f   : > { %13477 = vmatmul.mubr.msk.f32.gmra.mrb[8].mxu1 %vm516_vm0, %v444_v7  ;;  %v16972_v7 = vld [vmem:[%s15998_s22 + $0x200] sm:$0xff] }
 0x150   : > { %13479 = vmatprep.mubr.msk.f32.mxu1 %vm516_vm0, %v445_v36  ;;  %v16977_v36 = vld [vmem:[%s15998_s22 + $0x210] sm:$0xff] }
 0x151   : > { %13864 = vmatmul.mubr.msk.f32.gmra.mrb[10].mxu0 %vm516_vm0, %v16200_v11  ;;  %v448_v11 = vld [vmem:[%s15998_s22 + $0xe0] sm:$0xff] }
 0x152   : > { %13866 = vmatprep.mubr.msk.f32.mxu0 %vm516_vm0, %v16203_v13  ;;  %v20536_v13 = vld [vmem:[#allocation11_spill] sm:$0xff] }
 0x153   : > { %13480 = vmatmul.mubr.msk.f32.gmra.mrb[10].mxu1 %vm516_vm0, %v446_v9  ;;  %v20548_v9 = vld [vmem:[#allocation17_spill] sm:$0xff] }
 0x154   : > { %13482 = vmatprep.mubr.msk.f32.mxu1 %vm516_vm0, %v447_v10  ;;  %v14776_v10 = vpack.c.bf16 %v11976_v16, %v11975_v22  ;;  %v17172_v22 = vld [vmem:[%s15998_s22 + $0x171] sm:$0xff]  ;;  %v17175_v16 = vld [vmem:[%s15998_s22 + $0x181] sm:$0xff] }
 0x155   : > { %13867 = vmatmul.mubr.msk.f32.gmra.mrb[12].mxu0 %vm516_vm0, %v16210_v14  ;;  %v16871_v14 = vld [vmem:[%s15998_s22 + $0x100] sm:$0xff] }
 0x156   : > { %13869 = vmatprep.mubr.msk.f32.mxu0 %vm516_vm0, %v16213_v15  ;;  %v451_v15 = vld [vmem:[%s15998_s22 + $0x120] sm:$0xff] }
 0x157   : > { %13483 = vmatmul.mubr.msk.f32.gmra.mrb[12].mxu1 %vm516_vm0, %v448_v11  ;;  %v11977_v11 = vld [vmem:[%s20433_s1 + $0x260] sm:$0xff] }
 0x158   : > { %13485 = vmatprep.mubr.msk.f32.mxu1 %vm516_vm0, %v449_v37  ;;  %v16992_v37 = vld [vmem:[%s15998_s22 + $0x220] sm:$0xff] }
 0x159   : > { %13870 = vmatmul.mubr.msk.f32.gmra.mrb[14].mxu0 %vm516_vm0, %v20536_v13  ;;  %v11978_v13 = vld [vmem:[%s20433_s1 + $0x268] sm:$0xff] }
 0x15a   : > { %13872 = vmatprep.mubr.msk.f32.mxu0 %vm516_vm0, %v16223_v17  ;;  %v16882_v17 = vld [vmem:[%s15998_s22 + $0x130] sm:$0xff] }
 0x15b   : > { %13486 = vmatmul.mubr.msk.f32.gmra.mrb[14].mxu1 %vm516_vm0, %v16871_v14 }
 0x15c   : > { %13488 = vmatprep.mubr.msk.f32.mxu1 %vm516_vm0, %v451_v15  ;;  %v14780_v15 = vpack.c.bf16 %v11978_v13, %v11977_v11  ;;  %v12118_v11 = vld [vmem:[%s20433_s1 + $0x2c8] sm:$0xff]  ;;  %v17188_v13 = vld [vmem:[%s15998_s22 + $0x191] sm:$0xff] }
 0x15d   : > { %13873 = vmatmul.mubr.msk.f32.gmra.mrb[16].mxu0 %vm516_vm0, %v16230_v18  ;;  %v16896_v18 = vld [vmem:[%s15998_s22 + $0x150] sm:$0xff] }
 0x15e   : > { %13875 = vmatprep.mubr.msk.f32.mxu0 %vm516_vm0, %v16233_v19  ;;  %v20538_v19 = vld [vmem:[#allocation14_spill] sm:$0xff] }
 0x15f   : > { %13489 = vmatmul.mubr.msk.f32.gmra.mrb[16].mxu1 %vm516_vm0, %v16882_v17 }
 0x160   : > { %13491 = vmatprep.mubr.msk.f32.mxu1 %vm516_vm0, %v16887_v21 }
 0x161   : > { %13876 = vmatmul.mubr.msk.f32.gmra.mrb[18].mxu0 %vm516_vm0, %v20530_v5  ;;  %v20539_v5 = vld [vmem:[#allocation15_spill] sm:$0xff] }
 0x162   : > { %13878 = vmatprep.mubr.msk.f32.mxu0 %vm516_vm0, %v20537_v41  ;;  %v11979_v41 = vld [vmem:[%s20433_s1 + $0x270] sm:$0xff] }
 0x163   : > { %13492 = vmatmul.mubr.msk.f32.gmra.mrb[18].mxu1 %vm516_vm0, %v16896_v18 }
 0x164   : > { %13494 = vmatprep.mubr.msk.f32.mxu1 %vm516_vm0, %v16901_v44 }
 0x165   : > { %13879 = vmatmul.mubr.msk.f32.gmra.mrb[20].mxu0 %vm516_vm0, %v20538_v19  ;;  %v11980_v19 = vld [vmem:[%s20433_s1 + $0x278] sm:$0xff] }
 0x166   : > { %13881 = vmatprep.mubr.msk.f32.mxu0 %vm516_vm0, %v20539_v5 }
 0x167   : > { %13495 = vmatmul.mubr.msk.f32.gmra.mrb[20].mxu1 %vm516_vm0, %v16910_v45 }
 0x168   : > { %13497 = vmatprep.mubr.msk.f32.mxu1 %vm516_vm0, %v16915_v62 }
 0x169   : > { %13882 = vmatmul.mubr.msk.f32.gmra.mrb[22].mxu0 %vm516_vm0, %v20540_v49  ;;  %v12051_v49 = vld [vmem:[%s20433_s1 + $0x2b0] sm:$0xff] }
 0x16a   : > { %13884 = vmatprep.mubr.msk.f32.mxu0 %vm516_vm0, %v20541_v63 }
 0x16b   : > { %13498 = vmatmul.mubr.msk.f32.gmra.mrb[22].mxu1 %vm516_vm0, %v16924_v39 }
 0x16c   : > { %13500 = vmatprep.mubr.msk.f32.mxu1 %vm516_vm0, %v459_v54  ;;  %v12052_v54 = vld [vmem:[%s20433_s1 + $0x2b8] sm:$0xff] }
 0x16d   : > { %13885 = vmatmul.mubr.msk.f32.gmra.mrb[24].mxu0 %vm516_vm0, %v20542_v50 }
 0x16e   : > { %13887 = vmatprep.mubr.msk.f32.mxu0 %vm516_vm0, %v20543_v55 }
 0x16f   : > { %13501 = vmatmul.mubr.msk.f32.gmra.mrb[24].mxu1 %vm516_vm0, %v16935_v0 }
 0x170   : > { %13503 = vmatprep.mubr.msk.f32.mxu1 %vm516_vm0, %v16940_v1 }
 0x171   : > { %13888 = vmatmul.mubr.msk.f32.gmra.mrb[26].mxu0 %vm516_vm0, %v20544_v23 }
 0x172   : > { %13890 = vmatprep.mubr.msk.f32.mxu0 %vm516_vm0, %v20545_v24 }
 0x173   : > { %13504 = vmatmul.mubr.msk.f32.gmra.mrb[26].mxu1 %vm516_vm0, %v16949_v48 }
 0x174   : > { %13506 = vmatprep.mubr.msk.f32.mxu1 %vm516_vm0, %v16954_v20 }
 0x175   : > { %13891 = vmatmul.mubr.msk.f32.gmra.mrb[28].mxu0 %vm516_vm0, %v20546_v2 }
 0x176   : > { %13893 = vmatprep.mubr.msk.f32.mxu0 %vm516_vm0, %v20547_v6 }
 0x177   : > { %13507 = vmatmul.mubr.msk.f32.gmra.mrb[28].mxu1 %vm516_vm0, %v16972_v7 }
 0x178   : > { %13509 = vmatprep.mubr.msk.f32.mxu1 %vm516_vm0, %v16977_v36 }
 0x179   : > { %13894 = vmatmul.mubr.msk.f32.gmra.mrb[30].mxu0 %vm516_vm0, %v16959_v4 }
 0x17a   : > { %13912 = vmatprep.mubr.msk.f32.mxu0 %vm516_vm0, %v20548_v9  ;;  %v14800_v9 = vpack.c.bf16 %v12052_v54, %v12051_v49 }
 0x17b   : > { %13510 = vmatmul.mubr.msk.f32.gmra.mrb[30].mxu1 %vm516_vm0, %v16992_v37 }
 0x17c   : > { %13549 = vmatprep.mubr.msk.f32.mxu1 %vm516_vm0, %v16871_v14  ;;  %v17159_v14 = vld [vmem:[%s15998_s22 + $0x161] sm:$0xff] }
 0x17d   : > { %13913 = vmatmul.mubr.msk.f32.vlgmr.msra.gmra.mrb[0].mxu0 %vm516_vm0, %v16313_v51  ;;  %v14784_v51 = vpack.c.bf16 %v11980_v19, %v11979_v41  ;;  %v17195_v41 = vld [vmem:[%s15998_s22 + $0x1c1] sm:$0xff]  ;;  %v17198_v19 = vld [vmem:[%s15998_s22 + $0x1d1] sm:$0xff] }
 0x17e   : > { %14775 = vmatpush3.bf16.msra.mxu0 %v16820_v8  ;;  %13915 = vmatprep.mubr.msk.f32.mxu0 %vm516_vm0, %v16316_v52  ;;  %v12045_v52 = vld [vmem:[%s20433_s1 + $0x280] sm:$0xff]  ;;  %v12046_v8 = vld [vmem:[%s20433_s1 + $0x288] sm:$0xff] }
 0x17f   : > { %14777 = vmatprep.subr.bf16.mxu0 %v14776_v10  ;;  %13550 = vmatmul.mubr.msk.f32.vlgmr.msra.gmra.mrb[14].mxu1 %vm516_vm0, %v16621_v38  ;;  %v12049_v38 = vld [vmem:[%s20433_s1 + $0x2a0] sm:$0xff] }
 0x180   : > { %13552 = vmatprep.mubr.msk.f32.mxu1 %vm516_vm0, %v16882_v17 }
 0x181   : > { %13916 = vmatmul.mubr.msk.f32.gmra.mrb[2].mxu0 %vm516_vm0, %v16323_v53  ;;  %v14788_v53 = vpack.c.bf16 %v12046_v8, %v12045_v52  ;;  %v17208_v52 = vld [vmem:[%s15998_s22 + $0x1f1] sm:$0xff] }
 0x182   : > { %13918 = vmatprep.mubr.msk.f32.mxu0 %vm516_vm0, %v16326_v56  ;;  %14779 = vmatpush3.bf16.msra.mxu0 %v14776_v10  ;;  %v20549_v56 = vld [vmem:[#allocation18_spill] sm:$0xff]  ;;  %v11965_v8 = vld [vmem:[%s15998_s22 + $0x2d1] sm:$0xff] }
 0x183   : > { %14781 = vmatprep.subr.bf16.mxu0 %v14780_v15  ;;  %13553 = vmatmul.mubr.msk.f32.gmra.mrb[16].mxu1 %vm516_vm0, %v16887_v21  ;;  %v12117_v10 = vld [vmem:[%s20433_s1 + $0x2c0] sm:$0xff] }
 0x184   : > { %13555 = vmatprep.mubr.msk.f32.mxu1 %vm516_vm0, %v16896_v18 }
 0x185   : > { %13919 = vmatmul.mubr.msk.f32.gmra.mrb[4].mxu0 %vm516_vm0, %v16333_v57  ;;  %v11460_v57 = vld [vmem:[%s15998_s22 + $0x1a0] sm:$0xff] }
 0x186   : > { %13921 = vmatprep.mubr.msk.f32.mxu0 %vm516_vm0, %v16336_v58  ;;  %14783 = vmatpush3.bf16.msra.mxu0 %v14780_v15  ;;  %v20550_v58 = vld [vmem:[#allocation19_spill] sm:$0xff]  ;;  %v14804_v15 = vpack.c.bf16 %v12118_v11, %v12117_v10  ;;  %v12107_v11 = vld [vmem:[%s15998_s22 + $0x2b1] sm:$0xff] }
 0x187   : > { %14785 = vmatprep.subr.bf16.mxu0 %v14784_v51  ;;  %13556 = vmatmul.mubr.msk.f32.gmra.mrb[18].mxu1 %vm516_vm0, %v16901_v44 }
 0x188   : > { %13558 = vmatprep.mubr.msk.f32.mxu1 %vm516_vm0, %v16910_v45 }
 0x189   : > { %13922 = vmatmul.mubr.msk.f32.gmra.mrb[6].mxu0 %vm516_vm0, %v16343_v59  ;;  %v17084_v59 = vld [vmem:[%s15998_s22 + $0x230] sm:$0xff] }
 0x18a   : > { %13924 = vmatprep.mubr.msk.f32.mxu0 %vm516_vm0, %v20549_v56  ;;  %14787 = vmatpush3.bf16.msra.mxu0 %v14784_v51  ;;  %v17205_v51 = vld [vmem:[%s15998_s22 + $0x1e1] sm:$0xff]  ;;  %v12120_v56 = vld [vmem:[%s20433_s1 + $0x2d8] sm:$0xff] }
 0x18b   : > { %14789 = vmatprep.subr.bf16.mxu0 %v14788_v53  ;;  %13559 = vmatmul.mubr.msk.f32.gmra.mrb[20].mxu1 %vm516_vm0, %v16915_v62 }
 0x18c   : > { %13561 = vmatprep.mubr.msk.f32.mxu1 %vm516_vm0, %v16924_v39 }
 0x18d   : > { %13925 = vmatmul.mubr.msk.f32.gmra.mrb[8].mxu0 %vm516_vm0, %v16353_v25  ;;  %v11893_v25 = vld [vmem:[%s15998_s22 + $0x2d0] sm:$0xff] }
 0x18e   : > { %13927 = vmatprep.mubr.msk.f32.mxu0 %vm516_vm0, %v16356_v26  ;;  %v17097_v26 = vld [vmem:[%s15998_s22 + $0x2e0] sm:$0xff] }
 0x18f   : > { %13562 = vmatmul.mubr.msk.f32.gmra.mrb[22].mxu1 %vm516_vm0, %v11460_v57 }
 0x190   : > { %13564 = vmatprep.mubr.msk.f32.mxu1 %vm516_vm0, %v16935_v0 }
 0x191   : > { %13928 = vmatmul.mubr.msk.f32.gmra.mrb[10].mxu0 %vm516_vm0, %v16363_v27  ;;  %v17100_v27 = vld [vmem:[%s15998_s22 + $0x2f0] sm:$0xff] }
 0x192   : > { %13930 = vmatprep.mubr.msk.f32.mxu0 %vm516_vm0, %v16366_v28  ;;  %v17110_v28 = vld [vmem:[%s15998_s22 + $0x310] sm:$0xff] }
 0x193   : > { %13565 = vmatmul.mubr.msk.f32.gmra.mrb[24].mxu1 %vm516_vm0, %v16940_v1 }
 0x194   : > { %13567 = vmatprep.mubr.msk.f32.mxu1 %vm516_vm0, %v16949_v48 }
 0x195   : > { %13931 = vmatmul.mubr.msk.f32.gmra.mrb[12].mxu0 %vm516_vm0, %v16373_v29  ;;  %v17117_v29 = vld [vmem:[%s15998_s22 + $0x320] sm:$0xff] }
 0x196   : > { %13933 = vmatprep.mubr.msk.f32.mxu0 %vm516_vm0, %v16376_v30  ;;  %v17120_v30 = vld [vmem:[%s15998_s22 + $0x330] sm:$0xff] }
 0x197   : > { %13568 = vmatmul.mubr.msk.f32.gmra.mrb[26].mxu1 %vm516_vm0, %v16954_v20 }
 0x198   : > { %13570 = vmatprep.mubr.msk.f32.mxu1 %vm516_vm0, %v16972_v7 }
 0x199   : > { %13934 = vmatmul.mubr.msk.f32.gmra.mrb[14].mxu0 %vm516_vm0, %v16383_v31  ;;  %v17127_v31 = vld [vmem:[%s15998_s22 + $0x340] sm:$0xff] }
 0x19a   : > { %13936 = vmatprep.mubr.msk.f32.mxu0 %vm516_vm0, %v20550_v58  ;;  %v12121_v58 = vld [vmem:[%s20433_s1 + $0x2e0] sm:$0xff] }
 0x19b   : > { %13571 = vmatmul.mubr.msk.f32.gmra.mrb[28].mxu1 %vm516_vm0, %v16977_v36 }
 0x19c   : > { %13573 = vmatprep.mubr.msk.f32.mxu1 %vm516_vm0, %v16992_v37 }
 0x19d   : > { %13937 = vmatmul.mubr.msk.f32.gmra.mrb[16].mxu0 %vm516_vm0, %v16393_v33  ;;  %v12048_v33 = vld [vmem:[%s20433_s1 + $0x298] sm:$0xff] }
 0x19e   : > { %13939 = vmatprep.mubr.msk.f32.mxu0 %vm516_vm0, %v16396_v35  ;;  %v17140_v35 = vld [vmem:[%s15998_s22 + $0x131] sm:$0xff] }
 0x19f   : > { %13574 = vmatmul.mubr.msk.f32.gmra.mrb[30].mxu1 %vm516_vm0, %v17084_v59 }
 0x1a1   : > { %13940 = vmatmul.mubr.msk.f32.gmra.mrb[18].mxu0 %vm516_vm0, %v16403_v42  ;;  %v17143_v42 = vld [vmem:[%s15998_s22 + $0x141] sm:$0xff] }
 0x1a2   : > { %13942 = vmatprep.mubr.msk.f32.mxu0 %vm516_vm0, %v16406_v43 }
 0x1a5   : > { %13943 = vmatmul.mubr.msk.f32.gmra.mrb[20].mxu0 %vm516_vm0, %v16413_v32  ;;  %v12047_v32 = vld [vmem:[%s20433_s1 + $0x290] sm:$0xff] }
 0x1a6   : > { %13945 = vmatprep.mubr.msk.f32.mxu0 %vm516_vm0, %v16416_v61  ;;  %v17107_v61 = vld [vmem:[%s15998_s22 + $0x300] sm:$0xff]  ;;  %v14792_v43 = vpack.c.bf16 %v12048_v33, %v12047_v32  ;;  %v12124_v33 = vld [vmem:[%s20433_s1 + $0x2f8] sm:$0xff] }
 0x1a9   : > { %13946 = vmatmul.mubr.msk.f32.gmra.mrb[22].mxu0 %vm516_vm0, %v20529_v46  ;;  %v12050_v46 = vld [vmem:[%s20433_s1 + $0x2a8] sm:$0xff] }
 0x1aa   : > { %13948 = vmatprep.mubr.msk.f32.mxu0 %vm516_vm0, %v11893_v25  ;;  %v14796_v5 = vpack.c.bf16 %v12050_v46, %v12049_v38  ;;  %v12122_v25 = vld [vmem:[%s20433_s1 + $0x2e8] sm:$0xff]  ;;  %v12036_v38 = vld [vmem:[%s15998_s22 + $0x2c0] sm:$0xff] }
 0x1ab   : > { %v14812_v32 = vpack.c.bf16 %v12122_v25, %v12121_v58  ;;  %v5275_v58 = vlaneseq }
 0x1ad   : > { %13949 = vmatmul.mubr.msk.f32.gmra.mrb[24].mxu0 %vm516_vm0, %v17097_v26 }
 0x1ae   : > { %13951 = vmatprep.mubr.msk.f32.mxu0 %vm516_vm0, %v17100_v27 }
 0x1b1   : > { %13952 = vmatmul.mubr.msk.f32.gmra.mrb[26].mxu0 %vm516_vm0, %v17107_v61 }
 0x1b2   : > { %13954 = vmatprep.mubr.msk.f32.mxu0 %vm516_vm0, %v17110_v28 }
 0x1b5   : > { %13955 = vmatmul.mubr.msk.f32.gmra.mrb[28].mxu0 %vm516_vm0, %v17117_v29 }
 0x1b6   : > { %13957 = vmatprep.mubr.msk.f32.mxu0 %vm516_vm0, %v17120_v30 }
 0x1b9   : > { %13958 = vmatmul.mubr.msk.f32.gmra.mrb[30].mxu0 %vm516_vm0, %v17127_v31 }
 0x1ba   : > { %13976 = vmatprep.mubr.msk.f32.mxu0 %vm516_vm0, %v16469_v47  ;;  %v17156_v47 = vld [vmem:[%s15998_s22 + $0x151] sm:$0xff] }
 0x1bd   : > { %13977 = vmatmul.mubr.msk.f32.vlgmr.msra.gmra.mrb[0].mxu0 %vm516_vm0, %v17140_v35 }
 0x1be   : > { %14791 = vmatpush3.bf16.msra.mxu0 %v14788_v53  ;;  %13979 = vmatprep.mubr.msk.f32.mxu0 %vm516_vm0, %v17143_v42  ;;  %v12119_v53 = vld [vmem:[%s20433_s1 + $0x2d0] sm:$0xff] }
 0x1bf   : > { %14793 = vmatprep.subr.bf16.mxu0 %v14792_v43  ;;  %v14808_v57 = vpack.c.bf16 %v12120_v56, %v12119_v53  ;;  %v15880_v56 = vmov 1983009808  }
 0x1c1   : > { %13980 = vmatmul.mubr.msk.f32.gmra.mrb[2].mxu0 %vm516_vm0, %v17156_v47 }
 0x1c2   : > { %13982 = vmatprep.mubr.msk.f32.mxu0 %vm516_vm0, %v17159_v14  ;;  %14795 = vmatpush3.bf16.msra.mxu0 %v14792_v43 }
 0x1c3   : > { %14797 = vmatprep.subr.bf16.mxu0 %v14796_v5 }
 0x1c5   : > { %13983 = vmatmul.mubr.msk.f32.gmra.mrb[4].mxu0 %vm516_vm0, %v17172_v22 }
 0x1c6   : > { %13985 = vmatprep.mubr.msk.f32.mxu0 %vm516_vm0, %v17175_v16  ;;  %14799 = vmatpush3.bf16.msra.mxu0 %v14796_v5 }
 0x1c7   : > { %14801 = vmatprep.subr.bf16.mxu0 %v14800_v9 }
 0x1c9   : > { %13986 = vmatmul.mubr.msk.f32.gmra.mrb[6].mxu0 %vm516_vm0, %v17188_v13 }
 0x1ca   : > { %13988 = vmatprep.mubr.msk.f32.mxu0 %vm516_vm0, %v16491_v3  ;;  %14803 = vmatpush3.bf16.msra.mxu0 %v14800_v9  ;;  %v20551_v3 = vld [vmem:[#allocation21_spill] sm:$0xff] }
 0x1cb   : > { %14805 = vmatprep.subr.bf16.mxu0 %v14804_v15 }
 0x1cd   : > { %13989 = vmatmul.mubr.msk.f32.gmra.mrb[8].mxu0 %vm516_vm0, %v17195_v41 }
 0x1ce   : > { %13991 = vmatprep.mubr.msk.f32.mxu0 %vm516_vm0, %v17198_v19 }
 0x1d1   : > { %13992 = vmatmul.mubr.msk.f32.gmra.mrb[10].mxu0 %vm516_vm0, %v17205_v51 }
 0x1d2   : > { %13994 = vmatprep.mubr.msk.f32.mxu0 %vm516_vm0, %v17208_v52 }
 0x1d5   : > { %13995 = vmatmul.mubr.msk.f32.gmra.mrb[12].mxu0 %vm516_vm0, %v16755_v34 }
 0x1d6   : > { %13997 = vmatprep.mubr.msk.f32.mxu0 %vm516_vm0, %v16759_v12 }
 0x1d9   : > { %13998 = vmatmul.mubr.msk.f32.gmra.mrb[14].mxu0 %vm516_vm0, %v16780_v60 }
 0x1da   : > { %14000 = vmatprep.mubr.msk.f32.mxu0 %vm516_vm0, %v20551_v3 }
 0x1dd   : > { %14001 = vmatmul.mubr.msk.f32.gmra.mrb[16].mxu0 %vm516_vm0, %v20541_v63  ;;  %v17239_v63 = vld [vmem:[%s15998_s22 + $0x2e1] sm:$0xff] }
 0x1de   : > { %14003 = vmatprep.mubr.msk.f32.mxu0 %vm516_vm0, %v20542_v50  ;;  %v17242_v50 = vld [vmem:[%s15998_s22 + $0x2f1] sm:$0xff] }
 0x1e1   : > { %14004 = vmatmul.mubr.msk.f32.gmra.mrb[18].mxu0 %vm516_vm0, %v20543_v55  ;;  %v17249_v55 = vld [vmem:[%s15998_s22 + $0x301] sm:$0xff] }
 0x1e2   : > { %14006 = vmatprep.mubr.msk.f32.mxu0 %vm516_vm0, %v20544_v23  ;;  %v17252_v23 = vld [vmem:[%s15998_s22 + $0x311] sm:$0xff] }
 0x1e5   : > { %14007 = vmatmul.mubr.msk.f32.gmra.mrb[20].mxu0 %vm516_vm0, %v20545_v24  ;;  %v17259_v24 = vld [vmem:[%s15998_s22 + $0x321] sm:$0xff] }
 0x1e6   : > { %14009 = vmatprep.mubr.msk.f32.mxu0 %vm516_vm0, %v20546_v2  ;;  %v17262_v2 = vld [vmem:[%s15998_s22 + $0x331] sm:$0xff] }
 0x1e9   : > { %14010 = vmatmul.mubr.msk.f32.gmra.mrb[22].mxu0 %vm516_vm0, %v20547_v6  ;;  %v17269_v6 = vld [vmem:[%s15998_s22 + $0x341] sm:$0xff] }
 0x1ea   : > { %14012 = vmatprep.mubr.msk.f32.mxu0 %vm516_vm0, %v11965_v8 }
 0x1ed   : > { %14013 = vmatmul.mubr.msk.f32.gmra.mrb[24].mxu0 %vm516_vm0, %v17239_v63 }
 0x1ee   : > { %14015 = vmatprep.mubr.msk.f32.mxu0 %vm516_vm0, %v17242_v50 }
 0x1f1   : > { %14016 = vmatmul.mubr.msk.f32.gmra.mrb[26].mxu0 %vm516_vm0, %v17249_v55 }
 0x1f2   : > { %14018 = vmatprep.mubr.msk.f32.mxu0 %vm516_vm0, %v17252_v23 }
 0x1f5   : > { %14019 = vmatmul.mubr.msk.f32.gmra.mrb[28].mxu0 %vm516_vm0, %v17259_v24 }
 0x1f6   : > { %14021 = vmatprep.mubr.msk.f32.mxu0 %vm516_vm0, %v17262_v2 }
 0x1f9   : > { %14022 = vmatmul.mubr.msk.f32.gmra.mrb[30].mxu0 %vm516_vm0, %v17269_v6 }
 0x1fa   : > { %14040 = vmatprep.mubr.msk.f32.mxu0 %vm516_vm0, %v16882_v17  ;;  %v12123_v17 = vld [vmem:[%s20433_s1 + $0x2f0] sm:$0xff] }
 0x1fd   : > { %14041 = vmatmul.mubr.msk.f32.vlgmr.msra.gmra.mrb[0].mxu0 %vm516_vm0, %v16887_v21  ;;  %v14816_v21 = vpack.c.bf16 %v12124_v33, %v12123_v17 }
 0x1fe   : > { %14807 = vmatpush3.bf16.msra.mxu0 %v14804_v15  ;;  %14043 = vmatprep.mubr.msk.f32.mxu0 %vm516_vm0, %v16896_v18  ;;  %v12029_v18 = vld [vmem:[%s15998_s22 + $0x250] sm:$0xff] }
 0x1ff   : > { %14809 = vmatprep.subr.bf16.mxu0 %v14808_v57 }
 0x201   : > { %14044 = vmatmul.mubr.msk.f32.gmra.mrb[2].mxu0 %vm516_vm0, %v16901_v44 }
 0x202   : > { %14046 = vmatprep.mubr.msk.f32.mxu0 %vm516_vm0, %v16910_v45  ;;  %14811 = vmatpush3.bf16.msra.mxu0 %v14808_v57  ;;  %v12030_v45 = vld [vmem:[%s15998_s22 + $0x260] sm:$0xff]  ;;  %v5273_v57 = vunpack.c.l.s4 %v15880_v56 }
 0x203   : > { %14813 = vmatprep.subr.bf16.mxu0 %v14812_v32 }
 0x205   : > { %14047 = vmatmul.mubr.msk.f32.gmra.mrb[4].mxu0 %vm516_vm0, %v16915_v62 }
 0x206   : > { %14049 = vmatprep.mubr.msk.f32.mxu0 %vm516_vm0, %v16924_v39  ;;  %14815 = vmatpush3.bf16.msra.mxu0 %v14812_v32  ;;  %v12031_v39 = vld [vmem:[%s15998_s22 + $0x270] sm:$0xff] }
 0x207   : > { %14817 = vmatprep.subr.bf16.mxu0 %v14816_v21 }
 0x209   : > { %14050 = vmatmul.mubr.msk.f32.gmra.mrb[6].mxu0 %vm516_vm0, %v16659_v40 }
 0x20a   : > { %14052 = vmatprep.mubr.msk.f32.mxu0 %vm516_vm0, %v16935_v0  ;;  %14819 = vmatpush3.bf16.msra.mxu0 %v14816_v21  ;;  %v5274_v21 = vunpack.c.0.s8 %v5273_v57 }
 0x20d   : > { %14053 = vmatmul.mubr.msk.f32.gmra.mrb[8].mxu0 %vm516_vm0, %v16940_v1  ;;  %v12032_v1 = vld [vmem:[%s15998_s22 + $0x280] sm:$0xff] }
 0x20e   : > { %14055 = vmatprep.mubr.msk.f32.mxu0 %vm516_vm0, %v16949_v48 }
 0x211   : > { %14056 = vmatmul.mubr.msk.f32.gmra.mrb[10].mxu0 %vm516_vm0, %v16954_v20  ;;  %v12033_v20 = vld [vmem:[%s15998_s22 + $0x290] sm:$0xff] }
 0x212   : > { %14058 = vmatprep.mubr.msk.f32.mxu0 %vm516_vm0, %v16972_v7  ;;  %v17321_v40 = vpop.f32.mrb[0].mxu1 }
 0x213   : > { %v17324_v44 = vpop.f32.mrb[1].mxu1 }
 0x215   : > { %14059 = vmatmul.mubr.msk.f32.gmra.mrb[12].mxu0 %vm516_vm0, %v16977_v36  ;;  %v12034_v36 = vld [vmem:[%s15998_s22 + $0x2a0] sm:$0xff] }
 0x216   : > { %14061 = vmatprep.mubr.msk.f32.mxu0 %vm516_vm0, %v16992_v37  ;;  %v17330_v62 = vpop.f32.mrb[2].mxu1 }
 0x217   : > { %v17333_v0 = vpop.f32.mrb[3].mxu1 }
 0x219   : > { %14062 = vmatmul.mubr.msk.f32.gmra.mrb[14].mxu0 %vm516_vm0, %v17084_v59  ;;  %v12035_v59 = vld [vmem:[%s15998_s22 + $0x2b0] sm:$0xff] }
 0x21a   : > { %14064 = vmatprep.mubr.msk.f32.mxu0 %vm516_vm0, %v12029_v18  ;;  %v17338_v48 = vpop.f32.mrb[4].mxu1  ;;  %v17492_v18 = vshrl.u32 %v5275_v58, 7 }
 0x21b   : > { %v17341_v7 = vpop.f32.mrb[5].mxu1 }
 0x21c   : > { %20558 = vst [vmem:[#allocation9_spill] sm:$0xff] %v17492_v18 }
 0x21d   : > { %14065 = vmatmul.mubr.msk.f32.gmra.mrb[16].mxu0 %vm516_vm0, %v12030_v45 }
 0x21e   : > { %14067 = vmatprep.mubr.msk.f32.mxu0 %vm516_vm0, %v12031_v39  ;;  %v17346_v37 = vpop.f32.mrb[6].mxu1 }
 0x21f   : > { %v17349_v43 = vpop.f32.mrb[7].mxu1 }
 0x221   : > { %14068 = vmatmul.mubr.msk.f32.gmra.mrb[18].mxu0 %vm516_vm0, %v12032_v1 }
 0x222   : > { %14070 = vmatprep.mubr.msk.f32.mxu0 %vm516_vm0, %v12033_v20  ;;  %v17354_v46 = vpop.f32.mrb[8].mxu1 }
 0x223   : > { %v17356_v5 = vpop.f32.mrb[9].mxu1 }
 0x225   : > { %14071 = vmatmul.mubr.msk.f32.gmra.mrb[20].mxu0 %vm516_vm0, %v12034_v36  ;;  %v17497_v36 = vsub.s32 %v5274_v21, %v17492_v18 }
 0x226   : > { %14073 = vmatprep.mubr.msk.f32.mxu0 %vm516_vm0, %v12035_v59  ;;  %v17361_v49 = vpop.f32.mrb[10].mxu1 }
 0x227   : > { %v17363_v54 = vpop.f32.mrb[11].mxu1  ;;  %20559 = vst [vmem:[#allocation11_spill] sm:$0xff] %v17497_v36 }
 0x229   : > { %14074 = vmatmul.mubr.msk.f32.gmra.mrb[22].mxu0 %vm516_vm0, %v12036_v38 }
 0x22a   : > { %14076 = vmatprep.mubr.msk.f32.mxu0 %vm516_vm0, %v17097_v26  ;;  %v17369_v9 = vpop.f32.mrb[12].mxu1  ;;  %v12044_v26 = vld [vmem:[%s15998_s22 + $0x350] sm:$0xff] }
 0x22b   : > { %v17371_v10 = vpop.f32.mrb[13].mxu1 }
 0x22d   : > { %14077 = vmatmul.mubr.msk.f32.gmra.mrb[24].mxu0 %vm516_vm0, %v17100_v27  ;;  %v12092_v27 = vld [vmem:[%s15998_s22 + $0x1a1] sm:$0xff] }
 0x22e   : > { %14079 = vmatprep.mubr.msk.f32.mxu0 %vm516_vm0, %v17107_v61  ;;  %v12100_v61 = vld [vmem:[%s15998_s22 + $0x231] sm:$0xff] }
 0x231   : > { %14080 = vmatmul.mubr.msk.f32.gmra.mrb[26].mxu0 %vm516_vm0, %v17110_v28 }
 0x232   : > { %14082 = vmatprep.mubr.msk.f32.mxu0 %vm516_vm0, %v17117_v29  ;;  %v12101_v29 = vld [vmem:[%s15998_s22 + $0x251] sm:$0xff] }
 0x235   : > { %14083 = vmatmul.mubr.msk.f32.gmra.mrb[28].mxu0 %vm516_vm0, %v17120_v30 }
 0x236   : > { %14085 = vmatprep.mubr.msk.f32.mxu0 %vm516_vm0, %v17127_v31 }
 0x239   : > { %14086 = vmatmul.mubr.msk.f32.gmra.mrb[30].mxu0 %vm516_vm0, %v12044_v26 }
 0x23a   : > { %14104 = vmatprep.mubr.msk.f32.mxu0 %vm516_vm0, %v17140_v35 }
 0x23d   : > { %14105 = vmatmul.mubr.msk.f32.vlgmr.msra.gmra.mrb[0].mxu0 %vm516_vm0, %v17143_v42 }
 0x23e   : > { %14107 = vmatprep.mubr.msk.f32.mxu0 %vm516_vm0, %v17156_v47  ;;  %v12105_v47 = vld [vmem:[%s15998_s22 + $0x291] sm:$0xff] }
 0x241   : > { %14108 = vmatmul.mubr.msk.f32.gmra.mrb[2].mxu0 %vm516_vm0, %v17159_v14 }
 0x242   : > { %14110 = vmatprep.mubr.msk.f32.mxu0 %vm516_vm0, %v17172_v22  ;;  %v12106_v22 = vld [vmem:[%s15998_s22 + $0x2a1] sm:$0xff] }
 0x245   : > { %14111 = vmatmul.mubr.msk.f32.gmra.mrb[4].mxu0 %vm516_vm0, %v17175_v16 }
 0x246   : > { %14113 = vmatprep.mubr.msk.f32.mxu0 %vm516_vm0, %v17188_v13 }
 0x249   : > { %14114 = vmatmul.mubr.msk.f32.gmra.mrb[6].mxu0 %vm516_vm0, %v12092_v27 }
 0x24a   : > { %14116 = vmatprep.mubr.msk.f32.mxu0 %vm516_vm0, %v17195_v41 }
 0x24d   : > { %14117 = vmatmul.mubr.msk.f32.gmra.mrb[8].mxu0 %vm516_vm0, %v17198_v19 }
 0x24e   : > { %14119 = vmatprep.mubr.msk.f32.mxu0 %vm516_vm0, %v17205_v51 }
 0x251   : > { %14120 = vmatmul.mubr.msk.f32.gmra.mrb[10].mxu0 %vm516_vm0, %v17208_v52 }
 0x252   : > { %14122 = vmatprep.mubr.msk.f32.mxu0 %vm516_vm0, %v16755_v34  ;;  %v17414_v28 = vpop.f32.mrb[14].mxu1  ;;  %v12102_v34 = vld [vmem:[%s15998_s22 + $0x261] sm:$0xff] }
 0x253   : > { %v17417_v30 = vpop.f32.mrb[15].mxu1 }
 0x255   : > { %14123 = vmatmul.mubr.msk.f32.gmra.mrb[12].mxu0 %vm516_vm0, %v16759_v12  ;;  %v12103_v12 = vld [vmem:[%s15998_s22 + $0x271] sm:$0xff] }
 0x256   : > { %14125 = vmatprep.mubr.msk.f32.mxu0 %vm516_vm0, %v16780_v60  ;;  %v17422_v31 = vpop.f32.mrb[16].mxu1  ;;  %v12104_v60 = vld [vmem:[%s15998_s22 + $0x281] sm:$0xff] }
 0x257   : > { %v17425_v35 = vpop.f32.mrb[17].mxu1 }
 0x259   : > { %14126 = vmatmul.mubr.msk.f32.gmra.mrb[14].mxu0 %vm516_vm0, %v12100_v61 }
 0x25a   : > { %14128 = vmatprep.mubr.msk.f32.mxu0 %vm516_vm0, %v12101_v29  ;;  %v17430_v42 = vpop.f32.mrb[18].mxu1 }
 0x25b   : > { %v17433_v14 = vpop.f32.mrb[19].mxu1 }
 0x25d   : > { %14129 = vmatmul.mubr.msk.f32.gmra.mrb[16].mxu0 %vm516_vm0, %v12102_v34  ;;  %v17507_v34 = vsub.s32 1, %v17492_v18 }
 0x25e   : > { %14131 = vmatprep.mubr.msk.f32.mxu0 %vm516_vm0, %v12103_v12  ;;  %v17438_v16 = vpop.f32.mrb[20].mxu1 }
 0x25f   : > { %v17441_v13 = vpop.f32.mrb[21].mxu1 }
 0x261   : > { %14132 = vmatmul.mubr.msk.f32.gmra.mrb[18].mxu0 %vm516_vm0, %v12104_v60 }
 0x262   : > { %14134 = vmatprep.mubr.msk.f32.mxu0 %vm516_vm0, %v12105_v47  ;;  %v17445_v15 = vpop.f32.mrb[22].mxu1 }
 0x263   : > { %v17447_v41 = vpop.f32.mrb[23].mxu1 }
 0x265   : > { %14135 = vmatmul.mubr.msk.f32.gmra.mrb[20].mxu0 %vm516_vm0, %v12106_v22 }
 0x266   : > { %14137 = vmatprep.mubr.msk.f32.mxu0 %vm516_vm0, %v12107_v11  ;;  %v17453_v19 = vpop.f32.mrb[24].mxu1 }
 0x267   : > { %v17455_v51 = vpop.f32.mrb[25].mxu1 }
 0x269   : > { %14138 = vmatmul.mubr.msk.f32.gmra.mrb[22].mxu0 %vm516_vm0, %v16959_v4 }
 0x26a   : > { %14140 = vmatprep.mubr.msk.f32.mxu0 %vm516_vm0, %v17239_v63  ;;  %v17461_v52 = vpop.f32.mrb[26].mxu1  ;;  %v12116_v63 = vld [vmem:[%s15998_s22 + $0x351] sm:$0xff]  ;;  %s15881_s22 = smov 16  }
 0x26b   : > { %20552 = vst [vmem:[#allocation20_spill] sm:$0xff] %v17461_v52  ;;  %v17463_v3 = vpop.f32.mrb[27].mxu1 }
 0x26c   : > { %20553 = vst [vmem:[#allocation12_spill] sm:$0xff] %v17463_v3 }
 0x26d   : > { %14141 = vmatmul.mubr.msk.f32.gmra.mrb[24].mxu0 %vm516_vm0, %v17242_v50 }
 0x26e   : > { %14143 = vmatprep.mubr.msk.f32.mxu0 %vm516_vm0, %v17249_v55  ;;  %v17469_v4 = vpop.f32.mrb[28].mxu1 }
 0x26f   : > { %20554 = vst [vmem:[#allocation6_spill] sm:$0xff] %v17469_v4  ;;  %v17471_v8 = vpop.f32.mrb[29].mxu1 }
 0x270   : > { %20555 = vst [vmem:[#allocation7_spill] sm:$0xff] %v17471_v8 }
 0x271   : > { %14144 = vmatmul.mubr.msk.f32.gmra.mrb[26].mxu0 %vm516_vm0, %v17252_v23 }
 0x272   : > { %14146 = vmatprep.mubr.msk.f32.mxu0 %vm516_vm0, %v17259_v24  ;;  %v17478_v50 = vpop.f32.mrb[30].mxu1 }
 0x273   : > { %20556 = vst [vmem:[#allocation10_spill] sm:$0xff] %v17478_v50  ;;  %v17480_v55 = vpop.f32.mrb[31].mxu1 }
 0x274   : > { %20557 = vst [vmem:[#allocation8_spill] sm:$0xff] %v17480_v55 }
 0x275   : > { %14147 = vmatmul.mubr.msk.f32.gmra.mrb[28].mxu0 %vm516_vm0, %v17262_v2  ;;  %v17488_v2 = vld [vmem:[%s20434_s2] ss:$0 sm:$0xff] }
 0x276   : > { %14149 = vmatprep.mubr.msk.f32.mxu0 %vm516_vm0, %v17269_v6 }
 0x279   : > { %14150 = vmatmul.mubr.msk.f32.gmra.mrb[30].mxu0 %vm516_vm0, %v12116_v63 }
 0x310   : > { %v14106_v23 = vpop.f32.mrb[0].mxu0 }
 0x311   : > { %v15276_v24 = vadd.f32 %v14106_v23, %v17321_v40  ;;  %v4913_v53 = vpop.f32.mrb[1].mxu0 }
 0x312   : > { %v15277_v25 = vadd.f32 %v4913_v53, %v17324_v44 }
 0x313   : > { %v5112_v33 = vadd.f32 %v15276_v24, %v17488_v2 }
 0x314   : > { %v14109_v6 = vpop.f32.mrb[2].mxu0 }
 0x315   : > { %v15278_v32 = vadd.f32 %v14109_v6, %v17330_v62  ;;  %v4923_v17 = vpop.f32.mrb[3].mxu0  ;;  %v5176_v20 = vmul.f32 0.2, %v5112_v33  ;;  %v5111_v62 = vadd.f32 %v15277_v25, %v17488_v2  ;;  %vm5144_vm2 = vcmp.ge.f32.partialorder %v5112_v33, 0.0 }
 0x316   : > { %v15279_v40 = vadd.f32 %v4923_v17, %v17333_v0 }
 0x317   : > { %v5114_v45 = vadd.f32 %v15278_v32, %v17488_v2  ;;  %v5175_v12 = vmul.f32 0.2, %v5111_v62  ;;  %v5208_v22 = vsel %vm5144_vm2, %v5112_v33, %v5176_v20  ;;  %vm5143_vm3 = vcmp.ge.f32.partialorder %v5111_v62, 0.0 }
 0x318   : > { %v14112_v39 = vpop.f32.mrb[4].mxu0  ;;  %v5113_v38 = vadd.f32 %v15279_v40, %v17488_v2  ;;  %v5295_v21 = vrot.slane %v5208_v22, %v17497_v36 }
 0x319   : > { %vm5146_vm1 = vcmp.ge.f32.partialorder %v5114_v45, 0.0  ;;  %v5178_v44 = vmul.f32 0.2, %v5114_v45  ;;  %v4933_v1 = vpop.f32.mrb[5].mxu0  ;;  %v15280_v26 = vadd.f32 %v14112_v39, %v17338_v48  ;;  %v5207_v57 = vsel %vm5143_vm3, %v5111_v62, %v5175_v12 }
 0x31a   : > { %v15281_v27 = vadd.f32 %v4933_v1, %v17341_v7  ;;  %v5177_v48 = vmul.f32 0.2, %v5113_v38  ;;  %vm5145_vm4 = vcmp.ge.f32.partialorder %v5113_v38, 0.0  ;;  %v5271_v40 = vcombine.high %v5207_v57, %v5207_v57 }
 0x31b   : > { %v5210_v59 = vsel %vm5146_vm1, %v5114_v45, %v5178_v44  ;;  %v5116_v7 = vadd.f32 %v15280_v26, %v17488_v2  ;;  %v5303_v12 = vcombine.high %v5295_v21, %v5295_v21 }
 0x31c   : > { %v17504_v0 = vrot.slane %v5210_v59, %v17497_v36  ;;  %v14115_v61 = vpop.f32.mrb[6].mxu0  ;;  %v5115_v25 = vadd.f32 %v15281_v27, %v17488_v2  ;;  %v5322_v6 = vcombine.high %v5210_v59, %v5210_v59  ;;  %v5209_v32 = vsel %vm5145_vm4, %v5113_v38, %v5177_v48 }
 0x31d   : > { %v4943_v29 = vpop.f32.mrb[7].mxu0  ;;  %v15282_v47 = vadd.f32 %v14115_v61, %v17346_v37  ;;  %v5288_v37 = vcombine.high %v5208_v22, %v5208_v22  ;;  %v5180_v17 = vmul.f32 0.2, %v5116_v7  ;;  %vm5148_vm6 = vcmp.ge.f32.partialorder %v5116_v7, 0.0 }
 0x31e   : > { %v17511_v60 = vcombine.high %v17504_v0, %v17504_v0  ;;  %v6947_v11 = vrot.slane %v17504_v0, %v17507_v34  ;;  %v15283_v24 = vadd.f32 %v4943_v29, %v17349_v43  ;;  %v17529_v43 = vsub.s32 0, %v17492_v18 }
 0x31f   : > { %v5302_v45 = vrot.slane %v5288_v37, %v17497_v36  ;;  %v5305_v39 = vcombine.high %v5209_v32, %v5209_v32  ;;  %v5179_v44 = vmul.f32 0.2, %v5115_v25  ;;  %v17535_v1 = vrot.slane %v5322_v6, %v17497_v36 }
 0x320   : > { %v6951_v63 = vrot.slane %v17511_v60, %v17507_v34  ;;  %v14118_v23 = vpop.f32.mrb[8].mxu0  ;;  %v17538_v20 = vrot.slane %v5209_v32, %v17497_v36  ;;  %v5212_v62 = vsel %vm5148_vm6, %v5116_v7, %v5180_v17  ;;  %vm5147_vm8 = vcmp.ge.f32.partialorder %v5115_v25, 0.0 }
 0x321   : > { %v15284_v53 = vadd.f32 %v14118_v23, %v17354_v46  ;;  %v4953_v56 = vpop.f32.mrb[9].mxu0  ;;  %20561 = vst [vmem:[#allocation14_spill] sm:$0xff] %v17535_v1  ;;  %v17541_v59 = vrot.slane %v5207_v57, %v17497_v36  ;;  %v6931_v27 = vrot.slane %v5295_v21, %v17507_v34  ;;  %v17550_v61 = vrot.slane %v5271_v40, %v17497_v36 }
 0x322   : > { %v17522_v58 = vsel %vm6073_vm5, %v6951_v63, %v6947_v11  ;;  %v17544_v38 = vadd.f32 %v4953_v56, %v17356_v5  ;;  %v5118_v29 = vadd.f32 %v15282_v47, %v17488_v2  ;;  %v6939_v48 = vrot.slane %v5302_v45, %v17507_v34 }
 0x323   : > { %20560 = vst [vmem:[#allocation13_spill] sm:$0xff] %v17522_v58  ;;  %v5356_v7 = vcombine.high %v5212_v62, %v5212_v62  ;;  %v5211_v11 = vsel %vm5147_vm8, %v5115_v25, %v5179_v44  ;;  %v5304_v5 = vcombine.high %v5302_v45, %v5302_v45  ;;  %v17559_v23 = vrot.slane %v5305_v39, %v17497_v36 }
 0x324   : > { %v17525_v33 = vpop.f32.mrb[10].mxu0  ;;  %v17563_v56 = vcombine.high %v17538_v20, %v17538_v20  ;;  %v17566_v47 = vrot.slane %v5212_v62, %v17497_v36  ;;  %v5117_v37 = vadd.f32 %v15283_v24, %v17488_v2  ;;  %v6561_v57 = vrot.slane %v5295_v21, %v17529_v43 }
 0x325   : > { %v17531_v46 = vpop.f32.mrb[11].mxu0  ;;  %v6565_v25 = vrot.slane %v5303_v12, %v17529_v43  ;;  %v6569_v6 = vrot.slane %v5302_v45, %v17529_v43  ;;  %v5339_v17 = vcombine.high %v5211_v11, %v5211_v11  ;;  %v17575_v40 = vrot.slane %v5211_v11, %v17497_v36 }
 0x326   : > { %20562 = vst [vmem:[#allocation15_spill] sm:$0xff] %v17566_v47  ;;  %vm5150_vm11 = vcmp.ge.f32.partialorder %v5118_v29, 0.0  ;;  %v5182_v39 = vmul.f32 0.2, %v5118_v29  ;;  %v17580_v62 = vrot.slane %v5356_v7, %v17497_v36  ;;  %v6573_v24 = vrot.slane %v5304_v5, %v17529_v43 }
 0x327   : > { %v6814_v21 = vsel %vm6071_vm7, %v6565_v25, %v6561_v57  ;;  %v6935_v63 = vrot.slane %v5303_v12, %v17507_v34  ;;  %v17587_v45 = vcombine.high %v17566_v47, %v17566_v47  ;;  %v5120_v11 = vadd.f32 %v15284_v53, %v17488_v2 }
 0x328   : > { %v17546_v26 = vpop.f32.mrb[12].mxu0  ;;  %20563 = vst [vmem:[#allocation16_spill] sm:$0xff] %v17580_v62  ;;  %v6815_v18 = vsel %vm6073_vm5, %v6569_v6, %v6814_v21  ;;  %v6943_v58 = vrot.slane %v5304_v5, %v17507_v34  ;;  %v5181_v55 = vmul.f32 0.2, %v5117_v37  ;;  %v5286_v57 = vcombine.high %v17541_v59, %v17541_v59 }
 0x329   : > { %v17553_v22 = vpop.f32.mrb[13].mxu0  ;;  %20564 = vst [vmem:[#allocation22_spill] sm:$0xff] %v17587_v45  ;;  %v6816_v7 = vsel %vm6075_vm9, %v6573_v24, %v6815_v18  ;;  %v7184_v50 = vsel %vm6073_vm5, %v6935_v63, %v6931_v27  ;;  %v5214_v12 = vsel %vm5150_vm11, %v5118_v29, %v5182_v39  ;;  %vm5149_vm12 = vcmp.ge.f32.partialorder %v5117_v37, 0.0 }
 0x32a   : > { %v7185_v8 = vsel %vm6075_vm9, %v6939_v48, %v7184_v50  ;;  %6862 = vrot.lane.b32.xlu1 %v6816_v7, %s15881_s22  ;;  %v5287_v53 = vcombine.high %v17550_v61, %v17550_v61  ;;  %v5818_v27 = vrot.slane %v17541_v59, %v17529_v43  ;;  %v5822_v63 = vrot.slane %v5286_v57, %v17529_v43 }
 0x32b   : > { %v17606_v18 = vsel %vm6446_vm10, %v6943_v58, %v7185_v8  ;;  %v5826_v29 = vrot.slane %v17550_v61, %v17529_v43  ;;  %vm5152_vm13 = vcmp.ge.f32.partialorder %v5120_v11, 0.0  ;;  %v5184_v50 = vmul.f32 0.2, %v5120_v11 }
 0x32c   : > { %v17572_v32 = vpop.f32.mrb[14].mxu0  ;;  %20565 = vst [vmem:[#allocation23_spill] sm:$0xff] %v17606_v18  ;;  %v5830_v48 = vrot.slane %v5287_v53, %v17529_v43  ;;  %v15286_v6 = vadd.f32 %v17525_v33, %v17361_v49  ;;  %v5213_v39 = vsel %vm5149_vm12, %v5117_v37, %v5181_v55  ;;  %v6072_v24 = vsel %vm6071_vm7, %v5822_v63, %v5818_v27 }
 0x32d   : > { %v17577_v44 = vpop.f32.mrb[15].mxu0  ;;  %v15287_v8 = vadd.f32 %v17531_v46, %v17363_v54  ;;  %v17621_v58 = vcombine.high %v17535_v1, %v17535_v1  ;;  %v6074_v7 = vsel %vm6073_vm5, %v5826_v29, %v6072_v24  ;;  %v6577_v18 = vrot.slane %v17504_v0, %v17529_v43 }
 0x32e   : > { %v6581_v49 = vrot.slane %v17511_v60, %v17529_v43  ;;  %v6585_v55 = vrot.slane %v17535_v1, %v17529_v43  ;;  %v17637_v46 = vrot.slane %v5339_v17, %v17497_v36  ;;  %v6076_v37 = vsel %vm6075_vm9, %v5830_v48, %v6074_v7 }
 0x32f   : > { %20566 = vst [vmem:[#allocation24_spill] sm:$0xff] %v17621_v58  ;;  %v6589_v27 = vrot.slane %v17621_v58, %v17529_v43  ;;  %v5390_v0 = vcombine.high %v5214_v12, %v5214_v12  ;;  %v17643_v63 = vrot.slane %v5214_v12, %v17497_v36  ;;  %v5216_v60 = vsel %vm5152_vm13, %v5120_v11, %v5184_v50 }
 0x330   : > { %v17596_v25 = vpop.f32.mrb[16].mxu0  ;;  %6122 = vrot.lane.b32.xlu0 %v6076_v37, %s15882_s30  ;;  %v6817_v29 = vsel %vm6071_vm7, %v6581_v49, %v6577_v18  ;;  %v5373_v24 = vcombine.high %v5213_v39, %v5213_v39  ;;  %v6191_v48 = vrot.slane %v17541_v59, %v17507_v34  ;;  %v6195_v7 = vrot.slane %v5286_v57, %v17507_v34 }
 0x331   : > { %v17603_v5 = vpop.f32.mrb[17].mxu0  ;;  %20567 = vst [vmem:[#allocation25_spill] sm:$0xff] %v17643_v63  ;;  %v6818_v17 = vsel %vm6073_vm5, %v6585_v55, %v6817_v29  ;;  %v5119_v12 = vadd.f32 %v17544_v38, %v17488_v2  ;;  %v6199_v50 = vrot.slane %v17550_v61, %v17507_v34  ;;  %v6203_v18 = vrot.slane %v5287_v53, %v17507_v34 }
 0x332   : > { %v6819_v11 = vsel %vm6075_vm9, %v6589_v27, %v6818_v17  ;;  %v17666_v59 = vcombine.high %v17575_v40, %v17575_v40  ;;  %v17669_v57 = vrot.slane %v5213_v39, %v17497_v36  ;;  %v6444_v38 = vsel %vm6073_vm5, %v6195_v7, %v6191_v48 }
 0x333   : > { %6864 = vrot.lane.b32.xlu1 %v6819_v11, %s15881_s22  ;;  %v5424_v37 = vcombine.high %v5216_v60, %v5216_v60  ;;  %v17674_v61 = vrot.slane %v5216_v60, %v17497_v36  ;;  %v6445_v53 = vsel %vm6075_vm9, %v6199_v50, %v6444_v38  ;;  %v15288_v27 = vadd.f32 %v17546_v26, %v17369_v9 }
 0x334   : > { %v17623_v21 = vpop.f32.mrb[18].mxu0  ;;  %v17682_v17 = vrot.slane %v5390_v0, %v17497_v36  ;;  %v5122_v39 = vadd.f32 %v15286_v6, %v17488_v2  ;;  %v6447_v11 = vsel %vm6446_vm10, %v6203_v18, %v6445_v53  ;;  %v17690_v60 = vcombine.high %v17643_v63, %v17643_v63 }
 0x335   : > { %v17632_v33 = vpop.f32.mrb[19].mxu0  ;;  %20568 = vst [vmem:[#allocation26_spill] sm:$0xff] %v17674_v61  ;;  %v17693_v7 = vrot.slane %v5373_v24, %v17497_v36  ;;  %v5183_v9 = vmul.f32 0.2, %v5119_v12  ;;  %6493 = vrot.lane.b32.xlu0 %v6447_v11, %s15883_s12  ;;  %v15289_v26 = vadd.f32 %v17553_v22, %v17371_v10  ;;  %v17702_v6 = vcombine.high %v17669_v57, %v17669_v57 }
 0x336   : > { %20569 = vst [vmem:[#allocation27_spill] sm:$0xff] %v17682_v17  ;;  %20570 = vst [vmem:[#allocation28_spill] sm:$0xff] %v17690_v60  ;;  %vm5151_vm14 = vcmp.ge.f32.partialorder %v5119_v12, 0.0  ;;  %v5121_v50 = vadd.f32 %v15287_v8, %v17488_v2  ;;  %v5321_v24 = vcombine.high %v17559_v23, %v17559_v23  ;;  %v17708_v18 = vrot.slane %v5424_v37, %v17497_v36 }
 0x337   : > { %v17712_v38 = vcombine.high %v17674_v61, %v17674_v61  ;;  %v6207_v10 = vrot.slane %v17538_v20, %v17507_v34  ;;  %v6211_v22 = vrot.slane %v17563_v56, %v17507_v34  ;;  %v5186_v53 = vmul.f32 0.2, %v5122_v39 }
 0x338   : > { %v17652_v54 = vpop.f32.mrb[20].mxu0  ;;  %20571 = vst [vmem:[#allocation17_spill] sm:$0xff] %v17708_v18  ;;  %v6215_v8 = vrot.slane %v17559_v23, %v17507_v34  ;;  %v6219_v11 = vrot.slane %v5321_v24, %v17507_v34  ;;  %v5838_v37 = vrot.slane %v17563_v56, %v17529_v43  ;;  %v5215_v55 = vsel %vm5151_vm14, %v5119_v12, %v5183_v9 }
 0x339   : > { %v17660_v49 = vpop.f32.mrb[21].mxu0  ;;  %20572 = vst [vmem:[#allocation18_spill] sm:$0xff] %v17712_v38  ;;  %vm5154_vm15 = vcmp.ge.f32.partialorder %v5122_v39, 0.0  ;;  %v6448_v1 = vsel %vm6073_vm5, %v6211_v22, %v6207_v10  ;;  %v5834_v60 = vrot.slane %v17538_v20, %v17529_v43  ;;  %v5185_v17 = vmul.f32 0.2, %v5121_v50 }
 0x33a   : > { %v5124_v4 = vadd.f32 %v15288_v27, %v17488_v2  ;;  %v6449_v3 = vsel %vm6075_vm9, %v6215_v8, %v6448_v1  ;;  %v5842_v52 = vrot.slane %v17559_v23, %v17529_v43  ;;  %vm5153_vm1 = vcmp.ge.f32.partialorder %v5121_v50, 0.0 }
 0x33b   : > { %v6450_v56 = vsel %vm6446_vm10, %v6219_v11, %v6449_v3  ;;  %v5846_v12 = vrot.slane %v5321_v24, %v17529_v43  ;;  %v6077_v9 = vsel %vm6071_vm7, %v5838_v37, %v5834_v60  ;;  %v5218_v1 = vsel %vm5154_vm15, %v5122_v39, %v5186_v53 }
 0x33c   : > { %v17686_v48 = vpop.f32.mrb[22].mxu0  ;;  %6495 = vrot.lane.b32.xlu1 %v6450_v56, %s15883_s12  ;;  %v5407_v22 = vcombine.high %v5215_v55, %v5215_v55  ;;  %v6078_v3 = vsel %vm6073_vm5, %v5842_v52, %v6077_v9  ;;  %v15290_v60 = vadd.f32 %v17572_v32, %v17414_v28  ;;  %v15291_v24 = vadd.f32 %v17577_v44, %v17417_v30 }
 0x33d   : > { %v17698_v0 = vpop.f32.mrb[23].mxu0  ;;  %v17754_v11 = vrot.slane %v5215_v55, %v17497_v36  ;;  %v5217_v39 = vsel %vm5153_vm1, %v5121_v50, %v5185_v17  ;;  %v5188_v53 = vmul.f32 0.2, %v5124_v4  ;;  %v6079_v37 = vsel %vm6075_vm9, %v5846_v12, %v6078_v3 }
 0x33e   : > { %v5458_v56 = vcombine.high %v5218_v1, %v5218_v1  ;;  %v17759_v27 = vrot.slane %v5218_v1, %v17497_v36  ;;  %vm5156_vm2 = vcmp.ge.f32.partialorder %v5124_v4, 0.0  ;;  %6124 = vrot.lane.b32.xlu0 %v6079_v37, %s15882_s30  ;;  %v17764_v28 = vcombine.high %v17637_v46, %v17637_v46 }
 0x33f   : > { %v5123_v30 = vadd.f32 %v15289_v26, %v17488_v2  ;;  %v6223_v52 = vrot.slane %v17575_v40, %v17507_v34  ;;  %v6227_v32 = vrot.slane %v17666_v59, %v17507_v34  ;;  %v6231_v44 = vrot.slane %v17637_v46, %v17507_v34 }
 0x340   : > { %v17723_v29 = vpop.f32.mrb[24].mxu0  ;;  %20574 = vst [vmem:[#allocation21_spill] sm:$0xff] %v17759_v27  ;;  %v17776_v17 = vrot.slane %v5407_v22, %v17497_v36  ;;  %v5441_v50 = vcombine.high %v5217_v39, %v5217_v39  ;;  %v17779_v12 = vrot.slane %v5217_v39, %v17497_v36  ;;  %v17783_v26 = vcombine.high %v17580_v62, %v17580_v62 }
 0x341   : > { %v17728_v63 = vpop.f32.mrb[25].mxu0  ;;  %v5220_v9 = vsel %vm5156_vm2, %v5124_v4, %v5188_v53  ;;  %v6235_v1 = vrot.slane %v17764_v28, %v17507_v34  ;;  %v6451_v3 = vsel %vm6073_vm5, %v6227_v32, %v6223_v52  ;;  %v6597_v37 = vrot.slane %v17587_v45, %v17529_v43 }
 0x342   : > { %20576 = vst [vmem:[#allocation30_spill] sm:$0xff] %v17783_v26  ;;  %v17794_v22 = vcombine.high %v17759_v27, %v17759_v27  ;;  %v6452_v39 = vsel %vm6075_vm9, %v6231_v44, %v6451_v3  ;;  %v6593_v20 = vrot.slane %v17566_v47, %v17529_v43  ;;  %v6601_v4 = vrot.slane %v17580_v62, %v17529_v43 }
 0x343   : > { %v17803_v53 = vcombine.high %v17754_v11, %v17754_v11  ;;  %v17806_v52 = vrot.slane %v5458_v56, %v17497_v36  ;;  %v5187_v45 = vmul.f32 0.2, %v5123_v30  ;;  %v17813_v44 = vrot.slane %v5220_v9, %v17497_v36 }
 0x344   : > { %v17744_v23 = vpop.f32.mrb[26].mxu0  ;;  %20578 = vst [vmem:[#allocation32_spill] sm:$0xff] %v17794_v22  ;;  %v6453_v3 = vsel %vm6446_vm10, %v6235_v1, %v6452_v39  ;;  %v6605_v62 = vrot.slane %v17783_v26, %v17529_v43  ;;  %v6820_v47 = vsel %vm6071_vm7, %v6597_v37, %v6593_v20  ;;  %v17824_v32 = vrot.slane %v5441_v50, %v17497_v36 }
 0x345   : > { %v17751_v8 = vpop.f32.mrb[27].mxu0  ;;  %20579 = vst [vmem:[#allocation33_spill] sm:$0xff] %v17806_v52  ;;  %20581 = vst [vmem:[#allocation35_spill] sm:$0xff] %v17813_v44  ;;  %v17828_v58 = vcombine.high %v17779_v12, %v17779_v12  ;;  %vm5155_vm3 = vcmp.ge.f32.partialorder %v5123_v30, 0.0  ;;  %6497 = vrot.lane.b32.xlu1 %v6453_v3, %s15883_s12  ;;  %v6821_v20 = vsel %vm6073_vm5, %v6601_v4, %v6820_v47 }
 0x346   : > { %20573 = vst [vmem:[#allocation19_spill] sm:$0xff] %v17751_v8  ;;  %v15292_v37 = vadd.f32 %v17596_v25, %v17422_v31  ;;  %v15293_v39 = vadd.f32 %v17603_v5, %v17425_v35  ;;  %v5492_v50 = vcombine.high %v5220_v9, %v5220_v9  ;;  %v5126_v56 = vadd.f32 %v15290_v60, %v17488_v2 }
 0x347   : > { %v17846_v3 = vcombine.high %v17813_v44, %v17813_v44  ;;  %v5219_v47 = vsel %vm5155_vm3, %v5123_v30, %v5187_v45  ;;  %v5870_v35 = vrot.slane %v17702_v6, %v17529_v43  ;;  %v5866_v25 = vrot.slane %v17669_v57, %v17529_v43 }
 0x348   : > { %v17773_v55 = vpop.f32.mrb[28].mxu0  ;;  %v5128_v31 = vadd.f32 %v15292_v37, %v17488_v2  ;;  %v5850_v5 = vrot.slane %v17575_v40, %v17529_v43  ;;  %v5854_v60 = vrot.slane %v17666_v59, %v17529_v43  ;;  %v5125_v45 = vadd.f32 %v15291_v24, %v17488_v2 }
 0x349   : > { %20575 = vst [vmem:[#allocation29_spill] sm:$0xff] %v17773_v55  ;;  %v17790_v10 = vpop.f32.mrb[29].mxu0  ;;  %20583 = vst [vmem:[#allocation37_spill] sm:$0xff] %v17846_v3  ;;  %v5190_v9 = vmul.f32 0.2, %v5126_v56  ;;  %v6083_v4 = vsel %vm6071_vm7, %v5870_v35, %v5866_v25  ;;  %v5862_v59 = vrot.slane %v17764_v28, %v17529_v43  ;;  %v15294_v24 = vadd.f32 %v17623_v21, %v17430_v42 }
 0x34a   : > { %20577 = vst [vmem:[#allocation31_spill] sm:$0xff] %v17790_v10  ;;  %vm5160_vm4 = vcmp.ge.f32.partialorder %v5128_v31, 0.0  ;;  %v5192_v30 = vmul.f32 0.2, %v5128_v31  ;;  %v6080_v37 = vsel %vm6071_vm7, %v5854_v60, %v5850_v5  ;;  %v17877_v35 = vrot.slane %v5492_v50, %v17497_v36 }
 0x34b   : > { %vm5158_vm6 = vcmp.ge.f32.partialorder %v5126_v56, 0.0  ;;  %v15295_v28 = vadd.f32 %v17632_v33, %v17433_v14  ;;  %v5475_v21 = vcombine.high %v5219_v47, %v5219_v47  ;;  %vm5157_vm8 = vcmp.ge.f32.partialorder %v5125_v45, 0.0 }
 0x34c   : > { %v17810_v10 = vpop.f32.mrb[30].mxu0  ;;  %v17867_v1 = vsel %vm5160_vm4, %v5128_v31, %v5192_v30  ;;  %20584 = vst [vmem:[#allocation38_spill] sm:$0xff] %v17877_v35  ;;  %v5189_v31 = vmul.f32 0.2, %v5125_v45  ;;  %v17897_v60 = vrot.slane %v5219_v47, %v17497_v36  ;;  %v5222_v30 = vsel %vm5158_vm6, %v5126_v56, %v5190_v9 }
 0x34d   : > { %20580 = vst [vmem:[#allocation34_spill] sm:$0xff] %v17810_v10  ;;  %v17819_v55 = vpop.f32.mrb[31].mxu0  ;;  %v17842_v10 = vcombine.high %v17693_v7, %v17693_v7  ;;  %v5882_v47 = vrot.slane %v17754_v11, %v17529_v43  ;;  %v5886_v56 = vrot.slane %v17803_v53, %v17529_v43  ;;  %v5890_v9 = vrot.slane %v17776_v17, %v17529_v43 }
 0x34e   : > { %20582 = vst [vmem:[#allocation36_spill] sm:$0xff] %v17819_v55  ;;  %v6822_v55 = vsel %vm6075_vm9, %v6605_v62, %v6821_v20  ;;  %v5874_v62 = vrot.slane %v17693_v7, %v17529_v43  ;;  %v5858_v20 = vrot.slane %v17637_v46, %v17529_v43  ;;  %v17881_v46 = vrot.slane %v17867_v1, %v17497_v36 }
 0x34f   : > { %6866 = vrot.lane.b32.xlu0 %v6822_v55, %s15881_s22  ;;  %v5878_v55 = vrot.slane %v17842_v10, %v17529_v43 }
 0x350   : > { %v6084_v40 = vsel %vm6073_vm5, %v5874_v62, %v6083_v4  ;;  %v6081_v62 = vsel %vm6073_vm5, %v5858_v20, %v6080_v37  ;;  %v17891_v50 = vcombine.high %v17881_v46, %v17881_v46  ;;  %v7059_v33 = vrot.slane %v17881_v46, %v17507_v34 }
 0x351   : > { %v6085_v25 = vsel %vm6075_vm9, %v5878_v55, %v6084_v40  ;;  %v6082_v14 = vsel %vm6075_vm9, %v5862_v59, %v6081_v62  ;;  %v5127_v4 = vadd.f32 %v15293_v39, %v17488_v2  ;;  %v5423_v20 = vcombine.high %v17776_v17, %v17776_v17 }
 0x352   : > { %6128 = vrot.lane.b32.xlu1 %v6085_v25, %s15882_s30  ;;  %v7063_v55 = vrot.slane %v17891_v50, %v17507_v34  ;;  %v5221_v37 = vsel %vm5157_vm8, %v5125_v45, %v5189_v31  ;;  %v17917_v39 = vrot.slane %v5475_v21, %v17497_v36  ;;  %v5130_v45 = vadd.f32 %v15294_v24, %v17488_v2 }
 0x353   : > { %6126 = vrot.lane.b32.xlu0 %v6082_v14, %s15882_s30  ;;  %v5526_v31 = vcombine.high %v5222_v30, %v5222_v30  ;;  %v17924_v25 = vrot.slane %v5222_v30, %v17497_v36  ;;  %v5894_v62 = vrot.slane %v5423_v20, %v17529_v43  ;;  %v6086_v14 = vsel %vm6071_vm7, %v5886_v56, %v5882_v47 }
 0x354   : > { %v17920_v59 = vsel %vm6073_vm5, %v7063_v55, %v7059_v33  ;;  %v5509_v8 = vcombine.high %v5221_v37, %v5221_v37  ;;  %vm5159_vm11 = vcmp.ge.f32.partialorder %v5127_v4, 0.0  ;;  %v5191_v5 = vmul.f32 0.2, %v5127_v4 }
 0x355   : > { %20585 = vst [vmem:[#allocation39_spill] sm:$0xff] %v17920_v59  ;;  %v6087_v40 = vsel %vm6073_vm5, %v5890_v9, %v6086_v14  ;;  %v6239_v33 = vrot.slane %v17669_v57, %v17507_v34  ;;  %v6243_v24 = vrot.slane %v17702_v6, %v17507_v34  ;;  %v6247_v30 = vrot.slane %v17693_v7, %v17507_v34 }
 0x356   : > { %v6088_v21 = vsel %vm6075_vm9, %v5894_v62, %v6087_v40  ;;  %v17938_v55 = vcombine.high %v17897_v60, %v17897_v60  ;;  %v17941_v47 = vrot.slane %v5221_v37, %v17497_v36  ;;  %v5194_v9 = vmul.f32 0.2, %v5130_v45 }
 0x357   : > { %6130 = vrot.lane.b32.xlu1 %v6088_v21, %s15882_s30  ;;  %v6251_v57 = vrot.slane %v17842_v10, %v17507_v34  ;;  %v6454_v6 = vsel %vm6073_vm5, %v6243_v24, %v6239_v33  ;;  %v15296_v7 = vadd.f32 %v17652_v54, %v17438_v16  ;;  %v15297_v40 = vadd.f32 %v17660_v49, %v17441_v13 }
 0x358   : > { %v5223_v37 = vsel %vm5159_vm11, %v5127_v4, %v5191_v5  ;;  %vm5162_vm12 = vcmp.ge.f32.partialorder %v5130_v45, 0.0  ;;  %v5129_v62 = vadd.f32 %v15295_v28, %v17488_v2  ;;  %v6455_v14 = vsel %vm6075_vm9, %v6247_v30, %v6454_v6 }
 0x359   : > { %v17957_v21 = vrot.slane %v5526_v31, %v17497_v36  ;;  %v17961_v10 = vcombine.high %v17924_v25, %v17924_v25  ;;  %v17964_v33 = vrot.slane %v5509_v8, %v17497_v36  ;;  %v6456_v16 = vsel %vm6446_vm10, %v6251_v57, %v6455_v14 }
 0x35a   : > { %6499 = vrot.lane.b32.xlu0 %v6456_v16, %s15883_s12  ;;  %v6255_v13 = vrot.slane %v17754_v11, %v17507_v34  ;;  %v6259_v54 = vrot.slane %v17803_v53, %v17507_v34  ;;  %v6263_v49 = vrot.slane %v17776_v17, %v17507_v34  ;;  %v17976_v28 = vcombine.high %v17708_v18, %v17708_v18 }
 0x35b   : > { %v5560_v8 = vcombine.high %v17867_v1, %v17867_v1  ;;  %v5543_v5 = vcombine.high %v5223_v37, %v5223_v37  ;;  %v5226_v4 = vsel %vm5162_vm12, %v5130_v45, %v5194_v9  ;;  %v6267_v31 = vrot.slane %v5423_v20, %v17507_v34 }
 0x35c   : > { %20586 = vst [vmem:[#allocation40_spill] sm:$0xff] %v17976_v28  ;;  %vm5161_vm13 = vcmp.ge.f32.partialorder %v5129_v62, 0.0  ;;  %v5193_v24 = vmul.f32 0.2, %v5129_v62  ;;  %v6457_v11 = vsel %vm6073_vm5, %v6259_v54, %v6255_v13  ;;  %v6629_v53 = vrot.slane %v17712_v38, %v17529_v43 }
 0x35d   : > { %v5132_v17 = vadd.f32 %v15296_v7, %v17488_v2  ;;  %v6458_v30 = vsel %vm6075_vm9, %v6263_v49, %v6457_v11  ;;  %v6625_v57 = vrot.slane %v17674_v61, %v17529_v43  ;;  %v6633_v1 = vrot.slane %v17708_v18, %v17529_v43 }
 0x35e   : > { %v17992_v20 = vcombine.high %v17941_v47, %v17941_v47  ;;  %v17995_v45 = vrot.slane %v5223_v37, %v17497_v36  ;;  %v5131_v9 = vadd.f32 %v15297_v40, %v17488_v2  ;;  %v6637_v6 = vrot.slane %v17976_v28, %v17529_v43 }
 0x35f   : > { %v18001_v7 = vrot.slane %v5560_v8, %v17497_v36  ;;  %v6459_v14 = vsel %vm6446_vm10, %v6267_v31, %v6458_v30  ;;  %v6826_v16 = vsel %vm6071_vm7, %v6629_v53, %v6625_v57  ;;  %v15298_v13 = vadd.f32 %v17686_v48, %v17445_v15 }
 0x360   : > { %v18008_v54 = vrot.slane %v5543_v5, %v17497_v36  ;;  %v5594_v37 = vcombine.high %v5226_v4, %v5226_v4  ;;  %v18011_v49 = vrot.slane %v5226_v4, %v17497_v36  ;;  %v5225_v40 = vsel %vm5161_vm13, %v5129_v62, %v5193_v24  ;;  %6501 = vrot.lane.b32.xlu1 %v6459_v14, %s15883_s12 }
 0x361   : > { %vm5164_vm14 = vcmp.ge.f32.partialorder %v5132_v17, 0.0  ;;  %v5196_v8 = vmul.f32 0.2, %v5132_v17  ;;  %v6827_v31 = vsel %vm6073_vm5, %v6633_v1, %v6826_v16  ;;  %v15299_v11 = vadd.f32 %v17698_v0, %v17447_v41 }
 0x362   : > { %v5195_v53 = vmul.f32 0.2, %v5131_v9  ;;  %v6828_v15 = vsel %vm6075_vm9, %v6637_v6, %v6827_v31  ;;  %v5134_v48 = vadd.f32 %v15298_v13, %v17488_v2  ;;  %v18022_v5 = vcombine.high %v17824_v32, %v17824_v32 }
 0x363   : > { %v18028_v4 = vcombine.high %v17995_v45, %v17995_v45  ;;  %v5577_v24 = vcombine.high %v5225_v40, %v5225_v40  ;;  %vm5163_vm15 = vcmp.ge.f32.partialorder %v5131_v9, 0.0  ;;  %6870 = vrot.lane.b32.xlu0 %v6828_v15, %s15881_s22  ;;  %v18032_v41 = vrot.slane %v5225_v40, %v17497_v36 }
 0x364   : > { %v5898_v0 = vrot.slane %v17779_v12, %v17529_v43  ;;  %v5902_v30 = vrot.slane %v17828_v58, %v17529_v43  ;;  %v5906_v57 = vrot.slane %v17824_v32, %v17529_v43  ;;  %v18041_v1 = vrot.slane %v5594_v37, %v17497_v36 }
 0x365   : > { %v5228_v6 = vsel %vm5164_vm14, %v5132_v17, %v5196_v8  ;;  %v5910_v14 = vrot.slane %v18022_v5, %v17529_v43  ;;  %v18048_v16 = vcombine.high %v17806_v52, %v17806_v52  ;;  %v18052_v13 = vcombine.high %v18011_v49, %v18011_v49 }
 0x366   : > { %v5227_v40 = vsel %vm5163_vm15, %v5131_v9, %v5195_v53  ;;  %v5198_v31 = vmul.f32 0.2, %v5134_v48  ;;  %v6089_v15 = vsel %vm6071_vm7, %v5902_v30, %v5898_v0  ;;  %v6641_v17 = vrot.slane %v17759_v27, %v17529_v43 }
 0x367   : > { %v6090_v37 = vsel %vm6073_vm5, %v5906_v57, %v6089_v15  ;;  %v6645_v8 = vrot.slane %v17794_v22, %v17529_v43  ;;  %v6649_v62 = vrot.slane %v17806_v52, %v17529_v43  ;;  %v18063_v56 = vrot.slane %v5577_v24, %v17497_v36 }
 0x368   : > { %v18067_v9 = vcombine.high %v18032_v41, %v18032_v41  ;;  %v5628_v53 = vcombine.high %v5228_v6, %v5228_v6  ;;  %vm5166_vm1 = vcmp.ge.f32.partialorder %v5134_v48, 0.0  ;;  %v5133_v0 = vadd.f32 %v15299_v11, %v17488_v2 }
 0x369   : > { %v6091_v30 = vsel %vm6075_vm9, %v5910_v14, %v6090_v37  ;;  %v6653_v57 = vrot.slane %v18048_v16, %v17529_v43  ;;  %v6829_v15 = vsel %vm6071_vm7, %v6645_v8, %v6641_v17  ;;  %v18075_v42 = vrot.slane %v5228_v6, %v17497_v36 }
 0x36a   : > { %v5611_v24 = vcombine.high %v5227_v40, %v5227_v40  ;;  %v18078_v59 = vrot.slane %v5227_v40, %v17497_v36  ;;  %6132 = vrot.lane.b32.xlu1 %v6091_v30, %s15882_s30  ;;  %v6830_v52 = vsel %vm6073_vm5, %v6649_v62, %v6829_v15  ;;  %v5230_v14 = vsel %vm5166_vm1, %v5134_v48, %v5198_v31 }
 0x36b   : > { %v6831_v37 = vsel %vm6075_vm9, %v6653_v57, %v6830_v52  ;;  %v15300_v17 = vadd.f32 %v17723_v29, %v17453_v19  ;;  %v15301_v6 = vadd.f32 %v17728_v63, %v17455_v51  ;;  %v18092_v40 = vcombine.high %v17877_v35, %v17877_v35 }
 0x36c   : > { %6872 = vrot.lane.b32.xlu0 %v6831_v37, %s15881_s22  ;;  %v6657_v62 = vrot.slane %v17813_v44, %v17529_v43  ;;  %v6661_v48 = vrot.slane %v17846_v3, %v17529_v43  ;;  %vm5165_vm2 = vcmp.ge.f32.partialorder %v5133_v0, 0.0  ;;  %v6665_v19 = vrot.slane %v17877_v35, %v17529_v43 }
 0x36d   : > { %v5136_v52 = vadd.f32 %v15300_v17, %v17488_v2  ;;  %v6275_v29 = vrot.slane %v17828_v58, %v17507_v34  ;;  %v5197_v51 = vmul.f32 0.2, %v5133_v0  ;;  %v6669_v63 = vrot.slane %v18092_v40, %v17529_v43 }
 0x36e   : > { %v6832_v31 = vsel %vm6071_vm7, %v6661_v48, %v6657_v62  ;;  %v6271_v8 = vrot.slane %v17779_v12, %v17507_v34  ;;  %v6279_v15 = vrot.slane %v17824_v32, %v17507_v34  ;;  %v5662_v37 = vcombine.high %v5230_v14, %v5230_v14  ;;  %v20587_v48 = vld [vmem:[#allocation20_spill] sm:$0xff]  ;;  %v20589_v32 = vld [vmem:[#allocation19_spill] sm:$0xff] }
 0x36f   : > { %vm5168_vm3 = vcmp.ge.f32.partialorder %v5136_v52, 0.0  ;;  %v5200_v30 = vmul.f32 0.2, %v5136_v52  ;;  %v6833_v57 = vsel %vm6073_vm5, %v6665_v19, %v6832_v31  ;;  %v18112_v17 = vrot.slane %v5230_v14, %v17497_v36  ;;  %v20588_v31 = vld [vmem:[#allocation12_spill] sm:$0xff] }
 0x370   : > { %v6834_v58 = vsel %vm6075_vm9, %v6669_v63, %v6833_v57  ;;  %v6283_v11 = vrot.slane %v18022_v5, %v17507_v34  ;;  %v6460_v12 = vsel %vm6073_vm5, %v6275_v29, %v6271_v8  ;;  %v15302_v19 = vadd.f32 %v17744_v23, %v20587_v48 }
 0x371   : > { %v18117_v62 = vsel %vm5168_vm3, %v5136_v52, %v5200_v30  ;;  %6874 = vrot.lane.b32.xlu1 %v6834_v58, %s15881_s22  ;;  %v15303_v28 = vadd.f32 %v20589_v32, %v20588_v31  ;;  %v18126_v14 = vrot.slane %v5628_v53, %v17497_v36  ;;  %v5135_v5 = vadd.f32 %v15301_v6, %v17488_v2 }
 0x372   : > { %v18130_v63 = vrot.slane %v18117_v62, %v17497_v36  ;;  %v6461_v52 = vsel %vm6075_vm9, %v6279_v15, %v6460_v12  ;;  %v18136_v29 = vcombine.high %v18075_v42, %v18075_v42  ;;  %v5229_v23 = vsel %vm5165_vm2, %v5133_v0, %v5197_v51 }
 0x373   : > { %v6462_v8 = vsel %vm6446_vm10, %v6283_v11, %v6461_v52  ;;  %v5138_v30 = vadd.f32 %v15302_v19, %v17488_v2  ;;  %v18142_v53 = vrot.slane %v5611_v24, %v17497_v36  ;;  %v18146_v57 = vcombine.high %v18078_v59, %v18078_v59 }
 0x374   : > { %v18149_v6 = vrot.slane %v5662_v37, %v17497_v36  ;;  %v18153_v15 = vcombine.high %v18130_v63, %v18130_v63  ;;  %6503 = vrot.lane.b32.xlu0 %v6462_v8, %s15883_s12  ;;  %v18158_v0 = vcombine.high %v18112_v17, %v18112_v17  ;;  %v5645_v51 = vcombine.high %v5229_v23, %v5229_v23 }
 0x375   : > { %vm5170_vm4 = vcmp.ge.f32.partialorder %v5138_v30, 0.0  ;;  %v5202_v11 = vmul.f32 0.2, %v5138_v30  ;;  %v7123_v37 = vrot.slane %v18130_v63, %v17507_v34  ;;  %v5199_v12 = vmul.f32 0.2, %v5135_v5 }
 0x376   : > { %v7127_v58 = vrot.slane %v18153_v15, %v17507_v34  ;;  %v5137_v19 = vadd.f32 %v15303_v28, %v17488_v2  ;;  %v5525_v31 = vcombine.high %v17964_v33, %v17964_v33  ;;  %v5934_v32 = vrot.slane %v17992_v20, %v17529_v43 }
 0x377   : > { %v18166_v48 = vsel %vm5170_vm4, %v5138_v30, %v5202_v11  ;;  %vm5167_vm6 = vcmp.ge.f32.partialorder %v5135_v5, 0.0  ;;  %v5930_v30 = vrot.slane %v17941_v47, %v17529_v43  ;;  %v18185_v11 = vrot.slane %v5229_v23, %v17497_v36 }
 0x378   : > { %v18174_v52 = vsel %vm6073_vm5, %v7127_v58, %v7123_v37  ;;  %v18178_v8 = vrot.slane %v18166_v48, %v17497_v36  ;;  %v5938_v24 = vrot.slane %v17964_v33, %v17529_v43  ;;  %v5942_v37 = vrot.slane %v5525_v31, %v17529_v43 }
 0x379   : > { %20590 = vst [vmem:[#allocation20_spill] sm:$0xff] %v18174_v52  ;;  %v18193_v52 = vrot.slane %v5645_v51, %v17497_v36  ;;  %v6095_v28 = vsel %vm6071_vm7, %v5934_v32, %v5930_v30  ;;  %v18200_v18 = vsel %vm5167_vm6, %v5135_v5, %v5199_v12  ;;  %vm5169_vm8 = vcmp.ge.f32.partialorder %v5137_v19, 0.0  ;;  %v20593_v32 = vld [vmem:[#allocation6_spill] sm:$0xff]  ;;  %v20594_v30 = vld [vmem:[#allocation29_spill] sm:$0xff] }
 0x37a   : > { %20591 = vst [vmem:[#allocation12_spill] sm:$0xff] %v18178_v8  ;;  %v18197_v35 = vcombine.high %v18178_v8, %v18178_v8  ;;  %v6096_v23 = vsel %vm6073_vm5, %v5938_v24, %v6095_v28  ;;  %v5491_v26 = vcombine.high %v17917_v39, %v17917_v39  ;;  %v7139_v58 = vrot.slane %v18178_v8, %v17507_v34 }
 0x37b   : > { %v6097_v22 = vsel %vm6075_vm9, %v5942_v37, %v6096_v23  ;;  %v5914_v27 = vrot.slane %v17897_v60, %v17529_v43  ;;  %v5918_v5 = vrot.slane %v17938_v55, %v17529_v43  ;;  %v5922_v24 = vrot.slane %v17917_v39, %v17529_v43  ;;  %v20596_v37 = vld [vmem:[#allocation7_spill] sm:$0xff] }
 0x37c   : > { %20592 = vst [vmem:[#allocation19_spill] sm:$0xff] %v18197_v35  ;;  %v7143_v51 = vrot.slane %v18197_v35, %v17507_v34  ;;  %6136 = vrot.lane.b32.xlu1 %v6097_v22, %s15882_s30  ;;  %v5926_v12 = vrot.slane %v5491_v26, %v17529_v43  ;;  %v15304_v28 = vadd.f32 %v20594_v30, %v20593_v32  ;;  %v20597_v23 = vld [vmem:[#allocation31_spill] sm:$0xff]  ;;  %vm384_vm15 = vcmask 520192  }
 0x37d   : > { %v15305_v44 = vadd.f32 %v20597_v23, %v20596_v37  ;;  %v6303_v22 = vrot.slane %v17941_v47, %v17507_v34  ;;  %v6307_v38 = vrot.slane %v17992_v20, %v17507_v34  ;;  %v6092_v61 = vsel %vm6071_vm7, %v5918_v5, %v5914_v27 }
 0x37e   : > { %v18221_v3 = vsel %vm6073_vm5, %v7143_v51, %v7139_v58  ;;  %v5140_v35 = vadd.f32 %v15304_v28, %v17488_v2  ;;  %v6311_v8 = vrot.slane %v17964_v33, %v17507_v34  ;;  %v6315_v32 = vrot.slane %v5525_v31, %v17507_v34 }
 0x37f   : > { %20595 = vst [vmem:[#allocation6_spill] sm:$0xff] %v18221_v3  ;;  %v5201_v58 = vmul.f32 0.2, %v5137_v19  ;;  %v6093_v51 = vsel %vm6073_vm5, %v5922_v24, %v6092_v61  ;;  %v5139_v30 = vadd.f32 %v15305_v44, %v17488_v2  ;;  %v6466_v37 = vsel %vm6073_vm5, %v6307_v38, %v6303_v22  ;;  %v20599_v24 = vld [vmem:[#allocation34_spill] sm:$0xff] }
 0x380   : > { %v6094_v47 = vsel %vm6075_vm9, %v5926_v12, %v6093_v51  ;;  %vm5172_vm11 = vcmp.ge.f32.partialorder %v5140_v35, 0.0  ;;  %v5204_v20 = vmul.f32 0.2, %v5140_v35  ;;  %v6467_v27 = vsel %vm6075_vm9, %v6311_v8, %v6466_v37  ;;  %v20598_v8 = vld [vmem:[#allocation10_spill] sm:$0xff] }
 0x381   : > { %6134 = vrot.lane.b32.xlu0 %v6094_v47, %s15882_s30  ;;  %v5203_v5 = vmul.f32 0.2, %v5139_v30  ;;  %v6468_v33 = vsel %vm6446_vm10, %v6315_v32, %v6467_v27  ;;  %v6287_v31 = vrot.slane %v17897_v60, %v17507_v34  ;;  %v6291_v61 = vrot.slane %v17938_v55, %v17507_v34 }
 0x382   : > { %v5236_v2 = vsel %vm5172_vm11, %v5140_v35, %v5204_v20  ;;  %6507 = vrot.lane.b32.xlu1 %v6468_v33, %s15883_s12  ;;  %v6295_v38 = vrot.slane %v17917_v39, %v17507_v34  ;;  %v6299_v44 = vrot.slane %v5491_v26, %v17507_v34  ;;  %v15306_v12 = vadd.f32 %v20599_v24, %v20598_v8  ;;  %v20600_v33 = vld [vmem:[#allocation8_spill] sm:$0xff] }
 0x383   : > { %v5233_v28 = vsel %vm5169_vm8, %v5137_v19, %v5201_v58  ;;  %v18253_v23 = vrot.slane %v5236_v2, %v17497_v36  ;;  %vm5171_vm12 = vcmp.ge.f32.partialorder %v5139_v30, 0.0  ;;  %v6463_v60 = vsel %vm6073_vm5, %v6291_v61, %v6287_v31  ;;  %v20601_v31 = vld [vmem:[#allocation36_spill] sm:$0xff] }
 0x384   : > { %v18258_v35 = vcombine.high %v18185_v11, %v18185_v11  ;;  %v6464_v55 = vsel %vm6075_vm9, %v6295_v38, %v6463_v60  ;;  %v5696_v19 = vcombine.high %v18117_v62, %v18117_v62  ;;  %v5679_v22 = vcombine.high %v18200_v18, %v18200_v18 }
 0x385   : > { %v18271_v32 = vcombine.high %v18253_v23, %v18253_v23  ;;  %v6465_v58 = vsel %vm6446_vm10, %v6299_v44, %v6464_v55  ;;  %v18276_v51 = vrot.slane %v18200_v18, %v17497_v36  ;;  %v5730_v37 = vcombine.high %v18166_v48, %v18166_v48 }
 0x386   : > { %v5713_v47 = vcombine.high %v5233_v28, %v5233_v28  ;;  %v5235_v20 = vsel %vm5171_vm12, %v5139_v30, %v5203_v5  ;;  %6505 = vrot.lane.b32.xlu0 %v6465_v58, %s15883_s12  ;;  %v7155_v62 = vrot.slane %v18253_v23, %v17507_v34  ;;  %v15307_v61 = vadd.f32 %v20601_v31, %v20600_v33 }
 0x387   : > { %v7159_v27 = vrot.slane %v18271_v32, %v17507_v34  ;;  %v18289_v18 = vcombine.high %v18001_v7, %v18001_v7  ;;  %v18292_v38 = vrot.slane %v5233_v28, %v17497_v36  ;;  %v6689_v48 = vrot.slane %v17881_v46, %v17529_v43 }
 0x388   : > { %v6693_v30 = vrot.slane %v17891_v50, %v17529_v43  ;;  %v6697_v5 = vrot.slane %v18001_v7, %v17529_v43  ;;  %v18301_v44 = vrot.slane %v5696_v19, %v17497_v36  ;;  %v18304_v8 = vrot.slane %v5679_v22, %v17497_v36 }
 0x389   : > { %v5764_v24 = vcombine.high %v5236_v2, %v5236_v2  ;;  %v18307_v60 = vsel %vm6073_vm5, %v7159_v27, %v7155_v62  ;;  %v5747_v28 = vcombine.high %v5235_v20, %v5235_v20  ;;  %v6701_v46 = vrot.slane %v18289_v18, %v17529_v43 }
 0x38a   : > { %20602 = vst [vmem:[#allocation29_spill] sm:$0xff] %v18307_v60  ;;  %v6838_v55 = vsel %vm6071_vm7, %v6693_v30, %v6689_v48  ;;  %v5559_v50 = vcombine.high %v18008_v54, %v18008_v54  ;;  %v18316_v19 = vcombine.high %v18276_v51, %v18276_v51  ;;  %v18319_v22 = vrot.slane %v5730_v37, %v17497_v36 }
 0x38b   : > { %v18322_v2 = vrot.slane %v5713_v47, %v17497_v36  ;;  %v18325_v58 = vrot.slane %v5235_v20, %v17497_v36  ;;  %v18329_v62 = vcombine.high %v18292_v38, %v18292_v38  ;;  %v6839_v27 = vsel %vm6073_vm5, %v6697_v5, %v6838_v55  ;;  %v15855_v47 = vld [vmem:[%s20434_s2] ss:$0 sm:$0xff] }
 0x38c   : > { %v5946_v33 = vrot.slane %v17995_v45, %v17529_v43  ;;  %v5950_v31 = vrot.slane %v18028_v4, %v17529_v43  ;;  %v18337_v37 = vrot.slane %v5764_v24, %v17497_v36  ;;  %v18342_v20 = vadd.f32 %v15855_v47, %v15306_v12 }
 0x38d   : > { %v6840_v48 = vsel %vm6075_vm9, %v6701_v46, %v6839_v27  ;;  %v5954_v30 = vrot.slane %v18008_v54, %v17529_v43  ;;  %v18348_v5 = vrot.slane %v5747_v28, %v17497_v36  ;;  %v5958_v55 = vrot.slane %v5559_v50, %v17529_v43 }
 0x38e   : > { %6878 = vrot.lane.b32.xlu1 %v6840_v48, %s15881_s22  ;;  %v6098_v24 = vsel %vm6071_vm7, %v5950_v31, %v5946_v33  ;;  %v5593_v39 = vcombine.high %v18063_v56, %v18063_v56  ;;  %v18357_v12 = vcombine.high %v18325_v58, %v18325_v58  ;;  %v18359_v46 = vadd.f32 %v15855_v47, %v15307_v61 }
 0x38f   : > { %v6099_v27 = vsel %vm6073_vm5, %v5954_v30, %v6098_v24  ;;  %v6335_v28 = vrot.slane %v18032_v41, %v17507_v34  ;;  %v6339_v26 = vrot.slane %v18067_v9, %v17507_v34  ;;  %v6343_v33 = vrot.slane %v18063_v56, %v17507_v34 }
 0x390   : > { %v6100_v48 = vsel %vm6075_vm9, %v5958_v55, %v6099_v27  ;;  %v6347_v31 = vrot.slane %v5593_v39, %v17507_v34  ;;  %vm5174_vm13 = vcmp.ge.f32.partialorder %v18342_v20, 0.0  ;;  %v5206_v61 = vmul.f32 0.2, %v18342_v20 }
 0x391   : > { %6138 = vrot.lane.b32.xlu0 %v6100_v48, %s15882_s30  ;;  %v6319_v47 = vrot.slane %v17995_v45, %v17507_v34  ;;  %v6323_v30 = vrot.slane %v18028_v4, %v17507_v34  ;;  %v6472_v55 = vsel %vm6073_vm5, %v6339_v26, %v6335_v28  ;;  %v6327_v24 = vrot.slane %v18008_v54, %v17507_v34 }
 0x392   : > { %v6331_v27 = vrot.slane %v5559_v50, %v17507_v34  ;;  %v5627_v60 = vcombine.high %v18142_v53, %v18142_v53  ;;  %vm5173_vm14 = vcmp.ge.f32.partialorder %v18359_v46, 0.0  ;;  %v6473_v48 = vsel %vm6075_vm9, %v6343_v33, %v6472_v55 }
 0x393   : > { %v6469_v3 = vsel %vm6073_vm5, %v6323_v30, %v6319_v47  ;;  %v5978_v45 = vrot.slane %v18078_v59, %v17529_v43  ;;  %v5982_v4 = vrot.slane %v18146_v57, %v17529_v43  ;;  %v6474_v26 = vsel %vm6446_vm10, %v6347_v31, %v6473_v48 }
 0x394   : > { %v6470_v54 = vsel %vm6075_vm9, %v6327_v24, %v6469_v3  ;;  %v5986_v50 = vrot.slane %v18142_v53, %v17529_v43  ;;  %v5990_v28 = vrot.slane %v5627_v60, %v17529_v43  ;;  %6511 = vrot.lane.b32.xlu1 %v6474_v26, %s15883_s12  ;;  %v5962_v30 = vrot.slane %v18032_v41, %v17529_v43 }
 0x395   : > { %v6471_v33 = vsel %vm6446_vm10, %v6331_v27, %v6470_v54  ;;  %v6104_v47 = vsel %vm6071_vm7, %v5982_v4, %v5978_v45  ;;  %v5966_v55 = vrot.slane %v18067_v9, %v17529_v43  ;;  %v5970_v31 = vrot.slane %v18063_v56, %v17529_v43 }
 0x396   : > { %6509 = vrot.lane.b32.xlu0 %v6471_v33, %s15883_s12  ;;  %v6105_v3 = vsel %vm6073_vm5, %v5986_v50, %v6104_v47  ;;  %v5974_v24 = vrot.slane %v5593_v39, %v17529_v43  ;;  %v6351_v27 = vrot.slane %v18078_v59, %v17507_v34  ;;  %v6355_v41 = vrot.slane %v18146_v57, %v17507_v34 }
 0x397   : > { %v6106_v48 = vsel %vm6075_vm9, %v5990_v28, %v6105_v3  ;;  %v6101_v45 = vsel %vm6071_vm7, %v5966_v55, %v5962_v30  ;;  %v6359_v9 = vrot.slane %v18142_v53, %v17507_v34  ;;  %v6363_v26 = vrot.slane %v5627_v60, %v17507_v34 }
 0x398   : > { %v6102_v4 = vsel %vm6073_vm5, %v5970_v31, %v6101_v45  ;;  %v5661_v56 = vcombine.high %v18193_v52, %v18193_v52  ;;  %v5994_v59 = vrot.slane %v18185_v11, %v17529_v43  ;;  %6142 = vrot.lane.b32.xlu1 %v6106_v48, %s15882_s30  ;;  %v6475_v54 = vsel %vm6073_vm5, %v6355_v41, %v6351_v27 }
 0x399   : > { %v6103_v39 = vsel %vm6075_vm9, %v5974_v24, %v6102_v4  ;;  %v5998_v57 = vrot.slane %v18258_v35, %v17529_v43  ;;  %v6002_v53 = vrot.slane %v18193_v52, %v17529_v43  ;;  %v5205_v60 = vmul.f32 0.2, %v18359_v46 }
 0x39a   : > { %6140 = vrot.lane.b32.xlu0 %v6103_v39, %s15882_s30  ;;  %v6476_v50 = vsel %vm6075_vm9, %v6359_v9, %v6475_v54  ;;  %v6006_v28 = vrot.slane %v5661_v56, %v17529_v43  ;;  %v18434_v33 = vcombine.high %v18041_v1, %v18041_v1  ;;  %v6705_v30 = vrot.slane %v18011_v49, %v17529_v43  ;;  %v20603_v54 = vld [vmem:[#allocation27_spill] sm:$0xff] }
 0x39b   : > { %v6107_v47 = vsel %vm6071_vm7, %v5998_v57, %v5994_v59  ;;  %v6709_v55 = vrot.slane %v18052_v13, %v17529_v43  ;;  %v6713_v3 = vrot.slane %v18041_v1, %v17529_v43  ;;  %v5238_v31 = vsel %vm5174_vm13, %v18342_v20, %v5206_v61  ;;  %v20604_v57 = vld [vmem:[#allocation25_spill] sm:$0xff] }
 0x39c   : > { %v6477_v24 = vsel %vm6446_vm10, %v6363_v26, %v6476_v50  ;;  %v6108_v27 = vsel %vm6073_vm5, %v6002_v53, %v6107_v47  ;;  %v6717_v48 = vrot.slane %v18434_v33, %v17529_v43  ;;  %v6367_v9 = vrot.slane %v18185_v11, %v17507_v34 }
 0x39d   : > { %6513 = vrot.lane.b32.xlu1 %v6477_v24, %s15883_s12  ;;  %v6109_v45 = vsel %vm6075_vm9, %v6006_v28, %v6108_v27  ;;  %v6841_v41 = vsel %vm6071_vm7, %v6709_v55, %v6705_v30  ;;  %v6371_v4 = vrot.slane %v18258_v35, %v17507_v34  ;;  %v5237_v20 = vsel %vm5173_vm14, %v18359_v46, %v5205_v60  ;;  %v20605_v60 = vld [vmem:[#allocation28_spill] sm:$0xff] }
 0x39e   : > { %6144 = vrot.lane.b32.xlu0 %v6109_v45, %s15882_s30  ;;  %v6842_v61 = vsel %vm6073_vm5, %v6713_v3, %v6841_v41  ;;  %v6375_v26 = vrot.slane %v18193_v52, %v17507_v34  ;;  %v6379_v59 = vrot.slane %v5661_v56, %v17507_v34  ;;  %v18469_v35 = vcombine.high %v20603_v54, %v20603_v54 }
 0x39f   : > { %v6843_v39 = vsel %vm6075_vm9, %v6717_v48, %v6842_v61  ;;  %v6478_v11 = vsel %vm6073_vm5, %v6371_v4, %v6367_v9  ;;  %v6609_v46 = vrot.slane %v20604_v57, %v17529_v43  ;;  %v6613_v50 = vrot.slane %v20605_v60, %v17529_v43 }
 0x3a0   : > { %v6479_v53 = vsel %vm6075_vm9, %v6375_v26, %v6478_v11  ;;  %v6617_v52 = vrot.slane %v20603_v54, %v17529_v43  ;;  %v18480_v56 = vcombine.high %v18126_v14, %v18126_v14  ;;  %v5798_v28 = vcombine.high %v5238_v31, %v5238_v31 }
 0x3a1   : > { %6880 = vrot.lane.b32.xlu1 %v6843_v39, %s15881_s22  ;;  %v6480_v47 = vsel %vm6446_vm10, %v6379_v59, %v6479_v53  ;;  %v6621_v30 = vrot.slane %v18469_v35, %v17529_v43  ;;  %v6721_v55 = vrot.slane %v18075_v42, %v17529_v43  ;;  %v6823_v3 = vsel %vm6071_vm7, %v6613_v50, %v6609_v46 }
 0x3a2   : > { %6515 = vrot.lane.b32.xlu0 %v6480_v47, %s15883_s12  ;;  %v6725_v24 = vrot.slane %v18136_v29, %v17529_v43  ;;  %v6729_v27 = vrot.slane %v18126_v14, %v17529_v43  ;;  %v6733_v48 = vrot.slane %v18480_v56, %v17529_v43  ;;  %v18497_v45 = vrot.slane %v5238_v31, %v17497_v36 }
 0x3a3   : > { %v5781_v41 = vcombine.high %v5237_v20, %v5237_v20  ;;  %v6824_v9 = vsel %vm6073_vm5, %v6617_v52, %v6823_v3  ;;  %v18502_v4 = vcombine.high %v18149_v6, %v18149_v6  ;;  %v6737_v59 = vrot.slane %v18112_v17, %v17529_v43 }
 0x3a4   : > { %v6825_v61 = vsel %vm6075_vm9, %v6621_v30, %v6824_v9  ;;  %v6844_v26 = vsel %vm6071_vm7, %v6725_v24, %v6721_v55  ;;  %v6741_v39 = vrot.slane %v18158_v0, %v17529_v43  ;;  %v18511_v31 = vrot.slane %v5798_v28, %v17497_v36  ;;  %v18536_v24 = vpop.permute.xlu1 %6862 }
 0x3a5   : > { %6868 = vrot.lane.b32.xlu1 %v6825_v61, %s15881_s22  ;;  %v6845_v11 = vsel %vm6073_vm5, %v6729_v27, %v6844_v26  ;;  %v6745_v46 = vrot.slane %v18149_v6, %v17529_v43  ;;  %v6749_v53 = vrot.slane %v18502_v4, %v17529_v43  ;;  %v18520_v50 = vrot.slane %v5237_v20, %v17497_v36 }
 0x3a6   : > { %v6846_v52 = vsel %vm6075_vm9, %v6733_v48, %v6845_v11  ;;  %v6847_v47 = vsel %vm6071_vm7, %v6741_v39, %v6737_v59  ;;  %v18526_v28 = vcombine.high %v17957_v21, %v17957_v21  ;;  %v6673_v55 = vrot.slane %v17924_v25, %v17529_v43  ;;  %v18556_v11 = vpop.permute.xlu0 %6122 }
 0x3a7   : > { %6882 = vrot.lane.b32.xlu0 %v6846_v52, %s15881_s22  ;;  %v6848_v30 = vsel %vm6073_vm5, %v6745_v46, %v6847_v47  ;;  %v6677_v3 = vrot.slane %v17961_v10, %v17529_v43  ;;  %v6681_v20 = vrot.slane %v17957_v21, %v17529_v43  ;;  %v18539_v27 = vrot.slane %v5781_v41, %v17497_v36 }
 0x3a8   : > { %20606 = vst [vmem:[#allocation7_spill] sm:$0xff] %v18526_v28  ;;  %v6849_v48 = vsel %vm6075_vm9, %v6749_v53, %v6848_v30  ;;  %v6685_v9 = vrot.slane %v18526_v28, %v17529_v43  ;;  %v18546_v61 = vcombine.high %v18301_v44, %v18301_v44  ;;  %v6753_v59 = vrot.slane %v18130_v63, %v17529_v43 }
 0x3a9   : > { %6884 = vrot.lane.b32.xlu1 %v6849_v48, %s15881_s22  ;;  %v6835_v26 = vsel %vm6071_vm7, %v6677_v3, %v6673_v55  ;;  %v6757_v41 = vrot.slane %v18153_v15, %v17529_v43  ;;  %v6761_v39 = vrot.slane %v18301_v44, %v17529_v43  ;;  %v18560_v46 = vcombine.high %v18520_v50, %v18520_v50 }
 0x3aa   : > { %v6836_v53 = vsel %vm6073_vm5, %v6681_v20, %v6835_v26  ;;  %v6765_v52 = vrot.slane %v18546_v61, %v17529_v43  ;;  %v5695_v63 = vcombine.high %v18304_v8, %v18304_v8  ;;  %v6010_v30 = vrot.slane %v18276_v51, %v17529_v43  ;;  %v18601_v28 = vpop.permute.xlu0 %6493 }
 0x3ab   : > { %v6837_v47 = vsel %vm6075_vm9, %v6685_v9, %v6836_v53  ;;  %v6850_v15 = vsel %vm6071_vm7, %v6757_v41, %v6753_v59  ;;  %v6014_v55 = vrot.slane %v18316_v19, %v17529_v43  ;;  %v6018_v20 = vrot.slane %v18304_v8, %v17529_v43 }
 0x3ac   : > { %6876 = vrot.lane.b32.xlu0 %v6837_v47, %s15881_s22  ;;  %v6851_v3 = vsel %vm6073_vm5, %v6761_v39, %v6850_v15  ;;  %v6022_v48 = vrot.slane %v5695_v63, %v17529_v43  ;;  %v5729_v9 = vcombine.high %v18322_v2, %v18322_v2  ;;  %v6399_v41 = vrot.slane %v18292_v38, %v17507_v34  ;;  %v18586_v47 = vpop.permute.xlu1 %6864 }
 0x3ad   : > { %v6852_v26 = vsel %vm6075_vm9, %v6765_v52, %v6851_v3  ;;  %v6110_v59 = vsel %vm6071_vm7, %v6014_v55, %v6010_v30  ;;  %v6403_v53 = vrot.slane %v18329_v62, %v17507_v34  ;;  %v6407_v15 = vrot.slane %v18322_v2, %v17507_v34 }
 0x3ae   : > { %6886 = vrot.lane.b32.xlu1 %v6852_v26, %s15881_s22  ;;  %v6111_v39 = vsel %vm6073_vm5, %v6018_v20, %v6110_v59  ;;  %v6411_v36 = vrot.slane %v5729_v9, %v17507_v34  ;;  %v6383_v52 = vrot.slane %v18276_v51, %v17507_v34  ;;  %v6387_v3 = vrot.slane %v18316_v19, %v17507_v34 }
 0x3af   : > { %v6112_v30 = vsel %vm6075_vm9, %v6022_v48, %v6111_v39  ;;  %v6484_v55 = vsel %vm6073_vm5, %v6403_v53, %v6399_v41  ;;  %v6391_v26 = vrot.slane %v18304_v8, %v17507_v34  ;;  %v6395_v59 = vrot.slane %v5695_v63, %v17507_v34 }
 0x3b0   : > { %6146 = vrot.lane.b32.xlu0 %v6112_v30, %s15882_s30  ;;  %v6485_v20 = vsel %vm6075_vm9, %v6407_v15, %v6484_v55  ;;  %v5763_v51 = vcombine.high %v18348_v5, %v18348_v5  ;;  %v6042_v48 = vrot.slane %v18325_v58, %v17529_v43  ;;  %v6481_v19 = vsel %vm6073_vm5, %v6387_v3, %v6383_v52 }
 0x3b1   : > { %v6486_v41 = vsel %vm6446_vm10, %v6411_v36, %v6485_v20  ;;  %v6046_v8 = vrot.slane %v18357_v12, %v17529_v43  ;;  %v6050_v53 = vrot.slane %v18348_v5, %v17529_v43  ;;  %v6482_v63 = vsel %vm6075_vm9, %v6391_v26, %v6481_v19  ;;  %v18628_v20 = vpop.permute.xlu1 %6495  ;;  %v18642_v19 = vpop.permute.xlu0 %6124 }
 0x3b2   : > { %6519 = vrot.lane.b32.xlu1 %v6486_v41, %s15883_s12  ;;  %v6054_v39 = vrot.slane %v5763_v51, %v17529_v43  ;;  %v6026_v15 = vrot.slane %v18292_v38, %v17529_v43  ;;  %v6030_v36 = vrot.slane %v18329_v62, %v17529_v43  ;;  %v6483_v52 = vsel %vm6446_vm10, %v6395_v59, %v6482_v63 }
 0x3b3   : > { %v6116_v30 = vsel %vm6071_vm7, %v6046_v8, %v6042_v48  ;;  %v6034_v55 = vrot.slane %v18322_v2, %v17529_v43  ;;  %v6038_v3 = vrot.slane %v5729_v9, %v17529_v43  ;;  %v6415_v62 = vrot.slane %v18325_v58, %v17507_v34 }
 0x3b4   : > { %6517 = vrot.lane.b32.xlu0 %v6483_v52, %s15883_s12  ;;  %v6117_v26 = vsel %vm6073_vm5, %v6050_v53, %v6116_v30  ;;  %v6113_v38 = vsel %vm6071_vm7, %v6030_v36, %v6026_v15  ;;  %v6419_v59 = vrot.slane %v18357_v12, %v17507_v34  ;;  %v6423_v9 = vrot.slane %v18348_v5, %v17507_v34  ;;  %v20607_v52 = vld [vmem:[#allocation12_spill] sm:$0xff] }
 0x3b5   : > { %v6118_v48 = vsel %vm6075_vm9, %v6054_v39, %v6117_v26  ;;  %v6114_v2 = vsel %vm6073_vm5, %v6034_v55, %v6113_v38  ;;  %v6427_v41 = vrot.slane %v5763_v51, %v17507_v34  ;;  %v5797_v12 = vcombine.high %v18539_v27, %v18539_v27  ;;  %v20608_v55 = vld [vmem:[#allocation19_spill] sm:$0xff] }
 0x3b6   : > { %6150 = vrot.lane.b32.xlu1 %v6118_v48, %s15882_s30  ;;  %v6115_v8 = vsel %vm6075_vm9, %v6038_v3, %v6114_v2  ;;  %v6487_v58 = vsel %vm6073_vm5, %v6419_v59, %v6415_v62  ;;  %v6058_v53 = vrot.slane %v18520_v50, %v17529_v43  ;;  %v6062_v5 = vrot.slane %v18560_v46, %v17529_v43 }
 0x3b7   : > { %v6488_v63 = vsel %vm6075_vm9, %v6423_v9, %v6487_v58  ;;  %v6066_v51 = vrot.slane %v18539_v27, %v17529_v43  ;;  %v18658_v39 = vcombine.high %v18319_v22, %v18319_v22  ;;  %v18662_v15 = vcombine.high %v18497_v45, %v18497_v45  ;;  %v18676_v48 = vpop.permute.xlu1 %6497 }
 0x3b8   : > { %6148 = vrot.lane.b32.xlu0 %v6115_v8, %s15882_s30  ;;  %v6070_v36 = vrot.slane %v5797_v12, %v17529_v43  ;;  %v6769_v30 = vrot.slane %v20607_v52, %v17529_v43  ;;  %v6773_v3 = vrot.slane %v20608_v55, %v17529_v43  ;;  %v6489_v26 = vsel %vm6446_vm10, %v6427_v41, %v6488_v63 }
 0x3b9   : > { %v6119_v38 = vsel %vm6071_vm7, %v6062_v5, %v6058_v53  ;;  %v6777_v62 = vrot.slane %v18319_v22, %v17529_v43  ;;  %v6781_v59 = vrot.slane %v18658_v39, %v17529_v43  ;;  %v6431_v8 = vrot.slane %v18520_v50, %v17507_v34 }
 0x3ba   : > { %6521 = vrot.lane.b32.xlu1 %v6489_v26, %s15883_s12  ;;  %v6120_v2 = vsel %vm6073_vm5, %v6066_v51, %v6119_v38  ;;  %v6853_v9 = vsel %vm6071_vm7, %v6773_v3, %v6769_v30  ;;  %v6435_v41 = vrot.slane %v18560_v46, %v17507_v34  ;;  %v6439_v63 = vrot.slane %v18539_v27, %v17507_v34 }
 0x3bb   : > { %v6121_v58 = vsel %vm6075_vm9, %v6070_v36, %v6120_v2  ;;  %v6854_v53 = vsel %vm6073_vm5, %v6777_v62, %v6853_v9  ;;  %v6443_v5 = vrot.slane %v5797_v12, %v17507_v34  ;;  %v18697_v46 = vcombine.high %v18511_v31, %v18511_v31 }
 0x3bc   : > { %6152 = vrot.lane.b32.xlu0 %v6121_v58, %s15882_s30  ;;  %v6855_v51 = vsel %vm6075_vm9, %v6781_v59, %v6854_v53  ;;  %v6490_v50 = vsel %vm6073_vm5, %v6435_v41, %v6431_v8  ;;  %v6801_v36 = vrot.slane %v18497_v45, %v17529_v43  ;;  %v6805_v27 = vrot.slane %v18662_v15, %v17529_v43  ;;  %v18728_v41 = vld [vmem:[%s20435_s3 + $0x40] sm:$0xff] }
 0x3bd   : > { %v6491_v30 = vsel %vm6075_vm9, %v6439_v63, %v6490_v50  ;;  %v6809_v12 = vrot.slane %v18511_v31, %v17529_v43  ;;  %v18708_v55 = vcombine.high %v18337_v37, %v18337_v37  ;;  %v7131_v3 = vrot.slane %v18301_v44, %v17507_v34  ;;  %v18744_v63 = vld [vmem:[%s20435_s3 + $0x50] sm:$0xff] }
 0x3be   : > { %6888 = vrot.lane.b32.xlu1 %v6855_v51, %s15881_s22  ;;  %v6492_v26 = vsel %vm6446_vm10, %v6443_v5, %v6491_v30  ;;  %v6813_v38 = vrot.slane %v18697_v46, %v17529_v43  ;;  %v6785_v62 = vrot.slane %v18253_v23, %v17529_v43  ;;  %v6859_v59 = vsel %vm6071_vm7, %v6805_v27, %v6801_v36  ;;  %v18733_v23 = vld [vmem:[%s20435_s3 + $0x48] sm:$0xff]  ;;  %v18749_v5 = vld [vmem:[%s20435_s3 + $0x58] sm:$0xff]  ;;  %v12162_v30 = vld [vmem:[%s20435_s3 + $0x60] sm:$0xff] }
 0x3bf   : > { %v6789_v2 = vrot.slane %v18271_v32, %v17529_v43  ;;  %v6793_v9 = vrot.slane %v18337_v37, %v17529_v43  ;;  %v6797_v8 = vrot.slane %v18708_v55, %v17529_v43  ;;  %v7071_v32 = vrot.slane %v18289_v18, %v17507_v34  ;;  %v12163_v27 = vld [vmem:[%s20435_s3 + $0x68] sm:$0xff] }
 0x3c0   : > { %6523 = vrot.lane.b32.xlu0 %v6492_v26, %s15883_s12  ;;  %v6860_v53 = vsel %vm6073_vm5, %v6809_v12, %v6859_v59  ;;  %v15884_v36 = vmov 0.0   ;;  %vm6171_vm1 = vcmask 519552   ;;  %vm6541_vm2 = vcmask 389377   ;;  %v20609_v59 = vld [vmem:[#allocation13_spill] sm:$0xff] }
 0x3c1   : > { %v18690_v52 = vpop.permute.xlu0 %6866  ;;  %v6861_v51 = vsel %vm6075_vm9, %v6813_v38, %v6860_v53  ;;  %v6856_v50 = vsel %vm6071_vm7, %v6789_v2, %v6785_v62  ;;  %390 = vst.msk [vmem:[#allocation2 + $0x28] sm:$0x1f] %vm384_vm15, %v15884_v36  ;;  %385 = vst.msk [vmem:[#allocation2] sm:$0x1f] %vm384_vm15, %v15884_v36  ;;  %v14820_v38 = vpack.c.bf16 %v18733_v23, %v18728_v41  ;;  %vm6911_vm3 = vcmask 257152   ;;  %v20610_v2 = vld [vmem:[#allocation14_spill] sm:$0xff] }
 0x3c2   : > { %386 = vst.msk [vmem:[#allocation2 + $0x8] sm:$0x1f] %vm384_vm15, %v15884_v36  ;;  %387 = vst.msk [vmem:[#allocation2 + $0x10] sm:$0x1f] %vm384_vm15, %v15884_v36  ;;  %6892 = vrot.lane.b32.xlu1 %v6861_v51, %s15881_s22  ;;  %v6857_v26 = vsel %vm6073_vm5, %v6793_v9, %v6856_v50  ;;  %vm7248_vm4 = vcmask 126977   ;;  %v7119_v62 = vrot.slane %v18502_v4, %v17507_v34  ;;  %v20611_v9 = vrot.slane %v20610_v2, %v17507_v34  ;;  %v20614_v23 = vld [vmem:[#allocation15_spill] sm:$0xff] }
 0x3c3   : > { %388 = vst.msk [vmem:[#allocation2 + $0x18] sm:$0x1f] %vm384_vm15, %v15884_v36  ;;  %389 = vst.msk [vmem:[#allocation2 + $0x20] sm:$0x1f] %vm384_vm15, %v15884_v36  ;;  %14821 = vmatprep.subr.bf16.mxu1 %v14820_v38  ;;  %v20616_v53 = vld [vmem:[#allocation22_spill] sm:$0xff]  ;;  %v7151_v18 = vrot.slane %v18658_v39, %v17507_v34  ;;  %v7171_v39 = vrot.slane %v18497_v45, %v17507_v34  ;;  %vm9877_vm14 = vcmask 517376  }
 0x3c4   : > { %v18735_v58 = vpop.permute.xlu1 %6128  ;;  %391 = vst.msk [vmem:[#allocation2 + $0x30] sm:$0x1f] %vm384_vm15, %v15884_v36  ;;  %392 = vst.msk [vmem:[#allocation2 + $0x38] sm:$0x1f] %vm384_vm15, %v15884_v36  ;;  %v7188_v4 = vsel %vm6075_vm9, %v20611_v9, %v20609_v59  ;;  %14823 = vmatpush3.bf16.msra.mxu1 %v14820_v38  ;;  %v20629_v9 = vld [vmem:[#allocation21_spill] sm:$0xff]  ;;  %v20651_v45 = vld [vmem:[#allocation6_spill] sm:$0xff] }
 0x3c5   : > { %393 = vst.msk [vmem:[#allocation2 + $0x40] sm:$0x1f] %vm384_vm15, %v15884_v36  ;;  %394 = vst.msk [vmem:[#allocation2 + $0x48] sm:$0x1f] %vm384_vm15, %v15884_v36  ;;  %v6127_v12 = vpop.permute.xlu0 %6126 }
 0x3c6   : > { %395 = vst.msk [vmem:[#allocation2 + $0x50] sm:$0x1f] %vm384_vm15, %v15884_v36  ;;  %396 = vst.msk [vmem:[#allocation2 + $0x58] sm:$0x1f] %vm384_vm15, %v15884_v36 }
 0x3c7   : > { %397 = vst.msk [vmem:[#allocation2 + $0x60] sm:$0x1f] %vm384_vm15, %v15884_v36  ;;  %398 = vst.msk [vmem:[#allocation2 + $0x68] sm:$0x1f] %vm384_vm15, %v15884_v36 }
 0x3c8   : > { %399 = vst.msk [vmem:[#allocation2 + $0x70] sm:$0x1f] %vm384_vm15, %v15884_v36  ;;  %400 = vst.msk [vmem:[#allocation2 + $0x78] sm:$0x1f] %vm384_vm15, %v15884_v36 }
 0x3c9   : > { %401 = vst.msk [vmem:[#allocation2 + $0x80] sm:$0x1f] %vm384_vm15, %v15884_v36  ;;  %402 = vst.msk [vmem:[#allocation2 + $0x88] sm:$0x1f] %vm384_vm15, %v15884_v36 }
 0x3ca   : > { %403 = vst.msk [vmem:[#allocation2 + $0x90] sm:$0x1f] %vm384_vm15, %v15884_v36  ;;  %404 = vst.msk [vmem:[#allocation2 + $0x98] sm:$0x1f] %vm384_vm15, %v15884_v36 }
 0x3cb   : > { %405 = vst.msk [vmem:[#allocation2 + $0xa0] sm:$0x1f] %vm384_vm15, %v15884_v36  ;;  %406 = vst.msk [vmem:[#allocation2 + $0xa8] sm:$0x1f] %vm384_vm15, %v15884_v36 }
 0x3cc   : > { %407 = vst.msk [vmem:[#allocation2 + $0xb0] sm:$0x1f] %vm384_vm15, %v15884_v36  ;;  %408 = vst.msk [vmem:[#allocation2 + $0xb8] sm:$0x1f] %vm384_vm15, %v15884_v36 }
 0x3cd   : > { %409 = vst.msk [vmem:[#allocation2 + $0xc0] sm:$0x1f] %vm384_vm15, %v15884_v36  ;;  %410 = vst.msk [vmem:[#allocation2 + $0xc8] sm:$0x1f] %vm384_vm15, %v15884_v36 }
 0x3ce   : > { %411 = vst.msk [vmem:[#allocation2 + $0xd0] sm:$0x1f] %vm384_vm15, %v15884_v36  ;;  %412 = vst.msk [vmem:[#allocation2 + $0xd8] sm:$0x1f] %vm384_vm15, %v15884_v36 }
 0x3cf   : > { %413 = vst.msk [vmem:[#allocation2 + $0xe0] sm:$0x1f] %vm384_vm15, %v15884_v36  ;;  %414 = vst.msk [vmem:[#allocation2 + $0xe8] sm:$0x1f] %vm384_vm15, %v15884_v36  ;;  %vm9966_vm15 = vcmask 256001  }
 0x3d0   : > { %415 = vst [vmem:[#allocation3] sm:$0x7] %v15884_v36  ;;  %416 = vst [vmem:[#allocation3 + $0x4] sm:$0x7] %v15884_v36 }
 0x3d1   : > { %417 = vst [vmem:[#allocation3 + $0x8] sm:$0x7] %v15884_v36  ;;  %418 = vst [vmem:[#allocation3 + $0xc] sm:$0x7] %v15884_v36 }
 0x3d2   : > { %419 = vst [vmem:[#allocation3 + $0x10] sm:$0x7] %v15884_v36  ;;  %420 = vst [vmem:[#allocation3 + $0x14] sm:$0x7] %v15884_v36 }
 0x3d3   : > { %421 = vst [vmem:[#allocation3 + $0x18] sm:$0x7] %v15884_v36  ;;  %422 = vst [vmem:[#allocation3 + $0x1c] sm:$0x7] %v15884_v36 }
 0x3d4   : > { %423 = vst [vmem:[#allocation3 + $0x20] sm:$0x7] %v15884_v36  ;;  %424 = vst [vmem:[#allocation3 + $0x24] sm:$0x7] %v15884_v36 }
 0x3d5   : > { %425 = vst [vmem:[#allocation3 + $0x28] sm:$0x7] %v15884_v36  ;;  %426 = vst [vmem:[#allocation3 + $0x2c] sm:$0x7] %v15884_v36 }
 0x3d6   : > { %427 = vst [vmem:[#allocation4] sm:$0xf] %v15884_v36  ;;  %428 = vst [vmem:[#allocation4 + $0x4] sm:$0xf] %v15884_v36 }
 0x3d7   : > { %429 = vst [vmem:[#allocation4 + $0x8] sm:$0xf] %v15884_v36  ;;  %430 = vst [vmem:[#allocation4 + $0xc] sm:$0xf] %v15884_v36 }
 0x3d8   : > { %431 = vst [vmem:[#allocation4 + $0x10] sm:$0xf] %v15884_v36  ;;  %432 = vst [vmem:[#allocation4 + $0x14] sm:$0xf] %v15884_v36 }
 0x3d9   : > { %433 = vst [vmem:[#allocation4 + $0x18] sm:$0xf] %v15884_v36  ;;  %434 = vst [vmem:[#allocation4 + $0x1c] sm:$0xf] %v15884_v36 }
 0x3da   : > { %6172 = vst.msk [vmem:[#allocation2 + $0x28] sm:$0xf] %vm6171_vm1, %v18556_v11  ;;  %6173 = vst.msk [vmem:[#allocation2 + $0x30] sm:$0xf] %vm6171_vm1, %v18642_v19  ;;  %v6858_v11 = vsel %vm6075_vm9, %v6797_v8, %v6857_v26  ;;  %v14824_v19 = vpack.c.bf16 %v18749_v5, %v18744_v63  ;;  %v20618_v5 = vld [vmem:[#allocation23_spill] sm:$0xff] }
 0x3db   : > { %6175 = vst.msk [vmem:[#allocation2 + $0x40] sm:$0xf] %vm6171_vm1, %v18735_v58  ;;  %6174 = vst.msk [vmem:[#allocation2 + $0x38] sm:$0xf] %vm6171_vm1, %v6127_v12  ;;  %6890 = vrot.lane.b32.xlu0 %v6858_v11, %s15881_s22  ;;  %v20615_v58 = vrot.slane %v20614_v23, %v17507_v34  ;;  %v20625_v26 = vld [vmem:[#allocation35_spill] sm:$0xff]  ;;  %v20627_v11 = vld [vmem:[#allocation37_spill] sm:$0xff] }
 0x3dc   : > { %6542 = vst.msk [vmem:[#allocation2 + $0x28] sm:$0x1e] %vm6541_vm2, %v18601_v28  ;;  %6543 = vst.msk [vmem:[#allocation2 + $0x30] sm:$0x1e] %vm6541_vm2, %v18628_v20  ;;  %v14828_v28 = vpack.c.bf16 %v12163_v27, %v12162_v30  ;;  %v20612_v20 = vld [vmem:[#allocation24_spill] sm:$0xff]  ;;  %v20623_v30 = vld [vmem:[#allocation18_spill] sm:$0xff]  ;;  %v20626_v38 = vrot.slane %v20625_v26, %v17507_v34  ;;  %v20628_v59 = vrot.slane %v20627_v11, %v17507_v34  ;;  %14825 = vmatprep.subr.bf16.mxu1 %v14824_v19 }
 0x3dd   : > { %6544 = vst.msk [vmem:[#allocation2 + $0x38] sm:$0x1e] %vm6541_vm2, %v18676_v48  ;;  %v20613_v8 = vrot.slane %v20612_v20, %v17507_v34  ;;  %v20617_v48 = vrot.slane %v20616_v53, %v17507_v34  ;;  %v20624_v27 = vrot.slane %v20623_v30, %v17507_v34  ;;  %v20631_v20 = vld [vmem:[#allocation32_spill] sm:$0xff]  ;;  %v20633_v23 = vld [vmem:[#allocation30_spill] sm:$0xff]  ;;  %14827 = vmatpush3.bf16.msra.mxu1 %v14824_v19 }
 0x3de   : > { %6912 = vst.msk [vmem:[#allocation2 + $0x30] sm:$0xf] %vm6911_vm3, %v18536_v24  ;;  %6913 = vst.msk [vmem:[#allocation2 + $0x38] sm:$0xf] %vm6911_vm3, %v18586_v47  ;;  %v20619_v24 = vld [vmem:[#allocation16_spill] sm:$0xff]  ;;  %v20621_v47 = vld [vmem:[#allocation26_spill] sm:$0xff]  ;;  %v7202_v2 = vsel %vm6073_vm5, %v20628_v59, %v20626_v38  ;;  %v6131_v38 = vpop.permute.xlu1 %6130  ;;  %14829 = vmatprep.subr.bf16.mxu1 %v14828_v28  ;;  %v7183_v19 = vrot.slane %v18697_v46, %v17507_v34 }
 0x3df   : > { %v7189_v41 = vsel %vm6446_vm10, %v20613_v8, %v7188_v4  ;;  %v7190_v63 = vsel %vm6073_vm5, %v20617_v48, %v20615_v58  ;;  %7249 = vst.msk [vmem:[#allocation2 + $0x30] sm:$0x1e] %vm7248_vm4, %v20618_v5  ;;  %v20620_v51 = vrot.slane %v20619_v24, %v17507_v34  ;;  %v20622_v36 = vrot.slane %v20621_v47, %v17507_v34  ;;  %v20635_v48 = vld [vmem:[#allocation17_spill] sm:$0xff]  ;;  %v20637_v24 = vld [vmem:[#allocation38_spill] sm:$0xff]  ;;  %v12164_v26 = vld [vmem:[%s20435_s3 + $0x70] sm:$0xff] }
 0x3e0   : > { %7250 = vst.msk [vmem:[#allocation2 + $0x38] sm:$0x1e] %vm7248_vm4, %v7189_v41  ;;  %v20630_v4 = vrot.slane %v20629_v9, %v17507_v34  ;;  %v20632_v8 = vrot.slane %v20631_v20, %v17507_v34  ;;  %v20634_v58 = vrot.slane %v20633_v23, %v17507_v34 }
 0x3e1   : > { %v7191_v50 = vsel %vm6075_vm9, %v20620_v51, %v7190_v63  ;;  %v7196_v12 = vsel %vm6073_vm5, %v20624_v27, %v20622_v36  ;;  %v20636_v63 = vrot.slane %v20635_v48, %v17507_v34  ;;  %v20638_v51 = vrot.slane %v20637_v24, %v17507_v34  ;;  %v20639_v36 = vld [vmem:[#allocation33_spill] sm:$0xff]  ;;  %6176 = vst.msk [vmem:[#allocation2 + $0x50] sm:$0xf] %vm6171_vm1, %v6131_v38  ;;  %v15739_v48 = vld [vmem:[#allocation2 + $0x1] ss:$8 sps:$4 sm:$0xff]  }
 0x3e2   : > { %v7199_v41 = vsel %vm6073_vm5, %v20632_v8, %v20630_v4  ;;  %v7192_v53 = vsel %vm6446_vm10, %v20634_v58, %v7191_v50  ;;  %v20640_v30 = vrot.slane %v20639_v36, %v17507_v34  ;;  %v12165_v50 = vld [vmem:[%s20435_s3 + $0x78] sm:$0xff]  ;;  %v20644_v4 = vrot.slane %v18048_v16, %v17507_v34  ;;  %v20645_v8 = vld [vmem:[#allocation39_spill] sm:$0xff]  ;;  %14168 = vmatprep.mubr.msk.f32.mxu1 %vm516_vm0, %v15739_v48 }
 0x3e3   : > { %v7197_v5 = vsel %vm6075_vm9, %v20636_v63, %v7196_v12  ;;  %v7203_v47 = vsel %vm6075_vm9, %v20638_v51, %v7202_v2  ;;  %v20641_v12 = vld [vmem:[#allocation40_spill] sm:$0xff]  ;;  %v20643_v2 = vrot.slane %v18092_v40, %v17507_v34  ;;  %v7147_v58 = vrot.slane %v18319_v22, %v17507_v34  ;;  %v6500_v51 = vpop.permute.xlu0 %6499  ;;  %14831 = vmatpush3.bf16.msra.mxu1 %v14828_v28 }
 0x3e4   : > { %v7200_v27 = vsel %vm6075_vm9, %v20640_v30, %v7199_v41  ;;  %v20642_v11 = vrot.slane %v20641_v12, %v17507_v34  ;;  %v20646_v41 = vrot.slane %v18001_v7, %v17507_v34  ;;  %v7163_v40 = vrot.slane %v18337_v37, %v17507_v34  ;;  %6545 = vst.msk [vmem:[#allocation2 + $0x40] sm:$0x1e] %vm6541_vm2, %v6500_v51 }
 0x3e5   : > { %v18898_v9 = vsel %vm6446_vm10, %v20643_v2, %v7203_v47  ;;  %v18904_v20 = vsel %vm6446_vm10, %v20644_v4, %v7200_v27  ;;  %v20647_v7 = vrot.slane %v18112_v17, %v17507_v34  ;;  %v20648_v63 = vrot.slane %v18158_v0, %v17507_v34  ;;  %v20650_v47 = vld [vmem:[#allocation20_spill] sm:$0xff]  ;;  %6914 = vst.msk [vmem:[#allocation2 + $0x40] sm:$0xf] %vm6911_vm3, %v18690_v52  ;;  %v20652_v27 = vld [vmem:[#allocation29_spill] sm:$0xff]  ;;  %v7285_v4 = vld [vmem:[%s20435_s3 + $0x20] sm:$0xff] }
 0x3e6   : > { %v18892_v59 = vsel %vm6446_vm10, %v20642_v11, %v7197_v5  ;;  %v7209_v23 = vsel %vm6075_vm9, %v20646_v41, %v20645_v8  ;;  %v7175_v37 = vrot.slane %v18662_v15, %v17507_v34  ;;  %v7135_v5 = vrot.slane %v18546_v61, %v17507_v34  ;;  %7251 = vst.msk [vmem:[#allocation2 + $0x40] sm:$0x1e] %vm7248_vm4, %v7192_v53  ;;  %v15740_v53 = vld [vmem:[#allocation2 + $0x11] ss:$8 sps:$4 sm:$0xff]   ;;  %v6502_v11 = vpop.permute.xlu1 %6501  ;;  %v7286_v8 = vld [vmem:[%s20435_s3 + $0x28] sm:$0xff] }
 0x3e7   : > { %v18920_v16 = vsel %vm6446_vm10, %v7071_v32, %v7209_v23  ;;  %v7217_v22 = vsel %vm6073_vm5, %v20648_v63, %v20647_v7  ;;  %v7281_v32 = vld [vmem:[%s20435_s3] sm:$0xff]  ;;  %v20649_v17 = vrot.slane %v18149_v6, %v17507_v34  ;;  %v7179_v24 = vrot.slane %v18511_v31, %v17507_v34  ;;  %v7282_v31 = vld [vmem:[%s20435_s3 + $0x8] sm:$0xff]  ;;  %6546 = vst.msk [vmem:[#allocation2 + $0x50] sm:$0x1e] %vm6541_vm2, %v6502_v11  ;;  %v6871_v48 = vpop.permute.xlu0 %6870 }
 0x3e8   : > { %v14832_v15 = vpack.c.bf16 %v12165_v50, %v12164_v26  ;;  %v7167_v6 = vrot.slane %v18708_v55, %v17507_v34  ;;  %v7224_v36 = vsel %vm6075_vm9, %v7147_v58, %v20651_v45  ;;  %v7229_v30 = vsel %vm6073_vm5, %v7175_v37, %v7171_v39  ;;  %v7284_v26 = vld [vmem:[%s20435_s3 + $0x18] sm:$0xff]  ;;  %v15741_v12 = vld [vmem:[#allocation2 + $0x29] ss:$8 sps:$4 sm:$0xff]   ;;  %v12182_v63 = vld [vmem:[%s20435_s3 + $0x80] sm:$0xff] }
 0x3e9   : > { %v7218_v0 = vsel %vm6075_vm9, %v20649_v17, %v7217_v22  ;;  %v18971_v55 = vsel %vm6446_vm10, %v7151_v18, %v7224_v36  ;;  %v14836_v44 = vpack.c.bf16 %v7282_v31, %v7281_v32  ;;  %v7230_v28 = vsel %vm6075_vm9, %v7179_v24, %v7229_v30  ;;  %v7287_v58 = vld [vmem:[%s20435_s3 + $0x30] sm:$0xff]  ;;  %v12183_v37 = vld [vmem:[%s20435_s3 + $0x88] sm:$0xff] }
 0x3ea   : > { %v18946_v61 = vsel %vm6446_vm10, %v7119_v62, %v7218_v0  ;;  %v7221_v62 = vsel %vm6075_vm9, %v7131_v3, %v20650_v47  ;;  %14833 = vmatprep.subr.bf16.mxu1 %v14832_v15  ;;  %v7283_v3 = vld [vmem:[%s20435_s3 + $0x10] sm:$0xff]  ;;  %v7227_v52 = vsel %vm6075_vm9, %v7163_v40, %v20652_v27  ;;  %v18985_v50 = vsel %vm6446_vm10, %v7183_v19, %v7230_v28  ;;  %v7288_v40 = vld [vmem:[%s20435_s3 + $0x38] sm:$0xff]  ;;  %v6133_v22 = vpop.permute.xlu1 %6132 }
 0x3eb   : > { %v18968_v46 = vsel %vm6446_vm10, %v7135_v5, %v7221_v62  ;;  %v18988_v38 = vsel %vm6446_vm10, %v7167_v6, %v7227_v52  ;;  %14835 = vmatpush3.bf16.msra.mxu1 %v14832_v15  ;;  %v14840_v2 = vpack.c.bf16 %v7284_v26, %v7283_v3  ;;  %v14844_v23 = vpack.c.bf16 %v7286_v8, %v7285_v4  ;;  %v6873_v18 = vpop.permute.xlu0 %6872 }
 0x3ec   : > { %14837 = vmatprep.subr.bf16.mxu1 %v14836_v44  ;;  %v14848_v7 = vpack.c.bf16 %v7288_v40, %v7287_v58  ;;  %6177 = vst.msk [vmem:[#allocation2 + $0x58] sm:$0xf] %vm6171_vm1, %v6133_v22  ;;  %v19013_v5 = vpack.c.bf16 %v12183_v37, %v12182_v63  ;;  %v7075_v45 = vrot.slane %v18011_v49, %v17507_v34  ;;  %v15747_v22 = vld [vmem:[#allocation2] ss:$8 sps:$4 sm:$0xff]   ;;  %v12184_v37 = vld [vmem:[%s20435_s3 + $0x90] sm:$0xff] }
 0x3ed   : > { %v15742_v41 = vld [vmem:[#allocation2 + $0x39] ss:$8 sps:$4 sm:$0xff]   ;;  %v7083_v36 = vrot.slane %v18041_v1, %v17507_v34  ;;  %v6983_v30 = vrot.slane %v20605_v60, %v17507_v34  ;;  %v6979_v49 = vrot.slane %v20604_v57, %v17507_v34  ;;  %v7095_v3 = vrot.slane %v18136_v29, %v17507_v34 }
 0x3ee   : > { %14169 = vmatmul.mubr.msk.f32.vlgmr.msra.gmra.mrb[32].mxu1 %vm516_vm0, %v15740_v53  ;;  %v6875_v17 = vpop.permute.xlu1 %6874  ;;  %v7087_v1 = vrot.slane %v18434_v33, %v17507_v34  ;;  %v6987_v28 = vrot.slane %v20603_v54, %v17507_v34  ;;  %v7091_v57 = vrot.slane %v18075_v42, %v17507_v34  ;;  %v7099_v33 = vrot.slane %v18126_v14, %v17507_v34 }
 0x3ef   : > { %14171 = vmatprep.mubr.msk.f32.mxu1 %vm516_vm0, %v15741_v12  ;;  %14839 = vmatpush3.bf16.msra.mxu1 %v14836_v44  ;;  %v6504_v32 = vpop.permute.xlu0 %6503  ;;  %v7193_v29 = vsel %vm6073_vm5, %v6983_v30, %v6979_v49  ;;  %v6991_v54 = vrot.slane %v18469_v35, %v17507_v34  ;;  %v7047_v12 = vrot.slane %v17961_v10, %v17507_v34  ;;  %v12199_v49 = vld [vmem:[%s20435_s3 + $0xc8] sm:$0xff] }
 0x3f0   : > { %14841 = vmatprep.subr.bf16.mxu1 %v14840_v2  ;;  %6547 = vst.msk [vmem:[#allocation2 + $0x58] sm:$0x1e] %vm6541_vm2, %v6504_v32  ;;  %v7194_v42 = vsel %vm6075_vm9, %v6987_v28, %v7193_v29  ;;  %v7103_v14 = vrot.slane %v18480_v56, %v17507_v34  ;;  %v7043_v11 = vrot.slane %v17924_v25, %v17507_v34 }
 0x3f1   : > { %6916 = vst.msk [vmem:[#allocation2 + $0x58] sm:$0xf] %vm6911_vm3, %v6871_v48  ;;  %v7051_v8 = vrot.slane %v17957_v21, %v17507_v34  ;;  %v7195_v10 = vsel %vm6446_vm10, %v6991_v54, %v7194_v42  ;;  %v15757_v54 = vld [vmem:[#allocation2 + $0x30] ss:$8 sps:$4 sm:$0xff]  }
 0x3f2   : > { %14172 = vmatmul.mubr.msk.f32.gmra.mrb[34].mxu1 %vm516_vm0, %v15742_v41  ;;  %7253 = vst.msk [vmem:[#allocation2 + $0x58] sm:$0x1e] %vm7248_vm4, %v18892_v59  ;;  %v6137_v0 = vpop.permute.xlu1 %6136  ;;  %v7205_v56 = vsel %vm6073_vm5, %v7047_v12, %v7043_v11  ;;  %v12205_v42 = vld [vmem:[%s20435_s3 + $0xf8] sm:$0xff]  ;;  %v12215_v11 = vld [vmem:[%s20435_s3 + $0x108] sm:$0xff] }
 0x3f3   : > { %14843 = vmatpush3.bf16.msra.mxu1 %v14840_v2  ;;  %6179 = vst.msk [vmem:[#allocation2 + $0x68] sm:$0xf] %vm6171_vm1, %v6137_v0  ;;  %v6135_v15 = vpop.permute.xlu0 %6134  ;;  %v7206_v40 = vsel %vm6075_vm9, %v7051_v8, %v7205_v56  ;;  %v15748_v0 = vld [vmem:[#allocation2 + $0x10] ss:$8 sps:$4 sm:$0xff]  }
 0x3f4   : > { %14845 = vmatprep.subr.bf16.mxu1 %v14844_v23  ;;  %6178 = vst.msk [vmem:[#allocation2 + $0x60] sm:$0xf] %vm6171_vm1, %v6135_v15  ;;  %v15763_v8 = vld [vmem:[#allocation2 + $0x9] ss:$8 sps:$4 sm:$0xff]  }
 0x3f5   : > { %v12216_v56 = vld [vmem:[%s20435_s3 + $0x110] sm:$0xff] }
 0x3f6   : > { %v6508_v39 = vpop.permute.xlu1 %6507 }
 0x3f7   : > { %14847 = vmatpush3.bf16.msra.mxu1 %v14844_v23  ;;  %6549 = vst.msk [vmem:[#allocation2 + $0x68] sm:$0x1e] %vm6541_vm2, %v6508_v39  ;;  %v20653_v23 = vld [vmem:[#allocation7_spill] sm:$0xff] }
 0x3f8   : > { %14849 = vmatprep.subr.bf16.mxu1 %v14848_v7  ;;  %6918 = vst.msk [vmem:[#allocation2 + $0x68] sm:$0xf] %vm6911_vm3, %v6875_v17  ;;  %v6506_v19 = vpop.permute.xlu0 %6505  ;;  %v7055_v58 = vrot.slane %v20653_v23, %v17507_v34  ;;  %v15764_v23 = vld [vmem:[#allocation2 + $0x19] ss:$8 sps:$4 sm:$0xff]  }
 0x3f9   : > { %v15743_v24 = vld [vmem:[#allocation2 + $0x51] ss:$8 sps:$4 sm:$0xff]   ;;  %7255 = vst.msk [vmem:[#allocation2 + $0x68] sm:$0x1e] %vm7248_vm4, %v18898_v9  ;;  %v7079_v9 = vrot.slane %v18052_v13, %v17507_v34 }
 0x3fa   : > { %14174 = vmatprep.mubr.msk.f32.mxu1 %vm516_vm0, %v15743_v24  ;;  %6548 = vst.msk [vmem:[#allocation2 + $0x60] sm:$0x1e] %vm6541_vm2, %v6506_v19  ;;  %v12186_v24 = vld [vmem:[%s20435_s3 + $0xa0] sm:$0xff]  ;;  %v12187_v19 = vld [vmem:[%s20435_s3 + $0xa8] sm:$0xff] }
 0x3fb   : > { %14851 = vmatpush3.bf16.msra.mxu1 %v14848_v7  ;;  %6917 = vst.msk [vmem:[#allocation2 + $0x60] sm:$0xf] %vm6911_vm3, %v6873_v18  ;;  %v7211_v44 = vsel %vm6073_vm5, %v7079_v9, %v7075_v45  ;;  %v7207_v7 = vsel %vm6446_vm10, %v7055_v58, %v7206_v40  ;;  %v14860_v9 = vpack.c.bf16 %v12187_v19, %v12186_v24  ;;  %v15751_v45 = vld [vmem:[#allocation2 + $0x50] ss:$8 sps:$4 sm:$0xff]   ;;  %v12218_v40 = vld [vmem:[%s20435_s3 + $0x120] sm:$0xff]  ;;  %v12231_v24 = vld [vmem:[%s20435_s3 + $0x148] sm:$0xff] }
 0x3fc   : > { %14853 = vmatprep.subr.bf16.mxu1 %v19013_v5  ;;  %7254 = vst.msk [vmem:[#allocation2 + $0x60] sm:$0x1e] %vm7248_vm4, %v18904_v20  ;;  %v7212_v27 = vsel %vm6075_vm9, %v7083_v36, %v7211_v44  ;;  %v15771_v19 = vld [vmem:[#allocation2 + $0x28] ss:$8 sps:$4 sm:$0xff]  }
 0x3fd   : > { %v7213_v26 = vsel %vm6446_vm10, %v7087_v1, %v7212_v27  ;;  %v12200_v27 = vld [vmem:[%s20435_s3 + $0xd0] sm:$0xff] }
 0x400   : > { %v6879_v59 = vpop.permute.xlu1 %6878 }
 0x403   : > { %v15744_v6 = vld [vmem:[#allocation2 + $0x61] ss:$8 sps:$4 sm:$0xff]   ;;  %v6139_v51 = vpop.permute.xlu0 %6138 }
 0x404   : > { %6180 = vst.msk [vmem:[#allocation2 + $0x78] sm:$0xf] %vm6171_vm1, %v6139_v51  ;;  %14175 = vmatmul.mubr.msk.f32.gmra.mrb[36].mxu1 %vm516_vm0, %v15744_v6  ;;  %v12188_v51 = vld [vmem:[%s20435_s3 + $0xb0] sm:$0xff] }
 0x406   : > { %v6512_v31 = vpop.permute.xlu1 %6511 }
 0x408   : > { %v6510_v47 = vpop.permute.xlu0 %6509 }
 0x409   : > { %6550 = vst.msk [vmem:[#allocation2 + $0x78] sm:$0x1e] %vm6541_vm2, %v6510_v47  ;;  %v15750_v47 = vld [vmem:[#allocation2 + $0x38] ss:$8 sps:$4 sm:$0xff]  }
 0x40a   : > { %v6143_v62 = vpop.permute.xlu1 %6142 }
 0x40b   : > { %6182 = vst.msk [vmem:[#allocation2 + $0x88] sm:$0xf] %vm6171_vm1, %v6143_v62  ;;  %v12189_v62 = vld [vmem:[%s20435_s3 + $0xb8] sm:$0xff] }
 0x40c   : > { %v6141_v20 = vpop.permute.xlu0 %6140  ;;  %v14864_v30 = vpack.c.bf16 %v12189_v62, %v12188_v51  ;;  %v15772_v51 = vld [vmem:[#allocation2 + $0x38] ss:$8 sps:$4 sm:$0xff]   ;;  %v12235_v62 = vld [vmem:[%s20435_s3 + $0x168] sm:$0xff] }
 0x40d   : > { %6181 = vst.msk [vmem:[#allocation2 + $0x80] sm:$0xf] %vm6171_vm1, %v6141_v20 }
 0x40e   : > { %6551 = vst.msk [vmem:[#allocation2 + $0x80] sm:$0x1e] %vm6541_vm2, %v6512_v31 }
 0x40f   : > { %6920 = vst.msk [vmem:[#allocation2 + $0x80] sm:$0xf] %vm6911_vm3, %v6879_v59  ;;  %v6514_v13 = vpop.permute.xlu1 %6513  ;;  %v15749_v59 = vld [vmem:[#allocation2 + $0x28] ss:$8 sps:$4 sm:$0xff]  }
 0x410   : > { %7257 = vst.msk [vmem:[#allocation2 + $0x80] sm:$0x1e] %vm7248_vm4, %v18920_v16  ;;  %v6145_v60 = vpop.permute.xlu0 %6144  ;;  %v7214_v16 = vsel %vm6073_vm5, %v7095_v3, %v7091_v57  ;;  %v12201_v57 = vld [vmem:[%s20435_s3 + $0xd8] sm:$0xff] }
 0x411   : > { %6552 = vst.msk [vmem:[#allocation2 + $0x88] sm:$0x1e] %vm6541_vm2, %v6514_v13  ;;  %v7215_v35 = vsel %vm6075_vm9, %v7099_v33, %v7214_v16  ;;  %v12198_v13 = vld [vmem:[%s20435_s3 + $0xc0] sm:$0xff]  ;;  %v14872_v16 = vpack.c.bf16 %v12201_v57, %v12200_v27  ;;  %v12248_v27 = vld [vmem:[%s20435_s3 + $0x190] sm:$0xff]  ;;  %v12249_v57 = vld [vmem:[%s20435_s3 + $0x198] sm:$0xff] }
 0x412   : > { %6183 = vst.msk [vmem:[#allocation2 + $0x90] sm:$0xf] %vm6171_vm1, %v6145_v60  ;;  %v7216_v25 = vsel %vm6446_vm10, %v7103_v14, %v7215_v35  ;;  %v14868_v28 = vpack.c.bf16 %v12199_v49, %v12198_v13  ;;  %v15756_v33 = vld [vmem:[#allocation2 + $0x18] ss:$8 sps:$4 sm:$0xff]  }
 0x413   : > { %v6881_v52 = vpop.permute.xlu1 %6880  ;;  %v15759_v14 = vld [vmem:[#allocation2 + $0x58] ss:$8 sps:$4 sm:$0xff]  }
 0x414   : > { %6921 = vst.msk [vmem:[#allocation2 + $0x88] sm:$0xf] %vm6911_vm3, %v6881_v52  ;;  %v6516_v53 = vpop.permute.xlu0 %6515 }
 0x415   : > { %7258 = vst.msk [vmem:[#allocation2 + $0x88] sm:$0x1e] %vm7248_vm4, %v7213_v26  ;;  %v12203_v26 = vld [vmem:[%s20435_s3 + $0xe8] sm:$0xff] }
 0x416   : > { %6553 = vst.msk [vmem:[#allocation2 + $0x90] sm:$0x1e] %vm6541_vm2, %v6516_v53 }
 0x417   : > { %v6869_v2 = vpop.permute.xlu1 %6868  ;;  %v15745_v4 = vld [vmem:[#allocation2 + $0x79] ss:$8 sps:$4 sm:$0xff]  }
 0x418   : > { %6915 = vst.msk [vmem:[#allocation2 + $0x48] sm:$0xf] %vm6911_vm3, %v6869_v2  ;;  %14177 = vmatprep.mubr.msk.f32.mxu1 %vm516_vm0, %v15745_v4  ;;  %v15753_v44 = vld [vmem:[#allocation2 + $0x78] ss:$8 sps:$4 sm:$0xff]  }
 0x419   : > { %7252 = vst.msk [vmem:[#allocation2 + $0x48] sm:$0x1e] %vm7248_vm4, %v7195_v10  ;;  %v6883_v41 = vpop.permute.xlu0 %6882 }
 0x41a   : > { %6922 = vst.msk [vmem:[#allocation2 + $0x90] sm:$0xf] %vm6911_vm3, %v6883_v41 }
 0x41b   : > { %7259 = vst.msk [vmem:[#allocation2 + $0x90] sm:$0x1e] %vm7248_vm4, %v7216_v25  ;;  %v6885_v21 = vpop.permute.xlu1 %6884  ;;  %v12217_v25 = vld [vmem:[%s20435_s3 + $0x118] sm:$0xff] }
 0x41c   : > { %6923 = vst.msk [vmem:[#allocation2 + $0x98] sm:$0xf] %vm6911_vm3, %v6885_v21  ;;  %v15761_v4 = vld [vmem:[#allocation2 + $0x80] ss:$8 sps:$4 sm:$0xff]   ;;  %v14888_v58 = vpack.c.bf16 %v12217_v25, %v12216_v56  ;;  %v15765_v21 = vld [vmem:[#allocation2 + $0x31] ss:$8 sps:$4 sm:$0xff]  }
 0x41d   : > { %7260 = vst.msk [vmem:[#allocation2 + $0x98] sm:$0x1e] %vm7248_vm4, %v18946_v61  ;;  %v12185_v61 = vld [vmem:[%s20435_s3 + $0x98] sm:$0xff] }
 0x41e   : > { %v6877_v48 = vpop.permute.xlu0 %6876  ;;  %v14856_v39 = vpack.c.bf16 %v12185_v61, %v12184_v37 }
 0x41f   : > { %6919 = vst.msk [vmem:[#allocation2 + $0x70] sm:$0xf] %vm6911_vm3, %v6877_v48  ;;  %v12219_v48 = vld [vmem:[%s20435_s3 + $0x128] sm:$0xff] }
 0x420   : > { %7256 = vst.msk [vmem:[#allocation2 + $0x70] sm:$0x1e] %vm7248_vm4, %v7207_v7  ;;  %v6887_v63 = vpop.permute.xlu1 %6886  ;;  %v15758_v53 = vld [vmem:[#allocation2 + $0x40] ss:$8 sps:$4 sm:$0xff]   ;;  %v12220_v7 = vld [vmem:[%s20435_s3 + $0x130] sm:$0xff]  ;;  %v14892_v37 = vpack.c.bf16 %v12219_v48, %v12218_v40 }
 0x421   : > { %v15788_v56 = vld [vmem:[#allocation2 + $0x40] ss:$8 sps:$4 sm:$0xff]  }
 0x422   : > { %v6147_v18 = vpop.permute.xlu0 %6146  ;;  %v15746_v32 = vld [vmem:[#allocation2 + $0x89] ss:$8 sps:$4 sm:$0xff]  }
 0x423   : > { %6184 = vst.msk [vmem:[#allocation2 + $0xa0] sm:$0xf] %vm6171_vm1, %v6147_v18  ;;  %14178 = vmatmul.mubr.msk.f32.gmra.mrb[38].mxu1 %vm516_vm0, %v15746_v32  ;;  %v15754_v60 = vld [vmem:[#allocation2 + $0x88] ss:$8 sps:$4 sm:$0xff]   ;;  %v15767_v18 = vld [vmem:[#allocation2 + $0x59] ss:$8 sps:$4 sm:$0xff]  }
 0x424   : > { %v6520_v17 = vpop.permute.xlu1 %6519  ;;  %14196 = vmatprep.mubr.msk.f32.mxu1 %vm516_vm0, %v15747_v22  ;;  %v15762_v10 = vld [vmem:[#allocation2 + $0x90] ss:$8 sps:$4 sm:$0xff]   ;;  %v15766_v22 = vld [vmem:[#allocation2 + $0x41] ss:$8 sps:$4 sm:$0xff]  }
 0x426   : > { %v6518_v15 = vpop.permute.xlu0 %6517 }
 0x427   : > { %6554 = vst.msk [vmem:[#allocation2 + $0xa0] sm:$0x1e] %vm6541_vm2, %v6518_v15  ;;  %14197 = vmatmul.mubr.msk.f32.vlgmr.msra.gmra.mrb[32].mxu1 %vm516_vm0, %v15748_v0  ;;  %v15760_v35 = vld [vmem:[#allocation2 + $0x68] ss:$8 sps:$4 sm:$0xff]   ;;  %v12230_v0 = vld [vmem:[%s20435_s3 + $0x140] sm:$0xff] }
 0x428   : > { %v6151_v6 = vpop.permute.xlu1 %6150  ;;  %14199 = vmatprep.mubr.msk.f32.mxu1 %vm516_vm0, %v15749_v59  ;;  %14855 = vmatpush3.bf16.msra.mxu1 %v19013_v5  ;;  %v15752_v5 = vld [vmem:[#allocation2 + $0x60] ss:$8 sps:$4 sm:$0xff]   ;;  %v15770_v15 = vld [vmem:[#allocation2 + $0x91] ss:$8 sps:$4 sm:$0xff]  }
 0x429   : > { %6186 = vst.msk [vmem:[#allocation2 + $0xb0] sm:$0xf] %vm6171_vm1, %v6151_v6  ;;  %14857 = vmatprep.subr.bf16.mxu1 %v14856_v39  ;;  %v15768_v32 = vld [vmem:[#allocation2 + $0x69] ss:$8 sps:$4 sm:$0xff]   ;;  %v12233_v6 = vld [vmem:[%s20435_s3 + $0x158] sm:$0xff] }
 0x42a   : > { %v6149_v31 = vpop.permute.xlu0 %6148  ;;  %v12232_v59 = vld [vmem:[%s20435_s3 + $0x150] sm:$0xff] }
 0x42b   : > { %6185 = vst.msk [vmem:[#allocation2 + $0xa8] sm:$0xf] %vm6171_vm1, %v6149_v31  ;;  %14200 = vmatmul.mubr.msk.f32.gmra.mrb[34].mxu1 %vm516_vm0, %v15750_v47  ;;  %v14904_v31 = vpack.c.bf16 %v12233_v6, %v12232_v59  ;;  %v15773_v47 = vld [vmem:[#allocation2 + $0x50] ss:$8 sps:$4 sm:$0xff]   ;;  %v15796_v59 = vld [vmem:[#allocation2 + $0x41] ss:$8 sps:$4 sm:$0xff]  }
 0x42c   : > { %6555 = vst.msk [vmem:[#allocation2 + $0xa8] sm:$0x1e] %vm6541_vm2, %v6520_v17  ;;  %v6522_v20 = vpop.permute.xlu1 %6521  ;;  %14202 = vmatprep.mubr.msk.f32.mxu1 %vm516_vm0, %v15751_v45  ;;  %14859 = vmatpush3.bf16.msra.mxu1 %v14856_v39  ;;  %v15769_v17 = vld [vmem:[#allocation2 + $0x81] ss:$8 sps:$4 sm:$0xff]   ;;  %v14900_v39 = vpack.c.bf16 %v12231_v24, %v12230_v0 }
 0x42d   : > { %6924 = vst.msk [vmem:[#allocation2 + $0xa8] sm:$0xf] %vm6911_vm3, %v6887_v63  ;;  %14861 = vmatprep.subr.bf16.mxu1 %v14860_v9  ;;  %v12221_v63 = vld [vmem:[%s20435_s3 + $0x138] sm:$0xff]  ;;  %v15774_v45 = vld [vmem:[#allocation2 + $0x60] ss:$8 sps:$4 sm:$0xff]  }
 0x42e   : > { %6556 = vst.msk [vmem:[#allocation2 + $0xb0] sm:$0x1e] %vm6541_vm2, %v6522_v20  ;;  %v6153_v36 = vpop.permute.xlu0 %6152  ;;  %v14896_v61 = vpack.c.bf16 %v12221_v63, %v12220_v7  ;;  %v15790_v40 = vld [vmem:[#allocation2 + $0x68] ss:$8 sps:$4 sm:$0xff]  }
 0x42f   : > { %7261 = vst.msk [vmem:[#allocation2 + $0xa8] sm:$0x1e] %vm7248_vm4, %v18968_v46  ;;  %14203 = vmatmul.mubr.msk.f32.gmra.mrb[36].mxu1 %vm516_vm0, %v15752_v5  ;;  %v15755_v46 = vld [vmem:[#allocation2 + $0x8] ss:$8 sps:$4 sm:$0xff]   ;;  %v15775_v5 = vld [vmem:[#allocation2 + $0x78] ss:$8 sps:$4 sm:$0xff]  }
 0x430   : > { %6187 = vst.msk [vmem:[#allocation2 + $0xb8] sm:$0xf] %vm6171_vm1, %v6153_v36  ;;  %v6889_v3 = vpop.permute.xlu1 %6888  ;;  %14205 = vmatprep.mubr.msk.f32.mxu1 %vm516_vm0, %v15753_v44  ;;  %14863 = vmatpush3.bf16.msra.mxu1 %v14860_v9  ;;  %v12234_v9 = vld [vmem:[%s20435_s3 + $0x160] sm:$0xff]  ;;  %v12236_v36 = vld [vmem:[%s20435_s3 + $0x170] sm:$0xff] }
 0x431   : > { %6925 = vst.msk [vmem:[#allocation2 + $0xb0] sm:$0xf] %vm6911_vm3, %v6889_v3  ;;  %14865 = vmatprep.subr.bf16.mxu1 %v14864_v30  ;;  %v14908_v20 = vpack.c.bf16 %v12235_v62, %v12234_v9  ;;  %v15776_v44 = vld [vmem:[#allocation2 + $0x88] ss:$8 sps:$4 sm:$0xff]   ;;  %v12246_v3 = vld [vmem:[%s20435_s3 + $0x180] sm:$0xff] }
 0x432   : > { %7262 = vst.msk [vmem:[#allocation2 + $0xb0] sm:$0x1e] %vm7248_vm4, %v18971_v55  ;;  %v6524_v1 = vpop.permute.xlu0 %6523  ;;  %v12202_v55 = vld [vmem:[%s20435_s3 + $0xe0] sm:$0xff]  ;;  %v12268_v63 = vld [vmem:[%s20435_s3 + $0x1f0] sm:$0xff] }
 0x433   : > { %6557 = vst.msk [vmem:[#allocation2 + $0xb8] sm:$0x1e] %vm6541_vm2, %v6524_v1  ;;  %14206 = vmatmul.mubr.msk.f32.gmra.mrb[38].mxu1 %vm516_vm0, %v15754_v60  ;;  %v14876_v12 = vpack.c.bf16 %v12203_v26, %v12202_v55  ;;  %v15781_v55 = vld [vmem:[#allocation2 + $0x51] ss:$8 sps:$4 sm:$0xff]   ;;  %v15782_v26 = vld [vmem:[#allocation2 + $0x61] ss:$8 sps:$4 sm:$0xff]  }
 0x434   : > { %v6893_v29 = vpop.permute.xlu1 %6892  ;;  %14867 = vmatpush3.bf16.msra.mxu1 %v14864_v30  ;;  %14224 = vmatprep.mubr.msk.f32.mxu1 %vm516_vm0, %v15755_v46  ;;  %v12237_v30 = vld [vmem:[%s20435_s3 + $0x178] sm:$0xff]  ;;  %v12247_v46 = vld [vmem:[%s20435_s3 + $0x188] sm:$0xff] }
 0x435   : > { %6927 = vst.msk [vmem:[#allocation2 + $0xc0] sm:$0xf] %vm6911_vm3, %v6893_v29  ;;  %14869 = vmatprep.subr.bf16.mxu1 %v14868_v28  ;;  %v14912_v13 = vpack.c.bf16 %v12237_v30, %v12236_v36  ;;  %v14916_v60 = vpack.c.bf16 %v12247_v46, %v12246_v3  ;;  %v15780_v29 = vld [vmem:[#allocation2 + $0x39] ss:$8 sps:$4 sm:$0xff]   ;;  %v15798_v9 = vld [vmem:[#allocation2 + $0x69] ss:$8 sps:$4 sm:$0xff]  }
 0x436   : > { %7264 = vst.msk [vmem:[#allocation2 + $0xc0] sm:$0x1e] %vm7248_vm4, %v18985_v50  ;;  %v12204_v50 = vld [vmem:[%s20435_s3 + $0xf0] sm:$0xff]  ;;  %v15777_v49 = vld [vmem:[#allocation2 + $0xa0] ss:$8 sps:$4 sm:$0xff]  }
 0x437   : > { %14225 = vmatmul.mubr.msk.f32.vlgmr.msra.gmra.mrb[32].mxu1 %vm516_vm0, %v15756_v33  ;;  %v14880_v2 = vpack.c.bf16 %v12205_v42, %v12204_v50  ;;  %v14920_v33 = vpack.c.bf16 %v12249_v57, %v12248_v27  ;;  %v15783_v50 = vld [vmem:[#allocation2 + $0x79] ss:$8 sps:$4 sm:$0xff]   ;;  %v15784_v42 = vld [vmem:[#allocation2 + $0x89] ss:$8 sps:$4 sm:$0xff]  }
 0x438   : > { %14227 = vmatprep.mubr.msk.f32.mxu1 %vm516_vm0, %v15757_v54  ;;  %14871 = vmatpush3.bf16.msra.mxu1 %v14868_v28  ;;  %v15779_v28 = vld [vmem:[#allocation2 + $0x29] ss:$8 sps:$4 sm:$0xff]  }
 0x439   : > { %14873 = vmatprep.subr.bf16.mxu1 %v14872_v16  ;;  %v15791_v7 = vld [vmem:[#allocation2 + $0x80] ss:$8 sps:$4 sm:$0xff]   ;;  %v15800_v36 = vld [vmem:[#allocation2 + $0x91] ss:$8 sps:$4 sm:$0xff]  }
 0x43a   : > { %v15804_v27 = vld [vmem:[#allocation2 + $0x60] ss:$8 sps:$4 sm:$0xff]  }
 0x43b   : > { %14228 = vmatmul.mubr.msk.f32.gmra.mrb[34].mxu1 %vm516_vm0, %v15758_v53  ;;  %v12252_v53 = vld [vmem:[%s20435_s3 + $0x1b0] sm:$0xff] }
 0x43c   : > { %14230 = vmatprep.mubr.msk.f32.mxu1 %vm516_vm0, %v15759_v14  ;;  %14875 = vmatpush3.bf16.msra.mxu1 %v14872_v16  ;;  %v12251_v16 = vld [vmem:[%s20435_s3 + $0x1a8] sm:$0xff] }
 0x43d   : > { %14877 = vmatprep.subr.bf16.mxu1 %v14876_v12 }
 0x43f   : > { %14231 = vmatmul.mubr.msk.f32.gmra.mrb[36].mxu1 %vm516_vm0, %v15760_v35  ;;  %v12263_v35 = vld [vmem:[%s20435_s3 + $0x1c8] sm:$0xff] }
 0x440   : > { %14233 = vmatprep.mubr.msk.f32.mxu1 %vm516_vm0, %v15761_v4  ;;  %14879 = vmatpush3.bf16.msra.mxu1 %v14876_v12  ;;  %v12253_v12 = vld [vmem:[%s20435_s3 + $0x1b8] sm:$0xff] }
 0x441   : > { %14881 = vmatprep.subr.bf16.mxu1 %v14880_v2  ;;  %v14928_v14 = vpack.c.bf16 %v12253_v12, %v12252_v53  ;;  %v15809_v53 = vld [vmem:[#allocation2 + $0xc8] ss:$8 sps:$4 sm:$0xff]  }
 0x443   : > { %14234 = vmatmul.mubr.msk.f32.gmra.mrb[38].mxu1 %vm516_vm0, %v15762_v10  ;;  %v12264_v10 = vld [vmem:[%s20435_s3 + $0x1d0] sm:$0xff] }
 0x444   : > { %14883 = vmatpush3.bf16.msra.mxu1 %v14880_v2  ;;  %14252 = vmatprep.mubr.msk.f32.mxu1 %vm516_vm0, %v15763_v8  ;;  %v15787_v8 = vld [vmem:[#allocation2 + $0x30] ss:$8 sps:$4 sm:$0xff]  }
 0x447   : > { %14253 = vmatmul.mubr.msk.f32.vlgmr.msra.gmra.mrb[32].mxu1 %vm516_vm0, %v15764_v23  ;;  %v15789_v23 = vld [vmem:[#allocation2 + $0x58] ss:$8 sps:$4 sm:$0xff]  }
 0x448   : > { %14255 = vmatprep.mubr.msk.f32.mxu1 %vm516_vm0, %v15765_v21  ;;  %v12267_v21 = vld [vmem:[%s20435_s3 + $0x1e8] sm:$0xff] }
 0x44b   : > { %14256 = vmatmul.mubr.msk.f32.gmra.mrb[34].mxu1 %vm516_vm0, %v15766_v22  ;;  %v12269_v22 = vld [vmem:[%s20435_s3 + $0x1f8] sm:$0xff] }
 0x44c   : > { %14258 = vmatprep.mubr.msk.f32.mxu1 %vm516_vm0, %v15767_v18  ;;  %v14944_v18 = vpack.c.bf16 %v12269_v22, %v12268_v63  ;;  %v15817_v63 = vld [vmem:[#allocation2 + $0xc9] ss:$8 sps:$4 sm:$0xff]  }
 0x44d   : > { %v6891_v52 = vpop.permute.xlu0 %6890 }
 0x44e   : > { %6926 = vst.msk [vmem:[#allocation2 + $0xb8] sm:$0xf] %vm6911_vm3, %v6891_v52  ;;  %v12250_v52 = vld [vmem:[%s20435_s3 + $0x1a0] sm:$0xff]  ;;  %vm10634_vm3 = vcmask 516096  }
 0x44f   : > { %7263 = vst.msk [vmem:[#allocation2 + $0xb8] sm:$0x1e] %vm7248_vm4, %v18988_v38  ;;  %v12214_v38 = vld [vmem:[%s20435_s3 + $0x100] sm:$0xff]  ;;  %14259 = vmatmul.mubr.msk.f32.gmra.mrb[36].mxu1 %vm516_vm0, %v15768_v32  ;;  %v14924_v54 = vpack.c.bf16 %v12251_v16, %v12250_v52  ;;  %v15793_v32 = vld [vmem:[#allocation2 + $0xa8] ss:$8 sps:$4 sm:$0xff]   ;;  %vm10617_vm4 = vcmask 1040896  }
 0x450   : > { %v14884_v41 = vpack.c.bf16 %v12215_v11, %v12214_v38  ;;  %14261 = vmatprep.mubr.msk.f32.mxu1 %vm516_vm0, %v15769_v17  ;;  %v15785_v38 = vld [vmem:[#allocation2 + $0xa1] ss:$8 sps:$4 sm:$0xff]  }
 0x451   : > { %v12262_v11 = vld [vmem:[%s20435_s3 + $0x1c0] sm:$0xff]  ;;  %v12279_v17 = vld [vmem:[%s20435_s3 + $0x208] sm:$0xff] }
 0x452   : > { %14885 = vmatprep.subr.bf16.mxu1 %v14884_v41  ;;  %v14932_v4 = vpack.c.bf16 %v12263_v35, %v12262_v11  ;;  %v15806_v52 = vld [vmem:[#allocation2 + $0x88] ss:$8 sps:$4 sm:$0xff]   ;;  %v15810_v11 = vld [vmem:[#allocation2 + $0xd8] ss:$8 sps:$4 sm:$0xff]  }
 0x453   : > { %14887 = vmatpush3.bf16.msra.mxu1 %v14884_v41  ;;  %v12265_v41 = vld [vmem:[%s20435_s3 + $0x1d8] sm:$0xff] }
 0x454   : > { %14889 = vmatprep.subr.bf16.mxu1 %v14888_v58  ;;  %14262 = vmatmul.mubr.msk.f32.gmra.mrb[38].mxu1 %vm516_vm0, %v15770_v15  ;;  %v14936_v25 = vpack.c.bf16 %v12265_v41, %v12264_v10  ;;  %v15795_v15 = vld [vmem:[#allocation2 + $0x31] ss:$8 sps:$4 sm:$0xff]   ;;  %v15812_v10 = vld [vmem:[#allocation2 + $0x61] ss:$8 sps:$4 sm:$0xff]  }
 0x455   : > { %14280 = vmatprep.mubr.msk.f32.mxu1 %vm516_vm0, %v15771_v19  ;;  %v12281_v19 = vld [vmem:[%s20435_s3 + $0x218] sm:$0xff] }
 0x456   : > { %v15778_v1 = vld [vmem:[#allocation2 + $0xb0] ss:$8 sps:$4 sm:$0xff]  }
 0x457   : > { %14891 = vmatpush3.bf16.msra.mxu1 %v14888_v58  ;;  %v15786_v2 = vld [vmem:[#allocation2 + $0xb1] ss:$8 sps:$4 sm:$0xff]   ;;  %v12266_v58 = vld [vmem:[%s20435_s3 + $0x1e0] sm:$0xff] }
 0x458   : > { %14893 = vmatprep.subr.bf16.mxu1 %v14892_v37  ;;  %v14940_v48 = vpack.c.bf16 %v12267_v21, %v12266_v58  ;;  %v15794_v0 = vld [vmem:[#allocation2 + $0xb8] ss:$8 sps:$4 sm:$0xff]   ;;  %v15814_v58 = vld [vmem:[#allocation2 + $0x89] ss:$8 sps:$4 sm:$0xff]  }
 0x459   : > { %v15802_v3 = vld [vmem:[#allocation2 + $0xb9] ss:$8 sps:$4 sm:$0xff]  }
 0x45a   : > { %v15808_v12 = vld [vmem:[#allocation2 + $0xb0] ss:$8 sps:$4 sm:$0xff]  }
 0x45b   : > { %14895 = vmatpush3.bf16.msra.mxu1 %v14892_v37  ;;  %v15792_v37 = vld [vmem:[#allocation2 + $0x90] ss:$8 sps:$4 sm:$0xff]  }
 0x45c   : > { %14897 = vmatprep.subr.bf16.mxu1 %v14896_v61  ;;  %v15816_v22 = vld [vmem:[#allocation2 + $0xb1] ss:$8 sps:$4 sm:$0xff]  }
 0x45f   : > { %14899 = vmatpush3.bf16.msra.mxu1 %v14896_v61  ;;  %v12278_v61 = vld [vmem:[%s20435_s3 + $0x200] sm:$0xff] }
 0x460   : > { %14901 = vmatprep.subr.bf16.mxu1 %v14900_v39  ;;  %v14948_v24 = vpack.c.bf16 %v12279_v17, %v12278_v61  ;;  %v15818_v61 = vld [vmem:[#allocation2 + $0xd9] ss:$8 sps:$4 sm:$0xff]  }
 0x462   : > { %14281 = vmatmul.mubr.msk.f32.vlgmr.msra.gmra.mrb[32].mxu1 %vm516_vm0, %v15772_v51  ;;  %v15797_v51 = vld [vmem:[#allocation2 + $0x59] ss:$8 sps:$4 sm:$0xff]  }
 0x463   : > { %14283 = vmatprep.mubr.msk.f32.mxu1 %vm516_vm0, %v15773_v47  ;;  %14903 = vmatpush3.bf16.msra.mxu1 %v14900_v39  ;;  %v12280_v39 = vld [vmem:[%s20435_s3 + $0x210] sm:$0xff]  ;;  %v12283_v47 = vld [vmem:[%s20435_s3 + $0x228] sm:$0xff] }
 0x464   : > { %14905 = vmatprep.subr.bf16.mxu1 %v14904_v31  ;;  %v14952_v6 = vpack.c.bf16 %v12281_v19, %v12280_v39  ;;  %v15820_v39 = vld [vmem:[#allocation2 + $0x68] ss:$8 sps:$4 sm:$0xff]  }
 0x466   : > { %14284 = vmatmul.mubr.msk.f32.gmra.mrb[34].mxu1 %vm516_vm0, %v15774_v45  ;;  %v15799_v45 = vld [vmem:[#allocation2 + $0x81] ss:$8 sps:$4 sm:$0xff]  }
 0x467   : > { %14286 = vmatprep.mubr.msk.f32.mxu1 %vm516_vm0, %v15775_v5  ;;  %14907 = vmatpush3.bf16.msra.mxu1 %v14904_v31  ;;  %v12282_v31 = vld [vmem:[%s20435_s3 + $0x220] sm:$0xff]  ;;  %v12285_v5 = vld [vmem:[%s20435_s3 + $0x238] sm:$0xff] }
 0x468   : > { %14909 = vmatprep.subr.bf16.mxu1 %v14908_v20  ;;  %v14956_v62 = vpack.c.bf16 %v12283_v47, %v12282_v31  ;;  %v15822_v31 = vld [vmem:[#allocation2 + $0x90] ss:$8 sps:$4 sm:$0xff]  }
 0x46a   : > { %14287 = vmatmul.mubr.msk.f32.gmra.mrb[36].mxu1 %vm516_vm0, %v15776_v44  ;;  %v15801_v44 = vld [vmem:[#allocation2 + $0xa9] ss:$8 sps:$4 sm:$0xff]  }
 0x46b   : > { %14289 = vmatprep.mubr.msk.f32.mxu1 %vm516_vm0, %v15777_v49  ;;  %14911 = vmatpush3.bf16.msra.mxu1 %v14908_v20  ;;  %v12284_v20 = vld [vmem:[%s20435_s3 + $0x230] sm:$0xff]  ;;  %v12295_v49 = vld [vmem:[%s20435_s3 + $0x248] sm:$0xff] }
 0x46c   : > { %14913 = vmatprep.subr.bf16.mxu1 %v14912_v13  ;;  %v14960_v30 = vpack.c.bf16 %v12285_v5, %v12284_v20  ;;  %v15825_v20 = vld [vmem:[#allocation2 + $0xd0] ss:$8 sps:$4 sm:$0xff]  }
 0x46d   : > { %v15824_v5 = vld [vmem:[#allocation2 + $0xb8] ss:$8 sps:$4 sm:$0xff]  }
 0x46e   : > { %14290 = vmatmul.mubr.msk.f32.gmra.mrb[38].mxu1 %vm516_vm0, %v15778_v1  ;;  %v15803_v1 = vld [vmem:[#allocation2 + $0x50] ss:$8 sps:$4 sm:$0xff]  }
 0x46f   : > { %14915 = vmatpush3.bf16.msra.mxu1 %v14912_v13  ;;  %14308 = vmatprep.mubr.msk.f32.mxu1 %vm516_vm0, %v15779_v28  ;;  %v12294_v13 = vld [vmem:[%s20435_s3 + $0x240] sm:$0xff]  ;;  %v12297_v28 = vld [vmem:[%s20435_s3 + $0x258] sm:$0xff] }
 0x470   : > { %14917 = vmatprep.subr.bf16.mxu1 %v14916_v60  ;;  %v14964_v46 = vpack.c.bf16 %v12295_v49, %v12294_v13  ;;  %v15828_v13 = vld [vmem:[#allocation2 + $0x69] ss:$8 sps:$4 sm:$0xff]  }
 0x471   : > { %v15829_v49 = vld [vmem:[#allocation2 + $0x81] ss:$8 sps:$4 sm:$0xff]  }
 0x472   : > { %14309 = vmatmul.mubr.msk.f32.vlgmr.msra.gmra.mrb[32].mxu1 %vm516_vm0, %v15780_v29  ;;  %v15805_v29 = vld [vmem:[#allocation2 + $0x78] ss:$8 sps:$4 sm:$0xff]  }
 0x473   : > { %14311 = vmatprep.mubr.msk.f32.mxu1 %vm516_vm0, %v15781_v55  ;;  %14919 = vmatpush3.bf16.msra.mxu1 %v14916_v60  ;;  %v12296_v60 = vld [vmem:[%s20435_s3 + $0x250] sm:$0xff]  ;;  %v12299_v55 = vld [vmem:[%s20435_s3 + $0x268] sm:$0xff] }
 0x474   : > { %14921 = vmatprep.subr.bf16.mxu1 %v14920_v33  ;;  %v14968_v57 = vpack.c.bf16 %v12297_v28, %v12296_v60  ;;  %v15832_v60 = vld [vmem:[#allocation2 + $0xb9] ss:$8 sps:$4 sm:$0xff]  }
 0x475   : > { %v15834_v28 = vld [vmem:[#allocation2 + $0xe1] ss:$8 sps:$4 sm:$0xff]  }
 0x476   : > { %14312 = vmatmul.mubr.msk.f32.gmra.mrb[34].mxu1 %vm516_vm0, %v15782_v26  ;;  %v15807_v26 = vld [vmem:[#allocation2 + $0xa0] ss:$8 sps:$4 sm:$0xff]  }
 0x477   : > { %14314 = vmatprep.mubr.msk.f32.mxu1 %vm516_vm0, %v15783_v50  ;;  %14923 = vmatpush3.bf16.msra.mxu1 %v14920_v33  ;;  %v12298_v33 = vld [vmem:[%s20435_s3 + $0x260] sm:$0xff]  ;;  %v12301_v50 = vld [vmem:[%s20435_s3 + $0x278] sm:$0xff] }
 0x478   : > { %14925 = vmatprep.subr.bf16.mxu1 %v14924_v54  ;;  %v14972_v16 = vpack.c.bf16 %v12299_v55, %v12298_v33 }
 0x47a   : > { %14315 = vmatmul.mubr.msk.f32.gmra.mrb[36].mxu1 %vm516_vm0, %v15784_v42 }
 0x47b   : > { %14317 = vmatprep.mubr.msk.f32.mxu1 %vm516_vm0, %v15785_v38  ;;  %14927 = vmatpush3.bf16.msra.mxu1 %v14924_v54  ;;  %v12300_v54 = vld [vmem:[%s20435_s3 + $0x270] sm:$0xff]  ;;  %v12311_v38 = vld [vmem:[%s20435_s3 + $0x288] sm:$0xff] }
 0x47c   : > { %14929 = vmatprep.subr.bf16.mxu1 %v14928_v14  ;;  %v14976_v42 = vpack.c.bf16 %v12301_v50, %v12300_v54 }
 0x47e   : > { %14318 = vmatmul.mubr.msk.f32.gmra.mrb[38].mxu1 %vm516_vm0, %v15786_v2  ;;  %v15811_v2 = vld [vmem:[#allocation2 + $0x51] ss:$8 sps:$4 sm:$0xff]  }
 0x47f   : > { %14931 = vmatpush3.bf16.msra.mxu1 %v14928_v14  ;;  %14336 = vmatprep.mubr.msk.f32.mxu1 %vm516_vm0, %v15787_v8  ;;  %v12310_v14 = vld [vmem:[%s20435_s3 + $0x280] sm:$0xff]  ;;  %v12313_v8 = vld [vmem:[%s20435_s3 + $0x298] sm:$0xff] }
 0x480   : > { %14933 = vmatprep.subr.bf16.mxu1 %v14932_v4  ;;  %v14980_v35 = vpack.c.bf16 %v12311_v38, %v12310_v14 }
 0x482   : > { %14337 = vmatmul.mubr.msk.f32.vlgmr.msra.gmra.mrb[32].mxu1 %vm516_vm0, %v15788_v56  ;;  %v15813_v56 = vld [vmem:[#allocation2 + $0x79] ss:$8 sps:$4 sm:$0xff]  }
 0x483   : > { %14339 = vmatprep.mubr.msk.f32.mxu1 %vm516_vm0, %v15789_v23  ;;  %14935 = vmatpush3.bf16.msra.mxu1 %v14932_v4  ;;  %v12312_v4 = vld [vmem:[%s20435_s3 + $0x290] sm:$0xff]  ;;  %v12315_v23 = vld [vmem:[%s20435_s3 + $0x2a8] sm:$0xff] }
 0x484   : > { %14937 = vmatprep.subr.bf16.mxu1 %v14936_v25  ;;  %v14984_v41 = vpack.c.bf16 %v12313_v8, %v12312_v4 }
 0x486   : > { %14340 = vmatmul.mubr.msk.f32.gmra.mrb[34].mxu1 %vm516_vm0, %v15790_v40  ;;  %v15815_v40 = vld [vmem:[#allocation2 + $0xa1] ss:$8 sps:$4 sm:$0xff]  }
 0x487   : > { %14342 = vmatprep.mubr.msk.f32.mxu1 %vm516_vm0, %v15791_v7  ;;  %14939 = vmatpush3.bf16.msra.mxu1 %v14936_v25  ;;  %v12314_v25 = vld [vmem:[%s20435_s3 + $0x2a0] sm:$0xff]  ;;  %v12317_v7 = vld [vmem:[%s20435_s3 + $0x2b8] sm:$0xff] }
 0x488   : > { %14941 = vmatprep.subr.bf16.mxu1 %v14940_v48  ;;  %v14988_v21 = vpack.c.bf16 %v12315_v23, %v12314_v25 }
 0x48a   : > { %14343 = vmatmul.mubr.msk.f32.gmra.mrb[36].mxu1 %vm516_vm0, %v15792_v37 }
 0x48b   : > { %14345 = vmatprep.mubr.msk.f32.mxu1 %vm516_vm0, %v15793_v32  ;;  %14943 = vmatpush3.bf16.msra.mxu1 %v14940_v48  ;;  %v12316_v48 = vld [vmem:[%s20435_s3 + $0x2b0] sm:$0xff]  ;;  %v12327_v32 = vld [vmem:[%s20435_s3 + $0x2c8] sm:$0xff] }
 0x48c   : > { %14945 = vmatprep.subr.bf16.mxu1 %v14944_v18  ;;  %v14992_v37 = vpack.c.bf16 %v12317_v7, %v12316_v48 }
 0x48e   : > { %14346 = vmatmul.mubr.msk.f32.gmra.mrb[38].mxu1 %vm516_vm0, %v15794_v0  ;;  %v15819_v0 = vld [vmem:[#allocation2 + $0x58] ss:$8 sps:$4 sm:$0xff]  }
 0x48f   : > { %14947 = vmatpush3.bf16.msra.mxu1 %v14944_v18  ;;  %14364 = vmatprep.mubr.msk.f32.mxu1 %vm516_vm0, %v15795_v15  ;;  %v12326_v18 = vld [vmem:[%s20435_s3 + $0x2c0] sm:$0xff]  ;;  %v12329_v15 = vld [vmem:[%s20435_s3 + $0x2d8] sm:$0xff] }
 0x490   : > { %14949 = vmatprep.subr.bf16.mxu1 %v14948_v24  ;;  %v14996_v17 = vpack.c.bf16 %v12327_v32, %v12326_v18 }
 0x492   : > { %14365 = vmatmul.mubr.msk.f32.vlgmr.msra.gmra.mrb[32].mxu1 %vm516_vm0, %v15796_v59  ;;  %v15821_v59 = vld [vmem:[#allocation2 + $0x80] ss:$8 sps:$4 sm:$0xff]  }
 0x493   : > { %14367 = vmatprep.mubr.msk.f32.mxu1 %vm516_vm0, %v15797_v51  ;;  %14951 = vmatpush3.bf16.msra.mxu1 %v14948_v24  ;;  %v12328_v24 = vld [vmem:[%s20435_s3 + $0x2d0] sm:$0xff]  ;;  %v12331_v51 = vld [vmem:[%s20435_s3 + $0x2e8] sm:$0xff] }
 0x494   : > { %14953 = vmatprep.subr.bf16.mxu1 %v14952_v6  ;;  %v15000_v19 = vpack.c.bf16 %v12329_v15, %v12328_v24 }
 0x496   : > { %14368 = vmatmul.mubr.msk.f32.gmra.mrb[34].mxu1 %vm516_vm0, %v15798_v9  ;;  %v15823_v9 = vld [vmem:[#allocation2 + $0xa8] ss:$8 sps:$4 sm:$0xff]  }
 0x497   : > { %14370 = vmatprep.mubr.msk.f32.mxu1 %vm516_vm0, %v15799_v45  ;;  %14955 = vmatpush3.bf16.msra.mxu1 %v14952_v6  ;;  %v12330_v6 = vld [vmem:[%s20435_s3 + $0x2e0] sm:$0xff]  ;;  %v12333_v45 = vld [vmem:[%s20435_s3 + $0x2f8] sm:$0xff] }
 0x498   : > { %14957 = vmatprep.subr.bf16.mxu1 %v14956_v62  ;;  %v15004_v47 = vpack.c.bf16 %v12331_v51, %v12330_v6 }
 0x49a   : > { %14371 = vmatmul.mubr.msk.f32.gmra.mrb[36].mxu1 %vm516_vm0, %v15800_v36 }
 0x49b   : > { %14373 = vmatprep.mubr.msk.f32.mxu1 %vm516_vm0, %v15801_v44  ;;  %14959 = vmatpush3.bf16.msra.mxu1 %v14956_v62  ;;  %v12332_v62 = vld [vmem:[%s20435_s3 + $0x2f0] sm:$0xff]  ;;  %v15827_v44 = vld [vmem:[#allocation2 + $0x59] ss:$8 sps:$4 sm:$0xff]  }
 0x49c   : > { %14961 = vmatprep.subr.bf16.mxu1 %v14960_v30  ;;  %v15008_v36 = vpack.c.bf16 %v12333_v45, %v12332_v62 }
 0x49e   : > { %14374 = vmatmul.mubr.msk.f32.gmra.mrb[38].mxu1 %vm516_vm0, %v15802_v3  ;;  %v15830_v3 = vld [vmem:[#allocation2 + $0x91] ss:$8 sps:$4 sm:$0xff]  }
 0x49f   : > { %14963 = vmatpush3.bf16.msra.mxu1 %v14960_v30  ;;  %14392 = vmatprep.mubr.msk.f32.mxu1 %vm516_vm0, %v15803_v1  ;;  %v15826_v30 = vld [vmem:[#allocation2 + $0xe0] ss:$8 sps:$4 sm:$0xff]   ;;  %v15833_v1 = vld [vmem:[#allocation2 + $0xd1] ss:$8 sps:$4 sm:$0xff]  }
 0x4a0   : > { %14965 = vmatprep.subr.bf16.mxu1 %v14964_v46 }
 0x4a2   : > { %14393 = vmatmul.mubr.msk.f32.vlgmr.msra.gmra.mrb[32].mxu1 %vm516_vm0, %v15804_v27  ;;  %v12342_v27 = vld [vmem:[%s20436_s4] ss:$0 sm:$0xff] }
 0x4a3   : > { %14395 = vmatprep.mubr.msk.f32.mxu1 %vm516_vm0, %v15805_v29  ;;  %14967 = vmatpush3.bf16.msra.mxu1 %v14964_v46  ;;  %v15831_v46 = vld [vmem:[#allocation2 + $0xa9] ss:$8 sps:$4 sm:$0xff]  }
 0x4a4   : > { %14969 = vmatprep.subr.bf16.mxu1 %v14968_v57 }
 0x4a6   : > { %14396 = vmatmul.mubr.msk.f32.gmra.mrb[34].mxu1 %vm516_vm0, %v15806_v52 }
 0x4a7   : > { %14398 = vmatprep.mubr.msk.f32.mxu1 %vm516_vm0, %v15807_v26  ;;  %14971 = vmatpush3.bf16.msra.mxu1 %v14968_v57 }
 0x4a8   : > { %14973 = vmatprep.subr.bf16.mxu1 %v14972_v16 }
 0x4aa   : > { %14399 = vmatmul.mubr.msk.f32.gmra.mrb[36].mxu1 %vm516_vm0, %v15808_v12 }
 0x4ab   : > { %14975 = vmatpush3.bf16.msra.mxu1 %v14972_v16  ;;  %14401 = vmatprep.mubr.msk.f32.mxu1 %vm516_vm0, %v15809_v53  ;;  %v20654_v53 = vld [vmem:[#allocation11_spill] sm:$0xff] }
 0x4ac   : > { %14977 = vmatprep.subr.bf16.mxu1 %v14976_v42 }
 0x4ae   : > { %14402 = vmatmul.mubr.msk.f32.gmra.mrb[38].mxu1 %vm516_vm0, %v15810_v11 }
 0x4af   : > { %14979 = vmatpush3.bf16.msra.mxu1 %v14976_v42  ;;  %14420 = vmatprep.mubr.msk.f32.mxu1 %vm516_vm0, %v15811_v2 }
 0x4b0   : > { %14981 = vmatprep.subr.bf16.mxu1 %v14980_v35 }
 0x4b2   : > { %14421 = vmatmul.mubr.msk.f32.vlgmr.msra.gmra.mrb[32].mxu1 %vm516_vm0, %v15812_v10 }
 0x4b3   : > { %14423 = vmatprep.mubr.msk.f32.mxu1 %vm516_vm0, %v15813_v56  ;;  %14983 = vmatpush3.bf16.msra.mxu1 %v14980_v35 }
 0x4b4   : > { %14985 = vmatprep.subr.bf16.mxu1 %v14984_v41 }
 0x4b6   : > { %14424 = vmatmul.mubr.msk.f32.gmra.mrb[34].mxu1 %vm516_vm0, %v15814_v58 }
 0x4b7   : > { %14426 = vmatprep.mubr.msk.f32.mxu1 %vm516_vm0, %v15815_v40  ;;  %14987 = vmatpush3.bf16.msra.mxu1 %v14984_v41 }
 0x4b8   : > { %14989 = vmatprep.subr.bf16.mxu1 %v14988_v21 }
 0x4ba   : > { %14427 = vmatmul.mubr.msk.f32.gmra.mrb[36].mxu1 %vm516_vm0, %v15816_v22 }
 0x4bb   : > { %14991 = vmatpush3.bf16.msra.mxu1 %v14988_v21  ;;  %14429 = vmatprep.mubr.msk.f32.mxu1 %vm516_vm0, %v15817_v63 }
 0x4bc   : > { %14993 = vmatprep.subr.bf16.mxu1 %v14992_v37 }
 0x4be   : > { %14430 = vmatmul.mubr.msk.f32.gmra.mrb[38].mxu1 %vm516_vm0, %v15818_v61 }
 0x4bf   : > { %14995 = vmatpush3.bf16.msra.mxu1 %v14992_v37  ;;  %14448 = vmatprep.mubr.msk.f32.mxu1 %vm516_vm0, %v15819_v0 }
 0x4c0   : > { %14997 = vmatprep.subr.bf16.mxu1 %v14996_v17 }
 0x4c2   : > { %14449 = vmatmul.mubr.msk.f32.vlgmr.msra.gmra.mrb[32].mxu1 %vm516_vm0, %v15820_v39 }
 0x4c3   : > { %14451 = vmatprep.mubr.msk.f32.mxu1 %vm516_vm0, %v15821_v59  ;;  %14999 = vmatpush3.bf16.msra.mxu1 %v14996_v17 }
 0x4c4   : > { %15001 = vmatprep.subr.bf16.mxu1 %v15000_v19 }
 0x4c6   : > { %14452 = vmatmul.mubr.msk.f32.gmra.mrb[34].mxu1 %vm516_vm0, %v15822_v31 }
 0x4c7   : > { %14454 = vmatprep.mubr.msk.f32.mxu1 %vm516_vm0, %v15823_v9  ;;  %15003 = vmatpush3.bf16.msra.mxu1 %v15000_v19 }
 0x4c8   : > { %15005 = vmatprep.subr.bf16.mxu1 %v15004_v47 }
 0x4ca   : > { %14455 = vmatmul.mubr.msk.f32.gmra.mrb[36].mxu1 %vm516_vm0, %v15824_v5 }
 0x4cb   : > { %15007 = vmatpush3.bf16.msra.mxu1 %v15004_v47  ;;  %14457 = vmatprep.mubr.msk.f32.mxu1 %vm516_vm0, %v15825_v20 }
 0x4cc   : > { %15009 = vmatprep.subr.bf16.mxu1 %v15008_v36 }
 0x4ce   : > { %14458 = vmatmul.mubr.msk.f32.gmra.mrb[38].mxu1 %vm516_vm0, %v15826_v30 }
 0x4cf   : > { %15011 = vmatpush3.bf16.msra.mxu1 %v15008_v36  ;;  %14476 = vmatprep.mubr.msk.f32.mxu1 %vm516_vm0, %v15827_v44 }
 0x4d2   : > { %14477 = vmatmul.mubr.msk.f32.vlgmr.msra.gmra.mrb[32].mxu1 %vm516_vm0, %v15828_v13 }
 0x4d3   : > { %14479 = vmatprep.mubr.msk.f32.mxu1 %vm516_vm0, %v15829_v49 }
 0x4d6   : > { %14480 = vmatmul.mubr.msk.f32.gmra.mrb[34].mxu1 %vm516_vm0, %v15830_v3 }
 0x4d7   : > { %14482 = vmatprep.mubr.msk.f32.mxu1 %vm516_vm0, %v15831_v46 }
 0x4da   : > { %14483 = vmatmul.mubr.msk.f32.gmra.mrb[36].mxu1 %vm516_vm0, %v15832_v60 }
 0x4db   : > { %14485 = vmatprep.mubr.msk.f32.mxu1 %vm516_vm0, %v15833_v1 }
 0x4de   : > { %14486 = vmatmul.mubr.msk.f32.gmra.mrb[38].mxu1 %vm516_vm0, %v15834_v28 }
 0x5a5   : > { %v14478_v57 = vpop.f32.mrb[32].mxu1 }
 0x5a6   : > { %v9395_v29 = vadd.f32 %v14478_v57, %v12342_v27  ;;  %v9340_v33 = vpop.f32.mrb[33].mxu1 }
 0x5a7   : > { %v9394_v52 = vadd.f32 %v12342_v27, %v9340_v33 }
 0x5a8   : > { %vm9403_vm9 = vcmp.ge.f32.partialorder %v9395_v29, 0.0  ;;  %v9411_v55 = vmul.f32 0.2, %v9395_v29 }
 0x5a9   : > { %v14481_v16 = vpop.f32.mrb[34].mxu1  ;;  %v9410_v14 = vmul.f32 0.2, %v9394_v52  ;;  %vm9402_vm10 = vcmp.ge.f32.partialorder %v9394_v52, 0.0 }
 0x5aa   : > { %v19446_v26 = vsel %vm9403_vm9, %v9395_v29, %v9411_v55  ;;  %v9397_v54 = vadd.f32 %v14481_v16, %v12342_v27  ;;  %v9350_v50 = vpop.f32.mrb[35].mxu1 }
 0x5ab   : > { %v9458_v12 = vrot.slane %v19446_v26, %v20654_v53  ;;  %v9396_v38 = vadd.f32 %v12342_v27, %v9350_v50  ;;  %v9418_v10 = vsel %vm9402_vm10, %v9394_v52, %v9410_v14  ;;  %v9451_v61 = vcombine.high %v19446_v26, %v19446_v26 }
 0x5ac   : > { %v9413_v42 = vmul.f32 0.2, %v9397_v54  ;;  %vm9405_vm0 = vcmp.ge.f32.partialorder %v9397_v54, 0.0  ;;  %v9441_v40 = vrot.slane %v9418_v10, %v20654_v53  ;;  %v9434_v18 = vcombine.high %v9418_v10, %v9418_v10 }
 0x5ad   : > { %v14484_v11 = vpop.f32.mrb[36].mxu1  ;;  %v9466_v35 = vcombine.high %v9458_v12, %v9458_v12  ;;  %v9412_v41 = vmul.f32 0.2, %v9396_v38  ;;  %vm9404_vm6 = vcmp.ge.f32.partialorder %v9396_v38, 0.0  ;;  %v9581_v21 = vrot.slane %v9458_v12, %v17529_v43 }
 0x5ae   : > { %v9360_v2 = vpop.f32.mrb[37].mxu1  ;;  %v19450_v4 = vsel %vm9405_vm0, %v9397_v54, %v9413_v42  ;;  %v9399_v8 = vadd.f32 %v14484_v11, %v12342_v27  ;;  %v9686_v0 = vrot.slane %v9458_v12, %v17507_v34  ;;  %v9449_v31 = vcombine.high %v9441_v40, %v9441_v40 }
 0x5af   : > { %v9585_v25 = vrot.slane %v9466_v35, %v17529_v43  ;;  %v9492_v58 = vrot.slane %v19450_v4, %v20654_v53  ;;  %v9398_v7 = vadd.f32 %v12342_v27, %v9360_v2  ;;  %v9420_v63 = vsel %vm9404_vm6, %v9396_v38, %v9412_v41 }
 0x5b0   : > { %v9415_v48 = vmul.f32 0.2, %v9399_v8  ;;  %vm9407_vm8 = vcmp.ge.f32.partialorder %v9399_v8, 0.0  ;;  %v9690_v37 = vrot.slane %v9466_v35, %v17507_v34  ;;  %v19464_v15 = vrot.slane %v9420_v63, %v20654_v53 }
 0x5b1   : > { %v14487_v56 = vpop.f32.mrb[38].mxu1  ;;  %v9635_v22 = vsel %vm6071_vm7, %v9585_v25, %v9581_v21  ;;  %v9500_v24 = vcombine.high %v9492_v58, %v9492_v58  ;;  %vm9406_vm11 = vcmp.ge.f32.partialorder %v9398_v7, 0.0  ;;  %v9414_v19 = vmul.f32 0.2, %v9398_v7 }
 0x5b2   : > { %v9370_v23 = vpop.f32.mrb[39].mxu1  ;;  %v9401_v32 = vadd.f32 %v14487_v56, %v12342_v27  ;;  %9644 = vrot.lane.b32.xlu0 %v9635_v22, %s15885_s24  ;;  %v9423_v39 = vsel %vm9407_vm8, %v9399_v8, %v9415_v48  ;;  %v9740_v59 = vsel %vm6073_vm5, %v9690_v37, %v9686_v0  ;;  %v9597_v6 = vrot.slane %v9492_v58, %v17529_v43 }
 0x5b3   : > { %v9400_v17 = vadd.f32 %v12342_v27, %v9370_v23  ;;  %v9601_v51 = vrot.slane %v9500_v24, %v17529_v43  ;;  %v19470_v47 = vrot.slane %v9434_v18, %v20654_v53  ;;  %v9468_v9 = vcombine.high %v9420_v63, %v9420_v63 }
 0x5b4   : > { %vm9409_vm12 = vcmp.ge.f32.partialorder %v9401_v32, 0.0  ;;  %v9417_v62 = vmul.f32 0.2, %v9401_v32  ;;  %v9573_v5 = vrot.slane %v9441_v40, %v17529_v43  ;;  %v9577_v36 = vrot.slane %v9449_v31, %v17529_v43 }
 0x5b5   : > { %v9416_v45 = vmul.f32 0.2, %v9400_v17  ;;  %v9637_v20 = vsel %vm6071_vm7, %v9601_v51, %v9597_v6  ;;  %v19477_v30 = vrot.slane %v9423_v39, %v20654_v53  ;;  %v9422_v44 = vsel %vm9406_vm11, %v9398_v7, %v9414_v19 }
 0x5b6   : > { %9749 = vrot.lane.b32.xlu0 %v9740_v59, %s15886_s25  ;;  %vm9408_vm13 = vcmp.ge.f32.partialorder %v9400_v17, 0.0  ;;  %9648 = vrot.lane.b32.xlu1 %v9637_v20, %s15885_s24  ;;  %v9706_v13 = vrot.slane %v9500_v24, %v17507_v34  ;;  %v9634_v49 = vsel %vm6071_vm7, %v9577_v36, %v9573_v5  ;;  %v9702_v3 = vrot.slane %v9492_v58, %v17507_v34 }
 0x5b7   : > { %v9682_v46 = vrot.slane %v9449_v31, %v17507_v34  ;;  %v9483_v1 = vcombine.high %v19464_v15, %v19464_v15  ;;  %v9485_v60 = vcombine.high %v19450_v4, %v19450_v4  ;;  %v19490_v28 = vrot.slane %v9468_v9, %v20654_v53 }
 0x5b8   : > { %v9425_v27 = vsel %vm9409_vm12, %v9401_v32, %v9417_v62  ;;  %v19496_v57 = vcombine.high %v19470_v47, %v19470_v47  ;;  %v9424_v29 = vsel %vm9408_vm13, %v9400_v17, %v9416_v45  ;;  %v9742_v33 = vsel %vm6073_vm5, %v9706_v13, %v9702_v3 }
 0x5b9   : > { %v9678_v55 = vrot.slane %v9441_v40, %v17507_v34  ;;  %v9593_v52 = vrot.slane %v9483_v1, %v17529_v43  ;;  %v9519_v16 = vcombine.high %v9423_v39, %v9423_v39  ;;  %v9502_v26 = vcombine.high %v9422_v44, %v9422_v44 }
 0x5ba   : > { %9642 = vrot.lane.b32.xlu0 %v9634_v49, %s15885_s24  ;;  %9753 = vrot.lane.b32.xlu1 %v9742_v33, %s15886_s25  ;;  %v9589_v50 = vrot.slane %v19464_v15, %v17529_v43  ;;  %v9787_v12 = vrot.slane %v19496_v57, %v17529_v43  ;;  %v9534_v42 = vcombine.high %v19477_v30, %v19477_v30  ;;  %v12344_v33 = vld [vmem:[%s20437_s5 + $0x88] sm:$0xff]  ;;  %vm11278_vm0 = vcmask 1043456  }
 0x5bb   : > { %v9739_v54 = vsel %vm6073_vm5, %v9682_v46, %v9678_v55  ;;  %v19510_v14 = vrot.slane %v9451_v61, %v20654_v53  ;;  %v19513_v38 = vrot.slane %v9485_v60, %v20654_v53  ;;  %v19516_v11 = vrot.slane %v9425_v27, %v20654_v53 }
 0x5bc   : > { %v9536_v35 = vcombine.high %v9424_v29, %v9424_v29  ;;  %v9636_v2 = vsel %vm6071_vm7, %v9593_v52, %v9589_v50  ;;  %v9783_v4 = vrot.slane %v19470_v47, %v17529_v43  ;;  %v9698_v8 = vrot.slane %v9483_v1, %v17507_v34  ;;  %v12346_v50 = vld [vmem:[%s20437_s5 + $0x98] sm:$0xff] }
 0x5bd   : > { %v19525_v10 = vcombine.high %v19490_v28, %v19490_v28  ;;  %v19528_v41 = vrot.slane %v9519_v16, %v20654_v53  ;;  %v19531_v56 = vrot.slane %v9422_v44, %v20654_v53  ;;  %v19534_v25 = vrot.slane %v9502_v26, %v20654_v53 }
 0x5be   : > { %9747 = vrot.lane.b32.xlu0 %v9739_v54, %s15886_s25  ;;  %9646 = vrot.lane.b32.xlu1 %v9636_v2, %s15885_s24  ;;  %v9553_v23 = vcombine.high %v9425_v27, %v9425_v27  ;;  %v9844_v58 = vsel %vm6071_vm7, %v9787_v12, %v9783_v4  ;;  %v9694_v21 = vrot.slane %v19464_v15, %v17507_v34  ;;  %v12345_v54 = vld [vmem:[%s20437_s5 + $0x90] sm:$0xff]  ;;  %vm11290_vm10 = vcmask 1040384  }
 0x5bf   : > { %v9617_v40 = vrot.slane %v9534_v42, %v17529_v43  ;;  %v9897_v48 = vrot.slane %v19510_v14, %v17507_v34  ;;  %v9889_v7 = vrot.slane %v19470_v47, %v17507_v34  ;;  %v9913_v63 = vrot.slane %v19513_v38, %v17507_v34 }
 0x5c0   : > { %v19548_v22 = vrot.slane %v9536_v35, %v20654_v53  ;;  %v9741_v37 = vsel %vm6073_vm5, %v9698_v8, %v9694_v21  ;;  %v9803_v18 = vrot.slane %v19525_v10, %v17529_v43  ;;  %v9613_v32 = vrot.slane %v19477_v30, %v17529_v43 }
 0x5c1   : > { %v9568_v61 = vcombine.high %v19516_v11, %v19516_v11  ;;  %v9905_v17 = vrot.slane %v19490_v28, %v17507_v34  ;;  %v9929_v0 = vrot.slane %v19528_v41, %v17507_v34  ;;  %v9921_v24 = vrot.slane %v19534_v25, %v17507_v34 }
 0x5c2   : > { %9852 = vrot.lane.b32.xlu0 %v9844_v58, %s15883_s12  ;;  %9751 = vrot.lane.b32.xlu1 %v9741_v37, %s15886_s25  ;;  %v19567_v15 = vcombine.high %v19531_v56, %v19531_v56  ;;  %v19570_v39 = vrot.slane %v9553_v23, %v20654_v53  ;;  %v9799_v19 = vrot.slane %v19490_v28, %v17529_v43  ;;  %vm11303_vm6 = vcmask 0  }
 0x5c3   : > { %v9639_v59 = vsel %vm6071_vm7, %v9617_v40, %v9613_v32  ;;  %v9722_v6 = vrot.slane %v9534_v42, %v17507_v34  ;;  %v19577_v51 = vrot.slane %v9424_v29, %v20654_v53  ;;  %v9937_v31 = vrot.slane %v19548_v22, %v17507_v34  ;;  %v12343_v29 = vld [vmem:[%s20437_s5 + $0x80] sm:$0xff] }
 0x5c4   : > { %v9718_v47 = vrot.slane %v19477_v30, %v17507_v34  ;;  %v9518_v9 = vcombine.high %v19534_v25, %v19534_v25  ;;  %v9846_v62 = vsel %vm6071_vm7, %v9803_v18, %v9799_v19  ;;  %v9633_v45 = vrot.slane %v9568_v61, %v17529_v43  ;;  %v12347_v40 = vld [vmem:[%s20437_s5 + $0xa0] sm:$0xff] }
 0x5c5   : > { %v19590_v20 = vcombine.high %v19548_v22, %v19548_v22  ;;  %v19594_v5 = vcombine.high %v19510_v14, %v19510_v14  ;;  %v9893_v36 = vrot.slane %v19496_v57, %v17507_v34  ;;  %v9909_v30 = vrot.slane %v19525_v10, %v17507_v34 }
 0x5c6   : > { %9652 = vrot.lane.b32.xlu0 %v9639_v59, %s15885_s24  ;;  %9856 = vrot.lane.b32.xlu1 %v9846_v62, %s15883_s12  ;;  %v9609_v44 = vrot.slane %v19567_v15, %v17529_v43  ;;  %v19605_v13 = vcombine.high %v19528_v41, %v19528_v41  ;;  %v9744_v49 = vsel %vm6073_vm5, %v9722_v6, %v9718_v47 }
 0x5c7   : > { %v9629_v3 = vrot.slane %v19516_v11, %v17529_v43  ;;  %v9605_v46 = vrot.slane %v19531_v56, %v17529_v43  ;;  %v19614_v1 = vcombine.high %v19513_v38, %v19513_v38  ;;  %v9734_v60 = vrot.slane %v19516_v11, %v17507_v34 }
 0x5c8   : > { %v9738_v28 = vrot.slane %v9568_v61, %v17507_v34  ;;  %v9925_v27 = vrot.slane %v9518_v9, %v17507_v34  ;;  %v19623_v57 = vcombine.high %v19570_v39, %v19570_v39  ;;  %v19634_v52 = vcombine.high %v19577_v51, %v19577_v51 }
 0x5c9   : > { %v9641_v55 = vsel %vm6071_vm7, %v9633_v45, %v9629_v3  ;;  %v9941_v16 = vrot.slane %v19590_v20, %v17507_v34  ;;  %v9901_v26 = vrot.slane %v19594_v5, %v17507_v34  ;;  %v9638_v12 = vsel %vm6071_vm7, %v9609_v44, %v9605_v46 }
 0x5ca   : > { %9757 = vrot.lane.b32.xlu0 %v9744_v49, %s15886_s25  ;;  %9656 = vrot.lane.b32.xlu1 %v9641_v55, %s15885_s24  ;;  %v9933_v42 = vrot.slane %v19605_v13, %v17507_v34  ;;  %v9917_v11 = vrot.slane %v19614_v1, %v17507_v34  ;;  %v19653_v35 = vsel %vm6073_vm5, %v9893_v36, %v9889_v7  ;;  %v12348_v7 = vld [vmem:[%s20437_s5 + $0xa8] sm:$0xff]  ;;  %v12355_v55 = vld [vmem:[%s20437_s5 + $0xe0] sm:$0xff] }
 0x5cb   : > { %v9819_v2 = vrot.slane %v9518_v9, %v17529_v43  ;;  %v9949_v4 = vrot.slane %v19623_v57, %v17507_v34  ;;  %v19659_v8 = vsel %vm6073_vm5, %v9909_v30, %v9905_v17  ;;  %v15012_v10 = vpack.c.bf16 %v12344_v33, %v12343_v29 }
 0x5cc   : > { %v9945_v23 = vrot.slane %v19570_v39, %v17507_v34  ;;  %v9815_v58 = vrot.slane %v19534_v25, %v17529_v43  ;;  %v15016_v21 = vpack.c.bf16 %v12346_v50, %v12345_v54  ;;  %v19673_v37 = vsel %vm6073_vm5, %v9925_v27, %v9921_v24  ;;  %v12358_v54 = vld [vmem:[%s20437_s5 + $0xf8] sm:$0xff] }
 0x5cd   : > { %v9746_v18 = vsel %vm6073_vm5, %v9738_v28, %v9734_v60  ;;  %v9625_v32 = vrot.slane %v19634_v52, %v17529_v43  ;;  %15013 = vmatprep.subr.bf16.mxu1 %v15012_v10  ;;  %v19679_v25 = vsel %vm6073_vm5, %v9941_v16, %v9937_v31  ;;  %v19685_v61 = vsel %vm6073_vm5, %v9901_v26, %v9897_v48  ;;  %v12354_v28 = vld [vmem:[%s20437_s5 + $0xd8] sm:$0xff]  ;;  %v12357_v26 = vld [vmem:[%s20437_s5 + $0xf0] sm:$0xff] }
 0x5ce   : > { %9650 = vrot.lane.b32.xlu0 %v9638_v12, %s15885_s24  ;;  %9761 = vrot.lane.b32.xlu1 %v9746_v18, %s15886_s25  ;;  %v9621_v17 = vrot.slane %v19577_v51, %v17529_v43  ;;  %v19694_v24 = vsel %vm6073_vm5, %v9933_v42, %v9929_v0  ;;  %v19700_v19 = vsel %vm6073_vm5, %v9917_v11, %v9913_v63  ;;  %v12349_v0 = vld [vmem:[%s20437_s5 + $0xb0] sm:$0xff]  ;;  %v12350_v63 = vld [vmem:[%s20437_s5 + $0xb8] sm:$0xff] }
 0x5cf   : > { %15015 = vmatpush3.bf16.msra.mxu1 %v15012_v10  ;;  %v9848_v48 = vsel %vm6071_vm7, %v9819_v2, %v9815_v58  ;;  %v9714_v59 = vrot.slane %v19567_v15, %v17507_v34  ;;  %v15020_v6 = vpack.c.bf16 %v12348_v7, %v12347_v40  ;;  %v19706_v31 = vsel %vm6073_vm5, %v9949_v4, %v9945_v23 }
 0x5d0   : > { %15017 = vmatprep.subr.bf16.mxu1 %v15016_v21  ;;  %v9640_v47 = vsel %vm6071_vm7, %v9625_v32, %v9621_v17  ;;  %v9710_v15 = vrot.slane %v19531_v56, %v17507_v34  ;;  %v9835_v9 = vrot.slane %v19590_v20, %v17529_v43  ;;  %v9831_v45 = vrot.slane %v19548_v22, %v17529_v43  ;;  %v12351_v56 = vld [vmem:[%s20437_s5 + $0xc0] sm:$0xff]  ;;  %v12352_v20 = vld [vmem:[%s20437_s5 + $0xc8] sm:$0xff] }
 0x5d1   : > { %v9795_v36 = vrot.slane %v19594_v5, %v17529_v43  ;;  %v15024_v30 = vpack.c.bf16 %v12350_v63, %v12349_v0  ;;  %v9791_v22 = vrot.slane %v19510_v14, %v17529_v43  ;;  %v9730_v5 = vrot.slane %v19634_v52, %v17507_v34  ;;  %v12353_v14 = vld [vmem:[%s20437_s5 + $0xd0] sm:$0xff] }
 0x5d2   : > { %9860 = vrot.lane.b32.xlu0 %v9848_v48, %s15883_s12  ;;  %9654 = vrot.lane.b32.xlu1 %v9640_v47, %s15885_s24  ;;  %v9743_v62 = vsel %vm6073_vm5, %v9714_v59, %v9710_v15  ;;  %v9850_v44 = vsel %vm6071_vm7, %v9835_v9, %v9831_v45  ;;  %v9726_v3 = vrot.slane %v19577_v51, %v17507_v34 }
 0x5d3   : > { %15019 = vmatpush3.bf16.msra.mxu1 %v15016_v21  ;;  %v9845_v49 = vsel %vm6071_vm7, %v9795_v36, %v9791_v22  ;;  %v9827_v46 = vrot.slane %v19605_v13, %v17529_v43  ;;  %v15028_v60 = vpack.c.bf16 %v12352_v20, %v12351_v56  ;;  %v9823_v34 = vrot.slane %v19528_v41, %v17529_v43  ;;  %v12356_v41 = vld [vmem:[%s20437_s5 + $0xe8] sm:$0xff]  ;;  %v9985_v20 = vld [vmem:[%s20437_s5 + $0x10] sm:$0xff] }
 0x5d4   : > { %15021 = vmatprep.subr.bf16.mxu1 %v15020_v6  ;;  %v9745_v27 = vsel %vm6073_vm5, %v9730_v5, %v9726_v3  ;;  %v9811_v51 = vrot.slane %v19614_v1, %v17529_v43  ;;  %v9807_v29 = vrot.slane %v19513_v38, %v17529_v43  ;;  %v15032_v33 = vpack.c.bf16 %v12354_v28, %v12353_v14  ;;  %v9991_v14 = vld [vmem:[%s20437_s5 + $0x40] sm:$0xff]  ;;  %v9992_v28 = vld [vmem:[%s20437_s5 + $0x48] sm:$0xff] }
 0x5d5   : > { %v9849_v13 = vsel %vm6071_vm7, %v9827_v46, %v9823_v34  ;;  %v9843_v52 = vrot.slane %v19623_v57, %v17529_v43  ;;  %v9839_v38 = vrot.slane %v19570_v39, %v17529_v43  ;;  %v15036_v16 = vpack.c.bf16 %v12356_v41, %v12355_v55  ;;  %v9983_v43 = vld [vmem:[%s20437_s5] sm:$0xff]  ;;  %v9984_v39 = vld [vmem:[%s20437_s5 + $0x8] sm:$0xff]  ;;  %v9990_v46 = vld [vmem:[%s20437_s5 + $0x38] sm:$0xff] }
 0x5d6   : > { %9755 = vrot.lane.b32.xlu0 %v9743_v62, %s15886_s25  ;;  %9864 = vrot.lane.b32.xlu1 %v9850_v44, %s15883_s12  ;;  %v9847_v1 = vsel %vm6071_vm7, %v9811_v51, %v9807_v29  ;;  %v15040_v57 = vpack.c.bf16 %v12358_v54, %v12357_v26  ;;  %v19787_v12 = vpack.c.bf16 %v9984_v39, %v9983_v43  ;;  %vm9666_vm5 = vcmask 1042176   ;;  %v9993_v34 = vld [vmem:[%s20437_s5 + $0x50] sm:$0xff]  ;;  %v9994_v51 = vld [vmem:[%s20437_s5 + $0x58] sm:$0xff] }
 0x5d7   : > { %15023 = vmatpush3.bf16.msra.mxu1 %v15020_v6  ;;  %v9851_v50 = vsel %vm6071_vm7, %v9843_v52, %v9839_v38  ;;  %vm9771_vm7 = vcmask 780801   ;;  %v9995_v29 = vld [vmem:[%s20437_s5 + $0x60] sm:$0xff]  ;;  %v9997_v41 = vld [vmem:[%s20437_s5 + $0x70] sm:$0xff]  ;;  %v12360_v26 = vld [vmem:[%s20437_s5 + $0x108] sm:$0xff] }
 0x5d8   : > { %15025 = vmatprep.subr.bf16.mxu1 %v15024_v30  ;;  %v12361_v39 = vld [vmem:[%s20437_s5 + $0x110] sm:$0xff] }
 0x5da   : > { %9854 = vrot.lane.b32.xlu0 %v9845_v49, %s15883_s12  ;;  %9759 = vrot.lane.b32.xlu1 %v9745_v27, %s15886_s25  ;;  %v9988_v49 = vld [vmem:[%s20437_s5 + $0x28] sm:$0xff]  ;;  %v15060_v27 = vpack.c.bf16 %v9992_v28, %v9991_v14  ;;  %v12385_v14 = vld [vmem:[%s20437_s5 + $0x1d0] sm:$0xff] }
 0x5db   : > { %15027 = vmatpush3.bf16.msra.mxu1 %v15024_v30  ;;  %v12386_v28 = vld [vmem:[%s20437_s5 + $0x1d8] sm:$0xff] }
 0x5dc   : > { %15029 = vmatprep.subr.bf16.mxu1 %v15028_v60 }
 0x5de   : > { %9862 = vrot.lane.b32.xlu0 %v9849_v13, %s15883_s12  ;;  %9858 = vrot.lane.b32.xlu1 %v9847_v1, %s15883_s12  ;;  %v15064_v13 = vpack.c.bf16 %v9994_v51, %v9993_v34  ;;  %v9998_v1 = vld [vmem:[%s20437_s5 + $0x78] sm:$0xff]  ;;  %v12387_v34 = vld [vmem:[%s20437_s5 + $0x1e0] sm:$0xff] }
 0x5df   : > { %15031 = vmatpush3.bf16.msra.mxu1 %v15028_v60  ;;  %v15072_v52 = vpack.c.bf16 %v9998_v1, %v9997_v41  ;;  %v12388_v51 = vld [vmem:[%s20437_s5 + $0x1e8] sm:$0xff]  ;;  %v12416_v1 = vld [vmem:[%s20439_s7 + $0x180] sm:$0xff] }
 0x5e0   : > { %15033 = vmatprep.subr.bf16.mxu1 %v15032_v33 }
 0x5e2   : > { %9866 = vrot.lane.b32.xlu1 %v9851_v50, %s15883_s12 }
 0x5e3   : > { %15035 = vmatpush3.bf16.msra.mxu1 %v15032_v33  ;;  %v9996_v33 = vld [vmem:[%s20437_s5 + $0x68] sm:$0xff] }
 0x5e4   : > { %15037 = vmatprep.subr.bf16.mxu1 %v15036_v16  ;;  %v15068_v55 = vpack.c.bf16 %v9996_v33, %v9995_v29  ;;  %v12389_v29 = vld [vmem:[%s20437_s5 + $0x1f0] sm:$0xff]  ;;  %v12390_v33 = vld [vmem:[%s20437_s5 + $0x1f8] sm:$0xff] }
 0x5e7   : > { %15039 = vmatpush3.bf16.msra.mxu1 %v15036_v16  ;;  %v12359_v16 = vld [vmem:[%s20437_s5 + $0x100] sm:$0xff] }
 0x5e8   : > { %15041 = vmatprep.subr.bf16.mxu1 %v15040_v57  ;;  %v15076_v43 = vpack.c.bf16 %v12360_v26, %v12359_v16  ;;  %v12400_v26 = vld [vmem:[%s20439_s7 + $0x100] sm:$0xff] }
 0x5eb   : > { %15043 = vmatpush3.bf16.msra.mxu1 %v15040_v57 }
 0x5ec   : > { %15045 = vmatprep.subr.bf16.mxu1 %v19787_v12 }
 0x624   : > { %v9645_v42 = vpop.permute.xlu0 %9644 }
 0x625   : > { %9668 = vst.msk [vmem:[#allocation3 + $0x4] sm:$0x3] %vm9666_vm5, %v9645_v42 }
 0x628   : > { %v9750_v11 = vpop.permute.xlu0 %9749  ;;  %v9649_v2 = vpop.permute.xlu1 %9648 }
 0x629   : > { %9773 = vst.msk [vmem:[#allocation3 + $0x4] sm:$0x6] %vm9771_vm7, %v9750_v11 }
 0x62a   : > { %9670 = vst.msk [vmem:[#allocation3 + $0x10] sm:$0x3] %vm9666_vm5, %v9649_v2 }
 0x62c   : > { %v9643_v4 = vpop.permute.xlu0 %9642  ;;  %v9754_v10 = vpop.permute.xlu1 %9753 }
 0x62d   : > { %9667 = vst.msk [vmem:[#allocation3] sm:$0x3] %vm9666_vm5, %v9643_v4  ;;  %v12363_v4 = vld [vmem:[%s20437_s5 + $0x120] sm:$0xff] }
 0x62e   : > { %9775 = vst.msk [vmem:[#allocation3 + $0x10] sm:$0x6] %vm9771_vm7, %v9754_v10  ;;  %v12364_v10 = vld [vmem:[%s20437_s5 + $0x128] sm:$0xff] }
 0x630   : > { %v9748_v23 = vpop.permute.xlu0 %9747  ;;  %v9647_v58 = vpop.permute.xlu1 %9646 }
 0x631   : > { %9772 = vst.msk [vmem:[#allocation3] sm:$0x6] %vm9771_vm7, %v9748_v23  ;;  %v15084_v23 = vpack.c.bf16 %v12364_v10, %v12363_v4  ;;  %v12421_v4 = vld [vmem:[%s20439_s7 + $0x1a8] sm:$0xff] }
 0x632   : > { %9669 = vst.msk [vmem:[#allocation3 + $0xc] sm:$0x3] %vm9666_vm5, %v9647_v58  ;;  %v12365_v58 = vld [vmem:[%s20437_s5 + $0x130] sm:$0xff] }
 0x634   : > { %v9853_v21 = vpop.permute.xlu0 %9852  ;;  %v9752_v40 = vpop.permute.xlu1 %9751 }
 0x635   : > { %9878 = vst.msk [vmem:[#allocation3 + $0x4] sm:$0x3] %vm9877_vm14, %v9853_v21  ;;  %v12366_v21 = vld [vmem:[%s20437_s5 + $0x138] sm:$0xff] }
 0x636   : > { %9967 = vst.msk [vmem:[#allocation3 + $0x4] sm:$0x6] %vm9966_vm15, %v19653_v35 }
 0x637   : > { %9774 = vst.msk [vmem:[#allocation3 + $0xc] sm:$0x6] %vm9771_vm7, %v9752_v40  ;;  %v15088_v40 = vpack.c.bf16 %v12366_v21, %v12365_v58  ;;  %v12404_v58 = vld [vmem:[%s20439_s7 + $0x120] sm:$0xff]  ;;  %v12405_v21 = vld [vmem:[%s20439_s7 + $0x128] sm:$0xff] }
 0x638   : > { %v9653_v7 = vpop.permute.xlu0 %9652  ;;  %v9857_v18 = vpop.permute.xlu1 %9856 }
 0x639   : > { %9672 = vst.msk [vmem:[#allocation3 + $0x1c] sm:$0x3] %vm9666_vm5, %v9653_v7  ;;  %v12367_v7 = vld [vmem:[%s20437_s5 + $0x140] sm:$0xff] }
 0x63a   : > { %9880 = vst.msk [vmem:[#allocation3 + $0x10] sm:$0x3] %vm9877_vm14, %v9857_v18  ;;  %v12368_v18 = vld [vmem:[%s20437_s5 + $0x148] sm:$0xff] }
 0x63b   : > { %9969 = vst.msk [vmem:[#allocation3 + $0x10] sm:$0x6] %vm9966_vm15, %v19659_v8 }
 0x63c   : > { %v9758_v32 = vpop.permute.xlu0 %9757  ;;  %v9657_v17 = vpop.permute.xlu1 %9656 }
 0x63d   : > { %9777 = vst.msk [vmem:[#allocation3 + $0x1c] sm:$0x6] %vm9771_vm7, %v9758_v32  ;;  %v15856_v35 = vld.sshfl [vmem:[#allocation3 + $0x1] sm:$0xf pattern:$0x76325410]  ;;  %v15092_v32 = vpack.c.bf16 %v12368_v18, %v12367_v7 }
 0x63e   : > { %9674 = vst.msk [vmem:[#allocation3 + $0x28] sm:$0x3] %vm9666_vm5, %v9657_v17  ;;  %v15861_v30 = vld.sshfl [vmem:[#allocation3] sm:$0xf pattern:$0x76325410] }
 0x63f   : > { %v12369_v17 = vld [vmem:[%s20437_s5 + $0x150] sm:$0xff]  ;;  %v12423_v18 = vld [vmem:[%s20439_s7 + $0x1b8] sm:$0xff] }
 0x640   : > { %v9651_v48 = vpop.permute.xlu0 %9650  ;;  %v9762_v59 = vpop.permute.xlu1 %9761  ;;  %v12422_v7 = vld [vmem:[%s20439_s7 + $0x1b0] sm:$0xff] }
 0x641   : > { %9671 = vst.msk [vmem:[#allocation3 + $0x18] sm:$0x3] %vm9666_vm5, %v9651_v48  ;;  %v12370_v48 = vld [vmem:[%s20437_s5 + $0x158] sm:$0xff] }
 0x642   : > { %9779 = vst.msk [vmem:[#allocation3 + $0x28] sm:$0x6] %vm9771_vm7, %v9762_v59  ;;  %v15857_v6 = vld.sshfl [vmem:[#allocation3 + $0xd] sm:$0xf pattern:$0x76325410] }
 0x643   : > { %v10048_v63 = vcombine.low %v15856_v35, %v15857_v6  ;;  %v15858_v36 = vld.sshfl [vmem:[#allocation3 + $0xc] sm:$0xf pattern:$0x76325410]  ;;  %v15096_v35 = vpack.c.bf16 %v12370_v48, %v12369_v17  ;;  %v12372_v6 = vld [vmem:[%s20437_s5 + $0x168] sm:$0xff]  ;;  %v15152_v17 = vpack.c.bf16 %v12423_v18, %v12422_v7 }
 0x644   : > { %v9861_v0 = vpop.permute.xlu0 %9860  ;;  %v9655_v8 = vpop.permute.xlu1 %9654  ;;  %v10167_v5 = vcombine.low %v15861_v30, %v15858_v36  ;;  %v12371_v59 = vld [vmem:[%s20437_s5 + $0x160] sm:$0xff]  ;;  %v12377_v30 = vld [vmem:[%s20437_s5 + $0x190] sm:$0xff]  ;;  %v12407_v48 = vld [vmem:[%s20439_s7 + $0x138] sm:$0xff] }
 0x645   : > { %9882 = vst.msk [vmem:[#allocation3 + $0x1c] sm:$0x3] %vm9877_vm14, %v9861_v0  ;;  %14520 = vmatprep.mubr.f32.mxu1 %v10048_v63  ;;  %v15100_v0 = vpack.c.bf16 %v12372_v6, %v12371_v59  ;;  %v12374_v63 = vld [vmem:[%s20437_s5 + $0x178] sm:$0xff]  ;;  %v12424_v59 = vld [vmem:[%s20439_s7 + $0x1c0] sm:$0xff]  ;;  %v12425_v6 = vld [vmem:[%s20439_s7 + $0x1c8] sm:$0xff] }
 0x646   : > { %9971 = vst.msk [vmem:[#allocation3 + $0x1c] sm:$0x6] %vm9966_vm15, %v19673_v37 }
 0x647   : > { %9673 = vst.msk [vmem:[#allocation3 + $0x24] sm:$0x3] %vm9666_vm5, %v9655_v8  ;;  %v12373_v8 = vld [vmem:[%s20437_s5 + $0x170] sm:$0xff] }
 0x648   : > { %v9756_v47 = vpop.permute.xlu0 %9755  ;;  %v9865_v15 = vpop.permute.xlu1 %9864 }
 0x649   : > { %9776 = vst.msk [vmem:[#allocation3 + $0x18] sm:$0x6] %vm9771_vm7, %v9756_v47  ;;  %v15104_v47 = vpack.c.bf16 %v12374_v63, %v12373_v8  ;;  %v15156_v8 = vpack.c.bf16 %v12425_v6, %v12424_v59  ;;  %v12409_v63 = vld [vmem:[%s20439_s7 + $0x148] sm:$0xff] }
 0x64a   : > { %9884 = vst.msk [vmem:[#allocation3 + $0x28] sm:$0x3] %vm9877_vm14, %v9865_v15 }
 0x64b   : > { %9973 = vst.msk [vmem:[#allocation3 + $0x28] sm:$0x6] %vm9966_vm15, %v19679_v25 }
 0x64c   : > { %v9855_v9 = vpop.permute.xlu0 %9854  ;;  %v9760_v37 = vpop.permute.xlu1 %9759 }
 0x64d   : > { %9879 = vst.msk [vmem:[#allocation3 + $0x8] sm:$0x3] %vm9877_vm14, %v9855_v9  ;;  %v12375_v9 = vld [vmem:[%s20437_s5 + $0x180] sm:$0xff] }
 0x64e   : > { %9968 = vst.msk [vmem:[#allocation3 + $0x8] sm:$0x6] %vm9966_vm15, %v19685_v61 }
 0x64f   : > { %9778 = vst.msk [vmem:[#allocation3 + $0x24] sm:$0x6] %vm9771_vm7, %v9760_v37  ;;  %v12376_v37 = vld [vmem:[%s20437_s5 + $0x188] sm:$0xff] }
 0x650   : > { %v9863_v62 = vpop.permute.xlu0 %9862  ;;  %v9859_v45 = vpop.permute.xlu1 %9858  ;;  %v15859_v25 = vld.sshfl [vmem:[#allocation3 + $0x19] sm:$0xf pattern:$0x76325410] }
 0x651   : > { %9883 = vst.msk [vmem:[#allocation3 + $0x20] sm:$0x3] %vm9877_vm14, %v9863_v62  ;;  %9881 = vst.msk [vmem:[#allocation3 + $0x14] sm:$0x3] %vm9877_vm14, %v9859_v45 }
 0x652   : > { %9972 = vst.msk [vmem:[#allocation3 + $0x20] sm:$0x6] %vm9966_vm15, %v19694_v24  ;;  %9970 = vst.msk [vmem:[#allocation3 + $0x14] sm:$0x6] %vm9966_vm15, %v19700_v19  ;;  %v9986_v24 = vld [vmem:[%s20437_s5 + $0x18] sm:$0xff]  ;;  %v9987_v19 = vld [vmem:[%s20437_s5 + $0x20] sm:$0xff] }
 0x653   : > { %v15048_v22 = vpack.c.bf16 %v9986_v24, %v9985_v20  ;;  %v15052_v3 = vpack.c.bf16 %v9988_v49, %v9987_v19  ;;  %v15864_v50 = vld.sshfl [vmem:[#allocation3 + $0x18] sm:$0xf pattern:$0x76325410]  ;;  %v12382_v49 = vld [vmem:[%s20437_s5 + $0x1b8] sm:$0xff] }
 0x654   : > { %v9867_v56 = vpop.permute.xlu1 %9866 }
 0x655   : > { %9885 = vst.msk [vmem:[#allocation3 + $0x2c] sm:$0x3] %vm9877_vm14, %v9867_v56  ;;  %v15865_v57 = vld.sshfl [vmem:[#allocation3 + $0x4] sm:$0xf pattern:$0x76325410] }
 0x656   : > { %v15860_v61 = vld.sshfl [vmem:[#allocation3 + $0x25] sm:$0xf pattern:$0x76325410]  ;;  %9974 = vst.msk [vmem:[#allocation3 + $0x2c] sm:$0x6] %vm9966_vm15, %v19706_v31 }
 0x657   : > { %v10065_v44 = vcombine.low %v15859_v25, %v15860_v61  ;;  %v9989_v31 = vld [vmem:[%s20437_s5 + $0x30] sm:$0xff]  ;;  %v15108_v25 = vpack.c.bf16 %v12376_v37, %v12375_v9  ;;  %v12378_v56 = vld [vmem:[%s20437_s5 + $0x198] sm:$0xff] }
 0x658   : > { %v15056_v60 = vpack.c.bf16 %v9990_v46, %v9989_v31  ;;  %v15862_v38 = vld.sshfl [vmem:[#allocation3 + $0x24] sm:$0xf pattern:$0x76325410]  ;;  %v15112_v20 = vpack.c.bf16 %v12378_v56, %v12377_v30  ;;  %v12383_v31 = vld [vmem:[%s20437_s5 + $0x1c0] sm:$0xff]  ;;  %v12384_v46 = vld [vmem:[%s20437_s5 + $0x1c8] sm:$0xff] }
 0x659   : > { %14521 = vmatmul.mubr.f32.vlgmr.msra.gmra.mrb[40].mxu1 %v10065_v44  ;;  %v15863_v54 = vld.sshfl [vmem:[#allocation3 + $0x10] sm:$0xf pattern:$0x76325410]  ;;  %v10184_v42 = vcombine.low %v15864_v50, %v15862_v38  ;;  %v12427_v9 = vld [vmem:[%s20439_s7 + $0x1d8] sm:$0xff]  ;;  %v12410_v37 = vld [vmem:[%s20439_s7 + $0x150] sm:$0xff] }
 0x65a   : > { %15047 = vmatpush3.bf16.msra.mxu1 %v19787_v12  ;;  %14555 = vmatprep.mubr.f32.mxu1 %v10167_v5  ;;  %v12362_v12 = vld [vmem:[%s20437_s5 + $0x118] sm:$0xff]  ;;  %v10311_v2 = vcombine.low %v15865_v57, %v15863_v54  ;;  %v15867_v62 = vld.sshfl [vmem:[#allocation3 + $0x11] sm:$0xf pattern:$0x76325410]  ;;  %v12381_v5 = vld [vmem:[%s20437_s5 + $0x1b0] sm:$0xff] }
 0x65b   : > { %15049 = vmatprep.subr.bf16.mxu1 %v15048_v22  ;;  %v15080_v11 = vpack.c.bf16 %v12362_v12, %v12361_v39  ;;  %v15868_v45 = vld.sshfl [vmem:[#allocation3 + $0x1c] sm:$0xf pattern:$0x76325410]  ;;  %v12379_v44 = vld [vmem:[%s20437_s5 + $0x1a0] sm:$0xff]  ;;  %v12419_v39 = vld [vmem:[%s20439_s7 + $0x198] sm:$0xff] }
 0x65c   : > { %v15869_v36 = vld.sshfl [vmem:[#allocation3 + $0x5] sm:$0xf pattern:$0x76325410]  ;;  %v12401_v54 = vld [vmem:[%s20439_s7 + $0x108] sm:$0xff]  ;;  %v12412_v56 = vld [vmem:[%s20439_s7 + $0x160] sm:$0xff] }
 0x65d   : > { %v15866_v15 = vld.sshfl [vmem:[#allocation3 + $0x28] sm:$0xf pattern:$0x76325410]  ;;  %v10457_v24 = vcombine.low %v15869_v36, %v15867_v62  ;;  %v15142_v50 = vpack.c.bf16 %v12401_v54, %v12400_v26  ;;  %v12402_v12 = vld [vmem:[%s20439_s7 + $0x110] sm:$0xff]  ;;  %v12429_v30 = vld [vmem:[%s20439_s7 + $0x1e8] sm:$0xff] }
 0x65e   : > { %15051 = vmatpush3.bf16.msra.mxu1 %v15048_v22  ;;  %v10328_v61 = vcombine.low %v15868_v45, %v15866_v15  ;;  %v12380_v22 = vld [vmem:[%s20437_s5 + $0x1a8] sm:$0xff]  ;;  %v15870_v41 = vld.sshfl [vmem:[#allocation3 + $0x29] sm:$0xf pattern:$0x76325410]  ;;  %v12426_v15 = vld [vmem:[%s20439_s7 + $0x1d0] sm:$0xff] }
 0x65f   : > { %15053 = vmatprep.subr.bf16.mxu1 %v15052_v3  ;;  %v15116_v19 = vpack.c.bf16 %v12380_v22, %v12379_v44  ;;  %v15871_v38 = vld.sshfl [vmem:[#allocation3 + $0x1d] sm:$0xf pattern:$0x76325410]  ;;  %v15160_v62 = vpack.c.bf16 %v12427_v9, %v12426_v15  ;;  %v12411_v45 = vld [vmem:[%s20439_s7 + $0x158] sm:$0xff] }
 0x660   : > { %v10474_v57 = vcombine.low %v15871_v38, %v15870_v41  ;;  %v15162_v36 = vpack.c.bf16 %v12411_v45, %v12410_v37  ;;  %v12431_v44 = vld [vmem:[%s20439_s7 + $0x1f8] sm:$0xff]  ;;  %v10697_v9 = vld [vmem:[%s20439_s7 + $0x90] sm:$0xff] }
 0x661   : > { %v10698_v37 = vld [vmem:[%s20439_s7 + $0x98] sm:$0xff] }
 0x662   : > { %15055 = vmatpush3.bf16.msra.mxu1 %v15052_v3  ;;  %v15120_v3 = vpack.c.bf16 %v12382_v49, %v12381_v5  ;;  %v12414_v5 = vld [vmem:[%s20439_s7 + $0x170] sm:$0xff]  ;;  %v12415_v49 = vld [vmem:[%s20439_s7 + $0x178] sm:$0xff] }
 0x663   : > { %15057 = vmatprep.subr.bf16.mxu1 %v15056_v60 }
 0x666   : > { %15059 = vmatpush3.bf16.msra.mxu1 %v15056_v60  ;;  %v15124_v60 = vpack.c.bf16 %v12384_v46, %v12383_v31  ;;  %v10695_v31 = vld [vmem:[%s20439_s7 + $0x80] sm:$0xff]  ;;  %v10696_v46 = vld [vmem:[%s20439_s7 + $0x88] sm:$0xff] }
 0x667   : > { %15061 = vmatprep.subr.bf16.mxu1 %v15060_v27 }
 0x66a   : > { %15063 = vmatpush3.bf16.msra.mxu1 %v15060_v27  ;;  %v15128_v27 = vpack.c.bf16 %v12386_v28, %v12385_v14  ;;  %v12391_v14 = vld [vmem:[%s20438_s6] ss:$0 sm:$0xff] }
 0x66b   : > { %15065 = vmatprep.subr.bf16.mxu1 %v15064_v13 }
 0x66e   : > { %15067 = vmatpush3.bf16.msra.mxu1 %v15064_v13  ;;  %v15132_v13 = vpack.c.bf16 %v12388_v51, %v12387_v34 }
 0x66f   : > { %15069 = vmatprep.subr.bf16.mxu1 %v15068_v55 }
 0x672   : > { %15071 = vmatpush3.bf16.msra.mxu1 %v15068_v55  ;;  %v15136_v55 = vpack.c.bf16 %v12390_v33, %v12389_v29 }
 0x673   : > { %15073 = vmatprep.subr.bf16.mxu1 %v15072_v52 }
 0x676   : > { %15075 = vmatpush3.bf16.msra.mxu1 %v15072_v52  ;;  %v12417_v52 = vld [vmem:[%s20439_s7 + $0x188] sm:$0xff] }
 0x677   : > { %15077 = vmatprep.subr.bf16.mxu1 %v15076_v43  ;;  %v15140_v16 = vpack.c.bf16 %v12417_v52, %v12416_v1 }
 0x679   : > { %14556 = vmatmul.mubr.f32.vlgmr.msra.gmra.mrb[40].mxu1 %v10184_v42 }
 0x67a   : > { %15079 = vmatpush3.bf16.msra.mxu1 %v15076_v43  ;;  %14590 = vmatprep.mubr.f32.mxu1 %v10311_v2  ;;  %v12418_v43 = vld [vmem:[%s20439_s7 + $0x190] sm:$0xff]  ;;  %v12420_v2 = vld [vmem:[%s20439_s7 + $0x1a0] sm:$0xff] }
 0x67b   : > { %15081 = vmatprep.subr.bf16.mxu1 %v15080_v11  ;;  %v15144_v42 = vpack.c.bf16 %v12419_v39, %v12418_v43 }
 0x67e   : > { %15083 = vmatpush3.bf16.msra.mxu1 %v15080_v11  ;;  %v12403_v11 = vld [vmem:[%s20439_s7 + $0x118] sm:$0xff] }
 0x67f   : > { %15085 = vmatprep.subr.bf16.mxu1 %v15084_v23  ;;  %v15146_v10 = vpack.c.bf16 %v12403_v11, %v12402_v12  ;;  %v15887_v11 = vmov 1966171168  }
 0x682   : > { %15087 = vmatpush3.bf16.msra.mxu1 %v15084_v23  ;;  %v15148_v23 = vpack.c.bf16 %v12421_v4, %v12420_v2  ;;  %v10759_v2 = vunpack.c.l.s4 %v15887_v11  ;;  %v10693_v11 = vld [vmem:[%s20439_s7 + $0x70] sm:$0xff] }
 0x683   : > { %15089 = vmatprep.subr.bf16.mxu1 %v15088_v40 }
 0x686   : > { %15091 = vmatpush3.bf16.msra.mxu1 %v15088_v40  ;;  %v15150_v40 = vpack.c.bf16 %v12405_v21, %v12404_v58  ;;  %v10760_v21 = vunpack.c.0.s8 %v10759_v2  ;;  %v10694_v2 = vld [vmem:[%s20439_s7 + $0x78] sm:$0xff] }
 0x687   : > { %15093 = vmatprep.subr.bf16.mxu1 %v15092_v32 }
 0x68a   : > { %15095 = vmatpush3.bf16.msra.mxu1 %v15092_v32  ;;  %v12406_v32 = vld [vmem:[%s20439_s7 + $0x130] sm:$0xff] }
 0x68b   : > { %15097 = vmatprep.subr.bf16.mxu1 %v15096_v35 }
 0x68e   : > { %15099 = vmatpush3.bf16.msra.mxu1 %v15096_v35  ;;  %v15154_v35 = vpack.c.bf16 %v12407_v48, %v12406_v32 }
 0x68f   : > { %15101 = vmatprep.subr.bf16.mxu1 %v15100_v0 }
 0x692   : > { %15103 = vmatpush3.bf16.msra.mxu1 %v15100_v0  ;;  %v12408_v0 = vld [vmem:[%s20439_s7 + $0x140] sm:$0xff] }
 0x693   : > { %15105 = vmatprep.subr.bf16.mxu1 %v15104_v47 }
 0x696   : > { %15107 = vmatpush3.bf16.msra.mxu1 %v15104_v47  ;;  %v15158_v47 = vpack.c.bf16 %v12409_v63, %v12408_v0  ;;  %v10680_v63 = vld [vmem:[%s20439_s7 + $0x8] sm:$0xff] }
 0x697   : > { %15109 = vmatprep.subr.bf16.mxu1 %v15108_v25 }
 0x699   : > { %14591 = vmatmul.mubr.f32.vlgmr.msra.gmra.mrb[40].mxu1 %v10328_v61 }
 0x69a   : > { %15111 = vmatpush3.bf16.msra.mxu1 %v15108_v25  ;;  %14625 = vmatprep.mubr.f32.mxu1 %v10457_v24  ;;  %v12428_v25 = vld [vmem:[%s20439_s7 + $0x1e0] sm:$0xff]  ;;  %v12430_v24 = vld [vmem:[%s20439_s7 + $0x1f0] sm:$0xff] }
 0x69b   : > { %15113 = vmatprep.subr.bf16.mxu1 %v15112_v20  ;;  %v15164_v61 = vpack.c.bf16 %v12429_v30, %v12428_v25  ;;  %v15176_v25 = vpack.c.bf16 %v10698_v37, %v10697_v9  ;;  %v10681_v30 = vld [vmem:[%s20439_s7 + $0x10] sm:$0xff]  ;;  %v12432_v37 = vld [vmem:[%s20439_s7 + $0x200] sm:$0xff] }
 0x69e   : > { %15115 = vmatpush3.bf16.msra.mxu1 %v15112_v20  ;;  %v12413_v20 = vld [vmem:[%s20439_s7 + $0x168] sm:$0xff] }
 0x69f   : > { %15117 = vmatprep.subr.bf16.mxu1 %v15116_v19  ;;  %v15166_v22 = vpack.c.bf16 %v12413_v20, %v12412_v56  ;;  %v10682_v56 = vld [vmem:[%s20439_s7 + $0x18] sm:$0xff]  ;;  %v10700_v20 = vld [vmem:[%s20439_s7 + $0xa8] sm:$0xff] }
 0x6a2   : > { %15119 = vmatpush3.bf16.msra.mxu1 %v15116_v19  ;;  %v15168_v19 = vpack.c.bf16 %v12431_v44, %v12430_v24  ;;  %v15178_v24 = vpack.c.bf16 %v10682_v56, %v10681_v30  ;;  %v12450_v30 = vld [vmem:[%s20439_s7 + $0x290] sm:$0xff]  ;;  %v12451_v56 = vld [vmem:[%s20439_s7 + $0x298] sm:$0xff] }
 0x6a3   : > { %15121 = vmatprep.subr.bf16.mxu1 %v15120_v3 }
 0x6a6   : > { %15123 = vmatpush3.bf16.msra.mxu1 %v15120_v3  ;;  %v15170_v3 = vpack.c.bf16 %v12415_v49, %v12414_v5  ;;  %v10701_v5 = vld [vmem:[%s20439_s7 + $0xb0] sm:$0xff]  ;;  %v10702_v49 = vld [vmem:[%s20439_s7 + $0xb8] sm:$0xff] }
 0x6a7   : > { %15125 = vmatprep.subr.bf16.mxu1 %v15124_v60 }
 0x6aa   : > { %15127 = vmatpush3.bf16.msra.mxu1 %v15124_v60  ;;  %v15172_v60 = vpack.c.bf16 %v10696_v46, %v10695_v31  ;;  %v15184_v31 = vpack.c.bf16 %v10702_v49, %v10701_v5  ;;  %v10685_v46 = vld [vmem:[%s20439_s7 + $0x30] sm:$0xff]  ;;  %v15208_v49 = vpack.c.bf16 %v12451_v56, %v12450_v30 }
 0x6ab   : > { %15129 = vmatprep.subr.bf16.mxu1 %v15128_v27 }
 0x6ae   : > { %15131 = vmatpush3.bf16.msra.mxu1 %v15128_v27 }
 0x6af   : > { %15133 = vmatprep.subr.bf16.mxu1 %v15132_v13 }
 0x6b2   : > { %15135 = vmatpush3.bf16.msra.mxu1 %v15132_v13 }
 0x6b3   : > { %15137 = vmatprep.subr.bf16.mxu1 %v15136_v55 }
 0x6b6   : > { %15139 = vmatpush3.bf16.msra.mxu1 %v15136_v55 }
 0x6b7   : > { %15141 = vmatprep.subr.bf16.mxu1 %v15140_v16 }
 0x6b9   : > { %14626 = vmatmul.mubr.f32.vlgmr.msra.gmra.mrb[40].mxu1 %v10474_v57 }
 0x6ba   : > { %15143 = vmatpush3.bf16.msra.mxu1 %v15142_v50 }
 0x6bb   : > { %15145 = vmatprep.subr.bf16.mxu1 %v15144_v42 }
 0x6be   : > { %15147 = vmatpush3.bf16.msra.mxu1 %v15146_v10 }
 0x6bf   : > { %15149 = vmatprep.subr.bf16.mxu1 %v15148_v23 }
 0x6c2   : > { %15151 = vmatpush3.bf16.msra.mxu1 %v15150_v40  ;;  %v20655_v40 = vld [vmem:[#allocation9_spill] sm:$0xff] }
 0x6c3   : > { %15153 = vmatprep.subr.bf16.mxu1 %v15152_v17  ;;  %v20092_v7 = vsub.s32 %v10760_v21, %v20655_v40 }
 0x6c6   : > { %15155 = vmatpush3.bf16.msra.mxu1 %v15154_v35 }
 0x6c7   : > { %15157 = vmatprep.subr.bf16.mxu1 %v15156_v8  ;;  %v10679_v8 = vld [vmem:[%s20439_s7] sm:$0xff] }
 0x6ca   : > { %15159 = vmatpush3.bf16.msra.mxu1 %v15158_v47 }
 0x6cb   : > { %15161 = vmatprep.subr.bf16.mxu1 %v15160_v62 }
 0x6ce   : > { %15163 = vmatpush3.bf16.msra.mxu1 %v15162_v36  ;;  %v15174_v36 = vpack.c.bf16 %v10680_v63, %v10679_v8 }
 0x6cf   : > { %15165 = vmatprep.subr.bf16.mxu1 %v15164_v61  ;;  %v10699_v61 = vld [vmem:[%s20439_s7 + $0xa0] sm:$0xff] }
 0x6d0   : > { %v15180_v44 = vpack.c.bf16 %v10700_v20, %v10699_v61 }
 0x6d2   : > { %15167 = vmatpush3.bf16.msra.mxu1 %v15166_v22  ;;  %v10683_v22 = vld [vmem:[%s20439_s7 + $0x20] sm:$0xff] }
 0x6d3   : > { %15169 = vmatprep.subr.bf16.mxu1 %v15168_v19  ;;  %v10684_v19 = vld [vmem:[%s20439_s7 + $0x28] sm:$0xff] }
 0x6d6   : > { %15171 = vmatpush3.bf16.msra.mxu1 %v15170_v3  ;;  %v15182_v3 = vpack.c.bf16 %v10684_v19, %v10683_v22  ;;  %v12434_v22 = vld [vmem:[%s20439_s7 + $0x210] sm:$0xff]  ;;  %v12435_v19 = vld [vmem:[%s20439_s7 + $0x218] sm:$0xff] }
 0x6d7   : > { %15173 = vmatprep.subr.bf16.mxu1 %v15172_v60  ;;  %v10686_v60 = vld [vmem:[%s20439_s7 + $0x38] sm:$0xff] }
 0x78c   : > { %v14627_v28 = vpop.f32.mrb[40].mxu1 }
 0x78d   : > { %v10562_v27 = vadd.f32 %v14627_v28, %v12391_v14  ;;  %v10543_v34 = vpop.f32.mrb[41].mxu1  ;;  %v10704_v28 = vld [vmem:[%s20439_s7 + $0xc8] sm:$0xff] }
 0x78e   : > { %v10561_v51 = vadd.f32 %v12391_v14, %v10543_v34  ;;  %v10703_v14 = vld [vmem:[%s20439_s7 + $0xc0] sm:$0xff] }
 0x78f   : > { %vm10564_vm1 = vcmp.ge.f32.partialorder %v10562_v27, 0.0  ;;  %v10566_v13 = vmul.f32 0.2, %v10562_v27  ;;  %v15188_v34 = vpack.c.bf16 %v10704_v28, %v10703_v14  ;;  %v15210_v28 = vpack.c.bf16 %v12435_v19, %v12434_v22  ;;  %v12482_v22 = vld [vmem:[%s20439_s7 + $0x390] sm:$0xff]  ;;  %v12483_v19 = vld [vmem:[%s20439_s7 + $0x398] sm:$0xff] }
 0x790   : > { %vm10563_vm2 = vcmp.ge.f32.partialorder %v10561_v51, 0.0  ;;  %v10565_v29 = vmul.f32 0.2, %v10561_v51 }
 0x791   : > { %v10568_v33 = vsel %vm10564_vm1, %v10562_v27, %v10566_v13  ;;  %v15186_v27 = vpack.c.bf16 %v10686_v60, %v10685_v46  ;;  %v10688_v13 = vld [vmem:[%s20439_s7 + $0x48] sm:$0xff]  ;;  %v12452_v46 = vld [vmem:[%s20439_s7 + $0x2a0] sm:$0xff] }
 0x792   : > { %v10567_v55 = vsel %vm10563_vm2, %v10561_v51, %v10565_v29  ;;  %v10595_v41 = vrot.slane %v10568_v33, %v20654_v53  ;;  %v10588_v1 = vcombine.high %v10568_v33, %v10568_v33  ;;  %v10687_v51 = vld [vmem:[%s20439_s7 + $0x40] sm:$0xff]  ;;  %v10705_v29 = vld [vmem:[%s20439_s7 + $0xd0] sm:$0xff]  ;;  %v10706_v33 = vld [vmem:[%s20439_s7 + $0xd8] sm:$0xff] }
 0x793   : > { %v10578_v52 = vrot.slane %v10567_v55, %v20654_v53  ;;  %v10571_v38 = vcombine.high %v10567_v55, %v10567_v55  ;;  %v15190_v55 = vpack.c.bf16 %v10688_v13, %v10687_v51  ;;  %v12453_v60 = vld [vmem:[%s20439_s7 + $0x2a8] sm:$0xff]  ;;  %v12436_v13 = vld [vmem:[%s20439_s7 + $0x220] sm:$0xff] }
 0x794   : > { %v12394_v16 = vrot.slane %v10595_v41, 9  ;;  %v10602_v26 = vrot.slane %v10588_v1, %v20654_v53  ;;  %v10603_v54 = vcombine.high %v10595_v41, %v10595_v41  ;;  %v10689_v1 = vld [vmem:[%s20439_s7 + $0x50] sm:$0xff]  ;;  %v15212_v51 = vpack.c.bf16 %v12453_v60, %v12452_v46  ;;  %v12467_v46 = vld [vmem:[%s20439_s7 + $0x318] sm:$0xff] }
 0x795   : > { %10605 = vrot.lane.b32.xlu0 %v10578_v52, %s15886_s25  ;;  %v12392_v50 = vrot.slane %v10578_v52, 9  ;;  %v10585_v57 = vrot.slane %v10571_v38, %v20654_v53  ;;  %v10586_v43 = vcombine.high %v10578_v52, %v10578_v52  ;;  %v10690_v52 = vld [vmem:[%s20439_s7 + $0x58] sm:$0xff]  ;;  %v10707_v38 = vld [vmem:[%s20439_s7 + $0xe0] sm:$0xff] }
 0x796   : > { %10637 = vst.msk [vmem:[#allocation4 + $0x13] sm:$0x1] %vm10634_vm3, %v12394_v16  ;;  %v12395_v39 = vrot.slane %v10602_v26, 9  ;;  %v12398_v12 = vrot.slane %v10603_v54, 9  ;;  %v10604_v42 = vcombine.high %v10602_v26, %v10602_v26  ;;  %v10708_v16 = vld [vmem:[%s20439_s7 + $0xe8] sm:$0xff] }
 0x797   : > { %10635 = vst.msk [vmem:[#allocation4 + $0x3] sm:$0x1] %vm10634_vm3, %v12392_v50  ;;  %10607 = vrot.lane.b32.xlu1 %v10585_v57, %s15886_s25  ;;  %v12393_v4 = vrot.slane %v10585_v57, 9  ;;  %v12396_v10 = vrot.slane %v10586_v43, 9  ;;  %v10587_v23 = vcombine.high %v10585_v57, %v10585_v57  ;;  %v10691_v50 = vld [vmem:[%s20439_s7 + $0x60] sm:$0xff]  ;;  %v10692_v57 = vld [vmem:[%s20439_s7 + $0x68] sm:$0xff] }
 0x798   : > { %10638 = vst.msk [vmem:[#allocation4 + $0x1b] sm:$0x1] %vm10634_vm3, %v12395_v39  ;;  %10670 = vst.msk [vmem:[#allocation4 + $0x15] sm:$0x1] %vm10634_vm3, %v12398_v12  ;;  %v12399_v53 = vrot.slane %v10604_v42, 9  ;;  %v10710_v39 = vld [vmem:[%s20439_s7 + $0xf8] sm:$0xff]  ;;  %v15198_v12 = vpack.c.bf16 %v10692_v57, %v10691_v50 }
 0x799   : > { %10636 = vst.msk [vmem:[#allocation4 + $0xb] sm:$0x1] %vm10634_vm3, %v12393_v4  ;;  %10609 = vrot.lane.b32.xlu0 %v10595_v41, %s15886_s25  ;;  %10668 = vst.msk [vmem:[#allocation4 + $0x5] sm:$0x1] %vm10634_vm3, %v12396_v10  ;;  %v12397_v58 = vrot.slane %v10587_v23, 9  ;;  %v15192_v41 = vpack.c.bf16 %v10706_v33, %v10705_v29  ;;  %v12448_v4 = vld [vmem:[%s20439_s7 + $0x280] sm:$0xff] }
 0x79a   : > { %10671 = vst.msk [vmem:[#allocation4 + $0x1d] sm:$0x1] %vm10634_vm3, %v12399_v53  ;;  %v12449_v10 = vld [vmem:[%s20439_s7 + $0x288] sm:$0xff] }
 0x79b   : > { %10611 = vrot.lane.b32.xlu1 %v10602_v26, %s15886_s25  ;;  %10669 = vst.msk [vmem:[#allocation4 + $0xd] sm:$0x1] %vm10634_vm3, %v12397_v58  ;;  %v15194_v26 = vpack.c.bf16 %v10690_v52, %v10689_v1  ;;  %v15204_v53 = vpack.c.bf16 %v12449_v10, %v12448_v4  ;;  %v12437_v29 = vld [vmem:[%s20439_s7 + $0x228] sm:$0xff]  ;;  %v12442_v10 = vld [vmem:[%s20439_s7 + $0x250] sm:$0xff] }
 0x79c   : > { %v15214_v52 = vpack.c.bf16 %v12437_v29, %v12436_v13  ;;  %v12457_v50 = vld [vmem:[%s20439_s7 + $0x2c8] sm:$0xff]  ;;  %v12486_v29 = vld [vmem:[%s20439_s7 + $0x3b0] sm:$0xff] }
 0x79d   : > { %10639 = vrot.lane.b32.xlu0 %v10586_v43, %s15886_s25  ;;  %v10716_v18 = vld [vmem:[#allocation4 + $0x11] ss:$2 sm:$0x3]  ;;  %v12469_v13 = vld [vmem:[%s20439_s7 + $0x328] sm:$0xff] }
 0x79e   : > { %v10712_v17 = vld [vmem:[#allocation4 + $0x1] ss:$2 sm:$0x3]  ;;  %v10709_v43 = vld [vmem:[%s20439_s7 + $0xf0] sm:$0xff] }
 0x79f   : > { %10641 = vrot.lane.b32.xlu1 %v10587_v23, %s15886_s25  ;;  %v10718_v32 = vld [vmem:[#allocation4 + $0x19] ss:$2 sm:$0x3]  ;;  %v15202_v23 = vpack.c.bf16 %v10694_v2, %v10693_v11 }
 0x7a0   : > { %v10714_v48 = vld [vmem:[#allocation4 + $0x9] ss:$2 sm:$0x3]  ;;  %v10757_v35 = vcombine.low %v10716_v18, %v10718_v32  ;;  %v12459_v11 = vld [vmem:[%s20439_s7 + $0x2d8] sm:$0xff] }
 0x7a1   : > { %10643 = vrot.lane.b32.xlu0 %v10603_v54, %s15886_s25  ;;  %v10756_v59 = vcombine.low %v10712_v17, %v10714_v48  ;;  %v15196_v54 = vpack.c.bf16 %v10708_v16, %v10707_v38  ;;  %v12438_v16 = vld [vmem:[%s20439_s7 + $0x230] sm:$0xff] }
 0x7a2   : > { %v10771_v6 = vrot.slane %v10757_v35, %v20092_v7 }
 0x7a3   : > { %10645 = vrot.lane.b32.xlu1 %v10604_v42, %s15886_s25  ;;  %v10764_v0 = vrot.slane %v10756_v59, %v20092_v7  ;;  %v15200_v42 = vpack.c.bf16 %v10710_v39, %v10709_v43  ;;  %v12440_v39 = vld [vmem:[%s20439_s7 + $0x240] sm:$0xff] }
 0x7a5   : > { %v10773_v47 = vcombine.high %v10764_v0, %v10771_v6  ;;  %v10772_v15 = vcombine.low %v10764_v0, %v10771_v6 }
 0x7a7   : > { %v10787_v62 = vrot.slane %v10773_v47, %v20092_v7  ;;  %v10780_v45 = vrot.slane %v10772_v15, %v20092_v7 }
 0x7a9   : > { %10854 = vmatprep.mubr.f32.mxu1 %v10787_v62  ;;  %v12433_v62 = vld [vmem:[%s20439_s7 + $0x208] sm:$0xff] }
 0x7aa   : > { %10855 = vmatmul.mubr.f32.vlgmr.msra.gmra.mrb[42].mxu1 %v10780_v45 }
 0x7ab   : > { %15175 = vmatpush3.bf16.msra.mxu1 %v15174_v36 }
 0x7ac   : > { %15177 = vmatprep.subr.bf16.mxu1 %v15176_v25 }
 0x7af   : > { %15179 = vmatpush3.bf16.msra.mxu1 %v15178_v24 }
 0x7b0   : > { %15181 = vmatprep.subr.bf16.mxu1 %v15180_v44  ;;  %v15206_v44 = vpack.c.bf16 %v12433_v62, %v12432_v37  ;;  %v12447_v37 = vld [vmem:[%s20439_s7 + $0x278] sm:$0xff]  ;;  %v12480_v62 = vld [vmem:[%s20439_s7 + $0x380] sm:$0xff] }
 0x7b3   : > { %15183 = vmatpush3.bf16.msra.mxu1 %v15182_v3 }
 0x7b4   : > { %15185 = vmatprep.subr.bf16.mxu1 %v15184_v31 }
 0x7b7   : > { %15187 = vmatpush3.bf16.msra.mxu1 %v15186_v27 }
 0x7b8   : > { %15189 = vmatprep.subr.bf16.mxu1 %v15188_v34 }
 0x7bb   : > { %15191 = vmatpush3.bf16.msra.mxu1 %v15190_v55  ;;  %v12454_v55 = vld [vmem:[%s20439_s7 + $0x2b0] sm:$0xff] }
 0x7bc   : > { %15193 = vmatprep.subr.bf16.mxu1 %v15192_v41  ;;  %v12455_v41 = vld [vmem:[%s20439_s7 + $0x2b8] sm:$0xff] }
 0x7bd   : > { %v15216_v38 = vpack.c.bf16 %v12455_v41, %v12454_v55 }
 0x7bf   : > { %15195 = vmatpush3.bf16.msra.mxu1 %v15194_v26  ;;  %v12439_v26 = vld [vmem:[%s20439_s7 + $0x238] sm:$0xff] }
 0x7c0   : > { %15197 = vmatprep.subr.bf16.mxu1 %v15196_v54  ;;  %v12456_v54 = vld [vmem:[%s20439_s7 + $0x2c0] sm:$0xff]  ;;  %v15218_v57 = vpack.c.bf16 %v12439_v26, %v12438_v16  ;;  %v12489_v16 = vld [vmem:[%s20439_s7 + $0x3c8] sm:$0xff] }
 0x7c1   : > { %v15220_v43 = vpack.c.bf16 %v12457_v50, %v12456_v54  ;;  %v12472_v50 = vld [vmem:[%s20439_s7 + $0x340] sm:$0xff] }
 0x7c3   : > { %15199 = vmatpush3.bf16.msra.mxu1 %v15198_v12  ;;  %v12441_v12 = vld [vmem:[%s20439_s7 + $0x248] sm:$0xff] }
 0x7c4   : > { %15201 = vmatprep.subr.bf16.mxu1 %v15200_v42  ;;  %v12458_v42 = vld [vmem:[%s20439_s7 + $0x2d0] sm:$0xff]  ;;  %v15222_v2 = vpack.c.bf16 %v12441_v12, %v12440_v39  ;;  %v12491_v39 = vld [vmem:[%s20439_s7 + $0x3d8] sm:$0xff] }
 0x7c5   : > { %v15224_v4 = vpack.c.bf16 %v12459_v11, %v12458_v42  ;;  %v12474_v11 = vld [vmem:[%s20439_s7 + $0x350] sm:$0xff] }
 0x7c7   : > { %15203 = vmatpush3.bf16.msra.mxu1 %v15202_v23  ;;  %v12443_v23 = vld [vmem:[%s20439_s7 + $0x258] sm:$0xff] }
 0x7c8   : > { %15205 = vmatprep.subr.bf16.mxu1 %v15204_v53  ;;  %v12460_v53 = vld [vmem:[%s20439_s7 + $0x2e0] sm:$0xff] }
 0x807   : > { %v10606_v58 = vpop.permute.xlu0 %10605 }
 0x808   : > { %10618 = vst.msk [vmem:[#allocation4 + $0x2] sm:$0x1] %vm10617_vm4, %v10606_v58  ;;  %v12461_v58 = vld [vmem:[%s20439_s7 + $0x2e8] sm:$0xff] }
 0x809   : > { %v10608_v21 = vpop.permute.xlu1 %10607 }
 0x80a   : > { %10619 = vst.msk [vmem:[#allocation4 + $0xa] sm:$0x1] %vm10617_vm4, %v10608_v21  ;;  %v11120_v21 = vld [vmem:[#allocation4 + $0xd] ss:$2 sm:$0x3] }
 0x80b   : > { %v10610_v40 = vpop.permute.xlu0 %10609 }
 0x80c   : > { %10620 = vst.msk [vmem:[#allocation4 + $0x12] sm:$0x1] %vm10617_vm4, %v10610_v40  ;;  %v11124_v40 = vld [vmem:[#allocation4 + $0x1d] ss:$2 sm:$0x3] }
 0x80d   : > { %v10612_v18 = vpop.permute.xlu1 %10611 }
 0x80e   : > { %10621 = vst.msk [vmem:[#allocation4 + $0x1a] sm:$0x1] %vm10617_vm4, %v10612_v18  ;;  %v15226_v18 = vpack.c.bf16 %v12443_v23, %v12442_v10  ;;  %v12493_v10 = vld [vmem:[%s20439_s7 + $0x3e8] sm:$0xff] }
 0x80f   : > { %v10640_v32 = vpop.permute.xlu0 %10639  ;;  %v10672_v59 = vld [vmem:[#allocation4] ss:$2 sm:$0x3] }
 0x810   : > { %10652 = vst.msk [vmem:[#allocation4 + $0x4] sm:$0x1] %vm10617_vm4, %v10640_v32  ;;  %v11118_v32 = vld [vmem:[#allocation4 + $0x5] ss:$2 sm:$0x3] }
 0x811   : > { %v10642_v17 = vpop.permute.xlu1 %10641  ;;  %v10674_v48 = vld [vmem:[#allocation4 + $0x8] ss:$2 sm:$0x3] }
 0x812   : > { %10653 = vst.msk [vmem:[#allocation4 + $0xc] sm:$0x1] %vm10617_vm4, %v10642_v17  ;;  %v10864_v6 = vcombine.low %v10672_v59, %v10674_v48  ;;  %v15228_v17 = vpack.c.bf16 %v12461_v58, %v12460_v53  ;;  %v12444_v48 = vld [vmem:[%s20439_s7 + $0x260] sm:$0xff]  ;;  %v11122_v59 = vld [vmem:[#allocation4 + $0x15] ss:$2 sm:$0x3] }
 0x813   : > { %v10644_v35 = vpop.permute.xlu0 %10643  ;;  %v10676_v8 = vld [vmem:[#allocation4 + $0x10] ss:$2 sm:$0x3]  ;;  %v12476_v58 = vld [vmem:[%s20439_s7 + $0x360] sm:$0xff] }
 0x814   : > { %10654 = vst.msk [vmem:[#allocation4 + $0x14] sm:$0x1] %vm10617_vm4, %v10644_v35  ;;  %v10872_v15 = vrot.slane %v10864_v6, %v20092_v7  ;;  %v12445_v35 = vld [vmem:[%s20439_s7 + $0x268] sm:$0xff]  ;;  %v12462_v6 = vld [vmem:[%s20439_s7 + $0x2f0] sm:$0xff] }
 0x815   : > { %v10646_v0 = vpop.permute.xlu1 %10645  ;;  %v10678_v63 = vld [vmem:[#allocation4 + $0x18] ss:$2 sm:$0x3] }
 0x816   : > { %10655 = vst.msk [vmem:[#allocation4 + $0x1c] sm:$0x1] %vm10617_vm4, %v10646_v0  ;;  %v10865_v47 = vcombine.low %v10676_v8, %v10678_v63  ;;  %v12463_v0 = vld [vmem:[%s20439_s7 + $0x2f8] sm:$0xff]  ;;  %v11162_v8 = vcombine.low %v11118_v32, %v11120_v21  ;;  %v11163_v63 = vcombine.low %v11122_v59, %v11124_v40  ;;  %v12477_v21 = vld [vmem:[%s20439_s7 + $0x368] sm:$0xff]  ;;  %v12494_v40 = vld [vmem:[%s20439_s7 + $0x3f0] sm:$0xff] }
 0x817   : > { %v10968_v61 = vld [vmem:[#allocation4 + $0x4] ss:$2 sm:$0x3]  ;;  %v15262_v32 = vpack.c.bf16 %v12477_v21, %v12476_v58 }
 0x818   : > { %v10879_v9 = vrot.slane %v10865_v47, %v20092_v7  ;;  %v15230_v47 = vpack.c.bf16 %v12445_v35, %v12444_v48  ;;  %v12478_v48 = vld [vmem:[%s20439_s7 + $0x370] sm:$0xff]  ;;  %v12479_v35 = vld [vmem:[%s20439_s7 + $0x378] sm:$0xff] }
 0x819   : > { %v10970_v45 = vld [vmem:[#allocation4 + $0xc] ss:$2 sm:$0x3]  ;;  %v15266_v59 = vpack.c.bf16 %v12479_v35, %v12478_v48 }
 0x81a   : > { %v10881_v36 = vcombine.high %v10872_v15, %v10879_v9  ;;  %v10880_v25 = vcombine.low %v10872_v15, %v10879_v9  ;;  %v11012_v5 = vcombine.low %v10968_v61, %v10970_v45  ;;  %v15232_v15 = vpack.c.bf16 %v12463_v0, %v12462_v6  ;;  %v12446_v9 = vld [vmem:[%s20439_s7 + $0x270] sm:$0xff]  ;;  %v12481_v45 = vld [vmem:[%s20439_s7 + $0x388] sm:$0xff] }
 0x81b   : > { %v10972_v3 = vld [vmem:[#allocation4 + $0x14] ss:$2 sm:$0x3]  ;;  %v15234_v30 = vpack.c.bf16 %v12447_v37, %v12446_v9  ;;  %v15236_v61 = vpack.c.bf16 %v12481_v45, %v12480_v62 }
 0x81c   : > { %v10895_v20 = vrot.slane %v10881_v36, %v20092_v7  ;;  %v10888_v24 = vrot.slane %v10880_v25, %v20092_v7  ;;  %v20234_v27 = vrot.slane %v11012_v5, %v20092_v7  ;;  %v20315_v36 = vrot.slane %v11162_v8, %v20092_v7 }
 0x81d   : > { %v10974_v31 = vld [vmem:[#allocation4 + $0x1c] ss:$2 sm:$0x3]  ;;  %v20318_v25 = vrot.slane %v11163_v63, %v20092_v7 }
 0x81e   : > { %10962 = vmatprep.mubr.f32.mxu1 %v10895_v20  ;;  %v11013_v14 = vcombine.low %v10972_v3, %v10974_v31  ;;  %v12464_v20 = vld [vmem:[%s20439_s7 + $0x300] sm:$0xff]  ;;  %v15240_v3 = vpack.c.bf16 %v12483_v19, %v12482_v22  ;;  %v12466_v31 = vld [vmem:[%s20439_s7 + $0x310] sm:$0xff] }
 0x81f   : > { %10963 = vmatmul.mubr.f32.vlgmr.msra.gmra.mrb[44].mxu1 %v10888_v24  ;;  %v12465_v24 = vld [vmem:[%s20439_s7 + $0x308] sm:$0xff]  ;;  %v11178_v6 = vcombine.low %v20315_v36, %v20318_v25 }
 0x820   : > { %15207 = vmatpush3.bf16.msra.mxu1 %v15206_v44  ;;  %v20237_v34 = vrot.slane %v11013_v14, %v20092_v7  ;;  %v11179_v44 = vcombine.high %v20315_v36, %v20318_v25  ;;  %v15238_v5 = vpack.c.bf16 %v12465_v24, %v12464_v20  ;;  %v12484_v14 = vld [vmem:[%s20439_s7 + $0x3a0] sm:$0xff] }
 0x821   : > { %15209 = vmatprep.subr.bf16.mxu1 %v15208_v49  ;;  %v11186_v0 = vrot.slane %v11178_v6, %v20092_v7  ;;  %v12496_v36 = vld [vmem:[%s20440_s8] ss:$0 sm:$0xff] }
 0x822   : > { %v11029_v33 = vcombine.high %v20234_v27, %v20237_v34  ;;  %v11028_v56 = vcombine.low %v20234_v27, %v20237_v34  ;;  %v11193_v60 = vrot.slane %v11179_v44, %v20092_v7  ;;  %v15242_v27 = vpack.c.bf16 %v12467_v46, %v12466_v31 }
 0x824   : > { %15211 = vmatpush3.bf16.msra.mxu1 %v15210_v28  ;;  %v11043_v1 = vrot.slane %v11029_v33, %v20092_v7  ;;  %v11036_v49 = vrot.slane %v11028_v56, %v20092_v7  ;;  %v12485_v28 = vld [vmem:[%s20439_s7 + $0x3a8] sm:$0xff]  ;;  %v12487_v33 = vld [vmem:[%s20439_s7 + $0x3b8] sm:$0xff] }
 0x825   : > { %15213 = vmatprep.subr.bf16.mxu1 %v15212_v51  ;;  %v15244_v34 = vpack.c.bf16 %v12485_v28, %v12484_v14  ;;  %v12468_v51 = vld [vmem:[%s20439_s7 + $0x320] sm:$0xff]  ;;  %v15248_v41 = vpack.c.bf16 %v12487_v33, %v12486_v29 }
 0x826   : > { %11110 = vmatprep.mubr.f32.mxu1 %v11043_v1  ;;  %v15246_v55 = vpack.c.bf16 %v12469_v13, %v12468_v51  ;;  %v12470_v1 = vld [vmem:[%s20439_s7 + $0x330] sm:$0xff]  ;;  %v11288_v28 = vld [vmem:[%s20441_s9] sm:$0x1]  ;;  %v11295_v13 = vstv %s11294_s13 }
 0x828   : > { %15215 = vmatpush3.bf16.msra.mxu1 %v15214_v52  ;;  %v12471_v52 = vld [vmem:[%s20439_s7 + $0x338] sm:$0xff] }
 0x829   : > { %15217 = vmatprep.subr.bf16.mxu1 %v15216_v38  ;;  %v12488_v38 = vld [vmem:[%s20439_s7 + $0x3c0] sm:$0xff]  ;;  %v15250_v26 = vpack.c.bf16 %v12471_v52, %v12470_v1 }
 0x82a   : > { %v15252_v54 = vpack.c.bf16 %v12489_v16, %v12488_v38 }
 0x82c   : > { %15219 = vmatpush3.bf16.msra.mxu1 %v15218_v57  ;;  %v12473_v57 = vld [vmem:[%s20439_s7 + $0x348] sm:$0xff] }
 0x82d   : > { %15221 = vmatprep.subr.bf16.mxu1 %v15220_v43  ;;  %v12490_v43 = vld [vmem:[%s20439_s7 + $0x3d0] sm:$0xff]  ;;  %v15254_v12 = vpack.c.bf16 %v12473_v57, %v12472_v50 }
 0x82e   : > { %v15256_v42 = vpack.c.bf16 %v12491_v39, %v12490_v43 }
 0x830   : > { %15223 = vmatpush3.bf16.msra.mxu1 %v15222_v2  ;;  %v12475_v2 = vld [vmem:[%s20439_s7 + $0x358] sm:$0xff] }
 0x831   : > { %15225 = vmatprep.subr.bf16.mxu1 %v15224_v4  ;;  %v12492_v4 = vld [vmem:[%s20439_s7 + $0x3e0] sm:$0xff]  ;;  %v15258_v23 = vpack.c.bf16 %v12475_v2, %v12474_v11 }
 0x832   : > { %v15260_v53 = vpack.c.bf16 %v12493_v10, %v12492_v4 }
 0x834   : > { %15227 = vmatpush3.bf16.msra.mxu1 %v15226_v18  ;;  %v12495_v18 = vld [vmem:[%s20439_s7 + $0x3f8] sm:$0xff] }
 0x835   : > { %15229 = vmatprep.subr.bf16.mxu1 %v15228_v17  ;;  %v15264_v17 = vpack.c.bf16 %v12495_v18, %v12494_v40 }
 0x838   : > { %15231 = vmatpush3.bf16.msra.mxu1 %v15230_v47 }
 0x839   : > { %15233 = vmatprep.subr.bf16.mxu1 %v15232_v15 }
 0x83c   : > { %15235 = vmatpush3.bf16.msra.mxu1 %v15234_v30 }
 0x83d   : > { %15237 = vmatprep.subr.bf16.mxu1 %v15236_v61 }
 0x83f   : > { %11111 = vmatmul.mubr.f32.vlgmr.msra.gmra.mrb[46].mxu1 %v11036_v49 }
 0x840   : > { %15239 = vmatpush3.bf16.msra.mxu1 %v15238_v5  ;;  %11260 = vmatprep.mubr.f32.mxu1 %v11193_v60 }
 0x841   : > { %15241 = vmatprep.subr.bf16.mxu1 %v15240_v3 }
 0x844   : > { %15243 = vmatpush3.bf16.msra.mxu1 %v15242_v27 }
 0x845   : > { %15245 = vmatprep.subr.bf16.mxu1 %v15244_v34 }
 0x848   : > { %15247 = vmatpush3.bf16.msra.mxu1 %v15246_v55 }
 0x849   : > { %15249 = vmatprep.subr.bf16.mxu1 %v15248_v41 }
 0x84c   : > { %15251 = vmatpush3.bf16.msra.mxu1 %v15250_v26 }
 0x84d   : > { %15253 = vmatprep.subr.bf16.mxu1 %v15252_v54 }
 0x850   : > { %15255 = vmatpush3.bf16.msra.mxu1 %v15254_v12 }
 0x851   : > { %15257 = vmatprep.subr.bf16.mxu1 %v15256_v42 }
 0x854   : > { %15259 = vmatpush3.bf16.msra.mxu1 %v15258_v23 }
 0x855   : > { %15261 = vmatprep.subr.bf16.mxu1 %v15260_v53 }
 0x858   : > { %15263 = vmatpush3.bf16.msra.mxu1 %v15262_v32 }
 0x859   : > { %15265 = vmatprep.subr.bf16.mxu1 %v15264_v17 }
 0x85c   : > { %15267 = vmatpush3.bf16.msra.mxu1 %v15266_v59 }
 0x85f   : > { %11261 = vmatmul.mubr.f32.vlgmr.msra.gmra.mrb[48].mxu1 %v11186_v0 }
 0x87d   : > { %v13276_v8 = vpop.f32.mrb[42].mxu1 }
 0x87e   : > { %v13277_v63 = vpop.f32.mrb[43].mxu1 }
 0x87f   : > { %v13278_v47 = vadd.f32 %v13277_v63, %v13276_v8 }
 0x8f2   : > { %v13311_v15 = vpop.f32.mrb[44].mxu1 }
 0x8f3   : > { %v13312_v9 = vpop.f32.mrb[45].mxu1 }
 0x8f4   : > { %v13313_v37 = vadd.f32 %v13312_v9, %v13311_v15 }
 0x8f6   : > { %v10965_v62 = vadd.f32 %v13313_v37, %v13278_v47 }
 0x912   : > { %v13346_v45 = vpop.f32.mrb[46].mxu1 }
 0x913   : > { %v13347_v30 = vpop.f32.mrb[47].mxu1 }
 0x914   : > { %v13348_v56 = vadd.f32 %v13347_v30, %v13346_v45 }
 0x916   : > { %v11116_v61 = vadd.f32 %v13348_v56, %v10965_v62 }
 0x932   : > { %v13381_v20 = vpop.f32.mrb[48].mxu1 }
 0x933   : > { %v13382_v24 = vpop.f32.mrb[49].mxu1 }
 0x934   : > { %v13383_v44 = vadd.f32 %v13382_v24, %v13381_v20 }
 0x936   : > { %v11266_v7 = vadd.f32 %v13383_v44, %v11116_v61 }
 0x938   : > { %v11274_v25 = vadd.f32 %v12496_v36, %v11266_v7 }
 0x93a   : > { %vm11275_vm9 = vcmp.ge.f32.partialorder %v11274_v25, 0.0  ;;  %v11276_v22 = vmul.f32 0.2, %v11274_v25 }
 0x93c   : > { %v11277_v19 = vsel %vm11275_vm9, %v11274_v25, %v11276_v22 }
 0x93d   : > { %v11279_v5 = vsel %vm11278_vm0, %v11277_v19, 0.0 }
 0x93e   : > { %v11280_v49 = vrot.slane %v11279_v5, 4 }
 0x940   : > { %v11281_v3 = vadd.f32 %v11280_v49, %v11279_v5 }
 0x942   : > { %v11282_v31 = vrot.slane %v11281_v3, 2 }
 0x944   : > { %v11283_v46 = vadd.f32 %v11282_v31, %v11281_v3 }
 0x946   : > { %v11284_v60 = vrot.slane %v11283_v46, 1 }
 0x948   : > { %v11285_v14 = vadd.f32 %v11284_v60, %v11283_v46 }
 0x94a   : > { %v11287_v27 = vmul.f32 0.25, %v11285_v14 }
 0x94c   : > { %v11289_v34 = vmul.f32 %v11288_v28, %v11287_v27 }
 0x94e   : > { %v11291_v51 = vsel %vm11290_vm10, %v11289_v34, 0.0 }
 0x94f   : > { %11292 = vadd.xlane.f32.xlu0 %v11291_v51 }
 0x9dc   : > { %v11293_v29 = vpop.xlane.xlu0 %11292 }
 0x9dd   : > { %v11296_v33 = vadd.f32 %v11295_v13, %v11293_v29 }
 0x9df   : > { %v12497_v55 = vmul.f32 -1.442695, %v11296_v33 }
 0x9e1   : > { %15851 = vpow2.f32 %v12497_v55 }
 0x9eb   : > { %v15852_v41 = vpop.eup %15851 }
 0x9ec   : > { %v11300_v1 = vadd.f32 1.0, %v15852_v41 }
 0x9ee   : > { %15853 = vrcp.f32 %v11300_v1 }
 0x9f8   : > { %v15854_v52 = vpop.eup %15853 }
 0x9f9   : > { %11304 = vst.msk [vmem:[%s383_s16] sm:$0x1] %vm11303_vm6, %v15854_v52 }
 0x9fa PF: > { %s22_s19 = sadd.s32 1, %s15878_s19  }
 0x9fb   : > { %p19_p4 = scmp.ge.s32.totalorder %s22_s19, 4  }
 0x9fd   :  { %21 = sbr.rel (!%p19_p4) target bundleno = 2 (0x2), region = 148 }

</bundles_post_ra>
